<compile_context>
chip_gen: v5e
topology: v5e:2x2
jax: 0.10.0
libtpu: 0.0.40
codegen_flags: <defaults>
</compile_context>

<pallas_src>
import functools

import jax
import jax.numpy as jnp
from jax import lax
from jax.experimental import pallas as pl
from jax.experimental.pallas import tpu as pltpu

HIDDEN = 256
EMB_DIM = 10
NUM_LABELS = 3


def _default_gate_dtype():
    """bf16 gate transcendentals on chips with a bf16 EUP/VPU (v6e, v7x);
    f32 on v5e and older (no bf16 vector path there)."""
    try:
        kind = jax.devices()[0].device_kind.lower()
    except Exception:
        kind = ""
    if any(t in kind for t in ("v2", "v3", "v4", "v5")):
        return jnp.float32
    return jnp.bfloat16


def _choose_block_b(B):
    """2 tiles for small batches (feeds both TensorCores on megacore chips,
    costs one ~0.35us extra grid step on single-core chips); ~2048-row tiles
    for large batches. Tile rows are kept a multiple of 8 (sublane tiling)."""
    b8 = pl.cdiv(B, 8) * 8
    if b8 <= 16:
        return b8
    n_tiles = 2 if b8 <= 4096 else pl.cdiv(b8, 2048)
    return pl.cdiv(pl.cdiv(b8, n_tiles), 8) * 8


def discriminator_kernel(labels_ref, returns_ref, w0r_ref, w0emb_ref, b0_ref,
                         w1_ref, b1_ref, wfc_ref, bfc_ref, out_ref,
                         *, gate_dtype):
    H = HIDDEN
    bt = returns_ref.shape[0]

    # ---- label embedding folded onto the MXU --------------------------------
    # one_hot(label) @ (emb_table @ W0_emb) replaces the old (Bt, 3H) VPU select.
    lab = labels_ref[...]                                             # (Bt, 1) i32
    iota = lax.broadcasted_iota(jnp.int32, (bt, NUM_LABELS), 1)       # (Bt, 3)
    onehot = jnp.where(lab == iota, 1.0, 0.0).astype(jnp.bfloat16)    # (Bt, 3)

    x = returns_ref[...].astype(jnp.bfloat16)                         # (Bt, D)

    def lstm_cell(pre):
        # pre holds (i, g, o) pre-activations. The sigmoid 0.5 pre-scale is
        # baked into the i/o weight+bias columns, so sigmoid == 0.5*tanh(.)+0.5.
        g = pre.astype(gate_dtype)
        i = 0.5 * jnp.tanh(g[:, 0:H]) + 0.5
        gg = jnp.tanh(g[:, H:2 * H])
        o = 0.5 * jnp.tanh(g[:, 2 * H:3 * H]) + 0.5
        # c0 == 0 -> f-gate dead, c1 = i * g
        return (o * jnp.tanh(i * gg)).astype(jnp.float32)

    # ---- LSTM layer 0 (single step, zero state); bf16 MXU, f32 accumulate ----
    gates0 = (jnp.dot(x, w0r_ref[...], preferred_element_type=jnp.float32)
              + jnp.dot(onehot, w0emb_ref[...],
                        preferred_element_type=jnp.float32)
              + b0_ref[...])                                          # f32 bias
    h1 = lstm_cell(gates0)                                            # (Bt, H)

    # ---- LSTM layer 1 --------------------------------------------------------
    gates1 = (jnp.dot(h1.astype(jnp.bfloat16), w1_ref[...],
                      preferred_element_type=jnp.float32) + b1_ref[...])
    h2 = lstm_cell(gates1)                                            # (Bt, H)

    # ---- Linear(256 -> 1): VPU multiply + lane reduce (no zero-padded MXU
    #      pass), producing the (Bt, 1) result directly -> 128x smaller store.
    out_ref[...] = (jnp.sum(h2 * wfc_ref[...], axis=-1, keepdims=True)
                    + bfc_ref[...])                                   # (Bt, 1)


@functools.partial(jax.jit, static_argnames=("block_b", "gate_dtype"))
def discriminator_forward(returns, labels, p, block_b=None, gate_dtype=None):
    """returns: (B, D) f32, labels: (B,) int -> (B, 1) f32."""
    B, D = returns.shape
    if block_b is None:
        block_b = _choose_block_b(B)
    if gate_dtype is None:
        gate_dtype = _default_gate_dtype()

    nb = pl.cdiv(B, block_b)
    b_pad = nb * block_b
    if b_pad != B:                                   # pad batch to a tile multiple
        returns = jnp.pad(returns, ((0, b_pad - B), (0, 0)))
        labels = jnp.pad(labels, (0, b_pad - B))
    labels2d = labels.astype(jnp.int32)[:, None]     # (B_pad, 1)

    G3 = 3 * HIDDEN
    batch_block = lambda w: pl.BlockSpec((block_b, w), lambda i: (i, 0))
    resident = lambda shape: pl.BlockSpec(shape, lambda i: (0, 0))  # DMA'd once

    out = pl.pallas_call(
        functools.partial(discriminator_kernel, gate_dtype=gate_dtype),
        out_shape=jax.ShapeDtypeStruct((b_pad, 1), jnp.float32),
        grid_spec=pltpu.PrefetchScalarGridSpec(
            num_scalar_prefetch=0,
            grid=(nb,),
            in_specs=[
                batch_block(1),                      # labels      (Bt, 1) i32
                batch_block(D),                      # returns     (Bt, D) f32
                resident((D, G3)),                   # w0 (returns cols) bf16
                resident((NUM_LABELS, G3)),          # emb @ W0_emb      bf16
                resident((1, G3)),                   # b0                f32
                resident((HIDDEN, G3)),              # w1                bf16
                resident((1, G3)),                   # b1                f32
                resident((1, HIDDEN)),               # fc weight row     f32
                resident((1, 1)),                    # fc bias           f32
            ],
            out_specs=pl.BlockSpec((block_b, 1), lambda i: (i, 0)),
        ),
        # Batch tiles are independent -> shard across both TensorCores (v7x).
        compiler_params=pltpu.CompilerParams(
            dimension_semantics=("parallel",)),
    )(labels2d, returns, p["w0r"], p["w0_emb"], p["b0"],
      p["w1"], p["b1"], p["wfc"], p["bfc"])
    return out[:B]


# --------------------------------------------------------------------------
# Parameter construction / conversion (torch layout -> kernel layout)
# --------------------------------------------------------------------------
def make_raw_params(key, input_size):
    """Synthetic params in native torch.nn layout (LSTM gate order i, f, g, o)."""
    H = HIDDEN
    ks = jax.random.split(key, 11)
    s = 1.0 / jnp.sqrt(jnp.float32(H))
    u = lambda k, shape: jax.random.uniform(k, shape, jnp.float32, -s, s)
    return dict(
        emb=jax.random.normal(ks[0], (NUM_LABELS, EMB_DIM), jnp.float32) * 0.1,
        w_ih_l0=u(ks[1], (4 * H, input_size)),
        w_hh_l0=u(ks[2], (4 * H, H)),        # multiplies h0 == 0 -> unused
        b_ih_l0=u(ks[3], (4 * H,)),
        b_hh_l0=u(ks[4], (4 * H,)),
        w_ih_l1=u(ks[5], (4 * H, H)),
        w_hh_l1=u(ks[6], (4 * H, H)),        # multiplies h0 == 0 -> unused
        b_ih_l1=u(ks[7], (4 * H,)),
        b_hh_l1=u(ks[8], (4 * H,)),
        fc_w=u(ks[9], (1, H)),
        fc_b=u(ks[10], (1,)),
    )


def prepare_params(raw):
    """Torch layout -> kernel layout.

    * transpose (4H, in) -> (in, 4H) and fold b_ih + b_hh into one bias
    * drop the dead f-gate columns (c0 == 0); keep (i, g, o) -> width 3H
    * fold the embedding into a per-label MXU table: w0_emb = emb @ W0_emb  (3, 3H)
      selected in-kernel by a one-hot matmul; layer-0 bias stays a separate f32 add
    * bake sigmoid's 0.5 pre-scale into the i/o gate columns (weights + biases)
    * bf16 matmul weights (f32 accumulation in-kernel), f32 biases
    * fc head kept as a (1, 256) f32 row (VPU multiply + lane reduce in-kernel)
    """
    H = HIDDEN

    def igo_w(w):                            # (4H, in) -> (in, 3H)
        return jnp.concatenate(
            [w[0:H], w[2 * H:3 * H], w[3 * H:4 * H]], axis=0).T

    def igo_b(b_ih, b_hh):                   # -> (1, 3H)
        b = b_ih + b_hh
        return jnp.concatenate(
            [b[0:H], b[2 * H:3 * H], b[3 * H:4 * H]])[None, :]

    def prescale_io(a):                      # bake sigmoid 0.5 into i/o columns
        return a.at[:, 0:H].multiply(0.5).at[:, 2 * H:3 * H].multiply(0.5)

    w0 = igo_w(raw["w_ih_l0"])                       # (input_size, 3H)
    b0 = igo_b(raw["b_ih_l0"], raw["b_hh_l0"])       # (1, 3H)
    w0_ret, w0_emb_cols = w0[:-EMB_DIM], w0[-EMB_DIM:]
    emb_rows = raw["emb"] @ w0_emb_cols              # (3, 3H) per-label MXU rows

    return dict(
        w0r=prescale_io(w0_ret).astype(jnp.bfloat16),       # (D, 3H)
        w0_emb=prescale_io(emb_rows).astype(jnp.bfloat16),   # (3, 3H)
        b0=prescale_io(b0).astype(jnp.float32),              # (1, 3H)
        w1=prescale_io(igo_w(raw["w_ih_l1"])).astype(jnp.bfloat16),
        b1=prescale_io(igo_b(raw["b_ih_l1"], raw["b_hh_l1"])).astype(jnp.float32),
        wfc=raw["fc_w"].astype(jnp.float32),                 # (1, H)
        bfc=raw["fc_b"].reshape(1, 1).astype(jnp.float32),   # (1, 1)
    )


# --------------------------------------------------------------------------
# References
# --------------------------------------------------------------------------
def reference_prepared(returns, labels, p, gate_dtype=jnp.float32):
    """Pure-JAX mirror of the kernel math (same bf16 quantization / gate dtype)."""
    H = HIDDEN
    onehot = jax.nn.one_hot(labels, NUM_LABELS, dtype=jnp.bfloat16)
    x = returns.astype(jnp.bfloat16)

    def cell(pre):
        g = pre.astype(gate_dtype)
        i = 0.5 * jnp.tanh(g[:, 0:H]) + 0.5
        gg = jnp.tanh(g[:, H:2 * H])
        o = 0.5 * jnp.tanh(g[:, 2 * H:3 * H]) + 0.5
        return (o * jnp.tanh(i * gg)).astype(jnp.float32)

    g0 = (jnp.dot(x, p["w0r"], preferred_element_type=jnp.float32)
          + jnp.dot(onehot, p["w0_emb"], preferred_element_type=jnp.float32)
          + p["b0"])
    h1 = cell(g0)
    g1 = (jnp.dot(h1.astype(jnp.bfloat16), p["w1"],
                  preferred_element_type=jnp.float32) + p["b1"])
    h2 = cell(g1)
    return jnp.sum(h2 * p["wfc"], axis=-1, keepdims=True) + p["bfc"]


def reference_full(returns, labels, raw):
    """Full-precision torch.nn semantics (all 4 gates, seq_len=1, zero state)."""
    H = HIDDEN
    x = jnp.concatenate([returns, raw["emb"][labels]], axis=-1)

    def step(h_in, w_ih, b_ih, b_hh):
        g = h_in @ w_ih.T + b_ih + b_hh      # + W_hh @ h0 == 0
        i = jax.nn.sigmoid(g[:, 0:H])
        gg = jnp.tanh(g[:, 2 * H:3 * H])
        o = jax.nn.sigmoid(g[:, 3 * H:4 * H])
        c = i * gg                           # f-gate * c0 == 0
        return o * jnp.tanh(c)

    h1 = step(x, raw["w_ih_l0"], raw["b_ih_l0"], raw["b_hh_l0"])
    h2 = step(h1, raw["w_ih_l1"], raw["b_ih_l1"], raw["b_hh_l1"])
    return h2 @ raw["fc_w"].T + raw["fc_b"][None, :]


if __name__ == "__main__":
    B = 300                      # deliberately not a multiple of the batch tile
    D = 22                       # returns feature dim
    INPUT_SIZE = D + EMB_DIM     # == input_shape[0] == 32

    key = jax.random.PRNGKey(0)
    k_ret, k_lab, k_par = jax.random.split(key, 3)

    returns = jax.random.normal(k_ret, (B, D), jnp.float32)
    labels = jax.random.randint(k_lab, (B,), 0, NUM_LABELS, jnp.int32)

    raw = make_raw_params(k_par, INPUT_SIZE)
    params = prepare_params(raw)

    out = discriminator_forward(returns, labels, params)
    out = jax.block_until_ready(out)
    assert out.shape == (B, 1)

    gate_dtype = _default_gate_dtype()
    ref_q = reference_prepared(returns, labels, params, gate_dtype)  # same quantization
    ref_f = reference_full(returns, labels, raw)                     # full f32, all gates
    tol_q = 1e-4 if gate_dtype is jnp.float32 else 5e-3
    assert jnp.allclose(out, ref_q, atol=tol_q, rtol=tol_q), "mismatch vs quantized reference"
    assert jnp.allclose(out, ref_f, atol=1e-2, rtol=1e-2), "mismatch vs full-precision reference"

    print("KERNEL_OK")
</pallas_src>

<mosaic_0001>
module attributes {stable_mosaic.version = 11 : i64} {
  func.func @discriminator_kernel(%arg0: i32, %arg1: memref<152x1xi32, #tpu.memory_space<vmem>>, %arg2: memref<152x22xf32, #tpu.memory_space<vmem>>, %arg3: memref<22x768xbf16, #tpu.memory_space<vmem>>, %arg4: memref<3x768xbf16, #tpu.memory_space<vmem>>, %arg5: memref<1x768xf32, #tpu.memory_space<vmem>>, %arg6: memref<256x768xbf16, #tpu.memory_space<vmem>>, %arg7: memref<1x768xf32, #tpu.memory_space<vmem>>, %arg8: memref<1x256xf32, #tpu.memory_space<vmem>>, %arg9: memref<1x1xf32, #tpu.memory_space<vmem>>, %arg10: memref<152x1xf32, #tpu.memory_space<vmem>>) attributes {dimension_semantics = [#tpu.dimension_semantics<parallel>], iteration_bounds = array<i64: 2>, scalar_prefetch = 0 : i64, scratch_operands = 0 : i64, tpu.core_type = #tpu.core_type<tc>, window_params = [{transform_indices = @transform_0, window_bounds = array<i64: 152, 1>}, {transform_indices = @transform_1, window_bounds = array<i64: 152, 22>}, {pipeline_mode = #tpu.pipeline_mode<synchronous>, transform_indices = @transform_2, window_bounds = array<i64: 22, 768>}, {pipeline_mode = #tpu.pipeline_mode<synchronous>, transform_indices = @transform_3, window_bounds = array<i64: 3, 768>}, {pipeline_mode = #tpu.pipeline_mode<synchronous>, transform_indices = @transform_4, window_bounds = array<i64: 1, 768>}, {pipeline_mode = #tpu.pipeline_mode<synchronous>, transform_indices = @transform_5, window_bounds = array<i64: 256, 768>}, {pipeline_mode = #tpu.pipeline_mode<synchronous>, transform_indices = @transform_6, window_bounds = array<i64: 1, 768>}, {pipeline_mode = #tpu.pipeline_mode<synchronous>, transform_indices = @transform_7, window_bounds = array<i64: 1, 256>}, {pipeline_mode = #tpu.pipeline_mode<synchronous>, transform_indices = @transform_8, window_bounds = array<i64: 1, 1>}, {transform_indices = @transform_9, window_bounds = array<i64: 152, 1>}]} {
    %c0 = arith.constant 0 : index
    %c0_0 = arith.constant 0 : index
    %0 = vector.load %arg1[%c0, %c0_0] : memref<152x1xi32, #tpu.memory_space<vmem>>, vector<152x1xi32>
    %1 = tpu.iota {dimensions = array<i32: 1>} : vector<152x3xi32>
    %2 = vector.broadcast %0 : vector<152x1xi32> to vector<152x3xi32>
    %3 = arith.cmpi eq, %2, %1 : vector<152x3xi32>
    %cst = arith.constant 1.000000e+00 : f32
    %cst_1 = arith.constant 0.000000e+00 : f32
    %4 = vector.broadcast %cst : f32 to vector<152x3xf32>
    %5 = vector.broadcast %cst_1 : f32 to vector<152x3xf32>
    %6 = arith.select %3, %4, %5 : vector<152x3xi1>, vector<152x3xf32>
    %7 = arith.truncf %6 : vector<152x3xf32> to vector<152x3xbf16>
    %c0_2 = arith.constant 0 : index
    %c0_3 = arith.constant 0 : index
    %8 = vector.load %arg2[%c0_2, %c0_3] : memref<152x22xf32, #tpu.memory_space<vmem>>, vector<152x22xf32>
    %9 = arith.truncf %8 : vector<152x22xf32> to vector<152x22xbf16>
    %c0_4 = arith.constant 0 : index
    %c0_5 = arith.constant 0 : index
    %10 = vector.load %arg3[%c0_4, %c0_5] : memref<22x768xbf16, #tpu.memory_space<vmem>>, vector<22x768xbf16>
    %cst_6 = arith.constant dense<0.000000e+00> : vector<152x768xf32>
    %11 = tpu.matmul %9, %10, %cst_6 {dimension_numbers = #tpu.dot_dimension_numbers<[1], [0], [0], [1], [0, 0, 1, 1], [], []>} : vector<152x22xbf16>, vector<22x768xbf16>, vector<152x768xf32> -> vector<152x768xf32>
    %c0_7 = arith.constant 0 : index
    %c0_8 = arith.constant 0 : index
    %12 = vector.load %arg4[%c0_7, %c0_8] : memref<3x768xbf16, #tpu.memory_space<vmem>>, vector<3x768xbf16>
    %cst_9 = arith.constant dense<0.000000e+00> : vector<152x768xf32>
    %13 = tpu.matmul %7, %12, %cst_9 {dimension_numbers = #tpu.dot_dimension_numbers<[1], [0], [0], [1], [0, 0, 1, 1], [], []>} : vector<152x3xbf16>, vector<3x768xbf16>, vector<152x768xf32> -> vector<152x768xf32>
    %14 = arith.addf %11, %13 : vector<152x768xf32>
    %c0_10 = arith.constant 0 : index
    %c0_11 = arith.constant 0 : index
    %15 = vector.load %arg5[%c0_10, %c0_11] : memref<1x768xf32, #tpu.memory_space<vmem>>, vector<1x768xf32>
    %16 = vector.broadcast %15 : vector<1x768xf32> to vector<152x768xf32>
    %17 = arith.addf %14, %16 : vector<152x768xf32>
    %18 = arith.truncf %17 : vector<152x768xf32> to vector<152x768xbf16>
    %19 = vector.extract_strided_slice %18 {offsets = [0, 0], sizes = [152, 256], strides = [1, 1]} : vector<152x768xbf16> to vector<152x256xbf16>
    %20 = math.tanh %19 : vector<152x256xbf16>
    %cst_12 = arith.constant 5.000000e-01 : bf16
    %21 = vector.broadcast %cst_12 : bf16 to vector<152x256xbf16>
    %22 = arith.mulf %21, %20 : vector<152x256xbf16>
    %cst_13 = arith.constant 5.000000e-01 : bf16
    %23 = vector.broadcast %cst_13 : bf16 to vector<152x256xbf16>
    %24 = arith.addf %22, %23 : vector<152x256xbf16>
    %25 = vector.extract_strided_slice %18 {offsets = [0, 256], sizes = [152, 256], strides = [1, 1]} : vector<152x768xbf16> to vector<152x256xbf16>
    %26 = math.tanh %25 : vector<152x256xbf16>
    %27 = vector.extract_strided_slice %18 {offsets = [0, 512], sizes = [152, 256], strides = [1, 1]} : vector<152x768xbf16> to vector<152x256xbf16>
    %28 = math.tanh %27 : vector<152x256xbf16>
    %cst_14 = arith.constant 5.000000e-01 : bf16
    %29 = vector.broadcast %cst_14 : bf16 to vector<152x256xbf16>
    %30 = arith.mulf %29, %28 : vector<152x256xbf16>
    %cst_15 = arith.constant 5.000000e-01 : bf16
    %31 = vector.broadcast %cst_15 : bf16 to vector<152x256xbf16>
    %32 = arith.addf %30, %31 : vector<152x256xbf16>
    %33 = arith.mulf %24, %26 : vector<152x256xbf16>
    %34 = math.tanh %33 : vector<152x256xbf16>
    %35 = arith.mulf %32, %34 : vector<152x256xbf16>
    %36 = arith.extf %35 : vector<152x256xbf16> to vector<152x256xf32>
    %37 = arith.truncf %36 : vector<152x256xf32> to vector<152x256xbf16>
    %c0_16 = arith.constant 0 : index
    %c0_17 = arith.constant 0 : index
    %38 = vector.load %arg6[%c0_16, %c0_17] : memref<256x768xbf16, #tpu.memory_space<vmem>>, vector<256x768xbf16>
    %cst_18 = arith.constant dense<0.000000e+00> : vector<152x768xf32>
    %39 = tpu.matmul %37, %38, %cst_18 {dimension_numbers = #tpu.dot_dimension_numbers<[1], [0], [0], [1], [0, 0, 1, 1], [], []>} : vector<152x256xbf16>, vector<256x768xbf16>, vector<152x768xf32> -> vector<152x768xf32>
    %c0_19 = arith.constant 0 : index
    %c0_20 = arith.constant 0 : index
    %40 = vector.load %arg7[%c0_19, %c0_20] : memref<1x768xf32, #tpu.memory_space<vmem>>, vector<1x768xf32>
    %41 = vector.broadcast %40 : vector<1x768xf32> to vector<152x768xf32>
    %42 = arith.addf %39, %41 : vector<152x768xf32>
    %43 = arith.truncf %42 : vector<152x768xf32> to vector<152x768xbf16>
    %44 = vector.extract_strided_slice %43 {offsets = [0, 0], sizes = [152, 256], strides = [1, 1]} : vector<152x768xbf16> to vector<152x256xbf16>
    %45 = math.tanh %44 : vector<152x256xbf16>
    %cst_21 = arith.constant 5.000000e-01 : bf16
    %46 = vector.broadcast %cst_21 : bf16 to vector<152x256xbf16>
    %47 = arith.mulf %46, %45 : vector<152x256xbf16>
    %cst_22 = arith.constant 5.000000e-01 : bf16
    %48 = vector.broadcast %cst_22 : bf16 to vector<152x256xbf16>
    %49 = arith.addf %47, %48 : vector<152x256xbf16>
    %50 = vector.extract_strided_slice %43 {offsets = [0, 256], sizes = [152, 256], strides = [1, 1]} : vector<152x768xbf16> to vector<152x256xbf16>
    %51 = math.tanh %50 : vector<152x256xbf16>
    %52 = vector.extract_strided_slice %43 {offsets = [0, 512], sizes = [152, 256], strides = [1, 1]} : vector<152x768xbf16> to vector<152x256xbf16>
    %53 = math.tanh %52 : vector<152x256xbf16>
    %cst_23 = arith.constant 5.000000e-01 : bf16
    %54 = vector.broadcast %cst_23 : bf16 to vector<152x256xbf16>
    %55 = arith.mulf %54, %53 : vector<152x256xbf16>
    %cst_24 = arith.constant 5.000000e-01 : bf16
    %56 = vector.broadcast %cst_24 : bf16 to vector<152x256xbf16>
    %57 = arith.addf %55, %56 : vector<152x256xbf16>
    %58 = arith.mulf %49, %51 : vector<152x256xbf16>
    %59 = math.tanh %58 : vector<152x256xbf16>
    %60 = arith.mulf %57, %59 : vector<152x256xbf16>
    %61 = arith.extf %60 : vector<152x256xbf16> to vector<152x256xf32>
    %c0_25 = arith.constant 0 : index
    %c0_26 = arith.constant 0 : index
    %62 = vector.load %arg8[%c0_25, %c0_26] : memref<1x256xf32, #tpu.memory_space<vmem>>, vector<1x256xf32>
    %63 = vector.broadcast %62 : vector<1x256xf32> to vector<152x256xf32>
    %64 = arith.mulf %61, %63 : vector<152x256xf32>
    %cst_27 = arith.constant dense<0.000000e+00> : vector<152xf32>
    %65 = vector.multi_reduction <add>, %64, %cst_27 [1] : vector<152x256xf32> to vector<152xf32>
    %66 = vector.shape_cast %65 : vector<152xf32> to vector<152x1xf32>
    %c0_28 = arith.constant 0 : index
    %c0_29 = arith.constant 0 : index
    %67 = vector.load %arg9[%c0_28, %c0_29] : memref<1x1xf32, #tpu.memory_space<vmem>>, vector<1x1xf32>
    %68 = vector.broadcast %67 : vector<1x1xf32> to vector<152x1xf32>
    %69 = arith.addf %66, %68 : vector<152x1xf32>
    %c0_30 = arith.constant 0 : index
    %c0_31 = arith.constant 0 : index
    %70 = vector.load %arg10[%c0_30, %c0_31] : memref<152x1xf32, #tpu.memory_space<vmem>>, vector<152x1xf32>
    tpu.vector_store %arg10[%c0_30, %c0_31], %69 {strides = array<i32>} : memref<152x1xf32, #tpu.memory_space<vmem>>, vector<152x1xf32>,
    return
  }
  func.func @transform_0(%arg0: i32) -> (i32, i32) {
    %c0_i32 = arith.constant 0 : i32
    %c0_i32_0 = arith.constant 0 : i32
    return %arg0, %c0_i32 : i32, i32
  }
  func.func @transform_1(%arg0: i32) -> (i32, i32) {
    %c0_i32 = arith.constant 0 : i32
    %c0_i32_0 = arith.constant 0 : i32
    return %arg0, %c0_i32 : i32, i32
  }
  func.func @transform_2(%arg0: i32) -> (i32, i32) {
    %c0_i32 = arith.constant 0 : i32
    %c0_i32_0 = arith.constant 0 : i32
    %c0_i32_1 = arith.constant 0 : i32
    return %c0_i32, %c0_i32_0 : i32, i32
  }
  func.func @transform_3(%arg0: i32) -> (i32, i32) {
    %c0_i32 = arith.constant 0 : i32
    %c0_i32_0 = arith.constant 0 : i32
    %c0_i32_1 = arith.constant 0 : i32
    return %c0_i32, %c0_i32_0 : i32, i32
  }
  func.func @transform_4(%arg0: i32) -> (i32, i32) {
    %c0_i32 = arith.constant 0 : i32
    %c0_i32_0 = arith.constant 0 : i32
    %c0_i32_1 = arith.constant 0 : i32
    return %c0_i32, %c0_i32_0 : i32, i32
  }
  func.func @transform_5(%arg0: i32) -> (i32, i32) {
    %c0_i32 = arith.constant 0 : i32
    %c0_i32_0 = arith.constant 0 : i32
    %c0_i32_1 = arith.constant 0 : i32
    return %c0_i32, %c0_i32_0 : i32, i32
  }
  func.func @transform_6(%arg0: i32) -> (i32, i32) {
    %c0_i32 = arith.constant 0 : i32
    %c0_i32_0 = arith.constant 0 : i32
    %c0_i32_1 = arith.constant 0 : i32
    return %c0_i32, %c0_i32_0 : i32, i32
  }
  func.func @transform_7(%arg0: i32) -> (i32, i32) {
    %c0_i32 = arith.constant 0 : i32
    %c0_i32_0 = arith.constant 0 : i32
    %c0_i32_1 = arith.constant 0 : i32
    return %c0_i32, %c0_i32_0 : i32, i32
  }
  func.func @transform_8(%arg0: i32) -> (i32, i32) {
    %c0_i32 = arith.constant 0 : i32
    %c0_i32_0 = arith.constant 0 : i32
    %c0_i32_1 = arith.constant 0 : i32
    return %c0_i32, %c0_i32_0 : i32, i32
  }
  func.func @transform_9(%arg0: i32) -> (i32, i32) {
    %c0_i32 = arith.constant 0 : i32
    %c0_i32_0 = arith.constant 0 : i32
    return %arg0, %c0_i32 : i32, i32
  }
}

</mosaic_0001>

<bundles_post_ra>
// kernel: discriminator_forward.1
= control target key start
LH: loop header
LB: loop body
LE: loop exit
PB: predicated region body
PF: predicated region fallthrough
CT: control target
= control target key end

     0   :  { %s6536_s11 = smov 0   ;;  %s9539_s0 = inlined_call_operand.vmem [shape: s32[304,1], index: 0, kind: input, shape index: {}]   ;;  %s9540_s1 = inlined_call_operand.vmem [shape: f32[304,22], index: 1, kind: input, shape index: {}]   ;;  %s9541_s2 = inlined_call_operand.vmem [shape: bf16[22,768], index: 2, kind: input, shape index: {}]   ;;  %s9542_s3 = inlined_call_operand.vmem [shape: bf16[3,768], index: 3, kind: input, shape index: {}]   ;;  %s9543_s4 = inlined_call_operand.vmem [shape: f32[1,768], index: 4, kind: input, shape index: {}]   ;;  %s9544_s5 = inlined_call_operand.vmem [shape: bf16[256,768], index: 5, kind: input, shape index: {}]   ;;  %s9545_s6 = inlined_call_operand.vmem [shape: f32[1,768], index: 6, kind: input, shape index: {}]   ;;  %s9546_s7 = inlined_call_operand.vmem [shape: f32[1,256], index: 7, kind: input, shape index: {}]   ;;  %s9547_s8 = inlined_call_operand.<no memory space> [shape: f32[1,1], index: 8, kind: input, shape index: {}]   ;;  %s9548_s9 = inlined_call_operand.vmem [shape: f32[304,1], index: 9, kind: output, shape index: {}]  }
   0x1   :  { %v14_v0 = vstv %s9547_s8 }
   0x2   :  { %15 = vst [vmem:[#allocation2] sm:$0x1] %v14_v0 }
   0x3 LB: > { %s5207_s12 = sadd.s32 4294967295, %s6478_s11   ;;  %p5211_p0 = scmp.ge.s32.totalorder %s6478_s11, 1  ;;  %s6478_s11 = sphi %s6536_s11, %s21_s11  }
   0x4   : > { %p301_p1 = scmp.lt.s32.totalorder %s6478_s11, 3 }
   0x6   : > { %p302_p2 = pnand %p5211_p0, %p301_p1 }
   0x8   : > { %305 = sbr.rel (%p302_p2) target bundleno = 1489 (0x5d1), region = 56 }
   0xd   : > { %s342_s13 = smul.u32 19, %s5207_s12  ;;  %v6480_v1 = vmov 0   ;;  %v525_v21 = vld [vmem:[%s9542_s3] sm:$0xff]  ;;  %vm569_vm0 = vcmask 1040384   ;;  %vm570_vm1 = vcmask 1041408   ;;  %v6481_v22 = vmov 65535  }
   0xe   : > { %5859 = vset.pattern.permute.xlu1 %v6480_v1  ;;  %5858 = vset.pattern.permute.xlu0 %v6480_v1  ;;  %528 = vst [vmem:[#allocation1] ss:$4 sm:$0xff] %v525_v21  ;;  %v571_v23 = vsel %vm569_vm0, 4294967295, %v6481_v22  ;;  %v522_v33 = vld [vmem:[%s9541_s2 + $0x30] sm:$0x77]  ;;  %vm1009_vm2 = vcmask 1042432   ;;  %v380_v45 = vlaneseq }
   0xf   : > { %p343_p3 = scmp.lt.s32.totalorder %s342_s13, 37  ;;  %5860 = vset.pattern.permute.xlu2 %v6480_v1  ;;  %v572_v25 = vsel %vm570_vm1, %v571_v23, 0  ;;  %v526_v34 = vld [vmem:[%s9542_s3 + $0x8] sm:$0xf]  ;;  %v954_v35 = vunpack.c.l.b16 %v522_v33  ;;  %v955_v36 = vunpack.c.h.b16 %v522_v33  ;;  %v6482_v50 = vmov 0.0  }
  0x10   : > { %531 = vst [vmem:[#allocation1 + $0x20] ss:$4 sm:$0xff] %v526_v34  ;;  %v6582_v47 = vand.u32 127, %v380_v45  ;;  %vm538_vm5 = vcmask 23552  }
  0x11   : > { %s9806_s13 = smov (!%p343_p3, %s342_s13), 37  ;;  %v966_v37 = vpack.c.b16 %v954_v35, %v954_v35  ;;  %v967_v38 = vpack.c.b16 %v955_v36, %v955_v36 }
  0x12   : > { %s6544_s8 = sshll.u32 %s9806_s13, 3 }
  0x13   : > { %s6550_s16 = scalar_lea.vmem %s9539_s0, %s6544_s8  ;;  %v1011_v39 = vsel %vm1009_vm2, %v966_v37, 0  ;;  %v1014_v40 = vsel %vm1009_vm2, %v967_v38, 0  ;;  %v524_v37 = vld [vmem:[%s9541_s2 + $0x40] sm:$0x77]  ;;  %v523_v38 = vld [vmem:[%s9541_s2 + $0x38] sm:$0x77]  ;;  %s6776_s17 = scalar_lea.vmem %s9540_s1, %s6544_s8 }
  0x14   : > { %v363_v2 = vld [vmem:[%s6550_s16 + $0x10] sm:$0xff]  ;;  %v361_v3 = vld [vmem:[%s6550_s16] sm:$0xff]  ;;  %v364_v5 = vld [vmem:[%s6550_s16 + $0x18] sm:$0xff]  ;;  %s9470_s30 = scalar_lea.vmem %s9548_s9, %s6544_s8 }
  0x15   : > { %389 = vperm.xlu1 %5859, %v363_v2   ;;  %383 = vperm.xlu0 %5858, %v361_v3   ;;  %v365_v4 = vld [vmem:[%s6550_s16 + $0x20] sm:$0xff]  ;;  %v362_v6 = vld [vmem:[%s6550_s16 + $0x8] sm:$0xff]  ;;  %v368_v8 = vld [vmem:[%s6550_s16 + $0x38] sm:$0xff] }
  0x16   : > { %395 = vperm.xlu2 %5860, %v365_v4   ;;  %v366_v7 = vld [vmem:[%s6550_s16 + $0x28] sm:$0xff]  ;;  %v367_v9 = vld [vmem:[%s6550_s16 + $0x30] sm:$0xff]  ;;  %v369_v10 = vld [vmem:[%s6550_s16 + $0x40] sm:$0xff] }
  0x17   : > { %v371_v11 = vld [vmem:[%s6550_s16 + $0x50] sm:$0xff]  ;;  %v370_v12 = vld [vmem:[%s6550_s16 + $0x48] sm:$0xff]  ;;  %v372_v13 = vld [vmem:[%s6550_s16 + $0x58] sm:$0xff] }
  0x18   : > { %v374_v14 = vld [vmem:[%s6550_s16 + $0x68] sm:$0xff]  ;;  %v373_v15 = vld [vmem:[%s6550_s16 + $0x60] sm:$0xff]  ;;  %v375_v16 = vld [vmem:[%s6550_s16 + $0x70] sm:$0xff] }
  0x19   : > { %v377_v17 = vld [vmem:[%s6550_s16 + $0x80] sm:$0xff]  ;;  %v376_v18 = vld [vmem:[%s6550_s16 + $0x78] sm:$0xff]  ;;  %v378_v19 = vld [vmem:[%s6550_s16 + $0x88] sm:$0xff] }
  0x1a   : > { %v379_v20 = vld [vmem:[%s6550_s16 + $0x90] sm:$0xff]  ;;  %v532_v24 = vld.sshfl [vmem:[#allocation1] sm:$0xff pattern:$0x73625140] }
  0x1b   : > { %v573_v26 = vand.u32 %v572_v25, %v532_v24  ;;  %v533_v27 = vld.sshfl [vmem:[#allocation1 + $0x8] sm:$0xff pattern:$0x73625140]  ;;  %v534_v28 = vld.sshfl [vmem:[#allocation1 + $0x10] sm:$0xff pattern:$0x73625140] }
  0x1c   : > { %v575_v29 = vand.u32 %v572_v25, %v533_v27  ;;  %v577_v30 = vand.u32 %v572_v25, %v534_v28  ;;  %v535_v31 = vld.sshfl [vmem:[#allocation1 + $0x18] sm:$0xff pattern:$0x73625140]  ;;  %v536_v41 = vld.sshfl [vmem:[#allocation1 + $0x20] sm:$0xff pattern:$0x73625140] }
  0x1d   : > { %392 = vperm.xlu1 %5859, %v364_v5   ;;  %386 = vperm.xlu0 %5858, %v362_v6   ;;  %v579_v32 = vand.u32 %v572_v25, %v535_v31  ;;  %v537_v42 = vld.sshfl [vmem:[#allocation1 + $0x28] sm:$0xff pattern:$0x73625140]  ;;  %v581_v43 = vand.u32 %v572_v25, %v536_v41  ;;  %v5277_v4 = vld [vmem:[%s9541_s2] sm:$0xf]  ;;  %v956_v41 = vunpack.c.l.b16 %v523_v38 }
  0x1e   : > { %398 = vperm.xlu2 %5860, %v366_v7   ;;  %592 = vmatpush.bf16.msra.mxu0 %v573_v26  ;;  %v583_v44 = vand.u32 %v572_v25, %v537_v42  ;;  %v5748_v5 = vld [vmem:[%s9541_s2 + $0x14] sm:$0xf0]  ;;  %v5745_v6 = vld [vmem:[%s9541_s2 + $0x4] sm:$0xf]  ;;  %v957_v42 = vunpack.c.h.b16 %v523_v38 }
  0x1f   : > { %650 = vmatpush.bf16.msra.mxu1 %v575_v29  ;;  %708 = vmatpush.bf16.msra.mxu2 %v577_v30  ;;  %v5278_v7 = vor.u32 %v5748_v5, %v5277_v4 }
  0x20   : > { %766 = vmatpush.bf16.msra.mxu3 %v579_v32 }
  0x22   : > { %824 = vmatpush.bf16.msrb.mxu0 %v581_v43 }
  0x23   : > { %1034 = vmatpush.bf16.msrb.mxu2 %v1011_v39  ;;  %882 = vmatpush.bf16.msrb.mxu1 %v583_v44  ;;  %v958_v39 = vunpack.c.l.b16 %v524_v37 }
  0x24   : > { %1092 = vmatpush.bf16.msrb.mxu3 %v1014_v40  ;;  %v959_v40 = vunpack.c.h.b16 %v524_v37 }
  0x25   : > { %404 = vperm.xlu1 %5859, %v368_v8   ;;  %401 = vperm.xlu0 %5858, %v367_v9   ;;  %v5279_v8 = vld [vmem:[%s9541_s2 + $0x18] sm:$0xf0] }
  0x26   : > { %407 = vperm.xlu2 %5860, %v369_v10   ;;  %v5282_v9 = vor.u32 %v5745_v6, %v5279_v8  ;;  %v487_v6 = vld [vmem:[%s6776_s17] sm:$0xff] }
  0x27   : > { %1035 = vmatpush.bf16.msrb.mxu2 %v5278_v7  ;;  %v488_v7 = vld [vmem:[%s6776_s17 + $0x8] sm:$0xff] }
  0x28   : > { %1093 = vmatpush.bf16.msrb.mxu3 %v5282_v9 }
  0x2d   : > { %413 = vperm.xlu1 %5859, %v371_v11   ;;  %410 = vperm.xlu0 %5858, %v370_v12  }
  0x2e   : > { %416 = vperm.xlu2 %5860, %v372_v13  }
  0x35   : > { %422 = vperm.xlu1 %5859, %v374_v14   ;;  %419 = vperm.xlu0 %5858, %v373_v15  }
  0x36   : > { %425 = vperm.xlu2 %5860, %v375_v16  }
  0x3d   : > { %431 = vperm.xlu1 %5859, %v377_v17   ;;  %428 = vperm.xlu0 %5858, %v376_v18  }
  0x3e   : > { %434 = vperm.xlu2 %5860, %v378_v19  }
  0x45   : > { %437 = vperm.xlu0 %5858, %v379_v20  }
  0x70   : > { %v396_v57 = vpop.permute.xlu2 %395 }
  0x71   : > { %vm443_vm8 = vcmp.eq.s32.totalorder %v396_v57, %v6582_v47 }
  0x72   : > { %v462_v60 = vsel %vm443_vm8, 1.0, %v6482_v50 }
  0x78   : > { %v399_v59 = vpop.permute.xlu2 %398 }
  0x79   : > { %vm444_vm9 = vcmp.eq.s32.totalorder %v399_v59, %v6582_v47 }
  0x7a   : > { %v463_v61 = vsel %vm444_vm9, 1.0, %v6482_v50 }
  0x7b   : > { %v6616_v62 = vpack.c.bf16 %v463_v61, %v462_v60 }
  0x80   : > { %v408_v11 = vpop.permute.xlu2 %407 }
  0x81   : > { %vm447_vm12 = vcmp.eq.s32.totalorder %v408_v11, %v6582_v47 }
  0x82   : > { %v466_v12 = vsel %vm447_vm12, 1.0, %v6482_v50 }
  0x87   : > { %v384_v46 = vpop.permute.xlu0 %383  ;;  %v390_v49 = vpop.permute.xlu1 %389 }
  0x88   : > { %vm439_vm3 = vcmp.eq.s32.totalorder %v384_v46, %v6582_v47  ;;  %vm441_vm6 = vcmp.eq.s32.totalorder %v390_v49, %v6582_v47  ;;  %v417_v16 = vpop.permute.xlu2 %416  ;;  %v970_v46 = vpack.c.b16 %v958_v39, %v958_v39  ;;  %v968_v49 = vpack.c.b16 %v956_v41, %v956_v41 }
  0x89   : > { %v458_v51 = vsel %vm439_vm3, 1.0, %v6482_v50  ;;  %v460_v55 = vsel %vm441_vm6, 1.0, %v6482_v50  ;;  %vm450_vm14 = vcmp.eq.s32.totalorder %v417_v16, %v6582_v47 }
  0x8a   : > { %v469_v17 = vsel %vm450_vm14, 1.0, %v6482_v50  ;;  %v1017_v57 = vsel %vm1009_vm2, %v968_v49, 0 }
  0x8f   : > { %v387_v48 = vpop.permute.xlu0 %386  ;;  %v393_v54 = vpop.permute.xlu1 %392 }
  0x90   : > { %vm440_vm4 = vcmp.eq.s32.totalorder %v387_v48, %v6582_v47  ;;  %vm442_vm7 = vcmp.eq.s32.totalorder %v393_v54, %v6582_v47  ;;  %v426_v26 = vpop.permute.xlu2 %425  ;;  %v971_v48 = vpack.c.b16 %v959_v40, %v959_v40 }
  0x91   : > { %v459_v52 = vsel %vm440_vm4, 1.0, %v6482_v50  ;;  %v461_v56 = vsel %vm442_vm7, 1.0, %v6482_v50  ;;  %vm453_vm4 = vcmp.eq.s32.totalorder %v426_v26, %v6582_v47 }
  0x92   : > { %v6588_v53 = vpack.c.bf16 %v459_v52, %v458_v51  ;;  %v6602_v58 = vpack.c.bf16 %v461_v56, %v460_v55  ;;  %v472_v28 = vsel %vm453_vm4, 1.0, %v6482_v50  ;;  %v969_v51 = vpack.c.b16 %v957_v42, %v957_v42 }
  0x93   : > { %v1023_v55 = vsel %vm1009_vm2, %v970_v46, 0  ;;  %v1026_v56 = vsel %vm1009_vm2, %v971_v48, 0  ;;  %v493_v46 = vld [vmem:[%s6776_s17 + $0x30] sm:$0xff]  ;;  %v494_v48 = vld [vmem:[%s6776_s17 + $0x38] sm:$0xff] }
  0x94   : > { %5215 = vmatmul.msk.bf16.vlgmr.msra.gmra.mxu0 %vm538_vm5, %v6588_v53  ;;  %5225 = vmatmul.msk.bf16.vlgmr.msra.gmra.mxu1 %vm538_vm5, %v6588_v53  ;;  %v1020_v59 = vsel %vm1009_vm2, %v969_v51, 0  ;;  %vm978_vm2 = vcmask 179200  }
  0x95   : > { %5235 = vmatmul.msk.bf16.vlgmr.msra.gmra.mxu2 %vm538_vm5, %v6588_v53  ;;  %5245 = vmatmul.msk.bf16.vlgmr.msra.gmra.mxu3 %vm538_vm5, %v6588_v53 }
  0x96   : > { %1266 = vmatpush.bf16.msra.mxu2 %v1023_v55  ;;  %1324 = vmatpush.bf16.msra.mxu3 %v1026_v56  ;;  %v6872_v56 = vpack.c.bf16 %v494_v48, %v493_v46  ;;  %v5287_v46 = vld [vmem:[%s9541_s2 + $0x20] sm:$0xf0] }
  0x97   : > { %v405_v63 = vpop.permute.xlu1 %404  ;;  %v402_v0 = vpop.permute.xlu0 %401  ;;  %1150 = vmatpush.bf16.msra.mxu0 %v1017_v57  ;;  %1208 = vmatpush.bf16.msra.mxu1 %v1020_v59  ;;  %v5293_v57 = vld [vmem:[%s9541_s2 + $0x10] sm:$0xf]  ;;  %v5750_v59 = vld [vmem:[%s9541_s2 + $0x24] sm:$0xf0] }
  0x98   : > { %vm446_vm10 = vcmp.eq.s32.totalorder %v405_v63, %v6582_v47  ;;  %vm445_vm11 = vcmp.eq.s32.totalorder %v402_v0, %v6582_v47  ;;  %v435_v31 = vpop.permute.xlu2 %434 }
  0x99   : > { %v465_v1 = vsel %vm446_vm10, 1.0, %v6482_v50  ;;  %v464_v2 = vsel %vm445_vm11, 1.0, %v6482_v50  ;;  %vm456_vm7 = vcmp.eq.s32.totalorder %v435_v31, %v6582_v47  ;;  %v491_v31 = vld [vmem:[%s6776_s17 + $0x20] sm:$0xff] }
  0x9a   : > { %v6630_v3 = vpack.c.bf16 %v465_v1, %v464_v2  ;;  %v475_v33 = vsel %vm456_vm7, 1.0, %v6482_v50 }
  0x9f   : > { %v411_v10 = vpop.permute.xlu0 %410  ;;  %v414_v15 = vpop.permute.xlu1 %413 }
  0xa0   : > { %vm448_vm13 = vcmp.eq.s32.totalorder %v411_v10, %v6582_v47  ;;  %vm449_vm15 = vcmp.eq.s32.totalorder %v414_v15, %v6582_v47 }
  0xa1   : > { %v467_v13 = vsel %vm448_vm13, 1.0, %v6482_v50  ;;  %v468_v18 = vsel %vm449_vm15, 1.0, %v6482_v50 }
  0xa2   : > { %v6656_v14 = vpack.c.bf16 %v467_v13, %v466_v12  ;;  %v6670_v19 = vpack.c.bf16 %v469_v17, %v468_v18  ;;  %v6788_v12 = vpack.c.bf16 %v488_v7, %v487_v6  ;;  %v489_v18 = vld [vmem:[%s6776_s17 + $0x10] sm:$0xff]  ;;  %v5294_v6 = vor.u32 %v5750_v59, %v5293_v57  ;;  %v5285_v7 = vld [vmem:[%s9541_s2 + $0x8] sm:$0xf] }
  0xa4   : > { %5216 = vmatmul.msk.bf16.gmra.mxu0 %vm538_vm5, %v6602_v58  ;;  %5226 = vmatmul.msk.bf16.gmra.mxu1 %vm538_vm5, %v6602_v58 }
  0xa5   : > { %5236 = vmatmul.msk.bf16.gmra.mxu2 %vm538_vm5, %v6602_v58  ;;  %5246 = vmatmul.msk.bf16.gmra.mxu3 %vm538_vm5, %v6602_v58 }
  0xa6   : > { %1267 = vmatpush.bf16.msra.mxu2 %v5294_v6 }
  0xa7   : > { %v423_v20 = vpop.permute.xlu1 %422  ;;  %v420_v21 = vpop.permute.xlu0 %419 }
  0xa8   : > { %vm452_vm0 = vcmp.eq.s32.totalorder %v423_v20, %v6582_v47  ;;  %vm451_vm1 = vcmp.eq.s32.totalorder %v420_v21, %v6582_v47  ;;  %v490_v20 = vld [vmem:[%s6776_s17 + $0x18] sm:$0xff] }
  0xa9   : > { %v471_v22 = vsel %vm452_vm0, 1.0, %v6482_v50  ;;  %v470_v23 = vsel %vm451_vm1, 1.0, %v6482_v50 }
  0xaa   : > { %v6684_v24 = vpack.c.bf16 %v471_v22, %v470_v23 }
  0xaf   : > { %v429_v25 = vpop.permute.xlu0 %428  ;;  %v432_v30 = vpop.permute.xlu1 %431 }
  0xb0   : > { %vm454_vm3 = vcmp.eq.s32.totalorder %v429_v25, %v6582_v47  ;;  %vm455_vm6 = vcmp.eq.s32.totalorder %v432_v30, %v6582_v47  ;;  %v6816_v25 = vpack.c.bf16 %v490_v20, %v489_v18  ;;  %v5749_v18 = vld [vmem:[%s9541_s2 + $0x1c] sm:$0xf0] }
  0xb1   : > { %v473_v27 = vsel %vm454_vm3, 1.0, %v6482_v50  ;;  %v474_v32 = vsel %vm455_vm6, 1.0, %v6482_v50 }
  0xb2   : > { %v6698_v29 = vpack.c.bf16 %v473_v27, %v472_v28  ;;  %v6716_v36 = vpack.c.bf16 %v475_v33, %v474_v32  ;;  %v492_v32 = vld [vmem:[%s6776_s17 + $0x28] sm:$0xff] }
  0xb3   : > { %v6844_v39 = vpack.c.bf16 %v492_v32, %v491_v31  ;;  %v5286_v31 = vor.u32 %v5749_v18, %v5285_v7  ;;  %v5746_v32 = vld [vmem:[%s9541_s2 + $0xc] sm:$0xf] }
  0xb4   : > { %5217 = vmatmul.msk.bf16.gmra.mxu0 %vm538_vm5, %v6616_v62  ;;  %5227 = vmatmul.msk.bf16.gmra.mxu1 %vm538_vm5, %v6616_v62  ;;  %v5290_v59 = vor.u32 %v5746_v32, %v5287_v46 }
  0xb5   : > { %5237 = vmatmul.msk.bf16.gmra.mxu2 %vm538_vm5, %v6616_v62  ;;  %5247 = vmatmul.msk.bf16.gmra.mxu3 %vm538_vm5, %v6616_v62 }
  0xb6   : > { %1151 = vmatpush.bf16.msra.mxu0 %v5286_v31  ;;  %1209 = vmatpush.bf16.msra.mxu1 %v5290_v59  ;;  %v497_v59 = vld [vmem:[%s6776_s17 + $0x50] sm:$0xff] }
  0xb7   : > { %v438_v43 = vpop.permute.xlu0 %437 }
  0xb8   : > { %vm457_vm8 = vcmp.eq.s32.totalorder %v438_v43, %v6582_v47 }
  0xb9   : > { %v476_v60 = vsel %vm457_vm8, 1.0, %v6482_v50 }
  0xba   : > { %v6754_v2 = vpack.c.bf16 %v476_v60, %v476_v60  ;;  %v5747_v60 = vld [vmem:[%s9541_s2 + $0x14] sm:$0xf] }
  0xc4   : > { %5218 = vmatmul.msk.bf16.gmra.mxu0 %vm538_vm5, %v6630_v3  ;;  %5228 = vmatmul.msk.bf16.gmra.mxu1 %vm538_vm5, %v6630_v3 }
  0xc5   : > { %5238 = vmatmul.msk.bf16.gmra.mxu2 %vm538_vm5, %v6630_v3  ;;  %5248 = vmatmul.msk.bf16.gmra.mxu3 %vm538_vm5, %v6630_v3 }
  0xd4   : > { %5219 = vmatmul.msk.bf16.gmra.mxu0 %vm538_vm5, %v6656_v14  ;;  %5229 = vmatmul.msk.bf16.gmra.mxu1 %vm538_vm5, %v6656_v14 }
  0xd5   : > { %5239 = vmatmul.msk.bf16.gmra.mxu2 %vm538_vm5, %v6656_v14  ;;  %5249 = vmatmul.msk.bf16.gmra.mxu3 %vm538_vm5, %v6656_v14 }
  0xe4   : > { %5220 = vmatmul.msk.bf16.gmra.mxu0 %vm538_vm5, %v6670_v19  ;;  %5230 = vmatmul.msk.bf16.gmra.mxu1 %vm538_vm5, %v6670_v19 }
  0xe5   : > { %5240 = vmatmul.msk.bf16.gmra.mxu2 %vm538_vm5, %v6670_v19  ;;  %5250 = vmatmul.msk.bf16.gmra.mxu3 %vm538_vm5, %v6670_v19 }
  0xf4   : > { %5221 = vmatmul.msk.bf16.gmra.mxu0 %vm538_vm5, %v6684_v24  ;;  %5231 = vmatmul.msk.bf16.gmra.mxu1 %vm538_vm5, %v6684_v24 }
  0xf5   : > { %5241 = vmatmul.msk.bf16.gmra.mxu2 %vm538_vm5, %v6684_v24  ;;  %5251 = vmatmul.msk.bf16.gmra.mxu3 %vm538_vm5, %v6684_v24 }
 0x104   : > { %5222 = vmatmul.msk.bf16.gmra.mxu0 %vm538_vm5, %v6698_v29  ;;  %5232 = vmatmul.msk.bf16.gmra.mxu1 %vm538_vm5, %v6698_v29 }
 0x105   : > { %5242 = vmatmul.msk.bf16.gmra.mxu2 %vm538_vm5, %v6698_v29  ;;  %5252 = vmatmul.msk.bf16.gmra.mxu3 %vm538_vm5, %v6698_v29 }
 0x111   : > { %v6712_v34 = vpop.f32.mrf.mxu0  ;;  %v6714_v35 = vpop.f32.mrf.mxu1 }
 0x114   : > { %5223 = vmatmul.msk.bf16.gmra.mxu0 %vm538_vm5, %v6716_v36  ;;  %5233 = vmatmul.msk.bf16.gmra.mxu1 %vm538_vm5, %v6716_v36 }
 0x115   : > { %5243 = vmatmul.msk.bf16.gmra.mxu2 %vm538_vm5, %v6716_v36  ;;  %5253 = vmatmul.msk.bf16.gmra.mxu3 %vm538_vm5, %v6716_v36 }
 0x118   : > { %v6732_v44 = vpop.f32.mrf.mxu2  ;;  %v6734_v45 = vpop.f32.mrf.mxu3 }
 0x119   : > { %9582 = vst [vmem:[#allocation3_spill] sm:$0xff] %v6734_v45  ;;  %v6736_v52 = vpop.f32.mrf.mxu0  ;;  %v6738_v54 = vpop.f32.mrf.mxu1 }
 0x120   : > { %v6746_v61 = vpop.f32.mrf.mxu2  ;;  %v6748_v63 = vpop.f32.mrf.mxu3 }
 0x121   : > { %9583 = vst [vmem:[#allocation4_spill] sm:$0xff] %v6746_v61  ;;  %v6750_v0 = vpop.f32.mrf.mxu0  ;;  %v6752_v1 = vpop.f32.mrf.mxu1 }
 0x122   : > { %9584 = vst [vmem:[#allocation5_spill] sm:$0xff] %v6748_v63 }
 0x124   : > { %5224 = vmatmul.msk.bf16.gmra.mxu0 %vm538_vm5, %v6754_v2  ;;  %5234 = vmatmul.msk.bf16.gmra.mxu1 %vm538_vm5, %v6754_v2 }
 0x125   : > { %5244 = vmatmul.msk.bf16.gmra.mxu2 %vm538_vm5, %v6754_v2  ;;  %5254 = vmatmul.msk.bf16.gmra.mxu3 %vm538_vm5, %v6754_v2 }
 0x128   : > { %v6764_v47 = vpop.f32.mrf.mxu2  ;;  %v6766_v50 = vpop.f32.mrf.mxu3 }
 0x129   : > { %9585 = vst [vmem:[#allocation6_spill] sm:$0xff] %v6764_v47  ;;  %v6768_v4 = vpop.f32.mrf.mxu0  ;;  %v6770_v5 = vpop.f32.mrf.mxu1 }
 0x12a   : > { %9586 = vst [vmem:[#allocation7_spill] sm:$0xff] %v6766_v50 }
 0x130   : > { %v6780_v8 = vpop.f32.mrf.mxu2  ;;  %v6782_v9 = vpop.f32.mrf.mxu3 }
 0x131   : > { %9587 = vst [vmem:[#allocation8_spill] sm:$0xff] %v6780_v8  ;;  %v6784_v10 = vpop.f32.mrf.mxu0  ;;  %v6786_v11 = vpop.f32.mrf.mxu1 }
 0x132   : > { %9588 = vst [vmem:[#allocation9_spill] sm:$0xff] %v6782_v9 }
 0x134   : > { %5255 = vmatmul.msk.bf16.vlgmr.msrb.gmra.mxu0 %vm538_vm5, %v6588_v53  ;;  %5265 = vmatmul.msk.bf16.vlgmr.msrb.gmra.mxu1 %vm538_vm5, %v6588_v53 }
 0x135   : > { %5299 = vmatmul.msk.bf16.vlgmr.msrb.gmra.mxu2 %vm978_vm2, %v6788_v12  ;;  %5309 = vmatmul.msk.bf16.vlgmr.msrb.gmra.mxu3 %vm978_vm2, %v6788_v12 }
 0x138   : > { %v6798_v13 = vpop.f32.mrf.mxu2  ;;  %v6800_v15 = vpop.f32.mrf.mxu3 }
 0x139   : > { %9589 = vst [vmem:[#allocation10_spill] sm:$0xff] %v6798_v13  ;;  %v6802_v16 = vpop.f32.mrf.mxu0  ;;  %v6804_v17 = vpop.f32.mrf.mxu1 }
 0x13a   : > { %9590 = vst [vmem:[#allocation11_spill] sm:$0xff] %v6800_v15 }
 0x140   : > { %v6808_v21 = vpop.f32.mrf.mxu2  ;;  %v6810_v53 = vpop.f32.mrf.mxu3 }
 0x141   : > { %9591 = vst [vmem:[#allocation12_spill] sm:$0xff] %v6808_v21  ;;  %v6812_v22 = vpop.f32.mrf.mxu0  ;;  %v6814_v23 = vpop.f32.mrf.mxu1 }
 0x142   : > { %9592 = vst [vmem:[#allocation13_spill] sm:$0xff] %v6810_v53 }
 0x144   : > { %5256 = vmatmul.msk.bf16.gmra.mxu0 %vm538_vm5, %v6602_v58  ;;  %5266 = vmatmul.msk.bf16.gmra.mxu1 %vm538_vm5, %v6602_v58 }
 0x145   : > { %5300 = vmatmul.msk.bf16.gmra.mxu2 %vm978_vm2, %v6816_v25  ;;  %5310 = vmatmul.msk.bf16.gmra.mxu3 %vm978_vm2, %v6816_v25 }
 0x148   : > { %v6826_v26 = vpop.f32.mrf.mxu2  ;;  %v6828_v27 = vpop.f32.mrf.mxu3 }
 0x149   : > { %9593 = vst [vmem:[#allocation14_spill] sm:$0xff] %v6826_v26  ;;  %v6830_v28 = vpop.f32.mrf.mxu0  ;;  %v6832_v30 = vpop.f32.mrf.mxu1 }
 0x14a   : > { %9594 = vst [vmem:[#allocation15_spill] sm:$0xff] %v6828_v27 }
 0x150   : > { %v6836_v33 = vpop.f32.mrf.mxu2  ;;  %v6838_v58 = vpop.f32.mrf.mxu3 }
 0x151   : > { %9595 = vst [vmem:[#allocation16_spill] sm:$0xff] %v6836_v33  ;;  %v6840_v37 = vpop.f32.mrf.mxu0  ;;  %v6842_v38 = vpop.f32.mrf.mxu1 }
 0x152   : > { %9596 = vst [vmem:[#allocation17_spill] sm:$0xff] %v6838_v58 }
 0x154   : > { %5257 = vmatmul.msk.bf16.gmra.mxu0 %vm538_vm5, %v6616_v62  ;;  %5267 = vmatmul.msk.bf16.gmra.mxu1 %vm538_vm5, %v6616_v62 }
 0x155   : > { %5301 = vmatmul.msk.bf16.gmra.mxu2 %vm978_vm2, %v6844_v39  ;;  %5311 = vmatmul.msk.bf16.gmra.mxu3 %vm978_vm2, %v6844_v39 }
 0x158   : > { %v6854_v40 = vpop.f32.mrf.mxu2  ;;  %v6856_v41 = vpop.f32.mrf.mxu3 }
 0x159   : > { %9597 = vst [vmem:[#allocation18_spill] sm:$0xff] %v6854_v40  ;;  %v6858_v42 = vpop.f32.mrf.mxu0  ;;  %v6860_v43 = vpop.f32.mrf.mxu1 }
 0x15a   : > { %9598 = vst [vmem:[#allocation19_spill] sm:$0xff] %v6856_v41 }
 0x160   : > { %v6864_v49 = vpop.f32.mrf.mxu2  ;;  %v6866_v51 = vpop.f32.mrf.mxu3 }
 0x161   : > { %9599 = vst [vmem:[#allocation20_spill] sm:$0xff] %v6864_v49  ;;  %v6868_v62 = vpop.f32.mrf.mxu0  ;;  %v6870_v55 = vpop.f32.mrf.mxu1 }
 0x162   : > { %9600 = vst [vmem:[#allocation21_spill] sm:$0xff] %v6866_v51 }
 0x164   : > { %5258 = vmatmul.msk.bf16.gmra.mxu0 %vm538_vm5, %v6630_v3  ;;  %5268 = vmatmul.msk.bf16.gmra.mxu1 %vm538_vm5, %v6630_v3  ;;  %v5295_v3 = vld [vmem:[%s9541_s2 + $0x28] sm:$0xf0] }
 0x165   : > { %5302 = vmatmul.msk.bf16.gmra.mxu2 %vm978_vm2, %v6872_v56  ;;  %5312 = vmatmul.msk.bf16.gmra.mxu3 %vm978_vm2, %v6872_v56  ;;  %v5298_v20 = vor.u32 %v5747_v60, %v5295_v3  ;;  %v495_v60 = vld [vmem:[%s6776_s17 + $0x40] sm:$0xff]  ;;  %v496_v3 = vld [vmem:[%s6776_s17 + $0x48] sm:$0xff] }
 0x166   : > { %v6924_v6 = vpack.c.bf16 %v496_v3, %v495_v60  ;;  %v498_v60 = vld [vmem:[%s6776_s17 + $0x58] sm:$0xff] }
 0x167   : > { %1325 = vmatpush.bf16.msra.mxu3 %v5298_v20  ;;  %v6952_v41 = vpack.c.bf16 %v498_v60, %v497_v59  ;;  %v499_v60 = vld [vmem:[%s6776_s17 + $0x60] sm:$0xff] }
 0x168   : > { %v6906_v48 = vpop.f32.mrf.mxu2  ;;  %v6908_v57 = vpop.f32.mrf.mxu3 }
 0x169   : > { %9601 = vst [vmem:[#allocation22_spill] sm:$0xff] %v6906_v48  ;;  %v6910_v51 = vpop.f32.mrf.mxu0  ;;  %v6912_v49 = vpop.f32.mrf.mxu1 }
 0x16a   : > { %9602 = vst [vmem:[#allocation23_spill] sm:$0xff] %v6908_v57 }
 0x170   : > { %v6916_v7 = vpop.f32.mrf.mxu2  ;;  %v6918_v18 = vpop.f32.mrf.mxu3 }
 0x171   : > { %9603 = vst [vmem:[#allocation24_spill] sm:$0xff] %v6916_v7  ;;  %v6920_v48 = vpop.f32.mrf.mxu0  ;;  %v6922_v57 = vpop.f32.mrf.mxu1 }
 0x172   : > { %9604 = vst [vmem:[#allocation25_spill] sm:$0xff] %v6918_v18 }
 0x174   : > { %5259 = vmatmul.msk.bf16.gmra.mxu0 %vm538_vm5, %v6656_v14  ;;  %5269 = vmatmul.msk.bf16.gmra.mxu1 %vm538_vm5, %v6656_v14 }
 0x175   : > { %5303 = vmatmul.msk.bf16.gmra.mxu2 %vm978_vm2, %v6924_v6  ;;  %5313 = vmatmul.msk.bf16.gmra.mxu3 %vm978_vm2, %v6924_v6 }
 0x178   : > { %v6934_v20 = vpop.f32.mrf.mxu2  ;;  %v6936_v31 = vpop.f32.mrf.mxu3 }
 0x179   : > { %9605 = vst [vmem:[#allocation26_spill] sm:$0xff] %v6934_v20  ;;  %v6938_v32 = vpop.f32.mrf.mxu0  ;;  %v6940_v46 = vpop.f32.mrf.mxu1  ;;  %v500_v20 = vld [vmem:[%s6776_s17 + $0x68] sm:$0xff] }
 0x17a   : > { %9606 = vst [vmem:[#allocation27_spill] sm:$0xff] %v6936_v31  ;;  %v6980_v27 = vpack.c.bf16 %v500_v20, %v499_v60  ;;  %v501_v60 = vld [vmem:[%s6776_s17 + $0x70] sm:$0xff] }
 0x180   : > { %v6944_v3 = vpop.f32.mrf.mxu2  ;;  %v6946_v14 = vpop.f32.mrf.mxu3 }
 0x181   : > { %9607 = vst [vmem:[#allocation28_spill] sm:$0xff] %v6944_v3  ;;  %v6948_v18 = vpop.f32.mrf.mxu0  ;;  %v6950_v7 = vpop.f32.mrf.mxu1 }
 0x182   : > { %9608 = vst [vmem:[#allocation29_spill] sm:$0xff] %v6946_v14 }
 0x184   : > { %5260 = vmatmul.msk.bf16.gmra.mxu0 %vm538_vm5, %v6670_v19  ;;  %5270 = vmatmul.msk.bf16.gmra.mxu1 %vm538_vm5, %v6670_v19 }
 0x185   : > { %5304 = vmatmul.msk.bf16.gmra.mxu2 %vm978_vm2, %v6952_v41  ;;  %5314 = vmatmul.msk.bf16.gmra.mxu3 %vm978_vm2, %v6952_v41 }
 0x188   : > { %v6962_v3 = vpop.f32.mrf.mxu2  ;;  %v6964_v14 = vpop.f32.mrf.mxu3 }
 0x189   : > { %9609 = vst [vmem:[#allocation30_spill] sm:$0xff] %v6962_v3  ;;  %v6966_v31 = vpop.f32.mrf.mxu0  ;;  %v6968_v59 = vpop.f32.mrf.mxu1  ;;  %v502_v3 = vld [vmem:[%s6776_s17 + $0x78] sm:$0xff] }
 0x18a   : > { %9610 = vst [vmem:[#allocation31_spill] sm:$0xff] %v6964_v14  ;;  %v7008_v15 = vpack.c.bf16 %v502_v3, %v501_v60  ;;  %v503_v3 = vld [vmem:[%s6776_s17 + $0x80] sm:$0xff]  ;;  %v504_v60 = vld [vmem:[%s6776_s17 + $0x88] sm:$0xff] }
 0x190   : > { %v6972_v40 = vpop.f32.mrf.mxu2  ;;  %v6974_v19 = vpop.f32.mrf.mxu3 }
 0x191   : > { %9611 = vst [vmem:[#allocation32_spill] sm:$0xff] %v6972_v40  ;;  %v6976_v58 = vpop.f32.mrf.mxu0  ;;  %v6978_v33 = vpop.f32.mrf.mxu1 }
 0x192   : > { %9612 = vst [vmem:[#allocation33_spill] sm:$0xff] %v6974_v19 }
 0x194   : > { %5261 = vmatmul.msk.bf16.gmra.mxu0 %vm538_vm5, %v6684_v24  ;;  %5271 = vmatmul.msk.bf16.gmra.mxu1 %vm538_vm5, %v6684_v24 }
 0x195   : > { %5305 = vmatmul.msk.bf16.gmra.mxu2 %vm978_vm2, %v6980_v27  ;;  %5315 = vmatmul.msk.bf16.gmra.mxu3 %vm978_vm2, %v6980_v27 }
 0x198   : > { %v6990_v40 = vpop.f32.mrf.mxu2  ;;  %v6992_v19 = vpop.f32.mrf.mxu3 }
 0x199   : > { %9613 = vst [vmem:[#allocation34_spill] sm:$0xff] %v6990_v40  ;;  %v6994_v14 = vpop.f32.mrf.mxu0  ;;  %v6996_v20 = vpop.f32.mrf.mxu1 }
 0x19a   : > { %9614 = vst [vmem:[#allocation35_spill] sm:$0xff] %v6992_v19 }
 0x1a0   : > { %v7000_v26 = vpop.f32.mrf.mxu2  ;;  %v7002_v24 = vpop.f32.mrf.mxu3 }
 0x1a1   : > { %9615 = vst [vmem:[#allocation36_spill] sm:$0xff] %v7000_v26  ;;  %v7004_v53 = vpop.f32.mrf.mxu0  ;;  %v7006_v21 = vpop.f32.mrf.mxu1 }
 0x1a2   : > { %9616 = vst [vmem:[#allocation37_spill] sm:$0xff] %v7002_v24 }
 0x1a4   : > { %5262 = vmatmul.msk.bf16.gmra.mxu0 %vm538_vm5, %v6698_v29  ;;  %5272 = vmatmul.msk.bf16.gmra.mxu1 %vm538_vm5, %v6698_v29  ;;  %v7028_v29 = vpack.c.bf16 %v504_v60, %v503_v3 }
 0x1a5   : > { %5306 = vmatmul.msk.bf16.gmra.mxu2 %vm978_vm2, %v7008_v15  ;;  %5316 = vmatmul.msk.bf16.gmra.mxu3 %vm978_vm2, %v7008_v15 }
 0x1a6   : > { %9621 = vst [vmem:[#allocation42_spill] sm:$0xff] %v7028_v29 }
 0x1a8   : > { %v7018_v26 = vpop.f32.mrf.mxu2  ;;  %v7020_v24 = vpop.f32.mrf.mxu3 }
 0x1a9   : > { %9617 = vst [vmem:[#allocation38_spill] sm:$0xff] %v7018_v26  ;;  %v641_v19 = vpop.f32.mrf.mxu0  ;;  %v699_v40 = vpop.f32.mrf.mxu1 }
 0x1aa   : > { %9618 = vst [vmem:[#allocation39_spill] sm:$0xff] %v7020_v24  ;;  %v1376_v40 = vld [vmem:[%s9543_s4] sm:$0x3f] }
 0x1b0   : > { %v757_v13 = vpop.f32.mrf.mxu2  ;;  %v815_v9 = vpop.f32.mrf.mxu3 }
 0x1b1   : > { %v7024_v8 = vpop.f32.mrf.mxu0  ;;  %v7026_v50 = vpop.f32.mrf.mxu1  ;;  %v7041_v9 = vperm.slane %v1376_v40, 0  ;;  %v7043_v13 = vperm.slane %v1376_v40, 1 }
 0x1b2   : > { %9619 = vst [vmem:[#allocation40_spill] sm:$0xff] %v7024_v8 }
 0x1b3   : > { %9620 = vst [vmem:[#allocation41_spill] sm:$0xff] %v7026_v50  ;;  %v505_v50 = vld [vmem:[%s6776_s17 + $0x90] sm:$0xff] }
 0x1b4   : > { %5263 = vmatmul.msk.bf16.gmra.mxu0 %vm538_vm5, %v6716_v36  ;;  %5273 = vmatmul.msk.bf16.gmra.mxu1 %vm538_vm5, %v6716_v36 }
 0x1b5   : > { %5307 = vmatmul.msk.bf16.gmra.mxu2 %vm978_vm2, %v7028_v29  ;;  %5317 = vmatmul.msk.bf16.gmra.mxu3 %vm978_vm2, %v7028_v29 }
 0x1b8   : > { %v1037_v19 = vpop.f32.mrf.mxu2  ;;  %v1095_v3 = vpop.f32.mrf.mxu3 }
 0x1b9   : > { %v1038_v60 = vadd.f32 %v1037_v19, %v6712_v34  ;;  %v1096_v36 = vadd.f32 %v1095_v3, %v6714_v35  ;;  %v7047_v24 = vpop.f32.mrf.mxu0  ;;  %v7049_v26 = vpop.f32.mrf.mxu1  ;;  %v7062_v19 = vpack.c.bf16 %v505_v50, %v505_v50 }
 0x1bb   : > { %v1390_v47 = vadd.f32 %v7041_v9, %v1038_v60  ;;  %v1391_v63 = vadd.f32 %v7043_v13, %v1096_v36 }
 0x1bd   : > { %v7053_v61 = vpack.c.bf16 %v1391_v63, %v1390_v47 }
 0x1c0   : > { %v1039_v8 = vpop.f32.mrf.mxu2  ;;  %v1097_v40 = vpop.f32.mrf.mxu3 }
 0x1c1   : > { %v1040_v29 = vadd.f32 %v1039_v8, %v6736_v52  ;;  %v1098_v45 = vadd.f32 %v1097_v40, %v6738_v54  ;;  %v7058_v34 = vpop.f32.mrf.mxu0  ;;  %v7060_v35 = vpop.f32.mrf.mxu1 }
 0x1c2   : > { %9622 = vst [vmem:[#allocation43_spill] sm:$0xff] %v7060_v35 }
 0x1c3   : > { %v1396_v3 = vadd.f32 %v7041_v9, %v1040_v29  ;;  %v1397_v60 = vadd.f32 %v7043_v13, %v1098_v45 }
 0x1c4   : > { %5264 = vmatmul.msk.bf16.gmra.mxu0 %vm538_vm5, %v6754_v2  ;;  %5274 = vmatmul.msk.bf16.gmra.mxu1 %vm538_vm5, %v6754_v2  ;;  %vm5119_vm5 = vcmask 7168  }
 0x1c5   : > { %v7070_v63 = vpack.c.bf16 %v1397_v60, %v1396_v3  ;;  %5308 = vmatmul.msk.bf16.gmra.mxu2 %vm978_vm2, %v7062_v19  ;;  %5318 = vmatmul.msk.bf16.gmra.mxu3 %vm978_vm2, %v7062_v19 }
 0x1c8   : > { %v1042_v52 = vpop.f32.mrf.mxu2  ;;  %v1100_v54 = vpop.f32.mrf.mxu3 }
 0x1c9   : > { %v1043_v47 = vadd.f32 %v1042_v52, %v6750_v0  ;;  %v1101_v45 = vadd.f32 %v1100_v54, %v6752_v1  ;;  %v7078_v50 = vpop.f32.mrf.mxu0  ;;  %v7080_v8 = vpop.f32.mrf.mxu1 }
 0x1cb   : > { %v1402_v2 = vadd.f32 %v7041_v9, %v1043_v47  ;;  %v1403_v29 = vadd.f32 %v7043_v13, %v1101_v45 }
 0x1cd   : > { %v7084_v36 = vpack.c.bf16 %v1403_v29, %v1402_v2 }
 0x1d0   : > { %v1044_v40 = vpop.f32.mrf.mxu2  ;;  %v1102_v3 = vpop.f32.mrf.mxu3 }
 0x1d1   : > { %v7086_v60 = vpop.f32.mrf.mxu0  ;;  %v7088_v35 = vpop.f32.mrf.mxu1  ;;  %v1045_v0 = vadd.f32 %v1044_v40, %v6768_v4  ;;  %v1103_v1 = vadd.f32 %v1102_v3, %v6770_v5 }
 0x1d2   : > { %9623 = vst [vmem:[#allocation44_spill] sm:$0xff] %v7086_v60 }
 0x1d3   : > { %9624 = vst [vmem:[#allocation45_spill] sm:$0xff] %v7088_v35  ;;  %v1408_v52 = vadd.f32 %v7041_v9, %v1045_v0  ;;  %v1409_v54 = vadd.f32 %v7043_v13, %v1103_v1  ;;  %v5531_v1 = vld [vmem:[%s9544_s5 + $0x168] sm:$0xf0] }
 0x1d4   : > { %5319 = vmatmul.msk.bf16.vlgmr.msra.gmra.mxu0 %vm978_vm2, %v6788_v12  ;;  %5329 = vmatmul.msk.bf16.vlgmr.msra.gmra.mxu1 %vm978_vm2, %v6788_v12 }
 0x1d5   : > { %5339 = vmatmul.msk.bf16.vlgmr.msra.gmra.mxu2 %vm978_vm2, %v6788_v12  ;;  %5349 = vmatmul.msk.bf16.vlgmr.msra.gmra.mxu3 %vm978_vm2, %v6788_v12  ;;  %v7102_v47 = vpack.c.bf16 %v1409_v54, %v1408_v52  ;;  %v5793_v12 = vld [vmem:[%s9544_s5 + $0x154] sm:$0xf] }
 0x1d6   : > { %v5534_v52 = vor.u32 %v5793_v12, %v5531_v1 }
 0x1d8   : > { %v1047_v4 = vpop.f32.mrf.mxu2  ;;  %v1105_v5 = vpop.f32.mrf.mxu3  ;;  %3294 = vmatpush.bf16.msrb.mxu2 %v5534_v52 }
 0x1d9   : > { %v1048_v45 = vadd.f32 %v1047_v4, %v6784_v10  ;;  %v7105_v2 = vpop.f32.mrf.mxu0  ;;  %v7107_v29 = vpop.f32.mrf.mxu1  ;;  %v1106_v40 = vadd.f32 %v1105_v5, %v6786_v11  ;;  %v5841_v10 = vld [vmem:[%s9544_s5 + $0x2d4] sm:$0xf]  ;;  %v5723_v11 = vld [vmem:[%s9544_s5 + $0x2e8] sm:$0xf0] }
 0x1da   : > { %9625 = vst [vmem:[#allocation46_spill] sm:$0xff] %v7105_v2  ;;  %v5726_v4 = vor.u32 %v5841_v10, %v5723_v11 }
 0x1db   : > { %9626 = vst [vmem:[#allocation47_spill] sm:$0xff] %v7107_v29  ;;  %v1414_v3 = vadd.f32 %v7041_v9, %v1048_v45  ;;  %v1415_v0 = vadd.f32 %v7043_v13, %v1106_v40 }
 0x1dc   : > { %3352 = vmatpush.bf16.msrb.mxu3 %v5726_v4 }
 0x1dd   : > { %v7124_v54 = vpack.c.bf16 %v1415_v0, %v1414_v3  ;;  %v5721_v3 = vld [vmem:[%s9544_s5 + $0x2d0] sm:$0xf]  ;;  %v5844_v0 = vld [vmem:[%s9544_s5 + $0x2e4] sm:$0xf0] }
 0x1de   : > { %v5722_v52 = vor.u32 %v5844_v0, %v5721_v3  ;;  %v1564_v3 = vunpack.c.h.bf16 %v7070_v63 }
 0x1e0   : > { %v1049_v5 = vpop.f32.mrf.mxu2  ;;  %v1107_v45 = vpop.f32.mrf.mxu3  ;;  %3236 = vmatpush.bf16.msrb.mxu1 %v5722_v52 }
 0x1e1   : > { %v1050_v40 = vadd.f32 %v1049_v5, %v6802_v16  ;;  %v1108_v29 = vadd.f32 %v1107_v45, %v6804_v17  ;;  %v7128_v2 = vpop.f32.mrf.mxu0  ;;  %v7130_v35 = vpop.f32.mrf.mxu1  ;;  %v5529_v16 = vld [vmem:[%s9544_s5 + $0x150] sm:$0xf]  ;;  %v5796_v17 = vld [vmem:[%s9544_s5 + $0x164] sm:$0xf0] }
 0x1e2   : > { %9627 = vst [vmem:[#allocation48_spill] sm:$0xff] %v7128_v2 }
 0x1e3   : > { %9628 = vst [vmem:[#allocation49_spill] sm:$0xff] %v7130_v35  ;;  %v1420_v12 = vadd.f32 %v7041_v9, %v1050_v40  ;;  %v1421_v1 = vadd.f32 %v7043_v13, %v1108_v29  ;;  %v5530_v29 = vor.u32 %v5796_v17, %v5529_v16  ;;  %v1562_v16 = vunpack.c.h.bf16 %v7053_v61 }
 0x1e4   : > { %5320 = vmatmul.msk.bf16.gmra.mxu0 %vm978_vm2, %v6816_v25  ;;  %5330 = vmatmul.msk.bf16.gmra.mxu1 %vm978_vm2, %v6816_v25 }
 0x1e5   : > { %5340 = vmatmul.msk.bf16.gmra.mxu2 %vm978_vm2, %v6816_v25  ;;  %5350 = vmatmul.msk.bf16.gmra.mxu3 %vm978_vm2, %v6816_v25  ;;  %v7154_v10 = vpack.c.bf16 %v1421_v1, %v1420_v12  ;;  %v1561_v25 = vunpack.c.l.bf16 %v7053_v61  ;;  %v1563_v1 = vunpack.c.l.bf16 %v7070_v63 }
 0x1e6   : > { %3178 = vmatpush.bf16.msrb.mxu0 %v5530_v29 }
 0x1e7   : > { %5862 = vtanh.f32 %v1561_v25  ;;  %v5699_v25 = vld [vmem:[%s9544_s5 + $0x2b8] sm:$0xf0] }
 0x1e8   : > { %v1052_v11 = vpop.f32.mrf.mxu2  ;;  %v1110_v4 = vpop.f32.mrf.mxu3  ;;  %5864 = vtanh.f32 %v1562_v16  ;;  %v5505_v16 = vld [vmem:[%s9544_s5 + $0x120] sm:$0xf] }
 0x1e9   : > { %v1053_v5 = vadd.f32 %v1052_v11, %v6812_v22  ;;  %v1111_v45 = vadd.f32 %v1110_v4, %v6814_v23  ;;  %v7158_v40 = vpop.f32.mrf.mxu0  ;;  %v7160_v35 = vpop.f32.mrf.mxu1  ;;  %5866 = vtanh.f32 %v1563_v1  ;;  %v1565_v1 = vunpack.c.l.bf16 %v7084_v36 }
 0x1ea   : > { %9629 = vst [vmem:[#allocation50_spill] sm:$0xff] %v7158_v40  ;;  %5868 = vtanh.f32 %v1564_v3 }
 0x1eb   : > { %9630 = vst [vmem:[#allocation51_spill] sm:$0xff] %v7160_v35  ;;  %v1426_v12 = vadd.f32 %v7041_v9, %v1053_v5  ;;  %v1427_v17 = vadd.f32 %v7043_v13, %v1111_v45  ;;  %v5787_v5 = vld [vmem:[%s9544_s5 + $0x124] sm:$0xf]  ;;  %v5507_v45 = vld [vmem:[%s9544_s5 + $0x138] sm:$0xf0]  ;;  %5870 = vtanh.f32 %v1565_v1 }
 0x1ec   : > { %v5510_v3 = vor.u32 %v5787_v5, %v5507_v45 }
 0x1ed   : > { %v7168_v22 = vpack.c.bf16 %v1427_v17, %v1426_v12 }
 0x1ee   : > { %3295 = vmatpush.bf16.msrb.mxu2 %v5510_v3 }
 0x1f0   : > { %v1054_v23 = vpop.f32.mrf.mxu2  ;;  %v1112_v29 = vpop.f32.mrf.mxu3 }
 0x1f1   : > { %v1055_v0 = vadd.f32 %v1054_v23, %v6830_v28  ;;  %v1113_v61 = vadd.f32 %v1112_v29, %v6832_v30  ;;  %v7172_v52 = vpop.f32.mrf.mxu0  ;;  %v7174_v11 = vpop.f32.mrf.mxu1  ;;  %v5835_v28 = vld [vmem:[%s9544_s5 + $0x2a4] sm:$0xf]  ;;  %v5790_v29 = vld [vmem:[%s9544_s5 + $0x134] sm:$0xf0] }
 0x1f2   : > { %9631 = vst [vmem:[#allocation52_spill] sm:$0xff] %v7172_v52  ;;  %v5863_v30 = vpop.eup %5862  ;;  %v5702_v23 = vor.u32 %v5835_v28, %v5699_v25 }
 0x1f3   : > { %9632 = vst [vmem:[#allocation53_spill] sm:$0xff] %v7174_v11  ;;  %v1432_v4 = vadd.f32 %v7041_v9, %v1055_v0  ;;  %v1433_v63 = vadd.f32 %v7043_v13, %v1113_v61  ;;  %v5865_v12 = vpop.eup %5864  ;;  %v1566_v61 = vunpack.c.h.bf16 %v7084_v36  ;;  %v5506_v11 = vor.u32 %v5790_v29, %v5505_v16 }
 0x1f4   : > { %5321 = vmatmul.msk.bf16.gmra.mxu0 %vm978_vm2, %v6844_v39  ;;  %5331 = vmatmul.msk.bf16.gmra.mxu1 %vm978_vm2, %v6844_v39  ;;  %v5867_v0 = vpop.eup %5866  ;;  %v1568_v16 = vunpack.c.h.bf16 %v7102_v47 }
 0x1f5   : > { %v7198_v17 = vpack.c.bf16 %v1433_v63, %v1432_v4  ;;  %5341 = vmatmul.msk.bf16.gmra.mxu2 %vm978_vm2, %v6844_v39  ;;  %5351 = vmatmul.msk.bf16.gmra.mxu3 %vm978_vm2, %v6844_v39  ;;  %v5869_v52 = vpop.eup %5868  ;;  %v1637_v4 = vpack.c.bf16 %v5865_v12, %v5863_v30  ;;  %v1567_v39 = vunpack.c.l.bf16 %v7102_v47  ;;  %5872 = vtanh.f32 %v1566_v61 }
 0x1f6   : > { %3353 = vmatpush.bf16.msrb.mxu3 %v5702_v23  ;;  %3179 = vmatpush.bf16.msrb.mxu0 %v5506_v11  ;;  %v1638_v36 = vpack.c.bf16 %v5869_v52, %v5867_v0  ;;  %v5697_v11 = vld [vmem:[%s9544_s5 + $0x2a0] sm:$0xf]  ;;  %v1569_v23 = vunpack.c.l.bf16 %v7124_v54  ;;  %v5871_v29 = vpop.eup %5870  ;;  %v1570_v0 = vunpack.c.h.bf16 %v7124_v54 }
 0x1f7   : > { %5874 = vtanh.f32 %v1567_v39 }
 0x1f8   : > { %v1057_v63 = vpop.f32.mrf.mxu2  ;;  %v1115_v35 = vpop.f32.mrf.mxu3  ;;  %v1658_v3 = vunpack.c.l.bf16 %v1638_v36  ;;  %v1659_v47 = vunpack.c.h.bf16 %v1638_v36  ;;  %5876 = vtanh.f32 %v1568_v16 }
 0x1f9   : > { %v1058_v5 = vadd.f32 %v1057_v63, %v6840_v37  ;;  %v1116_v45 = vadd.f32 %v1115_v35, %v6842_v38  ;;  %v7211_v28 = vpop.f32.mrf.mxu0  ;;  %v7213_v25 = vpop.f32.mrf.mxu1  ;;  %v5838_v37 = vld [vmem:[%s9544_s5 + $0x2b4] sm:$0xf0]  ;;  %v1656_v38 = vunpack.c.l.bf16 %v1637_v4  ;;  %v1657_v35 = vunpack.c.h.bf16 %v1637_v4 }
 0x1fa   : > { %9633 = vst [vmem:[#allocation54_spill] sm:$0xff] %v7211_v28  ;;  %v5698_v52 = vor.u32 %v5838_v37, %v5697_v11  ;;  %v1696_v36 = vmul.f32 0.5, %v1658_v3  ;;  %v1697_v16 = vmul.f32 0.5, %v1659_v47  ;;  %5878 = vtanh.f32 %v1569_v23  ;;  %v5781_v47 = vld [vmem:[%s9544_s5 + $0xf4] sm:$0xf] }
 0x1fb   : > { %9634 = vst [vmem:[#allocation55_spill] sm:$0xff] %v7213_v25  ;;  %v1438_v30 = vadd.f32 %v7041_v9, %v1058_v5  ;;  %v1439_v12 = vadd.f32 %v7043_v13, %v1116_v45  ;;  %v5873_v61 = vpop.eup %5872  ;;  %v1694_v45 = vmul.f32 0.5, %v1656_v38  ;;  %v1695_v25 = vmul.f32 0.5, %v1657_v35  ;;  %v5483_v23 = vld [vmem:[%s9544_s5 + $0x108] sm:$0xf0] }
 0x1fc   : > { %3237 = vmatpush.bf16.msrb.mxu1 %v5698_v52  ;;  %v1639_v37 = vpack.c.bf16 %v5873_v61, %v5871_v29  ;;  %5880 = vtanh.f32 %v1570_v0  ;;  %v1571_v35 = vunpack.c.l.bf16 %v7154_v10  ;;  %v1733_v29 = vpack.c.bf16 %v1697_v16, %v1696_v36  ;;  %v5675_v0 = vld [vmem:[%s9544_s5 + $0x288] sm:$0xf0] }
 0x1fd   : > { %v7224_v1 = vpack.c.bf16 %v1439_v12, %v1438_v30  ;;  %v5875_v11 = vpop.eup %5874 }
 0x1fe   : > { %v5877_v38 = vpop.eup %5876  ;;  %v1660_v61 = vunpack.c.l.bf16 %v1639_v37  ;;  %5882 = vtanh.f32 %v1571_v35 }
 0x200   : > { %v1059_v63 = vpop.f32.mrf.mxu2  ;;  %v1117_v5 = vpop.f32.mrf.mxu3 }
 0x201   : > { %v1060_v4 = vadd.f32 %v1059_v63, %v6858_v42  ;;  %v1118_v39 = vadd.f32 %v1117_v5, %v6860_v43  ;;  %v7230_v30 = vpop.f32.mrf.mxu0  ;;  %v7232_v12 = vpop.f32.mrf.mxu1  ;;  %v1732_v42 = vpack.c.bf16 %v1695_v25, %v1694_v45  ;;  %v1572_v43 = vunpack.c.h.bf16 %v7154_v10  ;;  %v5829_v10 = vld [vmem:[%s9544_s5 + $0x274] sm:$0xf] }
 0x202   : > { %9635 = vst [vmem:[#allocation56_spill] sm:$0xff] %v7230_v30  ;;  %v5486_v25 = vor.u32 %v5781_v47, %v5483_v23  ;;  %v1640_v63 = vpack.c.bf16 %v5877_v38, %v5875_v11  ;;  %v5678_v5 = vor.u32 %v5829_v10, %v5675_v0  ;;  %v5879_v45 = vpop.eup %5878  ;;  %v1753_v23 = vunpack.c.l.bf16 %v1733_v29 }
 0x203   : > { %9636 = vst [vmem:[#allocation57_spill] sm:$0xff] %v7232_v12  ;;  %v1444_v54 = vadd.f32 %v7041_v9, %v1060_v4  ;;  %v1445_v52 = vadd.f32 %v7043_v13, %v1118_v39  ;;  %v1751_v36 = vunpack.c.l.bf16 %v1732_v42  ;;  %5884 = vtanh.f32 %v1572_v43 }
 0x204   : > { %5322 = vmatmul.msk.bf16.gmra.mxu0 %vm978_vm2, %v6872_v56  ;;  %5332 = vmatmul.msk.bf16.gmra.mxu1 %vm978_vm2, %v6872_v56  ;;  %v1752_v47 = vunpack.c.h.bf16 %v1732_v42  ;;  %v1662_v35 = vunpack.c.l.bf16 %v1640_v63  ;;  %v1663_v10 = vunpack.c.h.bf16 %v1640_v63  ;;  %v1754_v0 = vunpack.c.h.bf16 %v1733_v29 }
 0x205   : > { %v7242_v3 = vpack.c.bf16 %v1445_v52, %v1444_v54  ;;  %5342 = vmatmul.msk.bf16.gmra.mxu2 %vm978_vm2, %v6872_v56  ;;  %5352 = vmatmul.msk.bf16.gmra.mxu3 %vm978_vm2, %v6872_v56  ;;  %v1661_v56 = vunpack.c.h.bf16 %v1639_v37  ;;  %v5881_v54 = vpop.eup %5880  ;;  %v1698_v37 = vmul.f32 0.5, %v1660_v61  ;;  %v1573_v42 = vunpack.c.l.bf16 %v7168_v22 }
 0x206   : > { %3296 = vmatpush.bf16.msrb.mxu2 %v5486_v25  ;;  %3354 = vmatpush.bf16.msrb.mxu3 %v5678_v5  ;;  %v1641_v25 = vpack.c.bf16 %v5881_v54, %v5879_v45  ;;  %v5481_v5 = vld [vmem:[%s9544_s5 + $0xf0] sm:$0xf]  ;;  %v5883_v61 = vpop.eup %5882  ;;  %v1574_v63 = vunpack.c.h.bf16 %v7168_v22  ;;  %v1790_v54 = vadd.f32 0.5, %v1752_v47  ;;  %v1792_v28 = vadd.f32 0.5, %v1754_v0 }
 0x207   : > { %v1699_v38 = vmul.f32 0.5, %v1661_v56  ;;  %v1789_v56 = vadd.f32 0.5, %v1751_v36  ;;  %5886 = vtanh.f32 %v1573_v42  ;;  %v1576_v22 = vunpack.c.h.bf16 %v7198_v17 }
 0x208   : > { %v1062_v4 = vpop.f32.mrf.mxu2  ;;  %v1120_v39 = vpop.f32.mrf.mxu3  ;;  %v1665_v36 = vunpack.c.h.bf16 %v1641_v25  ;;  %5888 = vtanh.f32 %v1574_v63 }
 0x209   : > { %v7260_v16 = vpop.f32.mrf.mxu0  ;;  %v7262_v52 = vpop.f32.mrf.mxu1  ;;  %v1063_v12 = vadd.f32 %v1062_v4, %v6868_v62  ;;  %v1121_v11 = vadd.f32 %v1120_v39, %v6870_v55  ;;  %v5784_v62 = vld [vmem:[%s9544_s5 + $0x104] sm:$0xf0]  ;;  %v5673_v55 = vld [vmem:[%s9544_s5 + $0x270] sm:$0xf]  ;;  %v1734_v40 = vpack.c.bf16 %v1699_v38, %v1698_v37  ;;  %v1577_v37 = vunpack.c.l.bf16 %v7224_v1 }
 0x20a   : > { %9637 = vst [vmem:[#allocation58_spill] sm:$0xff] %v7260_v16  ;;  %v5482_v29 = vor.u32 %v5784_v62, %v5481_v5  ;;  %v5885_v39 = vpop.eup %5884  ;;  %v1701_v16 = vmul.f32 0.5, %v1663_v10  ;;  %v1664_v5 = vunpack.c.l.bf16 %v1641_v25  ;;  %v1575_v62 = vunpack.c.l.bf16 %v7198_v17 }
 0x20b   : > { %9638 = vst [vmem:[#allocation59_spill] sm:$0xff] %v7262_v52  ;;  %v1450_v30 = vadd.f32 %v7041_v9, %v1063_v12  ;;  %v1451_v43 = vadd.f32 %v7043_v13, %v1121_v11  ;;  %v5832_v12 = vld [vmem:[%s9544_s5 + $0x284] sm:$0xf0]  ;;  %v1791_v11 = vadd.f32 0.5, %v1753_v23  ;;  %v1700_v52 = vmul.f32 0.5, %v1662_v35 }
 0x20c   : > { %v5674_v4 = vor.u32 %v5832_v12, %v5673_v55  ;;  %3180 = vmatpush.bf16.msrb.mxu0 %v5482_v29  ;;  %v1642_v23 = vpack.c.bf16 %v5885_v39, %v5883_v61  ;;  %v1578_v10 = vunpack.c.h.bf16 %v7224_v1  ;;  %v7294_v0 = vpack.c.bf16 %v1790_v54, %v1789_v56 }
 0x20d   : > { %v7282_v45 = vpack.c.bf16 %v1451_v43, %v1450_v30  ;;  %v1735_v35 = vpack.c.bf16 %v1701_v16, %v1700_v52  ;;  %5890 = vtanh.f32 %v1575_v62  ;;  %v1755_v25 = vunpack.c.l.bf16 %v1734_v40  ;;  %v5887_v55 = vpop.eup %5886 }
 0x20e   : > { %3238 = vmatpush.bf16.msrb.mxu1 %v5674_v4  ;;  %5892 = vtanh.f32 %v1576_v22  ;;  %v1666_v1 = vunpack.c.l.bf16 %v1642_v23  ;;  %v1667_v16 = vunpack.c.h.bf16 %v1642_v23  ;;  %v1756_v42 = vunpack.c.h.bf16 %v1734_v40  ;;  %v5889_v12 = vpop.eup %5888 }
 0x20f   : > { %5894 = vtanh.f32 %v1577_v37  ;;  %v1757_v29 = vunpack.c.l.bf16 %v1735_v35  ;;  %v1793_v62 = vadd.f32 0.5, %v1755_v25  ;;  %v5775_v25 = vld [vmem:[%s9544_s5 + $0xc4] sm:$0xf]  ;;  %v1581_v63 = vunpack.c.l.bf16 %v7282_v45 }
 0x210   : > { %v1064_v2 = vpop.f32.mrf.mxu2  ;;  %v1122_v60 = vpop.f32.mrf.mxu3  ;;  %5896 = vtanh.f32 %v1578_v10  ;;  %v1705_v22 = vmul.f32 0.5, %v1667_v16  ;;  %v1794_v37 = vadd.f32 0.5, %v1756_v42  ;;  %v1643_v10 = vpack.c.bf16 %v5889_v12, %v5887_v55  ;;  %v5651_v12 = vld [vmem:[%s9544_s5 + $0x258] sm:$0xf0] }
 0x211   : > { %v1065_v30 = vadd.f32 %v1064_v2, %v6910_v51  ;;  %v7287_v43 = vpop.f32.mrf.mxu0  ;;  %v7289_v47 = vpop.f32.mrf.mxu1  ;;  %v1123_v38 = vadd.f32 %v1122_v60, %v6912_v49  ;;  %v7302_v2 = vpack.c.bf16 %v1792_v28, %v1791_v11  ;;  %v1702_v49 = vmul.f32 0.5, %v1664_v5 }
 0x212   : > { %9639 = vst [vmem:[#allocation60_spill] sm:$0xff] %v7289_v47  ;;  %v1703_v60 = vmul.f32 0.5, %v1665_v36  ;;  %v1758_v28 = vunpack.c.h.bf16 %v1735_v35  ;;  %v1704_v36 = vmul.f32 0.5, %v1666_v1 }
 0x213   : > { %v1456_v17 = vadd.f32 %v7041_v9, %v1065_v30  ;;  %v1457_v51 = vadd.f32 %v7043_v13, %v1123_v38  ;;  %v5891_v40 = vpop.eup %5890  ;;  %v1795_v38 = vadd.f32 0.5, %v1757_v29  ;;  %v1580_v29 = vunpack.c.h.bf16 %v7242_v3 }
 0x214   : > { %5323 = vmatmul.msk.bf16.gmra.mxu0 %vm978_vm2, %v6924_v6  ;;  %5333 = vmatmul.msk.bf16.gmra.mxu1 %vm978_vm2, %v6924_v6  ;;  %v1736_v4 = vpack.c.bf16 %v1703_v60, %v1702_v49  ;;  %v5893_v23 = vpop.eup %5892  ;;  %v1796_v35 = vadd.f32 0.5, %v1758_v28  ;;  %v5459_v49 = vld [vmem:[%s9544_s5 + $0xd8] sm:$0xf0]  ;;  %v5823_v60 = vld [vmem:[%s9544_s5 + $0x244] sm:$0xf]  ;;  %v1668_v30 = vunpack.c.l.bf16 %v1643_v10 }
 0x215   : > { %5343 = vmatmul.msk.bf16.gmra.mxu2 %vm978_vm2, %v6924_v6  ;;  %5353 = vmatmul.msk.bf16.gmra.mxu3 %vm978_vm2, %v6924_v6  ;;  %v7308_v52 = vpack.c.bf16 %v1457_v51, %v1456_v17  ;;  %v5462_v28 = vor.u32 %v5775_v25, %v5459_v49  ;;  %v5654_v1 = vor.u32 %v5823_v60, %v5651_v12 }
 0x216   : > { %v1759_v55 = vunpack.c.l.bf16 %v1736_v4  ;;  %v1760_v42 = vunpack.c.h.bf16 %v1736_v4  ;;  %v1644_v25 = vpack.c.bf16 %v5893_v23, %v5891_v40  ;;  %v7344_v49 = vpack.c.bf16 %v1794_v37, %v1793_v62 }
 0x217   : > { %3297 = vmatpush.bf16.msrb.mxu2 %v5462_v28  ;;  %3355 = vmatpush.bf16.msrb.mxu3 %v5654_v1  ;;  %v7347_v47 = vpack.c.bf16 %v1796_v35, %v1795_v38 }
 0x218   : > { %v1067_v61 = vpop.f32.mrf.mxu2  ;;  %v1125_v56 = vpop.f32.mrf.mxu3  ;;  %v1797_v37 = vadd.f32 0.5, %v1759_v55  ;;  %v1670_v60 = vunpack.c.l.bf16 %v1644_v25 }
 0x219   : > { %v1068_v39 = vadd.f32 %v1067_v61, %v6920_v48  ;;  %v1126_v6 = vadd.f32 %v1125_v56, %v6922_v57  ;;  %v7313_v54 = vpop.f32.mrf.mxu0  ;;  %v7315_v11 = vpop.f32.mrf.mxu1  ;;  %v1579_v57 = vunpack.c.l.bf16 %v7242_v3  ;;  %v5457_v61 = vld [vmem:[%s9544_s5 + $0xc0] sm:$0xf]  ;;  %v5778_v56 = vld [vmem:[%s9544_s5 + $0xd4] sm:$0xf0]  ;;  %v1669_v3 = vunpack.c.h.bf16 %v1643_v10 }
 0x21a   : > { %9640 = vst [vmem:[#allocation61_spill] sm:$0xff] %v7313_v54  ;;  %v5895_v48 = vpop.eup %5894  ;;  %v5458_v4 = vor.u32 %v5778_v56, %v5457_v61  ;;  %v1798_v10 = vadd.f32 0.5, %v1760_v42  ;;  %v1583_v42 = vunpack.c.l.bf16 %v7308_v52 }
 0x21b   : > { %9641 = vst [vmem:[#allocation62_spill] sm:$0xff] %v7315_v11  ;;  %v1462_v17 = vadd.f32 %v7041_v9, %v1068_v39  ;;  %v1463_v51 = vadd.f32 %v7043_v13, %v1126_v6  ;;  %v5897_v16 = vpop.eup %5896  ;;  %v1737_v39 = vpack.c.bf16 %v1705_v22, %v1704_v36  ;;  %5898 = vtanh.f32 %v1579_v57 }
 0x21c   : > { %v1645_v5 = vpack.c.bf16 %v5897_v16, %v5895_v48  ;;  %3181 = vmatpush.bf16.msrb.mxu0 %v5458_v4  ;;  %5900 = vtanh.f32 %v1580_v29  ;;  %v1582_v36 = vunpack.c.h.bf16 %v7282_v45  ;;  %v5649_v45 = vld [vmem:[%s9544_s5 + $0x240] sm:$0xf] }
 0x21d   : > { %v7342_v6 = vpack.c.bf16 %v1463_v51, %v1462_v17  ;;  %v1761_v48 = vunpack.c.l.bf16 %v1737_v39  ;;  %v1762_v57 = vunpack.c.h.bf16 %v1737_v39  ;;  %v1706_v17 = vmul.f32 0.5, %v1668_v30 }
 0x21e   : > { %v1707_v51 = vmul.f32 0.5, %v1669_v3  ;;  %5902 = vtanh.f32 %v1581_v63  ;;  %v1672_v30 = vunpack.c.l.bf16 %v1645_v5  ;;  %v1673_v35 = vunpack.c.h.bf16 %v1645_v5 }
 0x21f   : > { %5904 = vtanh.f32 %v1582_v36  ;;  %v1799_v16 = vadd.f32 0.5, %v1761_v48  ;;  %v1800_v55 = vadd.f32 0.5, %v1762_v57  ;;  %v1584_v5 = vunpack.c.h.bf16 %v7308_v52 }
 0x220   : > { %v1069_v11 = vpop.f32.mrf.mxu2  ;;  %v1127_v54 = vpop.f32.mrf.mxu3  ;;  %v1708_v39 = vmul.f32 0.5, %v1670_v60  ;;  %v7380_v36 = vpack.c.bf16 %v1798_v10, %v1797_v37  ;;  %5906 = vtanh.f32 %v1583_v42  ;;  %v1586_v37 = vunpack.c.h.bf16 %v7342_v6 }
 0x221   : > { %v1070_v22 = vadd.f32 %v1069_v11, %v6938_v32  ;;  %v1128_v40 = vadd.f32 %v1127_v54, %v6940_v46  ;;  %v7352_v23 = vpop.f32.mrf.mxu0  ;;  %v7354_v62 = vpop.f32.mrf.mxu1  ;;  %v5826_v32 = vld [vmem:[%s9544_s5 + $0x254] sm:$0xf0]  ;;  %v1671_v46 = vunpack.c.h.bf16 %v1644_v25  ;;  %5908 = vtanh.f32 %v1584_v5 }
 0x222   : > { %v5650_v11 = vor.u32 %v5826_v32, %v5649_v45  ;;  %v5899_v1 = vpop.eup %5898 }
 0x223   : > { %v1468_v38 = vadd.f32 %v7041_v9, %v1070_v22  ;;  %v1469_v54 = vadd.f32 %v7043_v13, %v1128_v40  ;;  %v5901_v28 = vpop.eup %5900  ;;  %v1709_v4 = vmul.f32 0.5, %v1671_v46  ;;  %v1710_v22 = vmul.f32 0.5, %v1672_v30  ;;  %v5435_v46 = vld [vmem:[%s9544_s5 + $0xa8] sm:$0xf0] }
 0x224   : > { %5324 = vmatmul.msk.bf16.gmra.mxu0 %vm978_vm2, %v6952_v41  ;;  %5334 = vmatmul.msk.bf16.gmra.mxu1 %vm978_vm2, %v6952_v41  ;;  %v1711_v40 = vmul.f32 0.5, %v1673_v35  ;;  %v5903_v45 = vpop.eup %5902  ;;  %v1646_v32 = vpack.c.bf16 %v5901_v28, %v5899_v1 }
 0x225   : > { %5344 = vmatmul.msk.bf16.gmra.mxu2 %vm978_vm2, %v6952_v41  ;;  %5354 = vmatmul.msk.bf16.gmra.mxu3 %vm978_vm2, %v6952_v41  ;;  %v7374_v29 = vpack.c.bf16 %v1469_v54, %v1468_v38  ;;  %v1738_v41 = vpack.c.bf16 %v1707_v51, %v1706_v17  ;;  %v1585_v17 = vunpack.c.l.bf16 %v7342_v6  ;;  %v7389_v51 = vpack.c.bf16 %v1800_v55, %v1799_v16  ;;  %v5905_v60 = vpop.eup %5904  ;;  %v5817_v54 = vld [vmem:[%s9544_s5 + $0x214] sm:$0xf]  ;;  %v5627_v6 = vld [vmem:[%s9544_s5 + $0x228] sm:$0xf0] }
 0x226   : > { %3239 = vmatpush.bf16.msrb.mxu1 %v5650_v11  ;;  %v1739_v35 = vpack.c.bf16 %v1709_v4, %v1708_v39  ;;  %v1740_v16 = vpack.c.bf16 %v1711_v40, %v1710_v22  ;;  %v5630_v28 = vor.u32 %v5817_v54, %v5627_v6  ;;  %v1674_v5 = vunpack.c.l.bf16 %v1646_v32  ;;  %v5907_v4 = vpop.eup %5906 }
 0x227   : > { %v1763_v11 = vunpack.c.l.bf16 %v1738_v41  ;;  %v1764_v30 = vunpack.c.h.bf16 %v1738_v41  ;;  %5910 = vtanh.f32 %v1585_v17 }
 0x228   : > { %v1072_v3 = vpop.f32.mrf.mxu2  ;;  %v1130_v25 = vpop.f32.mrf.mxu3  ;;  %5912 = vtanh.f32 %v1586_v37  ;;  %3356 = vmatpush.bf16.msrb.mxu3 %v5630_v28  ;;  %v1765_v40 = vunpack.c.l.bf16 %v1739_v35  ;;  %v1767_v17 = vunpack.c.l.bf16 %v1740_v16  ;;  %v1768_v6 = vunpack.c.h.bf16 %v1740_v16 }
 0x229   : > { %v1073_v48 = vadd.f32 %v1072_v3, %v6948_v18  ;;  %v1131_v57 = vadd.f32 %v1130_v25, %v6950_v7  ;;  %v7384_v52 = vpop.f32.mrf.mxu0  ;;  %v7386_v38 = vpop.f32.mrf.mxu1  ;;  %v5769_v7 = vld [vmem:[%s9544_s5 + $0x94] sm:$0xf]  ;;  %v1675_v3 = vunpack.c.h.bf16 %v1646_v32  ;;  %v1647_v25 = vpack.c.bf16 %v5905_v60, %v5903_v45 }
 0x22a   : > { %9642 = vst [vmem:[#allocation63_spill] sm:$0xff] %v7386_v38  ;;  %v5438_v42 = vor.u32 %v5769_v7, %v5435_v46  ;;  %v1802_v22 = vadd.f32 0.5, %v1764_v30  ;;  %v5909_v32 = vpop.eup %5908  ;;  %v1766_v45 = vunpack.c.h.bf16 %v1739_v35  ;;  %v5625_v35 = vld [vmem:[%s9544_s5 + $0x210] sm:$0xf]  ;;  %v1805_v41 = vadd.f32 0.5, %v1767_v17 }
 0x22b   : > { %v1474_v10 = vadd.f32 %v7041_v9, %v1073_v48  ;;  %v1475_v18 = vadd.f32 %v7043_v13, %v1131_v57  ;;  %v1587_v48 = vunpack.c.l.bf16 %v7374_v29  ;;  %v1801_v57 = vadd.f32 0.5, %v1763_v11 }
 0x22c   : > { %3298 = vmatpush.bf16.msrb.mxu2 %v5438_v42  ;;  %v1712_v42 = vmul.f32 0.5, %v1674_v5  ;;  %v1713_v11 = vmul.f32 0.5, %v1675_v3  ;;  %v1676_v30 = vunpack.c.l.bf16 %v1647_v25  ;;  %v1677_v28 = vunpack.c.h.bf16 %v1647_v25  ;;  %v5820_v25 = vld [vmem:[%s9544_s5 + $0x224] sm:$0xf0] }
 0x22d   : > { %v7407_v55 = vpack.c.bf16 %v1475_v18, %v1474_v10  ;;  %v1588_v10 = vunpack.c.h.bf16 %v7374_v29  ;;  %5914 = vtanh.f32 %v1587_v48  ;;  %v5911_v16 = vpop.eup %5910  ;;  %v1648_v5 = vpack.c.bf16 %v5909_v32, %v5907_v4 }
 0x22e   : > { %v7438_v48 = vpack.c.bf16 %v1802_v22, %v1801_v57  ;;  %v1803_v32 = vadd.f32 0.5, %v1765_v40  ;;  %v1806_v1 = vadd.f32 0.5, %v1768_v6  ;;  %v1741_v56 = vpack.c.bf16 %v1713_v11, %v1712_v42 }
 0x22f   : > { %5916 = vtanh.f32 %v1588_v10  ;;  %v1589_v3 = vunpack.c.l.bf16 %v7407_v55  ;;  %v5626_v10 = vor.u32 %v5820_v25, %v5625_v35  ;;  %v1714_v61 = vmul.f32 0.5, %v1676_v30 }
 0x230   : > { %v1074_v18 = vpop.f32.mrf.mxu2  ;;  %v1132_v7 = vpop.f32.mrf.mxu3  ;;  %v1715_v57 = vmul.f32 0.5, %v1677_v28  ;;  %v1679_v22 = vunpack.c.h.bf16 %v1648_v5  ;;  %v1769_v35 = vunpack.c.l.bf16 %v1741_v56 }
 0x231   : > { %v1075_v60 = vadd.f32 %v1074_v18, %v6966_v31  ;;  %v1133_v37 = vadd.f32 %v1132_v7, %v6968_v59  ;;  %v7415_v46 = vpop.f32.mrf.mxu0  ;;  %v7417_v54 = vpop.f32.mrf.mxu1  ;;  %v5433_v31 = vld [vmem:[%s9544_s5 + $0x90] sm:$0xf]  ;;  %v5772_v59 = vld [vmem:[%s9544_s5 + $0xa4] sm:$0xf0]  ;;  %v1590_v7 = vunpack.c.h.bf16 %v7407_v55  ;;  %3240 = vmatpush.bf16.msrb.mxu1 %v5626_v10  ;;  %5918 = vtanh.f32 %v1589_v3 }
 0x232   : > { %9643 = vst [vmem:[#allocation64_spill] sm:$0xff] %v7415_v46  ;;  %v5913_v18 = vpop.eup %5912  ;;  %v5434_v4 = vor.u32 %v5772_v59, %v5433_v31  ;;  %v7455_v59 = vpack.c.bf16 %v1806_v1, %v1805_v41  ;;  %v5805_v1 = vld [vmem:[%s9544_s5 + $0x1b4] sm:$0xf] }
 0x233   : > { %9644 = vst [vmem:[#allocation65_spill] sm:$0xff] %v7417_v54  ;;  %v1480_v29 = vadd.f32 %v7041_v9, %v1075_v60  ;;  %v1481_v39 = vadd.f32 %v7043_v13, %v1133_v37  ;;  %v1804_v37 = vadd.f32 0.5, %v1766_v45  ;;  %5920 = vtanh.f32 %v1590_v7  ;;  %v9674_v46 = vld [vmem:[#allocation12_spill] sm:$0xff] }
 0x234   : > { %5325 = vmatmul.msk.bf16.gmra.mxu0 %vm978_vm2, %v6980_v27  ;;  %5335 = vmatmul.msk.bf16.gmra.mxu1 %vm978_vm2, %v6980_v27 }
 0x235   : > { %v1549_v60 = vpack.c.bf16 %v1481_v39, %v1480_v29  ;;  %5345 = vmatmul.msk.bf16.gmra.mxu2 %vm978_vm2, %v6980_v27  ;;  %5355 = vmatmul.msk.bf16.gmra.mxu3 %vm978_vm2, %v6980_v27  ;;  %v1678_v39 = vunpack.c.l.bf16 %v1648_v5  ;;  %v1649_v29 = vpack.c.bf16 %v5913_v18, %v5911_v16  ;;  %v5915_v27 = vpop.eup %5914  ;;  %v7453_v28 = vpack.c.bf16 %v1804_v37, %v1803_v32 }
 0x236   : > { %3182 = vmatpush.bf16.msrb.mxu0 %v5434_v4  ;;  %v5917_v42 = vpop.eup %5916  ;;  %v1742_v16 = vpack.c.bf16 %v1715_v57, %v1714_v61  ;;  %v1807_v57 = vadd.f32 0.5, %v1769_v35 }
 0x237   : > { %v1591_v31 = vunpack.c.l.bf16 %v1549_v60  ;;  %v1592_v11 = vunpack.c.h.bf16 %v1549_v60  ;;  %v1680_v3 = vunpack.c.l.bf16 %v1649_v29  ;;  %v1681_v25 = vunpack.c.h.bf16 %v1649_v29  ;;  %v5919_v60 = vpop.eup %5918 }
 0x238   : > { %v1077_v12 = vpop.f32.mrf.mxu2  ;;  %v1135_v63 = vpop.f32.mrf.mxu3  ;;  %v1650_v18 = vpack.c.bf16 %v5917_v42, %v5915_v27  ;;  %v1771_v10 = vunpack.c.l.bf16 %v1742_v16  ;;  %v1772_v32 = vunpack.c.h.bf16 %v1742_v16 }
 0x239   : > { %v1078_v40 = vadd.f32 %v1077_v12, %v6976_v58  ;;  %v1136_v45 = vadd.f32 %v1135_v63, %v6978_v33  ;;  %v7448_v17 = vpop.f32.mrf.mxu0  ;;  %v7450_v6 = vpop.f32.mrf.mxu1  ;;  %v1770_v12 = vunpack.c.h.bf16 %v1741_v56  ;;  %v1716_v33 = vmul.f32 0.5, %v1678_v39 }
 0x23a   : > { %9645 = vst [vmem:[#allocation66_spill] sm:$0xff] %v7448_v17  ;;  %v1717_v63 = vmul.f32 0.5, %v1679_v22  ;;  %5922 = vtanh.f32 %v1591_v31  ;;  %v5921_v41 = vpop.eup %5920  ;;  %v1682_v42 = vunpack.c.l.bf16 %v1650_v18 }
 0x23b   : > { %9646 = vst [vmem:[#allocation67_spill] sm:$0xff] %v7450_v6  ;;  %v1486_v5 = vadd.f32 %v7041_v9, %v1078_v40  ;;  %v1487_v58 = vadd.f32 %v7043_v13, %v1136_v45  ;;  %5924 = vtanh.f32 %v1592_v11  ;;  %v1808_v39 = vadd.f32 0.5, %v1770_v12 }
 0x23c   : > { %v7462_v22 = vpack.c.bf16 %v1717_v63, %v1716_v33  ;;  %v1718_v40 = vmul.f32 0.5, %v1680_v3  ;;  %v1719_v45 = vmul.f32 0.5, %v1681_v25  ;;  %v1809_v33 = vadd.f32 0.5, %v1771_v10 }
 0x23d   : > { %v1552_v7 = vpack.c.bf16 %v1487_v58, %v1486_v5  ;;  %v1651_v58 = vpack.c.bf16 %v5921_v41, %v5919_v60  ;;  %v1810_v63 = vadd.f32 0.5, %v1772_v32  ;;  %v7488_v60 = vpack.c.bf16 %v1808_v39, %v1807_v57  ;;  %v5409_v57 = vld [vmem:[%s9544_s5 + $0x60] sm:$0xf] }
 0x23e   : > { %v1773_v25 = vunpack.c.l.bf16 %v7462_v22  ;;  %v1774_v41 = vunpack.c.h.bf16 %v7462_v22  ;;  %v7491_v10 = vpack.c.bf16 %v1719_v45, %v1718_v40  ;;  %v1720_v32 = vmul.f32 0.5, %v1682_v42  ;;  %v5766_v45 = vld [vmem:[%s9544_s5 + $0x74] sm:$0xf0] }
 0x23f   : > { %v1593_v37 = vunpack.c.l.bf16 %v1552_v7  ;;  %v1594_v56 = vunpack.c.h.bf16 %v1552_v7  ;;  %v1683_v7 = vunpack.c.h.bf16 %v1650_v18  ;;  %v5811_v18 = vld [vmem:[%s9544_s5 + $0x1e4] sm:$0xf]  ;;  %v1684_v39 = vunpack.c.l.bf16 %v1651_v58  ;;  %v5814_v42 = vld [vmem:[%s9544_s5 + $0x1f4] sm:$0xf0] }
 0x240   : > { %v1079_v29 = vpop.f32.mrf.mxu2  ;;  %v1137_v27 = vpop.f32.mrf.mxu3  ;;  %v1685_v22 = vunpack.c.h.bf16 %v1651_v58  ;;  %v1775_v30 = vunpack.c.l.bf16 %v7491_v10 }
 0x241   : > { %5926 = vtanh.f32 %v1593_v37  ;;  %v7465_v11 = vpop.f32.mrf.mxu0  ;;  %v7467_v5 = vpop.f32.mrf.mxu1  ;;  %v1080_v16 = vadd.f32 %v1079_v29, %v6994_v14  ;;  %v1138_v35 = vadd.f32 %v1137_v27, %v6996_v20  ;;  %v5763_v14 = vld [vmem:[%s9544_s5 + $0x64] sm:$0xf]  ;;  %v5411_v20 = vld [vmem:[%s9544_s5 + $0x78] sm:$0xf0] }
 0x242   : > { %9647 = vst [vmem:[#allocation68_spill] sm:$0xff] %v7465_v11  ;;  %5928 = vtanh.f32 %v1594_v56  ;;  %v5923_v12 = vpop.eup %5922  ;;  %v5414_v56 = vor.u32 %v5763_v14, %v5411_v20  ;;  %v5603_v29 = vld [vmem:[%s9544_s5 + $0x1f8] sm:$0xf0]  ;;  %v5410_v20 = vor.u32 %v5766_v45, %v5409_v57  ;;  %v1723_v57 = vmul.f32 0.5, %v1685_v22 }
 0x243   : > { %9648 = vst [vmem:[#allocation69_spill] sm:$0xff] %v7467_v5  ;;  %v5925_v3 = vpop.eup %5924  ;;  %v1492_v37 = vadd.f32 %v7041_v9, %v1080_v16  ;;  %v1493_v61 = vadd.f32 %v7043_v13, %v1138_v35  ;;  %v5606_v40 = vor.u32 %v5811_v18, %v5603_v29  ;;  %v1721_v35 = vmul.f32 0.5, %v1683_v7 }
 0x244   : > { %5326 = vmatmul.msk.bf16.gmra.mxu0 %vm978_vm2, %v7008_v15  ;;  %5336 = vmatmul.msk.bf16.gmra.mxu1 %vm978_vm2, %v7008_v15  ;;  %v1652_v14 = vpack.c.bf16 %v5925_v3, %v5923_v12  ;;  %v7516_v3 = vpack.c.bf16 %v1810_v63, %v1809_v33  ;;  %v1812_v45 = vadd.f32 0.5, %v1774_v41  ;;  %v6470_v41 = vld [vmem:[%s9543_s4] sm:$0x3f] }
 0x245   : > { %5346 = vmatmul.msk.bf16.gmra.mxu2 %vm978_vm2, %v7008_v15  ;;  %5356 = vmatmul.msk.bf16.gmra.mxu3 %vm978_vm2, %v7008_v15  ;;  %v1555_v27 = vpack.c.bf16 %v1493_v61, %v1492_v37  ;;  %v5601_v15 = vld [vmem:[%s9544_s5 + $0x1e0] sm:$0xf] }
 0x246   : > { %3299 = vmatpush.bf16.msrb.mxu2 %v5414_v56  ;;  %v5602_v58 = vor.u32 %v5814_v42, %v5601_v15  ;;  %3357 = vmatpush.bf16.msrb.mxu3 %v5606_v40  ;;  %v1722_v56 = vmul.f32 0.5, %v1684_v39  ;;  %v1811_v40 = vadd.f32 0.5, %v1773_v25  ;;  %v1745_v15 = vpack.c.bf16 %v1721_v35, %v1720_v32 }
 0x247   : > { %v5927_v16 = vpop.eup %5926  ;;  %v1595_v37 = vunpack.c.l.bf16 %v1555_v27  ;;  %v1596_v18 = vunpack.c.h.bf16 %v1555_v27  ;;  %3183 = vmatpush.bf16.msrb.mxu0 %v5410_v20  ;;  %v1686_v42 = vunpack.c.l.bf16 %v1652_v14  ;;  %v1687_v4 = vunpack.c.h.bf16 %v1652_v14 }
 0x248   : > { %v5929_v61 = vpop.eup %5928  ;;  %v1082_v29 = vpop.f32.mrf.mxu2  ;;  %3241 = vmatpush.bf16.msrb.mxu1 %v5602_v58  ;;  %v1776_v20 = vunpack.c.h.bf16 %v7491_v10  ;;  %v1813_v39 = vadd.f32 0.5, %v1775_v30  ;;  %v1746_v22 = vpack.c.bf16 %v1723_v57, %v1722_v56  ;;  %v1778_v25 = vunpack.c.h.bf16 %v1745_v15 }
 0x249   : > { %v1140_v31 = vpop.f32.mrf.mxu3  ;;  %v1653_v55 = vpack.c.bf16 %v5929_v61, %v5927_v16  ;;  %v1083_v5 = vadd.f32 %v1082_v29, %v7004_v53  ;;  %v873_v7 = vpop.f32.mrf.mxu0  ;;  %5930 = vtanh.f32 %v1595_v37  ;;  %v1724_v10 = vmul.f32 0.5, %v1686_v42 }
 0x24a   : > { %v931_v12 = vpop.f32.mrf.mxu1  ;;  %v1141_v27 = vadd.f32 %v1140_v31, %v7006_v21  ;;  %5932 = vtanh.f32 %v1596_v18  ;;  %v1777_v31 = vunpack.c.l.bf16 %v1745_v15  ;;  %v1814_v37 = vadd.f32 0.5, %v1776_v20  ;;  %v9654_v21 = vld [vmem:[#allocation5_spill] sm:$0xff] }
 0x24b   : > { %v1498_v16 = vadd.f32 %v7041_v9, %v1083_v5  ;;  %v1688_v58 = vunpack.c.l.bf16 %v1653_v55  ;;  %v1689_v33 = vunpack.c.h.bf16 %v1653_v55  ;;  %v7527_v9 = vperm.slane %v6470_v41, 2 }
 0x24c   : > { %v1499_v53 = vadd.f32 %v7043_v13, %v1141_v27  ;;  %v7529_v13 = vperm.slane %v6470_v41, 3  ;;  %v1725_v55 = vmul.f32 0.5, %v1687_v4  ;;  %v7531_v56 = vpack.c.bf16 %v1812_v45, %v1811_v40  ;;  %v9650_v45 = vld [vmem:[#allocation42_spill] sm:$0xff] }
 0x24d   : > { %v1726_v18 = vmul.f32 0.5, %v1688_v58  ;;  %v1727_v29 = vmul.f32 0.5, %v1689_v33  ;;  %v1779_v27 = vunpack.c.l.bf16 %v1746_v22  ;;  %v7535_v42 = vadd.f32 0.5, %v1777_v31 }
 0x24e   : > { %v1558_v61 = vpack.c.bf16 %v1499_v53, %v1498_v16  ;;  %v9649_v16 = vld [vmem:[#allocation3_spill] sm:$0xff]  ;;  %v1780_v4 = vunpack.c.h.bf16 %v1746_v22  ;;  %v1747_v20 = vpack.c.bf16 %v1725_v55, %v1724_v10  ;;  %v7549_v22 = vperm.slane %v6470_v41, 4 }
 0x24f   : > { %v5931_v5 = vpop.eup %5930  ;;  %v7553_v10 = vperm.slane %v6470_v41, 5  ;;  %v5757_v41 = vld [vmem:[%s9544_s5 + $0x34] sm:$0xf] }
 0x250   : > { %v1597_v32 = vunpack.c.l.bf16 %v1558_v61  ;;  %v1598_v35 = vunpack.c.h.bf16 %v1558_v61  ;;  %v1084_v30 = vpop.f32.mrf.mxu2  ;;  %v5933_v57 = vpop.eup %5932 }
 0x251   : > { %v1142_v14 = vpop.f32.mrf.mxu3  ;;  %v1153_v7 = vpop.f32.mrf.mxu0  ;;  %v1654_v61 = vpack.c.bf16 %v5933_v57, %v5931_v5  ;;  %v7537_v30 = vadd.f32 0.5, %v1778_v25  ;;  %v7551_v25 = vadd.f32 0.5, %v1779_v27  ;;  %v5387_v27 = vld [vmem:[%s9544_s5 + $0x48] sm:$0xf0] }
 0x252   : > { %v1211_v12 = vpop.f32.mrf.mxu1  ;;  %5934 = vtanh.f32 %v1597_v32  ;;  %v1154_v15 = vadd.f32 %v1153_v7, %v6732_v44  ;;  %v1748_v44 = vpack.c.bf16 %v1727_v29, %v1726_v18  ;;  %v7556_v32 = vadd.f32 0.5, %v1780_v4 }
 0x253   : > { %v1212_v53 = vadd.f32 %v1211_v12, %v9649_v16  ;;  %5936 = vtanh.f32 %v1598_v35  ;;  %v1690_v33 = vunpack.c.l.bf16 %v1654_v61  ;;  %v1691_v31 = vunpack.c.h.bf16 %v1654_v61 }
 0x254   : > { %v1392_v58 = vadd.f32 %v7527_v9, %v1154_v15  ;;  %5327 = vmatmul.msk.bf16.gmra.mxu0 %vm978_vm2, %v9650_v45  ;;  %5337 = vmatmul.msk.bf16.gmra.mxu1 %vm978_vm2, %v9650_v45  ;;  %v7558_v18 = vpack.c.bf16 %v1814_v37, %v1813_v39  ;;  %v1781_v7 = vunpack.c.l.bf16 %v1747_v20  ;;  %v1782_v12 = vunpack.c.h.bf16 %v1747_v20  ;;  %v9652_v37 = vld [vmem:[#allocation41_spill] sm:$0xff] }
 0x255   : > { %v1393_v40 = vadd.f32 %v7529_v13, %v1212_v53  ;;  %5347 = vmatmul.msk.bf16.gmra.mxu2 %vm978_vm2, %v9650_v45  ;;  %5357 = vmatmul.msk.bf16.gmra.mxu3 %vm978_vm2, %v9650_v45  ;;  %v1728_v35 = vmul.f32 0.5, %v1690_v33  ;;  %v1729_v14 = vmul.f32 0.5, %v1691_v31  ;;  %v1783_v61 = vunpack.c.l.bf16 %v1748_v44 }
 0x256   : > { %v5390_v33 = vor.u32 %v5757_v41, %v5387_v27  ;;  %v7583_v27 = vadd.f32 0.5, %v1781_v7  ;;  %v5385_v7 = vld [vmem:[%s9544_s5 + $0x30] sm:$0xf] }
 0x257   : > { %v1505_v5 = vpack.c.bf16 %v1393_v40, %v1392_v58  ;;  %v9651_v58 = vld [vmem:[#allocation40_spill] sm:$0xff]  ;;  %v7568_v31 = vpack.c.bf16 %v1729_v14, %v1728_v35 }
 0x258   : > { %v5935_v29 = vpop.eup %5934  ;;  %v1269_v16 = vpop.f32.mrf.mxu2  ;;  %3300 = vmatpush.bf16.msrb.mxu2 %v5390_v33 }
 0x259   : > { %v1846_v57 = vunpack.c.l.bf16 %v1505_v5  ;;  %v1847_v15 = vunpack.c.h.bf16 %v1505_v5  ;;  %v1327_v53 = vpop.f32.mrf.mxu3  ;;  %v5937_v4 = vpop.eup %5936  ;;  %v1270_v39 = vadd.f32 %v1269_v16, %v9651_v58  ;;  %v9653_v5 = vld [vmem:[#allocation4_spill] sm:$0xff]  ;;  %v5579_v16 = vld [vmem:[%s9544_s5 + $0x1c8] sm:$0xf0]  ;;  %v1784_v58 = vunpack.c.h.bf16 %v1748_v44 }
 0x25a   : > { %v1328_v40 = vadd.f32 %v1327_v53, %v9652_v37  ;;  %v1155_v45 = vpop.f32.mrf.mxu0  ;;  %v1213_v20 = vpop.f32.mrf.mxu1  ;;  %v1655_v53 = vpack.c.bf16 %v5937_v4, %v5935_v29  ;;  %v7587_v29 = vadd.f32 0.5, %v1782_v12  ;;  %v1785_v4 = vunpack.c.l.bf16 %v7568_v31 }
 0x25b   : > { %5938 = vtanh.f32 %v1846_v57  ;;  %v1156_v55 = vadd.f32 %v1155_v45, %v9653_v5  ;;  %v1214_v63 = vadd.f32 %v1213_v20, %v9654_v21  ;;  %v1394_v41 = vadd.f32 %v7549_v22, %v1270_v39 }
 0x25c   : > { %5940 = vtanh.f32 %v1847_v15  ;;  %v1395_v35 = vadd.f32 %v7553_v10, %v1328_v40  ;;  %v5582_v45 = vor.u32 %v5805_v1, %v5579_v16  ;;  %v7589_v15 = vadd.f32 0.5, %v1783_v61  ;;  %v5760_v1 = vld [vmem:[%s9544_s5 + $0x44] sm:$0xf0] }
 0x25d   : > { %v1398_v14 = vadd.f32 %v7527_v9, %v1156_v55  ;;  %v1399_v37 = vadd.f32 %v7529_v13, %v1214_v63  ;;  %v7592_v40 = vadd.f32 0.5, %v1784_v58  ;;  %v1692_v55 = vunpack.c.l.bf16 %v1655_v53 }
 0x25e   : > { %9655 = vst [vmem:[#allocation3_spill] sm:$0xff] %v7589_v15  ;;  %v1506_v39 = vpack.c.bf16 %v1395_v35, %v1394_v41  ;;  %3358 = vmatpush.bf16.msrb.mxu3 %v5582_v45  ;;  %v7602_v63 = vpack.c.bf16 %v7537_v30, %v7535_v42  ;;  %v1693_v61 = vunpack.c.h.bf16 %v1655_v53  ;;  %v5386_v41 = vor.u32 %v5760_v1, %v5385_v7  ;;  %v9658_v7 = vld [vmem:[#allocation6_spill] sm:$0xff] }
 0x25f   : > { %9656 = vst [vmem:[#allocation42_spill] sm:$0xff] %v7592_v40  ;;  %v1508_v20 = vpack.c.bf16 %v1399_v37, %v1398_v14  ;;  %v1786_v14 = vunpack.c.h.bf16 %v7568_v31  ;;  %v7607_v11 = vadd.f32 0.5, %v1785_v4  ;;  %v1730_v4 = vmul.f32 0.5, %v1692_v55 }
 0x260   : > { %v1941_v33 = vunpack.c.l.bf16 %v1506_v39  ;;  %v1942_v5 = vunpack.c.h.bf16 %v1506_v39  ;;  %v1271_v16 = vpop.f32.mrf.mxu2  ;;  %3184 = vmatpush.bf16.msrb.mxu0 %v5386_v41  ;;  %v1731_v1 = vmul.f32 0.5, %v1693_v61  ;;  %v9660_v55 = vunpack.c.l.bf16 %v7294_v0 }
 0x261   : > { %v5939_v12 = vpop.eup %5938  ;;  %v1329_v58 = vpop.f32.mrf.mxu3  ;;  %v1848_v37 = vunpack.c.l.bf16 %v1508_v20  ;;  %v1272_v45 = vadd.f32 %v1271_v16, %v7047_v24  ;;  %9657 = vst [vmem:[#allocation40_spill] sm:$0xff] %v7607_v11  ;;  %v1849_v30 = vunpack.c.h.bf16 %v1508_v20  ;;  %v5577_v24 = vld [vmem:[%s9544_s5 + $0x1b0] sm:$0xf]  ;;  %v9661_v16 = vunpack.c.h.bf16 %v7294_v0 }
 0x262   : > { %v5941_v35 = vpop.eup %5940  ;;  %v1330_v44 = vadd.f32 %v1329_v58, %v7049_v26  ;;  %v1158_v57 = vpop.f32.mrf.mxu0  ;;  %5942 = vtanh.f32 %v1941_v33  ;;  %v5808_v26 = vld [vmem:[%s9544_s5 + $0x1c4] sm:$0xf0] }
 0x263   : > { %v1216_v21 = vpop.f32.mrf.mxu1  ;;  %v1922_v42 = vpack.c.bf16 %v5941_v35, %v5939_v12  ;;  %5944 = vtanh.f32 %v1942_v5  ;;  %v1400_v53 = vadd.f32 %v7549_v22, %v1272_v45  ;;  %v1159_v31 = vadd.f32 %v1158_v57, %v9658_v7  ;;  %v9659_v33 = vld [vmem:[#allocation7_spill] sm:$0xff] }
 0x264   : > { %v1401_v39 = vadd.f32 %v7553_v10, %v1330_v44  ;;  %5328 = vmatmul.msk.bf16.gmra.mxu0 %vm978_vm2, %v7062_v19  ;;  %5338 = vmatmul.msk.bf16.gmra.mxu1 %vm978_vm2, %v7062_v19  ;;  %5946 = vtanh.f32 %v1848_v37  ;;  %v1217_v5 = vadd.f32 %v1216_v21, %v9659_v33  ;;  %v5578_v41 = vor.u32 %v5808_v26, %v5577_v24  ;;  %v9663_v24 = vld [vmem:[#allocation43_spill] sm:$0xff] }
 0x265   : > { %v2264_v12 = vunpack.c.l.bf16 %v1922_v42  ;;  %v2265_v20 = vunpack.c.h.bf16 %v1922_v42  ;;  %v1404_v44 = vadd.f32 %v7527_v9, %v1159_v31  ;;  %5348 = vmatmul.msk.bf16.gmra.mxu2 %vm978_vm2, %v7062_v19  ;;  %5358 = vmatmul.msk.bf16.gmra.mxu3 %vm978_vm2, %v7062_v19  ;;  %5948 = vtanh.f32 %v1849_v30 }
 0x266   : > { %v1509_v57 = vpack.c.bf16 %v1401_v39, %v1400_v53  ;;  %v7632_v35 = vadd.f32 0.5, %v1786_v14  ;;  %v1405_v21 = vadd.f32 %v7529_v13, %v1217_v5  ;;  %v7635_v53 = vpack.c.bf16 %v1731_v1, %v1730_v4  ;;  %3242 = vmatpush.bf16.msrb.mxu1 %v5578_v41 }
 0x267   : > { %v2302_v61 = vmul.f32 %v2264_v12, %v9660_v55  ;;  %v2303_v58 = vmul.f32 %v2265_v20, %v9661_v16 }
 0x268   : > { %9662 = vst [vmem:[#allocation41_spill] sm:$0xff] %v7632_v35  ;;  %v1943_v37 = vunpack.c.l.bf16 %v1509_v57  ;;  %v1944_v45 = vunpack.c.h.bf16 %v1509_v57  ;;  %v5943_v42 = vpop.eup %5942  ;;  %v1274_v19 = vpop.f32.mrf.mxu2  ;;  %v1511_v30 = vpack.c.bf16 %v1405_v21, %v1404_v44  ;;  %v9672_v35 = vld [vmem:[#allocation44_spill] sm:$0xff] }
 0x269   : > { %v2340_v39 = vpack.c.bf16 %v2303_v58, %v2302_v61  ;;  %v1332_v7 = vpop.f32.mrf.mxu3  ;;  %v5945_v12 = vpop.eup %5944  ;;  %v1275_v14 = vadd.f32 %v1274_v19, %v7058_v34  ;;  %v9664_v34 = vld [vmem:[#allocation8_spill] sm:$0xff] }
 0x26a   : > { %5950 = vtanh.f32 %v1943_v37  ;;  %v1333_v26 = vadd.f32 %v1332_v7, %v9663_v24  ;;  %v1160_v20 = vpop.f32.mrf.mxu0  ;;  %v2017_v1 = vpack.c.bf16 %v5945_v12, %v5943_v42  ;;  %v5947_v5 = vpop.eup %5946  ;;  %v1850_v55 = vunpack.c.l.bf16 %v1511_v30  ;;  %v9665_v24 = vld [vmem:[#allocation9_spill] sm:$0xff] }
 0x26b   : > { %v1218_v57 = vpop.f32.mrf.mxu1  ;;  %v2359_v33 = vunpack.c.l.bf16 %v2340_v39  ;;  %v2360_v4 = vunpack.c.h.bf16 %v2340_v39  ;;  %5952 = vtanh.f32 %v1944_v45  ;;  %v1851_v61 = vunpack.c.h.bf16 %v1511_v30  ;;  %v5949_v41 = vpop.eup %5948  ;;  %v5751_v45 = vld [vmem:[%s9544_s5 + $0x4] sm:$0xf]  ;;  %v5363_v42 = vld [vmem:[%s9544_s5 + $0x18] sm:$0xf0] }
 0x26c   : > { %v1406_v16 = vadd.f32 %v7549_v22, %v1275_v14  ;;  %v1407_v58 = vadd.f32 %v7553_v10, %v1333_v26  ;;  %v2036_v44 = vunpack.c.l.bf16 %v2017_v1  ;;  %v2037_v37 = vunpack.c.h.bf16 %v2017_v1 }
 0x26d   : > { %5954 = vtanh.f32 %v2359_v33  ;;  %v1161_v21 = vadd.f32 %v1160_v20, %v9664_v34  ;;  %v1923_v19 = vpack.c.bf16 %v5949_v41, %v5947_v5  ;;  %v1219_v39 = vadd.f32 %v1218_v57, %v9665_v24 }
 0x26e   : > { %5956 = vtanh.f32 %v2360_v4  ;;  %v1512_v7 = vpack.c.bf16 %v1407_v58, %v1406_v16  ;;  %v2074_v12 = vmul.f32 0.5, %v2036_v44  ;;  %v2075_v30 = vmul.f32 0.5, %v2037_v37 }
 0x26f   : > { %5958 = vtanh.f32 %v1850_v55  ;;  %v1410_v14 = vadd.f32 %v7527_v9, %v1161_v21  ;;  %v2266_v20 = vunpack.c.l.bf16 %v1923_v19  ;;  %v2267_v33 = vunpack.c.h.bf16 %v1923_v19 }
 0x270   : > { %v5951_v26 = vpop.eup %5950  ;;  %5960 = vtanh.f32 %v1851_v61  ;;  %v1945_v4 = vunpack.c.l.bf16 %v1512_v7  ;;  %v2112_v57 = vpack.c.bf16 %v2075_v30, %v2074_v12  ;;  %v1946_v5 = vunpack.c.h.bf16 %v1512_v7  ;;  %v1276_v58 = vpop.f32.mrf.mxu2 }
 0x271   : > { %v5953_v1 = vpop.eup %5952  ;;  %v1411_v16 = vadd.f32 %v7529_v13, %v1219_v39  ;;  %v1334_v41 = vpop.f32.mrf.mxu3  ;;  %v5366_v34 = vor.u32 %v5751_v45, %v5363_v42  ;;  %v9666_v24 = vunpack.c.l.bf16 %v7302_v2  ;;  %v9667_v55 = vunpack.c.h.bf16 %v7302_v2 }
 0x272   : > { %v2018_v21 = vpack.c.bf16 %v5953_v1, %v5951_v26  ;;  %5962 = vtanh.f32 %v1945_v4  ;;  %v1163_v0 = vpop.f32.mrf.mxu0  ;;  %v2131_v31 = vunpack.c.l.bf16 %v2112_v57  ;;  %v2132_v12 = vunpack.c.h.bf16 %v2112_v57 }
 0x273   : > { %v2304_v44 = vmul.f32 %v2266_v20, %v9666_v24  ;;  %v2305_v37 = vmul.f32 %v2267_v33, %v9667_v55  ;;  %v1221_v19 = vpop.f32.mrf.mxu1  ;;  %v7657_v61 = vpop.eup %5954  ;;  %5964 = vtanh.f32 %v1946_v5  ;;  %v1514_v7 = vpack.c.bf16 %v1411_v16, %v1410_v14  ;;  %3301 = vmatpush.bf16.msrb.mxu2 %v5366_v34 }
 0x274   : > { %v7659_v39 = vpop.eup %5956  ;;  %v2038_v42 = vunpack.c.l.bf16 %v2018_v21  ;;  %v2039_v30 = vunpack.c.h.bf16 %v2018_v21  ;;  %v1277_v20 = vadd.f32 %v1276_v58, %v7078_v50  ;;  %v2169_v33 = vadd.f32 0.5, %v2131_v31  ;;  %v9668_v31 = vld [vmem:[#allocation10_spill] sm:$0xff] }
 0x275   : > { %v2341_v45 = vpack.c.bf16 %v2305_v37, %v2304_v44  ;;  %v5959_v2 = vpop.eup %5958  ;;  %v2170_v26 = vadd.f32 0.5, %v2132_v12  ;;  %v1852_v4 = vunpack.c.l.bf16 %v1514_v7  ;;  %v1853_v1 = vunpack.c.h.bf16 %v1514_v7  ;;  %v9669_v7 = vld [vmem:[#allocation11_spill] sm:$0xff] }
 0x276   : > { %v5961_v24 = vpop.eup %5960  ;;  %v2076_v17 = vmul.f32 0.5, %v2038_v42  ;;  %v2077_v57 = vmul.f32 0.5, %v2039_v30  ;;  %v1412_v16 = vadd.f32 %v7549_v22, %v1277_v20  ;;  %v1335_v50 = vadd.f32 %v1334_v41, %v7080_v8  ;;  %v5555_v8 = vld [vmem:[%s9544_s5 + $0x198] sm:$0xf0] }
 0x277   : > { %v2361_v55 = vunpack.c.l.bf16 %v2341_v45  ;;  %v2362_v6 = vunpack.c.h.bf16 %v2341_v45  ;;  %v1924_v5 = vpack.c.bf16 %v5961_v24, %v5959_v2  ;;  %5966 = vtanh.f32 %v1852_v4  ;;  %v5361_v24 = vld [vmem:[%s9544_s5] sm:$0xf] }
 0x278   : > { %v5963_v34 = vpop.eup %5962  ;;  %v7664_v44 = vpack.c.bf16 %v2077_v57, %v2076_v17  ;;  %v1164_v58 = vadd.f32 %v1163_v0, %v9668_v31  ;;  %v1222_v45 = vadd.f32 %v1221_v19, %v9669_v7  ;;  %v1279_v42 = vpop.f32.mrf.mxu2  ;;  %v7670_v2 = vpack.c.bf16 %v2170_v26, %v2169_v33  ;;  %v5799_v17 = vld [vmem:[%s9544_s5 + $0x184] sm:$0xf] }
 0x279   : > { %5968 = vtanh.f32 %v2361_v55  ;;  %v5965_v37 = vpop.eup %5964  ;;  %v2268_v21 = vunpack.c.l.bf16 %v1924_v5  ;;  %v2269_v12 = vunpack.c.h.bf16 %v1924_v5  ;;  %v9670_v19 = vunpack.c.l.bf16 %v7344_v49  ;;  %v5754_v55 = vld [vmem:[%s9544_s5 + $0x14] sm:$0xf0] }
 0x27a   : > { %5970 = vtanh.f32 %v2362_v6  ;;  %v2019_v20 = vpack.c.bf16 %v5965_v37, %v5963_v34  ;;  %v1337_v6 = vpop.f32.mrf.mxu3  ;;  %v1165_v0 = vpop.f32.mrf.mxu0  ;;  %v2133_v41 = vunpack.c.l.bf16 %v7664_v44  ;;  %v9671_v33 = vunpack.c.h.bf16 %v7344_v49 }
 0x27b   : > { %5972 = vtanh.f32 %v1853_v1  ;;  %v2306_v4 = vmul.f32 %v2268_v21, %v9670_v19  ;;  %v1413_v1 = vadd.f32 %v7553_v10, %v1335_v50  ;;  %v1223_v57 = vpop.f32.mrf.mxu1  ;;  %v2134_v5 = vunpack.c.h.bf16 %v7664_v44  ;;  %v5553_v44 = vld [vmem:[%s9544_s5 + $0x180] sm:$0xf] }
 0x27c   : > { %v2307_v26 = vmul.f32 %v2269_v12, %v9671_v33  ;;  %v2040_v34 = vunpack.c.l.bf16 %v2019_v20  ;;  %v2041_v31 = vunpack.c.h.bf16 %v2019_v20  ;;  %v1416_v37 = vadd.f32 %v7527_v9, %v1164_v58  ;;  %v5802_v58 = vld [vmem:[%s9544_s5 + $0x194] sm:$0xf0] }
 0x27d   : > { %v5967_v21 = vpop.eup %5966  ;;  %v1515_v12 = vpack.c.bf16 %v1413_v1, %v1412_v16  ;;  %v1417_v50 = vadd.f32 %v7529_v13, %v1222_v45  ;;  %v5558_v7 = vor.u32 %v5799_v17, %v5555_v8  ;;  %v5362_v14 = vor.u32 %v5754_v55, %v5361_v24 }
 0x27e   : > { %v2342_v49 = vpack.c.bf16 %v2307_v26, %v2306_v4  ;;  %v2078_v33 = vmul.f32 0.5, %v2040_v34  ;;  %v2079_v30 = vmul.f32 0.5, %v2041_v31  ;;  %v1280_v11 = vadd.f32 %v1279_v42, %v9672_v35  ;;  %v9673_v42 = vld [vmem:[#allocation45_spill] sm:$0xff] }
 0x27f   : > { %v7693_v19 = vpop.eup %5968  ;;  %v7704_v16 = vadd.f32 0.5, %v2133_v41  ;;  %v1947_v8 = vunpack.c.l.bf16 %v1515_v12  ;;  %3359 = vmatpush.bf16.msrb.mxu3 %v5558_v7  ;;  %v1948_v1 = vunpack.c.h.bf16 %v1515_v12  ;;  %v1517_v35 = vpack.c.bf16 %v1417_v50, %v1416_v37  ;;  %3185 = vmatpush.bf16.msrb.mxu0 %v5362_v14 }
 0x280   : > { %v7702_v20 = vpop.eup %5970  ;;  %v2363_v45 = vunpack.c.l.bf16 %v2342_v49  ;;  %v2364_v17 = vunpack.c.h.bf16 %v2342_v49  ;;  %v2114_v26 = vpack.c.bf16 %v2079_v30, %v2078_v33  ;;  %v1338_v24 = vadd.f32 %v1337_v6, %v9673_v42  ;;  %v1281_v30 = vpop.f32.mrf.mxu2  ;;  %v9680_v42 = vld [vmem:[#allocation14_spill] sm:$0xff] }
 0x281   : > { %v5973_v4 = vpop.eup %5972  ;;  %v1418_v34 = vadd.f32 %v7549_v22, %v1280_v11  ;;  %v5554_v31 = vor.u32 %v5802_v58, %v5553_v44  ;;  %v1854_v41 = vunpack.c.l.bf16 %v1517_v35  ;;  %v1166_v40 = vadd.f32 %v1165_v0, %v9674_v46 }
 0x282   : > { %5974 = vtanh.f32 %v2363_v45  ;;  %v1925_v55 = vpack.c.bf16 %v5973_v4, %v5967_v21  ;;  %v2135_v54 = vunpack.c.l.bf16 %v2114_v26  ;;  %v1855_v7 = vunpack.c.h.bf16 %v1517_v35  ;;  %v1339_v21 = vpop.f32.mrf.mxu3  ;;  %v1168_v12 = vpop.f32.mrf.mxu0  ;;  %v9677_v45 = vld [vmem:[#allocation13_spill] sm:$0xff] }
 0x283   : > { %5976 = vtanh.f32 %v2364_v17  ;;  %3243 = vmatpush.bf16.msrb.mxu1 %v5554_v31  ;;  %v2172_v37 = vadd.f32 0.5, %v2134_v5  ;;  %v2136_v14 = vunpack.c.h.bf16 %v2114_v26  ;;  %v1419_v6 = vadd.f32 %v7553_v10, %v1338_v24  ;;  %v1226_v44 = vpop.f32.mrf.mxu1  ;;  %v9681_v31 = vld [vmem:[#allocation15_spill] sm:$0xff] }
 0x284   : > { %v2270_v49 = vunpack.c.l.bf16 %v1925_v55  ;;  %v2271_v15 = vunpack.c.h.bf16 %v1925_v55  ;;  %5978 = vtanh.f32 %v1947_v8  ;;  %v7710_v11 = vadd.f32 0.5, %v2135_v54  ;;  %v9678_v54 = vld [vmem:[#allocation46_spill] sm:$0xff] }
 0x285   : > { %5980 = vtanh.f32 %v1948_v1  ;;  %v9675_v50 = vunpack.c.l.bf16 %v7347_v47  ;;  %v9676_v46 = vunpack.c.h.bf16 %v7347_v47  ;;  %v1518_v58 = vpack.c.bf16 %v1419_v6, %v1418_v34  ;;  %v9679_v1 = vld [vmem:[#allocation47_spill] sm:$0xff] }
 0x286   : > { %5982 = vtanh.f32 %v1854_v41  ;;  %v1422_v5 = vadd.f32 %v7527_v9, %v1166_v40  ;;  %v1224_v17 = vadd.f32 %v1223_v57, %v9677_v45  ;;  %v1282_v26 = vadd.f32 %v1281_v30, %v9678_v54 }
 0x287   : > { %v2308_v33 = vmul.f32 %v2270_v49, %v9675_v50  ;;  %v2309_v0 = vmul.f32 %v2271_v15, %v9676_v46  ;;  %5984 = vtanh.f32 %v1855_v7  ;;  %v1340_v35 = vadd.f32 %v1339_v21, %v9679_v1 }
 0x288   : > { %v7718_v8 = vpop.eup %5974  ;;  %v1169_v24 = vadd.f32 %v1168_v12, %v9680_v42  ;;  %v2174_v15 = vadd.f32 0.5, %v2136_v14  ;;  %v1949_v55 = vunpack.c.l.bf16 %v1518_v58  ;;  %v1423_v34 = vadd.f32 %v7529_v13, %v1224_v17 }
 0x289   : > { %v7720_v4 = vpack.c.bf16 %v2309_v0, %v2308_v33  ;;  %v7725_v47 = vpop.eup %5976  ;;  %v1227_v40 = vadd.f32 %v1226_v44, %v9681_v31  ;;  %v1950_v49 = vunpack.c.h.bf16 %v1518_v58  ;;  %v1424_v7 = vadd.f32 %v7549_v22, %v1282_v26 }
 0x28a   : > { %v5979_v41 = vpop.eup %5978  ;;  %v1425_v30 = vadd.f32 %v7553_v10, %v1340_v35  ;;  %5986 = vtanh.f32 %v1949_v55  ;;  %v1520_v21 = vpack.c.bf16 %v1423_v34, %v1422_v5  ;;  %v1428_v12 = vadd.f32 %v7527_v9, %v1169_v24 }
 0x28b   : > { %v2365_v57 = vunpack.c.l.bf16 %v7720_v4  ;;  %v5981_v6 = vpop.eup %5980  ;;  %v1429_v14 = vadd.f32 %v7529_v13, %v1227_v40  ;;  %v2366_v33 = vunpack.c.h.bf16 %v7720_v4  ;;  %v7736_v54 = vpack.c.bf16 %v2172_v37, %v7704_v16 }
 0x28c   : > { %v5983_v50 = vpop.eup %5982  ;;  %v2020_v46 = vpack.c.bf16 %v5981_v6, %v5979_v41  ;;  %v1521_v0 = vpack.c.bf16 %v1425_v30, %v1424_v7  ;;  %v1856_v45 = vunpack.c.l.bf16 %v1520_v21  ;;  %v1857_v58 = vunpack.c.h.bf16 %v1520_v21 }
 0x28d   : > { %5988 = vtanh.f32 %v2365_v57  ;;  %v5985_v44 = vpop.eup %5984  ;;  %v1523_v17 = vpack.c.bf16 %v1429_v14, %v1428_v12  ;;  %v2435_v57 = vpack.c.bf16 %v7659_v39, %v7657_v61  ;;  %v7742_v16 = vpack.c.bf16 %v7702_v20, %v7693_v19 }
 0x28e   : > { %v2042_v26 = vunpack.c.l.bf16 %v2020_v46  ;;  %v2043_v1 = vunpack.c.h.bf16 %v2020_v46  ;;  %v1926_v5 = vpack.c.bf16 %v5985_v44, %v5983_v50  ;;  %5990 = vtanh.f32 %v1950_v49 }
 0x28f   : > { %5992 = vtanh.f32 %v1856_v45  ;;  %v1951_v35 = vunpack.c.l.bf16 %v1521_v0  ;;  %v1952_v42 = vunpack.c.h.bf16 %v1521_v0  ;;  %v1858_v24 = vunpack.c.l.bf16 %v1523_v17 }
 0x290   : > { %v2080_v55 = vmul.f32 0.5, %v2042_v26  ;;  %v2081_v4 = vmul.f32 0.5, %v2043_v1  ;;  %v2272_v34 = vunpack.c.l.bf16 %v1926_v5  ;;  %v2273_v31 = vunpack.c.h.bf16 %v1926_v5  ;;  %v5987_v40 = vpop.eup %5986 }
 0x291   : > { %5994 = vtanh.f32 %v1857_v58  ;;  %v1859_v41 = vunpack.c.h.bf16 %v1523_v17  ;;  %v9682_v7 = vunpack.c.l.bf16 %v7380_v36  ;;  %v9683_v6 = vunpack.c.h.bf16 %v7380_v36 }
 0x292   : > { %v7746_v49 = vpack.c.bf16 %v2081_v4, %v2080_v55  ;;  %5996 = vtanh.f32 %v1951_v35  ;;  %v2454_v12 = vunpack.c.l.bf16 %v7670_v2  ;;  %v2456_v61 = vunpack.c.l.bf16 %v7736_v54 }
 0x293   : > { %v7744_v37 = vpop.eup %5988  ;;  %v2310_v30 = vmul.f32 %v2272_v34, %v9682_v7  ;;  %v2311_v21 = vmul.f32 %v2273_v31, %v9683_v6  ;;  %5998 = vtanh.f32 %v1952_v42  ;;  %v2492_v39 = vunpack.c.l.bf16 %v2435_v57  ;;  %v1342_v7 = vpop.f32.mrf.mxu3 }
 0x294   : > { %v5991_v14 = vpop.eup %5990  ;;  %v9684_v19 = vunpack.c.l.bf16 %v7635_v53  ;;  %v9686_v50 = vunpack.c.h.bf16 %v7635_v53  ;;  %6000 = vtanh.f32 %v1858_v24  ;;  %v2494_v45 = vunpack.c.l.bf16 %v7742_v16 }
 0x295   : > { %v7762_v0 = vpack.c.bf16 %v2311_v21, %v2310_v30  ;;  %v5993_v36 = vpop.eup %5992  ;;  %v2021_v44 = vpack.c.bf16 %v5991_v14, %v5987_v40  ;;  %6002 = vtanh.f32 %v1859_v41  ;;  %v7767_v58 = vpack.c.bf16 %v7556_v32, %v7551_v25 }
 0x296   : > { %v7756_v20 = vadd.f32 0.5, %v9684_v19  ;;  %v7760_v46 = vadd.f32 0.5, %v9686_v50  ;;  %v7770_v17 = vpack.c.bf16 %v2174_v15, %v7710_v11  ;;  %6004 = vtanh.f32 %v2366_v33  ;;  %v5794_v11 = vld [vmem:[%s9544_s5 + $0x15c] sm:$0xf]  ;;  %v5539_v15 = vld [vmem:[%s9544_s5 + $0x170] sm:$0xf0]  ;;  %v1284_v33 = vpop.f32.mrf.mxu2 }
 0x297   : > { %v2137_v53 = vunpack.c.l.bf16 %v7746_v49  ;;  %v2530_v26 = vmul.f32 %v2492_v39, %v2454_v12  ;;  %v5995_v1 = vpop.eup %5994  ;;  %v2044_v5 = vunpack.c.l.bf16 %v2021_v44  ;;  %v2045_v35 = vunpack.c.h.bf16 %v2021_v44  ;;  %v1228_v39 = vpop.f32.mrf.mxu1 }
 0x298   : > { %9685 = vst [vmem:[#allocation4_spill] sm:$0xff] %v7756_v20  ;;  %v2532_v42 = vmul.f32 %v2494_v45, %v2456_v61  ;;  %v2455_v24 = vunpack.c.h.bf16 %v7670_v2  ;;  %v5997_v55 = vpop.eup %5996  ;;  %v2138_v4 = vunpack.c.h.bf16 %v7746_v49  ;;  %v2367_v34 = vunpack.c.l.bf16 %v7762_v0  ;;  %v1170_v61 = vpop.f32.mrf.mxu0 }
 0x299   : > { %9687 = vst [vmem:[#allocation5_spill] sm:$0xff] %v7760_v46  ;;  %v1927_v25 = vpack.c.bf16 %v5995_v1, %v5993_v36  ;;  %v2493_v32 = vunpack.c.h.bf16 %v2435_v57  ;;  %v5999_v31 = vpop.eup %5998  ;;  %v2082_v40 = vmul.f32 0.5, %v2044_v5  ;;  %v2083_v41 = vmul.f32 0.5, %v2045_v35 }
 0x29a   : > { %v7782_v2 = vpack.c.bf16 %v2532_v42, %v2530_v26  ;;  %v2457_v49 = vunpack.c.h.bf16 %v7736_v54  ;;  %v6001_v30 = vpop.eup %6000  ;;  %v2022_v21 = vpack.c.bf16 %v5999_v31, %v5997_v55  ;;  %v2495_v12 = vunpack.c.h.bf16 %v7742_v16  ;;  %v5842_v54 = vld [vmem:[%s9544_s5 + $0x2dc] sm:$0xf]  ;;  %v5731_v16 = vld [vmem:[%s9544_s5 + $0x2f0] sm:$0xf0] }
 0x29b   : > { %v2274_v6 = vunpack.c.l.bf16 %v1927_v25  ;;  %v2275_v57 = vunpack.c.h.bf16 %v1927_v25  ;;  %v6003_v14 = vpop.eup %6002  ;;  %v2368_v19 = vunpack.c.h.bf16 %v7762_v0  ;;  %v2116_v50 = vpack.c.bf16 %v2083_v41, %v2082_v40 }
 0x29c   : > { %9688 = vst [vmem:[#allocation6_spill] sm:$0xff] %v7782_v2  ;;  %3186 = vmatmul.bf16.vlgmr.msrb.gmra.mxu0 %v7782_v2  ;;  %v2531_v36 = vmul.f32 %v2493_v32, %v2455_v24  ;;  %3302 = vmatmul.bf16.vlgmr.msrb.gmra.mxu2 %v7782_v2  ;;  %v5542_v44 = vor.u32 %v5794_v11, %v5539_v15  ;;  %v7795_v45 = vpop.eup %6004  ;;  %v9689_v26 = vunpack.c.l.bf16 %v7389_v51  ;;  %v9690_v1 = vunpack.c.h.bf16 %v7389_v51 }
 0x29d   : > { %v2046_v35 = vunpack.c.l.bf16 %v2022_v21  ;;  %v2047_v42 = vunpack.c.h.bf16 %v2022_v21  ;;  %v2139_v24 = vunpack.c.l.bf16 %v2116_v50  ;;  %v2140_v55 = vunpack.c.h.bf16 %v2116_v50 }
 0x29e   : > { %v2312_v0 = vmul.f32 %v2274_v6, %v9689_v26  ;;  %v2313_v5 = vmul.f32 %v2275_v57, %v9690_v1  ;;  %v1928_v25 = vpack.c.bf16 %v6003_v14, %v6001_v30  ;;  %v2533_v32 = vmul.f32 %v2495_v12, %v2457_v49  ;;  %3526 = vmatpush.bf16.msra.mxu2 %v5542_v44  ;;  %v9693_v14 = vld [vmem:[#allocation48_spill] sm:$0xff] }
 0x29f   : > { %v2084_v15 = vmul.f32 0.5, %v2046_v35  ;;  %v2085_v31 = vmul.f32 0.5, %v2047_v42  ;;  %v5734_v40 = vor.u32 %v5842_v54, %v5731_v16  ;;  %v2177_v41 = vadd.f32 0.5, %v2139_v24  ;;  %v9695_v54 = vld [vmem:[#allocation16_spill] sm:$0xff]  ;;  %v1231_v24 = vpop.f32.mrf.mxu1 }
 0x2a0   : > { %v2345_v11 = vpack.c.bf16 %v2313_v5, %v2312_v0  ;;  %v2178_v2 = vadd.f32 0.5, %v2140_v55  ;;  %v2276_v46 = vunpack.c.l.bf16 %v1928_v25  ;;  %v2277_v20 = vunpack.c.h.bf16 %v1928_v25  ;;  %v5845_v26 = vld [vmem:[%s9544_s5 + $0x2ec] sm:$0xf0]  ;;  %v1344_v0 = vpop.f32.mrf.mxu3  ;;  %v9696_v5 = vld [vmem:[#allocation17_spill] sm:$0xff]  ;;  %v1173_v42 = vpop.f32.mrf.mxu0 }
 0x2a1   : > { %v2175_v38 = vadd.f32 0.5, %v2137_v53  ;;  %6006 = vtanh.f32 %v2367_v34  ;;  %v7801_v51 = vpack.c.bf16 %v2533_v32, %v2531_v36  ;;  %3584 = vmatpush.bf16.msra.mxu3 %v5734_v40  ;;  %v7803_v57 = vpack.c.bf16 %v2085_v31, %v2084_v15  ;;  %v9694_v53 = vld [vmem:[#allocation49_spill] sm:$0xff] }
 0x2a2   : > { %v2369_v6 = vunpack.c.l.bf16 %v2345_v11  ;;  %v9691_v30 = vunpack.c.l.bf16 %v7438_v48  ;;  %v9692_v21 = vunpack.c.h.bf16 %v7438_v48  ;;  %v1285_v50 = vadd.f32 %v1284_v33, %v9693_v14  ;;  %v5537_v36 = vld [vmem:[%s9544_s5 + $0x158] sm:$0xf]  ;;  %v1286_v48 = vpop.f32.mrf.mxu2 }
 0x2a3   : > { %v2176_v44 = vadd.f32 0.5, %v2138_v4  ;;  %6008 = vtanh.f32 %v2368_v19  ;;  %3244 = vmatmul.bf16.vlgmr.msrb.gmra.mxu1 %v7801_v51  ;;  %3360 = vmatmul.bf16.vlgmr.msrb.gmra.mxu3 %v7801_v51  ;;  %v1343_v34 = vadd.f32 %v1342_v7, %v9694_v53  ;;  %v7820_v33 = vpack.c.bf16 %v2178_v2, %v2177_v41  ;;  %v5729_v7 = vld [vmem:[%s9544_s5 + $0x2d8] sm:$0xf]  ;;  %v9697_v41 = vld [vmem:[#allocation50_spill] sm:$0xff] }
 0x2a4   : > { %v2314_v49 = vmul.f32 %v2276_v46, %v9691_v30  ;;  %v2315_v12 = vmul.f32 %v2277_v20, %v9692_v21  ;;  %v5797_v46 = vld [vmem:[%s9544_s5 + $0x16c] sm:$0xf0]  ;;  %v2458_v20 = vunpack.c.l.bf16 %v7770_v17  ;;  %v2370_v4 = vunpack.c.h.bf16 %v2345_v11 }
 0x2a5   : > { %v1430_v19 = vadd.f32 %v7549_v22, %v1285_v50  ;;  %v1171_v16 = vadd.f32 %v1170_v61, %v9695_v54  ;;  %6010 = vtanh.f32 %v2369_v6  ;;  %v1431_v2 = vadd.f32 %v7553_v10, %v1343_v34 }
 0x2a6   : > { %v7830_v1 = vpack.c.bf16 %v2315_v12, %v2314_v49  ;;  %v1229_v35 = vadd.f32 %v1228_v39, %v9696_v5  ;;  %v2141_v61 = vunpack.c.l.bf16 %v7803_v57  ;;  %v2142_v55 = vunpack.c.h.bf16 %v7803_v57  ;;  %v9698_v39 = vld [vmem:[#allocation51_spill] sm:$0xff]  ;;  %v9699_v49 = vld [vmem:[#allocation18_spill] sm:$0xff] }
 0x2a7   : > { %v1434_v25 = vadd.f32 %v7527_v9, %v1171_v16  ;;  %v5538_v32 = vor.u32 %v5797_v46, %v5537_v36  ;;  %v7837_v11 = vpop.eup %6006  ;;  %v1524_v15 = vpack.c.bf16 %v1431_v2, %v1430_v19  ;;  %v5730_v40 = vor.u32 %v5845_v26, %v5729_v7  ;;  %v9700_v12 = vld [vmem:[#allocation19_spill] sm:$0xff] }
 0x2a8   : > { %v1435_v31 = vadd.f32 %v7529_v13, %v1229_v35  ;;  %v1287_v6 = vadd.f32 %v1286_v48, %v9697_v41  ;;  %6012 = vtanh.f32 %v2370_v4  ;;  %v1345_v30 = vadd.f32 %v1344_v0, %v9698_v39 }
 0x2a9   : > { %3410 = vmatpush.bf16.msra.mxu0 %v5538_v32  ;;  %v1174_v21 = vadd.f32 %v1173_v42, %v9699_v49  ;;  %v1232_v14 = vadd.f32 %v1231_v24, %v9700_v12  ;;  %v7844_v50 = vpop.eup %6008  ;;  %v2371_v53 = vunpack.c.l.bf16 %v7830_v1  ;;  %v1953_v34 = vunpack.c.l.bf16 %v1524_v15  ;;  %3468 = vmatpush.bf16.msra.mxu1 %v5730_v40  ;;  %v9701_v49 = vld [vmem:[#allocation52_spill] sm:$0xff] }
 0x2aa   : > { %v1954_v36 = vunpack.c.h.bf16 %v1524_v15  ;;  %v1526_v46 = vpack.c.bf16 %v1435_v31, %v1434_v25  ;;  %v1436_v19 = vadd.f32 %v7549_v22, %v1287_v6  ;;  %v1437_v48 = vadd.f32 %v7553_v10, %v1345_v30  ;;  %v1289_v32 = vpop.f32.mrf.mxu2 }
 0x2ab   : > { %v1440_v4 = vadd.f32 %v7527_v9, %v1174_v21  ;;  %v1441_v54 = vadd.f32 %v7529_v13, %v1232_v14  ;;  %v7851_v16 = vpop.eup %6010  ;;  %6014 = vtanh.f32 %v1953_v34  ;;  %v2210_v0 = vpack.c.bf16 %v2176_v44, %v2175_v38  ;;  %v1347_v44 = vpop.f32.mrf.mxu3  ;;  %v9702_v14 = vld [vmem:[#allocation53_spill] sm:$0xff] }
 0x2ac   : > { %v1860_v7 = vunpack.c.l.bf16 %v1526_v46  ;;  %v1861_v26 = vunpack.c.h.bf16 %v1526_v46  ;;  %6016 = vtanh.f32 %v1954_v36  ;;  %v1527_v2 = vpack.c.bf16 %v1437_v48, %v1436_v19  ;;  %v5788_v36 = vld [vmem:[%s9544_s5 + $0x12c] sm:$0xf]  ;;  %v5515_v46 = vld [vmem:[%s9544_s5 + $0x140] sm:$0xf0]  ;;  %v1175_v19 = vpop.f32.mrf.mxu0  ;;  %v1233_v48 = vpop.f32.mrf.mxu1 }
 0x2ad   : > { %v1529_v5 = vpack.c.bf16 %v1441_v54, %v1440_v4  ;;  %v2437_v35 = vpack.c.bf16 %v7725_v47, %v7718_v8  ;;  %v2438_v42 = vpack.c.bf16 %v7795_v45, %v7744_v37  ;;  %v2460_v24 = vunpack.c.l.bf16 %v2210_v0 }
 0x2ae   : > { %6018 = vtanh.f32 %v1860_v7  ;;  %v2459_v25 = vunpack.c.h.bf16 %v7770_v17  ;;  %v7858_v15 = vpop.eup %6012  ;;  %v1955_v31 = vunpack.c.l.bf16 %v1527_v2  ;;  %v1956_v40 = vunpack.c.h.bf16 %v1527_v2 }
 0x2af   : > { %6020 = vtanh.f32 %v1861_v26  ;;  %v1862_v38 = vunpack.c.l.bf16 %v1529_v5  ;;  %v1863_v41 = vunpack.c.h.bf16 %v1529_v5  ;;  %v2496_v6 = vunpack.c.l.bf16 %v2437_v35 }
 0x2b0   : > { %v2498_v39 = vunpack.c.l.bf16 %v2438_v42  ;;  %v2461_v30 = vunpack.c.h.bf16 %v2210_v0  ;;  %6022 = vtanh.f32 %v1955_v31  ;;  %v2497_v8 = vunpack.c.h.bf16 %v2437_v35  ;;  %v9704_v31 = vld [vmem:[#allocation21_spill] sm:$0xff] }
 0x2b1   : > { %v2499_v47 = vunpack.c.h.bf16 %v2438_v42  ;;  %v1290_v37 = vadd.f32 %v1289_v32, %v9701_v49  ;;  %v6015_v45 = vpop.eup %6014  ;;  %6024 = vtanh.f32 %v1956_v40  ;;  %v2534_v21 = vmul.f32 %v2496_v6, %v2458_v20  ;;  %v5836_v6 = vld [vmem:[%s9544_s5 + $0x2ac] sm:$0xf] }
 0x2b2   : > { %v2536_v12 = vmul.f32 %v2498_v39, %v2460_v24  ;;  %v1348_v34 = vadd.f32 %v1347_v44, %v9702_v14  ;;  %v6017_v4 = vpop.eup %6016  ;;  %6026 = vtanh.f32 %v1862_v38  ;;  %v2535_v54 = vmul.f32 %v2497_v8, %v2459_v25  ;;  %v9703_v24 = vld [vmem:[#allocation20_spill] sm:$0xff]  ;;  %v5707_v39 = vld [vmem:[%s9544_s5 + $0x2c0] sm:$0xf0] }
 0x2b3   : > { %v2537_v7 = vmul.f32 %v2499_v47, %v2461_v30  ;;  %v1442_v17 = vadd.f32 %v7549_v22, %v1290_v37  ;;  %v2023_v26 = vpack.c.bf16 %v6017_v4, %v6015_v45  ;;  %6028 = vtanh.f32 %v1863_v41  ;;  %v5513_v45 = vld [vmem:[%s9544_s5 + $0x128] sm:$0xf] }
 0x2b4   : > { %v6019_v20 = vpop.eup %6018  ;;  %v7871_v0 = vpack.c.bf16 %v2536_v12, %v2534_v21  ;;  %v1443_v2 = vadd.f32 %v7553_v10, %v1348_v34  ;;  %v5518_v42 = vor.u32 %v5788_v36, %v5515_v46  ;;  %v1176_v32 = vadd.f32 %v1175_v19, %v9703_v24  ;;  %v5791_v21 = vld [vmem:[%s9544_s5 + $0x13c] sm:$0xf0] }
 0x2b5   : > { %v6021_v5 = vpop.eup %6020  ;;  %v7874_v35 = vpack.c.bf16 %v2537_v7, %v2535_v54  ;;  %v1234_v40 = vadd.f32 %v1233_v48, %v9704_v31  ;;  %v2048_v38 = vunpack.c.l.bf16 %v2023_v26  ;;  %v2049_v25 = vunpack.c.h.bf16 %v2023_v26 }
 0x2b6   : > { %v1929_v44 = vpack.c.bf16 %v6021_v5, %v6019_v20  ;;  %3191 = vmatmul.bf16.gmra.mxu0 %v7871_v0  ;;  %3307 = vmatmul.bf16.gmra.mxu2 %v7871_v0  ;;  %v1530_v41 = vpack.c.bf16 %v1443_v2, %v1442_v17  ;;  %v6023_v30 = vpop.eup %6022  ;;  %v2372_v8 = vunpack.c.h.bf16 %v7830_v1  ;;  %v1446_v47 = vadd.f32 %v7527_v9, %v1176_v32 }
 0x2b7   : > { %3249 = vmatmul.bf16.gmra.mxu1 %v7874_v35  ;;  %3365 = vmatmul.bf16.gmra.mxu3 %v7874_v35  ;;  %v1447_v49 = vadd.f32 %v7529_v13, %v1234_v40  ;;  %v5710_v37 = vor.u32 %v5836_v6, %v5707_v39  ;;  %v6025_v12 = vpop.eup %6024  ;;  %v2086_v14 = vmul.f32 0.5, %v2048_v38  ;;  %v2087_v34 = vmul.f32 0.5, %v2049_v25 }
 0x2b8   : > { %v2278_v36 = vunpack.c.l.bf16 %v1929_v44  ;;  %v2279_v46 = vunpack.c.h.bf16 %v1929_v44  ;;  %3527 = vmatpush.bf16.msra.mxu2 %v5518_v42  ;;  %v6027_v19 = vpop.eup %6026  ;;  %v2024_v48 = vpack.c.bf16 %v6025_v12, %v6023_v30  ;;  %v1957_v4 = vunpack.c.l.bf16 %v1530_v41 }
 0x2b9   : > { %v1958_v54 = vunpack.c.h.bf16 %v1530_v41  ;;  %v1532_v7 = vpack.c.bf16 %v1447_v49, %v1446_v47  ;;  %3585 = vmatpush.bf16.msra.mxu3 %v5710_v37  ;;  %v6029_v17 = vpop.eup %6028  ;;  %v2118_v20 = vpack.c.bf16 %v2087_v34, %v2086_v14  ;;  %v9705_v26 = vunpack.c.l.bf16 %v7453_v28  ;;  %v1291_v47 = vpop.f32.mrf.mxu2 }
 0x2ba   : > { %v9706_v5 = vunpack.c.h.bf16 %v7453_v28  ;;  %v5514_v32 = vor.u32 %v5791_v21, %v5513_v45  ;;  %v2050_v31 = vunpack.c.l.bf16 %v2024_v48  ;;  %v2051_v40 = vunpack.c.h.bf16 %v2024_v48  ;;  %v1349_v34 = vpop.f32.mrf.mxu3 }
 0x2bb   : > { %v2316_v2 = vmul.f32 %v2278_v36, %v9705_v26  ;;  %v1930_v38 = vpack.c.bf16 %v6029_v17, %v6027_v19  ;;  %6030 = vtanh.f32 %v1957_v4  ;;  %v2143_v42 = vunpack.c.l.bf16 %v2118_v20  ;;  %v5705_v36 = vld [vmem:[%s9544_s5 + $0x2a8] sm:$0xf] }
 0x2bc   : > { %v2317_v24 = vmul.f32 %v2279_v46, %v9706_v5  ;;  %v2144_v25 = vunpack.c.h.bf16 %v2118_v20  ;;  %6032 = vtanh.f32 %v1958_v54  ;;  %3411 = vmatpush.bf16.msra.mxu0 %v5514_v32  ;;  %v2088_v41 = vmul.f32 0.5, %v2050_v31  ;;  %v5839_v46 = vld [vmem:[%s9544_s5 + $0x2bc] sm:$0xf0] }
 0x2bd   : > { %v2089_v6 = vmul.f32 0.5, %v2051_v40  ;;  %v2280_v39 = vunpack.c.l.bf16 %v1930_v38  ;;  %v2281_v30 = vunpack.c.h.bf16 %v1930_v38  ;;  %v2179_v49 = vadd.f32 0.5, %v2141_v61 }
 0x2be   : > { %v2347_v44 = vpack.c.bf16 %v2317_v24, %v2316_v2  ;;  %6034 = vtanh.f32 %v2371_v53  ;;  %v2181_v28 = vadd.f32 0.5, %v2143_v42  ;;  %v2182_v45 = vadd.f32 0.5, %v2144_v25  ;;  %v9707_v53 = vld [vmem:[#allocation54_spill] sm:$0xff]  ;;  %v1178_v2 = vpop.f32.mrf.mxu0  ;;  %v1236_v24 = vpop.f32.mrf.mxu1 }
 0x2bf   : > { %v7905_v12 = vpack.c.bf16 %v2089_v6, %v2088_v41  ;;  %v1864_v14 = vunpack.c.l.bf16 %v1532_v7  ;;  %v2180_v1 = vadd.f32 0.5, %v2142_v55  ;;  %6036 = vtanh.f32 %v2372_v8  ;;  %v9710_v55 = vld [vmem:[#allocation55_spill] sm:$0xff]  ;;  %v9711_v25 = vld [vmem:[#allocation22_spill] sm:$0xff] }
 0x2c0   : > { %v2373_v37 = vunpack.c.l.bf16 %v2347_v44  ;;  %v2374_v21 = vunpack.c.h.bf16 %v2347_v44  ;;  %v1865_v61 = vunpack.c.h.bf16 %v1532_v7  ;;  %v1292_v19 = vadd.f32 %v1291_v47, %v9707_v53  ;;  %v9712_v6 = vld [vmem:[#allocation23_spill] sm:$0xff] }
 0x2c1   : > { %v6031_v48 = vpop.eup %6030  ;;  %v2145_v4 = vunpack.c.l.bf16 %v7905_v12  ;;  %v9708_v54 = vunpack.c.l.bf16 %v7455_v59  ;;  %v9709_v20 = vunpack.c.h.bf16 %v7455_v59  ;;  %v1350_v8 = vadd.f32 %v1349_v34, %v9710_v55 }
 0x2c2   : > { %6038 = vtanh.f32 %v2373_v37  ;;  %v6033_v5 = vpop.eup %6032  ;;  %v1448_v57 = vadd.f32 %v7549_v22, %v1292_v19  ;;  %v5706_v7 = vor.u32 %v5839_v46, %v5705_v36  ;;  %v7923_v32 = vpack.c.bf16 %v2182_v45, %v2181_v28  ;;  %v1294_v19 = vpop.f32.mrf.mxu2 }
 0x2c3   : > { %v2318_v17 = vmul.f32 %v2280_v39, %v9708_v54  ;;  %v2319_v26 = vmul.f32 %v2281_v30, %v9709_v20  ;;  %6040 = vtanh.f32 %v1864_v14  ;;  %v2146_v31 = vunpack.c.h.bf16 %v7905_v12 }
 0x2c4   : > { %6042 = vtanh.f32 %v2374_v21  ;;  %v2462_v40 = vunpack.c.l.bf16 %v7820_v33  ;;  %v7927_v38 = vpop.eup %6034  ;;  %v2025_v59 = vpack.c.bf16 %v6033_v5, %v6031_v48  ;;  %v1449_v42 = vadd.f32 %v7553_v10, %v1350_v8  ;;  %3469 = vmatpush.bf16.msra.mxu1 %v5706_v7 }
 0x2c5   : > { %6044 = vtanh.f32 %v1865_v61  ;;  %v1179_v44 = vadd.f32 %v1178_v2, %v9711_v25  ;;  %v7931_v41 = vpack.c.bf16 %v2319_v26, %v2318_v17  ;;  %v1237_v39 = vadd.f32 %v1236_v24, %v9712_v6  ;;  %v7936_v28 = vpop.eup %6036 }
 0x2c6   : > { %v2212_v30 = vpack.c.bf16 %v2180_v1, %v2179_v49  ;;  %v2439_v47 = vpack.c.bf16 %v7844_v50, %v7837_v11  ;;  %v7938_v37 = vadd.f32 0.5, %v2145_v4  ;;  %v2052_v45 = vunpack.c.l.bf16 %v2025_v59  ;;  %v1180_v6 = vpop.f32.mrf.mxu0 }
 0x2c7   : > { %v2053_v21 = vunpack.c.h.bf16 %v2025_v59  ;;  %v1533_v12 = vpack.c.bf16 %v1449_v42, %v1448_v57  ;;  %v1452_v34 = vadd.f32 %v7527_v9, %v1179_v44  ;;  %v1453_v36 = vadd.f32 %v7529_v13, %v1237_v39  ;;  %v1352_v42 = vpop.f32.mrf.mxu3 }
 0x2c8   : > { %v7940_v14 = vpop.eup %6038  ;;  %v2440_v46 = vpack.c.bf16 %v7858_v15, %v7851_v16  ;;  %v2464_v49 = vunpack.c.l.bf16 %v2212_v30  ;;  %v2090_v61 = vmul.f32 0.5, %v2052_v45  ;;  %v2500_v54 = vunpack.c.l.bf16 %v2439_v47  ;;  %v1238_v45 = vpop.f32.mrf.mxu1 }
 0x2c9   : > { %v6041_v1 = vpop.eup %6040  ;;  %v2091_v11 = vmul.f32 0.5, %v2053_v21  ;;  %v1959_v50 = vunpack.c.l.bf16 %v1533_v12  ;;  %v1960_v53 = vunpack.c.h.bf16 %v1533_v12  ;;  %v1535_v4 = vpack.c.bf16 %v1453_v36, %v1452_v34 }
 0x2ca   : > { %v7946_v48 = vpop.eup %6042  ;;  %v2502_v17 = vunpack.c.l.bf16 %v2440_v46  ;;  %v2463_v20 = vunpack.c.h.bf16 %v7820_v33  ;;  %v2465_v5 = vunpack.c.h.bf16 %v2212_v30  ;;  %v2501_v57 = vunpack.c.h.bf16 %v2439_v47 }
 0x2cb   : > { %v6045_v26 = vpop.eup %6044  ;;  %v2120_v2 = vpack.c.bf16 %v2091_v11, %v2090_v61  ;;  %6046 = vtanh.f32 %v1959_v50  ;;  %v1866_v15 = vunpack.c.l.bf16 %v1535_v4  ;;  %v1867_v55 = vunpack.c.h.bf16 %v1535_v4  ;;  %v9715_v61 = vld [vmem:[#allocation56_spill] sm:$0xff]  ;;  %v9716_v11 = vld [vmem:[#allocation57_spill] sm:$0xff] }
 0x2cc   : > { %v1931_v16 = vpack.c.bf16 %v6045_v26, %v6041_v1  ;;  %6048 = vtanh.f32 %v1960_v53  ;;  %v7949_v8 = vadd.f32 0.5, %v2146_v31  ;;  %v2375_v7 = vunpack.c.l.bf16 %v7931_v41  ;;  %v9719_v26 = vld [vmem:[#allocation25_spill] sm:$0xff] }
 0x2cd   : > { %v2538_v24 = vmul.f32 %v2500_v54, %v2462_v40  ;;  %v2540_v59 = vmul.f32 %v2502_v17, %v2464_v49  ;;  %6050 = vtanh.f32 %v1866_v15  ;;  %v2503_v33 = vunpack.c.h.bf16 %v2440_v46  ;;  %v5782_v46 = vld [vmem:[%s9544_s5 + $0xfc] sm:$0xf]  ;;  %v9718_v17 = vld [vmem:[#allocation24_spill] sm:$0xff] }
 0x2ce   : > { %v2282_v25 = vunpack.c.l.bf16 %v1931_v16  ;;  %v2283_v44 = vunpack.c.h.bf16 %v1931_v16  ;;  %v2376_v39 = vunpack.c.h.bf16 %v7931_v41  ;;  %v2147_v30 = vunpack.c.l.bf16 %v2120_v2  ;;  %v5491_v41 = vld [vmem:[%s9544_s5 + $0x110] sm:$0xf0] }
 0x2cf   : > { %6052 = vtanh.f32 %v1867_v55  ;;  %v7953_v47 = vpack.c.bf16 %v2540_v59, %v2538_v24  ;;  %v9713_v31 = vunpack.c.l.bf16 %v7488_v60  ;;  %v9714_v12 = vunpack.c.h.bf16 %v7488_v60 }
 0x2d0   : > { %v2539_v34 = vmul.f32 %v2501_v57, %v2463_v20  ;;  %v2541_v36 = vmul.f32 %v2503_v33, %v2465_v5  ;;  %6054 = vtanh.f32 %v2375_v7  ;;  %v2148_v1 = vunpack.c.h.bf16 %v2120_v2  ;;  %v5830_v2 = vld [vmem:[%s9544_s5 + $0x27c] sm:$0xf]  ;;  %v5683_v57 = vld [vmem:[%s9544_s5 + $0x290] sm:$0xf0]  ;;  %v1296_v7 = vpop.f32.mrf.mxu2 }
 0x2d1   : > { %v2320_v21 = vmul.f32 %v2282_v25, %v9713_v31  ;;  %v2321_v40 = vmul.f32 %v2283_v44, %v9714_v12  ;;  %v6047_v49 = vpop.eup %6046  ;;  %3196 = vmatmul.bf16.gmra.mxu0 %v7953_v47  ;;  %3312 = vmatmul.bf16.gmra.mxu2 %v7953_v47  ;;  %v1295_v60 = vadd.f32 %v1294_v19, %v9715_v61  ;;  %6056 = vtanh.f32 %v2376_v39  ;;  %v1354_v61 = vpop.f32.mrf.mxu3 }
 0x2d2   : > { %v1353_v50 = vadd.f32 %v1352_v42, %v9716_v11  ;;  %v6049_v53 = vpop.eup %6048  ;;  %v7971_v54 = vpack.c.bf16 %v2541_v36, %v2539_v34  ;;  %v1181_v20 = vadd.f32 %v1180_v6, %v9718_v17  ;;  %v1239_v5 = vadd.f32 %v1238_v45, %v9719_v26  ;;  %v9720_v34 = vld [vmem:[#allocation58_spill] sm:$0xff]  ;;  %v1183_v17 = vpop.f32.mrf.mxu0 }
 0x2d3   : > { %v7969_v4 = vpack.c.bf16 %v2321_v40, %v2320_v21  ;;  %v2026_v19 = vpack.c.bf16 %v6049_v53, %v6047_v49  ;;  %v1454_v16 = vadd.f32 %v7549_v22, %v1295_v60  ;;  %v5494_v55 = vor.u32 %v5782_v46, %v5491_v41  ;;  %v6051_v24 = vpop.eup %6050 }
 0x2d4   : > { %9717 = vst [vmem:[#allocation7_spill] sm:$0xff] %v7971_v54  ;;  %v1455_v15 = vadd.f32 %v7553_v10, %v1353_v50  ;;  %v2185_v59 = vadd.f32 0.5, %v2147_v30  ;;  %3254 = vmatmul.bf16.gmra.mxu1 %v7971_v54  ;;  %3370 = vmatmul.bf16.gmra.mxu3 %v7971_v54  ;;  %v1458_v42 = vadd.f32 %v7527_v9, %v1181_v20  ;;  %v2186_v21 = vadd.f32 0.5, %v2148_v1 }
 0x2d5   : > { %v1459_v25 = vadd.f32 %v7529_v13, %v1239_v5  ;;  %v6053_v44 = vpop.eup %6052  ;;  %v2054_v33 = vunpack.c.l.bf16 %v2026_v19  ;;  %v2055_v6 = vunpack.c.h.bf16 %v2026_v19  ;;  %3528 = vmatpush.bf16.msra.mxu2 %v5494_v55  ;;  %v5686_v31 = vor.u32 %v5830_v2, %v5683_v57  ;;  %v1241_v5 = vpop.f32.mrf.mxu1  ;;  %v9723_v55 = vld [vmem:[#allocation59_spill] sm:$0xff] }
 0x2d6   : > { %v1536_v45 = vpack.c.bf16 %v1455_v15, %v1454_v16  ;;  %v1932_v12 = vpack.c.bf16 %v6053_v44, %v6051_v24  ;;  %v1297_v39 = vadd.f32 %v1296_v7, %v9720_v34  ;;  %v7988_v30 = vpop.eup %6054  ;;  %v2377_v36 = vunpack.c.l.bf16 %v7969_v4  ;;  %v5489_v24 = vld [vmem:[%s9544_s5 + $0xf8] sm:$0xf]  ;;  %v9724_v44 = vld [vmem:[#allocation26_spill] sm:$0xff] }
 0x2d7   : > { %v1538_v40 = vpack.c.bf16 %v1459_v25, %v1458_v42  ;;  %v2092_v46 = vmul.f32 0.5, %v2054_v33  ;;  %v2093_v41 = vmul.f32 0.5, %v2055_v6  ;;  %3586 = vmatpush.bf16.msra.mxu3 %v5686_v31  ;;  %v7994_v2 = vpop.eup %6056  ;;  %v9721_v57 = vunpack.c.l.bf16 %v7516_v3  ;;  %v5785_v42 = vld [vmem:[%s9544_s5 + $0x10c] sm:$0xf0] }
 0x2d8   : > { %v1961_v49 = vunpack.c.l.bf16 %v1536_v45  ;;  %v2284_v60 = vunpack.c.l.bf16 %v1932_v12  ;;  %v2285_v11 = vunpack.c.h.bf16 %v1932_v12  ;;  %v1962_v50 = vunpack.c.h.bf16 %v1536_v45  ;;  %v9725_v31 = vld [vmem:[#allocation27_spill] sm:$0xff] }
 0x2d9   : > { %v1868_v53 = vunpack.c.l.bf16 %v1538_v40  ;;  %v7991_v20 = vpack.c.bf16 %v2093_v41, %v2092_v46  ;;  %v1869_v1 = vunpack.c.h.bf16 %v1538_v40  ;;  %v1460_v26 = vadd.f32 %v7549_v22, %v1297_v39 }
 0x2da   : > { %6058 = vtanh.f32 %v1961_v49  ;;  %v2322_v19 = vmul.f32 %v2284_v60, %v9721_v57  ;;  %v9722_v16 = vunpack.c.h.bf16 %v7516_v3  ;;  %v1355_v7 = vadd.f32 %v1354_v61, %v9723_v55 }
 0x2db   : > { %6060 = vtanh.f32 %v1962_v50  ;;  %v8007_v25 = vpack.c.bf16 %v2186_v21, %v2185_v59  ;;  %v1184_v33 = vadd.f32 %v1183_v17, %v9724_v44  ;;  %v2466_v6 = vunpack.c.l.bf16 %v7923_v32 }
 0x2dc   : > { %v2323_v15 = vmul.f32 %v2285_v11, %v9722_v16  ;;  %6062 = vtanh.f32 %v1868_v53  ;;  %v1461_v45 = vadd.f32 %v7553_v10, %v1355_v7  ;;  %v1242_v12 = vadd.f32 %v1241_v5, %v9725_v31 }
 0x2dd   : > { %6064 = vtanh.f32 %v1869_v1  ;;  %v2378_v40 = vunpack.c.h.bf16 %v7969_v4  ;;  %v1464_v34 = vadd.f32 %v7527_v9, %v1184_v33  ;;  %v5490_v39 = vor.u32 %v5785_v42, %v5489_v24  ;;  %v1357_v24 = vpop.f32.mrf.mxu3 }
 0x2de   : > { %v8011_v3 = vpack.c.bf16 %v2323_v15, %v2322_v19  ;;  %6066 = vtanh.f32 %v2377_v36  ;;  %v2149_v59 = vunpack.c.l.bf16 %v7991_v20  ;;  %v2150_v21 = vunpack.c.h.bf16 %v7991_v20  ;;  %v9732_v20 = vld [vmem:[#allocation29_spill] sm:$0xff] }
 0x2df   : > { %v1539_v46 = vpack.c.bf16 %v1461_v45, %v1460_v26  ;;  %v1465_v41 = vadd.f32 %v7529_v13, %v1242_v12  ;;  %3412 = vmatpush.bf16.msra.mxu0 %v5490_v39  ;;  %v2214_v60 = vpack.c.bf16 %v7949_v8, %v7938_v37  ;;  %v2441_v4 = vpack.c.bf16 %v7936_v28, %v7927_v38  ;;  %v1299_v28 = vpop.f32.mrf.mxu2 }
 0x2e0   : > { %v6059_v49 = vpop.eup %6058  ;;  %v2379_v61 = vunpack.c.l.bf16 %v8011_v3  ;;  %v2442_v36 = vpack.c.bf16 %v7946_v48, %v7940_v14  ;;  %v2380_v50 = vunpack.c.h.bf16 %v8011_v3  ;;  %v2467_v16 = vunpack.c.h.bf16 %v7923_v32  ;;  %v5681_v32 = vld [vmem:[%s9544_s5 + $0x278] sm:$0xf]  ;;  %v5833_v3 = vld [vmem:[%s9544_s5 + $0x28c] sm:$0xf0] }
 0x2e1   : > { %v6061_v11 = vpop.eup %6060  ;;  %v1963_v53 = vunpack.c.l.bf16 %v1539_v46  ;;  %v1964_v17 = vunpack.c.h.bf16 %v1539_v46  ;;  %v1541_v1 = vpack.c.bf16 %v1465_v41, %v1464_v34  ;;  %v2468_v57 = vunpack.c.l.bf16 %v2214_v60 }
 0x2e2   : > { %v6063_v26 = vpop.eup %6062  ;;  %v2027_v5 = vpack.c.bf16 %v6061_v11, %v6059_v49  ;;  %v2504_v19 = vunpack.c.l.bf16 %v2441_v4  ;;  %v2506_v38 = vunpack.c.l.bf16 %v2442_v36  ;;  %v2469_v33 = vunpack.c.h.bf16 %v2214_v60 }
 0x2e3   : > { %v6065_v15 = vpop.eup %6064  ;;  %6068 = vtanh.f32 %v1963_v53  ;;  %v1870_v37 = vunpack.c.l.bf16 %v1541_v1  ;;  %v1871_v8 = vunpack.c.h.bf16 %v1541_v1  ;;  %v2505_v46 = vunpack.c.h.bf16 %v2441_v4  ;;  %v1185_v1 = vpop.f32.mrf.mxu0 }
 0x2e4   : > { %v8029_v55 = vpop.eup %6066  ;;  %v2056_v14 = vunpack.c.l.bf16 %v2027_v5  ;;  %v2057_v48 = vunpack.c.h.bf16 %v2027_v5  ;;  %v1933_v7 = vpack.c.bf16 %v6065_v15, %v6063_v26  ;;  %6070 = vtanh.f32 %v1964_v17 }
 0x2e5   : > { %6072 = vtanh.f32 %v1870_v37  ;;  %v2542_v42 = vmul.f32 %v2504_v19, %v2466_v6  ;;  %v2544_v44 = vmul.f32 %v2506_v38, %v2468_v57  ;;  %v2507_v41 = vunpack.c.h.bf16 %v2442_v36  ;;  %v9729_v37 = vld [vmem:[#allocation60_spill] sm:$0xff] }
 0x2e6   : > { %v2094_v45 = vmul.f32 0.5, %v2056_v14  ;;  %v2095_v31 = vmul.f32 0.5, %v2057_v48  ;;  %v2286_v12 = vunpack.c.l.bf16 %v1933_v7  ;;  %v2287_v34 = vunpack.c.h.bf16 %v1933_v7 }
 0x2e7   : > { %6074 = vtanh.f32 %v1871_v8  ;;  %v8037_v39 = vpack.c.bf16 %v2544_v44, %v2542_v42  ;;  %v9727_v49 = vunpack.c.l.bf16 %v7531_v56  ;;  %v9728_v11 = vunpack.c.h.bf16 %v7531_v56  ;;  %v1243_v8 = vpop.f32.mrf.mxu1 }
 0x2e8   : > { %v2122_v6 = vpack.c.bf16 %v2095_v31, %v2094_v45  ;;  %v5682_v17 = vor.u32 %v5833_v3, %v5681_v32  ;;  %6076 = vtanh.f32 %v2378_v40  ;;  %v2543_v5 = vmul.f32 %v2505_v46, %v2467_v16  ;;  %v9731_v16 = vld [vmem:[#allocation28_spill] sm:$0xff]  ;;  %v1301_v3 = vpop.f32.mrf.mxu2 }
 0x2e9   : > { %9726 = vst [vmem:[#allocation43_spill] sm:$0xff] %v8037_v39  ;;  %v2324_v60 = vmul.f32 %v2286_v12, %v9727_v49  ;;  %v2325_v53 = vmul.f32 %v2287_v34, %v9728_v11  ;;  %v6069_v26 = vpop.eup %6068  ;;  %3201 = vmatmul.bf16.gmra.mxu0 %v8037_v39  ;;  %v2545_v57 = vmul.f32 %v2507_v41, %v2469_v33  ;;  %6078 = vtanh.f32 %v2379_v61  ;;  %v1359_v12 = vpop.f32.mrf.mxu3 }
 0x2ea   : > { %3317 = vmatmul.bf16.gmra.mxu2 %v8037_v39  ;;  %v1300_v4 = vadd.f32 %v1299_v28, %v7287_v43  ;;  %v6071_v36 = vpop.eup %6070  ;;  %v2151_v19 = vunpack.c.l.bf16 %v2122_v6  ;;  %3470 = vmatpush.bf16.msra.mxu1 %v5682_v17  ;;  %v1358_v56 = vadd.f32 %v1357_v24, %v9729_v37  ;;  %v1186_v7 = vadd.f32 %v1185_v1, %v9731_v16  ;;  %v9733_v17 = vld [vmem:[#allocation61_spill] sm:$0xff] }
 0x2eb   : > { %v2351_v15 = vpack.c.bf16 %v2325_v53, %v2324_v60  ;;  %v6073_v38 = vpop.eup %6072  ;;  %v2028_v14 = vpack.c.bf16 %v6071_v36, %v6069_v26  ;;  %v8047_v48 = vpack.c.bf16 %v2545_v57, %v2543_v5  ;;  %v8053_v42 = vadd.f32 0.5, %v2149_v59 }
 0x2ec   : > { %v1466_v40 = vadd.f32 %v7549_v22, %v1300_v4  ;;  %v8057_v43 = vadd.f32 0.5, %v2150_v21  ;;  %6080 = vtanh.f32 %v2380_v50  ;;  %v2152_v61 = vunpack.c.h.bf16 %v2122_v6  ;;  %v9734_v4 = vld [vmem:[#allocation62_spill] sm:$0xff] }
 0x2ed   : > { %9730 = vst [vmem:[#allocation8_spill] sm:$0xff] %v8047_v48  ;;  %v6075_v28 = vpop.eup %6074  ;;  %v2189_v24 = vadd.f32 0.5, %v2151_v19  ;;  %v2058_v44 = vunpack.c.l.bf16 %v2028_v14  ;;  %v2059_v33 = vunpack.c.h.bf16 %v2028_v14  ;;  %3259 = vmatmul.bf16.gmra.mxu1 %v8047_v48  ;;  %3375 = vmatmul.bf16.gmra.mxu3 %v8047_v48  ;;  %v1467_v32 = vadd.f32 %v7553_v10, %v1358_v56 }
 0x2ee   : > { %v2381_v45 = vunpack.c.l.bf16 %v2351_v15  ;;  %v1934_v59 = vpack.c.bf16 %v6075_v28, %v6073_v38  ;;  %v1470_v31 = vadd.f32 %v7527_v9, %v1186_v7  ;;  %v1244_v21 = vadd.f32 %v1243_v8, %v9732_v20  ;;  %v6077_v50 = vpop.eup %6076  ;;  %v5776_v8 = vld [vmem:[%s9544_s5 + $0xcc] sm:$0xf]  ;;  %v5467_v38 = vld [vmem:[%s9544_s5 + $0xe0] sm:$0xf0]  ;;  %v1188_v28 = vpop.f32.mrf.mxu0 }
 0x2ef   : > { %v2382_v34 = vunpack.c.h.bf16 %v2351_v15  ;;  %v2096_v46 = vmul.f32 0.5, %v2058_v44  ;;  %v2097_v41 = vmul.f32 0.5, %v2059_v33  ;;  %v1542_v6 = vpack.c.bf16 %v1467_v32, %v1466_v40  ;;  %v8064_v49 = vpop.eup %6078  ;;  %v5824_v20 = vld [vmem:[%s9544_s5 + $0x24c] sm:$0xf] }
 0x2f0   : > { %v2288_v60 = vunpack.c.l.bf16 %v1934_v59  ;;  %v2289_v11 = vunpack.c.h.bf16 %v1934_v59  ;;  %v1471_v53 = vadd.f32 %v7529_v13, %v1244_v21  ;;  %v1302_v1 = vadd.f32 %v1301_v3, %v9733_v17  ;;  %v1246_v3 = vpop.f32.mrf.mxu1 }
 0x2f1   : > { %v2123_v26 = vpack.c.bf16 %v2097_v41, %v2096_v46  ;;  %v1965_v5 = vunpack.c.l.bf16 %v1542_v6  ;;  %v1966_v57 = vunpack.c.h.bf16 %v1542_v6  ;;  %v1360_v36 = vadd.f32 %v1359_v12, %v9734_v4  ;;  %v9737_v12 = vld [vmem:[#allocation30_spill] sm:$0xff] }
 0x2f2   : > { %v8069_v19 = vpop.eup %6080  ;;  %v2190_v37 = vadd.f32 0.5, %v2152_v61  ;;  %6082 = vtanh.f32 %v2381_v45  ;;  %v1544_v15 = vpack.c.bf16 %v1471_v53, %v1470_v31  ;;  %v1472_v56 = vadd.f32 %v7549_v22, %v1302_v1 }
 0x2f3   : > { %v9735_v14 = vunpack.c.l.bf16 %v7558_v18  ;;  %v9736_v16 = vunpack.c.h.bf16 %v7558_v18  ;;  %6084 = vtanh.f32 %v1965_v5  ;;  %v1473_v61 = vadd.f32 %v7553_v10, %v1360_v36  ;;  %v5659_v18 = vld [vmem:[%s9544_s5 + $0x260] sm:$0xf0] }
 0x2f4   : > { %v2153_v44 = vunpack.c.l.bf16 %v2123_v26  ;;  %6086 = vtanh.f32 %v1966_v57  ;;  %v1872_v33 = vunpack.c.l.bf16 %v1544_v15  ;;  %v1873_v32 = vunpack.c.h.bf16 %v1544_v15 }
 0x2f5   : > { %v2326_v40 = vmul.f32 %v2288_v60, %v9735_v14  ;;  %v2327_v7 = vmul.f32 %v2289_v11, %v9736_v16  ;;  %6088 = vtanh.f32 %v2382_v34  ;;  %v2154_v45 = vunpack.c.h.bf16 %v2123_v26  ;;  %v9738_v60 = vld [vmem:[#allocation31_spill] sm:$0xff] }
 0x2f6   : > { %v1545_v59 = vpack.c.bf16 %v1473_v61, %v1472_v56  ;;  %v5470_v31 = vor.u32 %v5776_v8, %v5467_v38  ;;  %v8089_v21 = vpack.c.bf16 %v2190_v37, %v2189_v24  ;;  %6090 = vtanh.f32 %v1872_v33 }
 0x2f7   : > { %v1189_v46 = vadd.f32 %v1188_v28, %v9737_v12  ;;  %v2254_v41 = vunpack.c.l.bf16 %v7767_v58  ;;  %6092 = vtanh.f32 %v1873_v32  ;;  %v1247_v11 = vadd.f32 %v1246_v3, %v9738_v60 }
 0x2f8   : > { %v1967_v34 = vunpack.c.l.bf16 %v1545_v59  ;;  %v1968_v6 = vunpack.c.h.bf16 %v1545_v59  ;;  %3529 = vmatpush.bf16.msra.mxu2 %v5470_v31  ;;  %v8094_v53 = vpop.eup %6082  ;;  %v8096_v17 = vadd.f32 0.5, %v2153_v44  ;;  %v8098_v1 = vpack.c.bf16 %v2327_v7, %v2326_v40  ;;  %v5465_v59 = vld [vmem:[%s9544_s5 + $0xc8] sm:$0xf]  ;;  %v5779_v31 = vld [vmem:[%s9544_s5 + $0xdc] sm:$0xf0] }
 0x2f9   : > { %v1476_v24 = vadd.f32 %v7527_v9, %v1189_v46  ;;  %v5662_v26 = vor.u32 %v5824_v20, %v5659_v18  ;;  %v6085_v5 = vpop.eup %6084  ;;  %v8101_v57 = vadd.f32 0.5, %v2154_v45  ;;  %v1477_v4 = vadd.f32 %v7529_v13, %v1247_v11  ;;  %v1304_v20 = vpop.f32.mrf.mxu2 }
 0x2fa   : > { %v2216_v36 = vpack.c.bf16 %v8057_v43, %v8053_v42  ;;  %v2443_v37 = vpack.c.bf16 %v7994_v2, %v7988_v30  ;;  %v6087_v15 = vpop.eup %6086  ;;  %6094 = vtanh.f32 %v1967_v34  ;;  %v2444_v56 = vpack.c.bf16 %v6077_v50, %v8029_v55 }
 0x2fb   : > { %3587 = vmatpush.bf16.msra.mxu3 %v5662_v26  ;;  %v2470_v8 = vunpack.c.l.bf16 %v8007_v25  ;;  %v2471_v38 = vunpack.c.h.bf16 %v8007_v25  ;;  %v8111_v14 = vpop.eup %6088  ;;  %v2029_v40 = vpack.c.bf16 %v6087_v15, %v6085_v5  ;;  %6096 = vtanh.f32 %v1968_v6  ;;  %v1190_v15 = vpop.f32.mrf.mxu0 }
 0x2fc   : > { %v1547_v16 = vpack.c.bf16 %v1477_v4, %v1476_v24  ;;  %v2472_v7 = vunpack.c.l.bf16 %v2216_v36  ;;  %v6091_v61 = vpop.eup %6090  ;;  %v2508_v42 = vunpack.c.l.bf16 %v2443_v37  ;;  %v2510_v43 = vunpack.c.l.bf16 %v2444_v56  ;;  %v1362_v24 = vpop.f32.mrf.mxu3 }
 0x2fd   : > { %v2473_v28 = vunpack.c.h.bf16 %v2216_v36  ;;  %v2509_v30 = vunpack.c.h.bf16 %v2443_v37  ;;  %v6093_v2 = vpop.eup %6092  ;;  %v2060_v44 = vunpack.c.l.bf16 %v2029_v40  ;;  %v2061_v33 = vunpack.c.h.bf16 %v2029_v40 }
 0x2fe   : > { %v1874_v32 = vunpack.c.l.bf16 %v1547_v16  ;;  %v1875_v55 = vunpack.c.h.bf16 %v1547_v16  ;;  %v1935_v50 = vpack.c.bf16 %v6093_v2, %v6091_v61  ;;  %v2546_v3 = vmul.f32 %v2508_v42, %v2470_v8  ;;  %v5657_v61 = vld [vmem:[%s9544_s5 + $0x248] sm:$0xf] }
 0x2ff   : > { %v2548_v45 = vmul.f32 %v2510_v43, %v2472_v7  ;;  %v2511_v25 = vunpack.c.h.bf16 %v2444_v56  ;;  %v2098_v18 = vmul.f32 0.5, %v2060_v44  ;;  %v2099_v12 = vmul.f32 0.5, %v2061_v33 }
 0x300   : > { %6098 = vtanh.f32 %v1874_v32  ;;  %v2547_v46 = vmul.f32 %v2509_v30, %v2471_v38  ;;  %v6095_v34 = vpop.eup %6094  ;;  %v2290_v6 = vunpack.c.l.bf16 %v1935_v50  ;;  %v2291_v60 = vunpack.c.h.bf16 %v1935_v50 }
 0x301   : > { %6100 = vtanh.f32 %v1875_v55  ;;  %v8119_v11 = vpack.c.bf16 %v2548_v45, %v2546_v3  ;;  %v6097_v26 = vpop.eup %6096  ;;  %v2124_v5 = vpack.c.bf16 %v2099_v12, %v2098_v18  ;;  %v2549_v4 = vmul.f32 %v2511_v25, %v2473_v28  ;;  %v9743_v45 = vld [vmem:[#allocation32_spill] sm:$0xff] }
 0x302   : > { %v5466_v36 = vor.u32 %v5779_v31, %v5465_v59  ;;  %v1305_v37 = vadd.f32 %v1304_v20, %v7352_v23  ;;  %v2383_v56 = vunpack.c.l.bf16 %v8098_v1  ;;  %v9740_v8 = vunpack.c.l.bf16 %v7602_v63  ;;  %v5827_v23 = vld [vmem:[%s9544_s5 + $0x25c] sm:$0xf0] }
 0x303   : > { %9739 = vst [vmem:[#allocation9_spill] sm:$0xff] %v8119_v11  ;;  %v9741_v38 = vunpack.c.h.bf16 %v7602_v63  ;;  %v2030_v7 = vpack.c.bf16 %v6097_v26, %v6095_v34  ;;  %3206 = vmatmul.bf16.gmra.mxu0 %v8119_v11  ;;  %3322 = vmatmul.bf16.gmra.mxu2 %v8119_v11  ;;  %v2384_v42 = vunpack.c.h.bf16 %v8098_v1  ;;  %v2155_v43 = vunpack.c.l.bf16 %v2124_v5  ;;  %v1248_v63 = vpop.f32.mrf.mxu1  ;;  %v9744_v26 = vld [vmem:[#allocation33_spill] sm:$0xff] }
 0x304   : > { %v2328_v40 = vmul.f32 %v2290_v6, %v9740_v8  ;;  %v2156_v28 = vunpack.c.h.bf16 %v2124_v5  ;;  %v8136_v30 = vpack.c.bf16 %v2549_v4, %v2547_v46  ;;  %3413 = vmatpush.bf16.msra.mxu0 %v5466_v36  ;;  %v1363_v32 = vadd.f32 %v1362_v24, %v7354_v62 }
 0x305   : > { %v2329_v16 = vmul.f32 %v2291_v60, %v9741_v38  ;;  %v2062_v44 = vunpack.c.l.bf16 %v2030_v7  ;;  %v2063_v33 = vunpack.c.h.bf16 %v2030_v7  ;;  %v2193_v50 = vadd.f32 0.5, %v2155_v43  ;;  %v1364_v38 = vpop.f32.mrf.mxu3 }
 0x306   : > { %9742 = vst [vmem:[#allocation10_spill] sm:$0xff] %v8136_v30  ;;  %v6099_v55 = vpop.eup %6098  ;;  %3264 = vmatmul.bf16.gmra.mxu1 %v8136_v30  ;;  %3380 = vmatmul.bf16.gmra.mxu3 %v8136_v30  ;;  %v1478_v3 = vadd.f32 %v7549_v22, %v1305_v37  ;;  %v5658_v1 = vor.u32 %v5827_v23, %v5657_v61  ;;  %v2194_v31 = vadd.f32 0.5, %v2156_v28  ;;  %6102 = vtanh.f32 %v2383_v56 }
 0x307   : > { %v2353_v2 = vpack.c.bf16 %v2329_v16, %v2328_v40  ;;  %v1191_v25 = vadd.f32 %v1190_v15, %v9743_v45  ;;  %v6101_v59 = vpop.eup %6100  ;;  %v2100_v18 = vmul.f32 0.5, %v2062_v44  ;;  %v2101_v12 = vmul.f32 0.5, %v2063_v33  ;;  %v1306_v40 = vpop.f32.mrf.mxu2 }
 0x308   : > { %v1936_v46 = vpack.c.bf16 %v6101_v59, %v6099_v55  ;;  %v2255_v62 = vunpack.c.h.bf16 %v7767_v58  ;;  %v1479_v34 = vadd.f32 %v7553_v10, %v1363_v32  ;;  %3471 = vmatpush.bf16.msra.mxu1 %v5658_v1  ;;  %v1249_v5 = vadd.f32 %v1248_v63, %v9744_v26  ;;  %v9746_v55 = vld [vmem:[#allocation34_spill] sm:$0xff] }
 0x309   : > { %v2385_v20 = vunpack.c.l.bf16 %v2353_v2  ;;  %v2386_v6 = vunpack.c.h.bf16 %v2353_v2  ;;  %v8145_v60 = vpack.c.bf16 %v2101_v12, %v2100_v18  ;;  %v1482_v24 = vadd.f32 %v7527_v9, %v1191_v25  ;;  %v9747_v12 = vld [vmem:[#allocation35_spill] sm:$0xff] }
 0x30a   : > { %6104 = vtanh.f32 %v2384_v42  ;;  %v2292_v4 = vunpack.c.l.bf16 %v1936_v46  ;;  %v2293_v36 = vunpack.c.h.bf16 %v1936_v46  ;;  %v1548_v37 = vpack.c.bf16 %v1479_v34, %v1478_v3  ;;  %v1193_v42 = vpop.f32.mrf.mxu0 }
 0x30b   : > { %v8149_v15 = vpack.c.bf16 %v2194_v31, %v2193_v50  ;;  %6106 = vtanh.f32 %v2385_v20  ;;  %v1483_v56 = vadd.f32 %v7529_v13, %v1249_v5  ;;  %v8154_v8 = vpack.c.bf16 %v7587_v29, %v7583_v27  ;;  %v9745_v29 = vld [vmem:[#allocation63_spill] sm:$0xff] }
 0x30c   : > { %v2330_v16 = vmul.f32 %v2292_v4, %v2254_v41  ;;  %v2331_v7 = vmul.f32 %v2293_v36, %v2255_v62  ;;  %v1969_v61 = vunpack.c.l.bf16 %v1548_v37  ;;  %v1970_v23 = vunpack.c.h.bf16 %v1548_v37  ;;  %v8160_v2 = vpop.eup %6102  ;;  %v1251_v41 = vpop.f32.mrf.mxu1  ;;  %v9748_v4 = vld [vmem:[#allocation3_spill] sm:$0xff]  ;;  %v9749_v36 = vld [vmem:[#allocation42_spill] sm:$0xff] }
 0x30d   : > { %6108 = vtanh.f32 %v2386_v6  ;;  %v2157_v43 = vunpack.c.l.bf16 %v8145_v60  ;;  %v2158_v28 = vunpack.c.h.bf16 %v8145_v60  ;;  %v1550_v63 = vpack.c.bf16 %v1483_v56, %v1482_v24  ;;  %v5633_v60 = vld [vmem:[%s9544_s5 + $0x218] sm:$0xf] }
 0x30e   : > { %v8162_v44 = vpack.c.bf16 %v2331_v7, %v2330_v16  ;;  %6110 = vtanh.f32 %v1969_v61  ;;  %v1307_v27 = vadd.f32 %v1306_v40, %v7384_v52  ;;  %v1365_v58 = vadd.f32 %v1364_v38, %v9745_v29 }
 0x30f   : > { %6112 = vtanh.f32 %v1970_v23  ;;  %v1876_v33 = vunpack.c.l.bf16 %v1550_v63  ;;  %v2256_v32 = vunpack.c.l.bf16 %v8154_v8  ;;  %v1194_v50 = vadd.f32 %v1193_v42, %v9746_v55  ;;  %v1309_v61 = vpop.f32.mrf.mxu2  ;;  %v1367_v23 = vpop.f32.mrf.mxu3 }
 0x310   : > { %v8168_v3 = vpop.eup %6104  ;;  %v2387_v1 = vunpack.c.l.bf16 %v8162_v44  ;;  %v1877_v45 = vunpack.c.h.bf16 %v1550_v63  ;;  %v1484_v25 = vadd.f32 %v7549_v22, %v1307_v27  ;;  %v1485_v59 = vadd.f32 %v7553_v10, %v1365_v58 }
 0x311   : > { %v8173_v31 = vpop.eup %6106  ;;  %v8175_v52 = vadd.f32 0.5, %v2157_v43  ;;  %v2257_v20 = vunpack.c.h.bf16 %v8154_v8  ;;  %v1488_v18 = vadd.f32 %v7527_v9, %v1194_v50  ;;  %v1252_v46 = vadd.f32 %v1251_v41, %v9747_v12 }
 0x312   : > { %6114 = vtanh.f32 %v1876_v33  ;;  %v1551_v62 = vpack.c.bf16 %v1485_v59, %v1484_v25  ;;  %v2218_v34 = vpack.c.bf16 %v8101_v57, %v8096_v17  ;;  %v2445_v6 = vpack.c.bf16 %v8069_v19, %v8064_v49 }
 0x313   : > { %v8184_v24 = vpop.eup %6108  ;;  %v2388_v26 = vunpack.c.h.bf16 %v8162_v44  ;;  %6116 = vtanh.f32 %v2387_v1  ;;  %v1489_v5 = vadd.f32 %v7529_v13, %v1252_v46  ;;  %v8190_v37 = vpack.c.bf16 %v9749_v36, %v9748_v4  ;;  %v5770_v44 = vld [vmem:[%s9544_s5 + $0x9c] sm:$0xf]  ;;  %v5635_v1 = vld [vmem:[%s9544_s5 + $0x230] sm:$0xf0] }
 0x314   : > { %v6111_v56 = vpop.eup %6110  ;;  %6118 = vtanh.f32 %v1877_v45  ;;  %v1971_v40 = vunpack.c.l.bf16 %v1551_v62  ;;  %v1972_v38 = vunpack.c.h.bf16 %v1551_v62  ;;  %v2446_v17 = vpack.c.bf16 %v8111_v14, %v8094_v53  ;;  %v5443_v53 = vld [vmem:[%s9544_s5 + $0xb0] sm:$0xf0] }
 0x315   : > { %v6113_v57 = vpop.eup %6112  ;;  %v1553_v49 = vpack.c.bf16 %v1489_v5, %v1488_v18  ;;  %v2474_v19 = vunpack.c.l.bf16 %v8089_v21  ;;  %v2476_v16 = vunpack.c.l.bf16 %v2218_v34  ;;  %v2512_v7 = vunpack.c.l.bf16 %v2445_v6 }
 0x316   : > { %v2031_v42 = vpack.c.bf16 %v6113_v57, %v6111_v56  ;;  %6120 = vtanh.f32 %v1971_v40  ;;  %v2514_v43 = vunpack.c.l.bf16 %v2446_v17  ;;  %v2475_v63 = vunpack.c.h.bf16 %v8089_v21  ;;  %v5818_v21 = vld [vmem:[%s9544_s5 + $0x21c] sm:$0xf]  ;;  %v1195_v40 = vpop.f32.mrf.mxu0 }
 0x317   : > { %6122 = vtanh.f32 %v1972_v38  ;;  %v1878_v14 = vunpack.c.l.bf16 %v1553_v49  ;;  %v1879_v27 = vunpack.c.h.bf16 %v1553_v49  ;;  %v2550_v29 = vmul.f32 %v2512_v7, %v2474_v19  ;;  %v1253_v38 = vpop.f32.mrf.mxu1  ;;  %v9752_v19 = vld [vmem:[#allocation65_spill] sm:$0xff] }
 0x318   : > { %v6115_v58 = vpop.eup %6114  ;;  %v2064_v41 = vunpack.c.l.bf16 %v2031_v42  ;;  %v2065_v33 = vunpack.c.h.bf16 %v2031_v42  ;;  %v2552_v55 = vmul.f32 %v2514_v43, %v2476_v16  ;;  %v2477_v50 = vunpack.c.h.bf16 %v2218_v34 }
 0x319   : > { %v8208_v45 = vpop.eup %6116  ;;  %6124 = vtanh.f32 %v1878_v14  ;;  %v2513_v25 = vunpack.c.h.bf16 %v2445_v6  ;;  %v2515_v59 = vunpack.c.h.bf16 %v2446_v17  ;;  %v5446_v18 = vor.u32 %v5770_v44, %v5443_v53  ;;  %v9751_v6 = vld [vmem:[#allocation64_spill] sm:$0xff] }
 0x31a   : > { %v6119_v12 = vpop.eup %6118  ;;  %v2102_v46 = vmul.f32 0.5, %v2064_v41  ;;  %v2103_v62 = vmul.f32 0.5, %v2065_v33  ;;  %6126 = vtanh.f32 %v1879_v27  ;;  %v8210_v5 = vpack.c.bf16 %v2552_v55, %v2550_v29  ;;  %v9753_v44 = vld [vmem:[#allocation36_spill] sm:$0xff]  ;;  %v1311_v55 = vpop.f32.mrf.mxu2 }
 0x31b   : > { %v1937_v34 = vpack.c.bf16 %v6119_v12, %v6115_v58  ;;  %v2551_v4 = vmul.f32 %v2513_v25, %v2475_v63  ;;  %v2553_v36 = vmul.f32 %v2515_v59, %v2477_v50  ;;  %3530 = vmatpush.bf16.msra.mxu2 %v5446_v18  ;;  %v5638_v56 = vor.u32 %v5818_v21, %v5635_v1  ;;  %v1369_v50 = vpop.f32.mrf.mxu3 }
 0x31c   : > { %9750 = vst [vmem:[#allocation11_spill] sm:$0xff] %v8210_v5  ;;  %v6121_v57 = vpop.eup %6120  ;;  %6128 = vtanh.f32 %v2388_v26  ;;  %v2126_v49 = vpack.c.bf16 %v2103_v62, %v2102_v46  ;;  %3211 = vmatmul.bf16.gmra.mxu0 %v8210_v5  ;;  %3327 = vmatmul.bf16.gmra.mxu2 %v8210_v5  ;;  %v1310_v17 = vadd.f32 %v1309_v61, %v9751_v6  ;;  %v2259_v18 = vunpack.c.h.bf16 %v8190_v37 }
 0x31d   : > { %v1368_v16 = vadd.f32 %v1367_v23, %v9752_v19  ;;  %v6123_v7 = vpop.eup %6122  ;;  %v2294_v42 = vunpack.c.l.bf16 %v1937_v34  ;;  %v2295_v43 = vunpack.c.h.bf16 %v1937_v34  ;;  %v8216_v63 = vpack.c.bf16 %v2553_v36, %v2551_v4  ;;  %3588 = vmatpush.bf16.msra.mxu3 %v5638_v56  ;;  %v9754_v36 = vld [vmem:[#allocation37_spill] sm:$0xff] }
 0x31e   : > { %v1196_v53 = vadd.f32 %v1195_v40, %v9753_v44  ;;  %v2159_v14 = vunpack.c.l.bf16 %v2126_v49  ;;  %v2160_v27 = vunpack.c.h.bf16 %v2126_v49  ;;  %v2032_v26 = vpack.c.bf16 %v6123_v7, %v6121_v57  ;;  %v1198_v7 = vpop.f32.mrf.mxu0 }
 0x31f   : > { %v1490_v29 = vadd.f32 %v7549_v22, %v1310_v17  ;;  %v6125_v58 = vpop.eup %6124  ;;  %v2332_v41 = vmul.f32 %v2294_v42, %v2256_v32  ;;  %v2333_v61 = vmul.f32 %v2295_v43, %v2257_v20  ;;  %v2258_v23 = vunpack.c.l.bf16 %v8190_v37  ;;  %3269 = vmatmul.bf16.gmra.mxu1 %v8216_v63  ;;  %3385 = vmatmul.bf16.gmra.mxu3 %v8216_v63  ;;  %v1256_v42 = vpop.f32.mrf.mxu1 }
 0x320   : > { %v1491_v33 = vadd.f32 %v7553_v10, %v1368_v16  ;;  %v6127_v21 = vpop.eup %6126  ;;  %v2197_v1 = vadd.f32 0.5, %v2159_v14  ;;  %v2066_v25 = vunpack.c.l.bf16 %v2032_v26  ;;  %v2067_v59 = vunpack.c.h.bf16 %v2032_v26  ;;  %v9755_v14 = vld [vmem:[#allocation40_spill] sm:$0xff] }
 0x321   : > { %v2198_v32 = vadd.f32 0.5, %v2160_v27  ;;  %v2355_v12 = vpack.c.bf16 %v2333_v61, %v2332_v41  ;;  %v1938_v8 = vpack.c.bf16 %v6127_v21, %v6125_v58  ;;  %v1494_v4 = vadd.f32 %v7527_v9, %v1196_v53  ;;  %v9756_v27 = vld [vmem:[#allocation41_spill] sm:$0xff]  ;;  %v5773_v41 = vld [vmem:[%s9544_s5 + $0xac] sm:$0xf0] }
 0x322   : > { %v1554_v20 = vpack.c.bf16 %v1491_v33, %v1490_v29  ;;  %v8229_v46 = vpop.eup %6128  ;;  %v2104_v62 = vmul.f32 0.5, %v2066_v25  ;;  %v2105_v34 = vmul.f32 0.5, %v2067_v59  ;;  %v1254_v56 = vadd.f32 %v1253_v38, %v9754_v36  ;;  %v5441_v58 = vld [vmem:[%s9544_s5 + $0x98] sm:$0xf] }
 0x323   : > { %v2389_v40 = vunpack.c.l.bf16 %v2355_v12  ;;  %v2390_v57 = vunpack.c.h.bf16 %v2355_v12  ;;  %v2296_v49 = vunpack.c.l.bf16 %v1938_v8  ;;  %v2297_v6 = vunpack.c.h.bf16 %v1938_v8 }
 0x324   : > { %v2127_v17 = vpack.c.bf16 %v2105_v34, %v2104_v62  ;;  %v1973_v19 = vunpack.c.l.bf16 %v1554_v20  ;;  %v1974_v16 = vunpack.c.h.bf16 %v1554_v20  ;;  %v1495_v37 = vadd.f32 %v7529_v13, %v1254_v56  ;;  %v9758_v56 = vld [vmem:[#allocation67_spill] sm:$0xff] }
 0x325   : > { %6130 = vtanh.f32 %v2389_v40  ;;  %v2334_v43 = vmul.f32 %v2296_v49, %v2258_v23  ;;  %v2335_v44 = vmul.f32 %v2297_v6, %v2259_v18  ;;  %v8236_v26 = vpack.c.bf16 %v9756_v27, %v9755_v14  ;;  %v8256_v18 = vpop.f32.mrf.mxu2  ;;  %v9759_v6 = vld [vmem:[#allocation38_spill] sm:$0xff] }
 0x326   : > { %v2196_v38 = vadd.f32 0.5, %v2158_v28  ;;  %6132 = vtanh.f32 %v2390_v57  ;;  %v2161_v53 = vunpack.c.l.bf16 %v2127_v17  ;;  %v1556_v29 = vpack.c.bf16 %v1495_v37, %v1494_v4  ;;  %v5821_v28 = vld [vmem:[%s9544_s5 + $0x22c] sm:$0xf0]  ;;  %v9757_v4 = vld [vmem:[#allocation66_spill] sm:$0xff] }
 0x327   : > { %v8246_v61 = vpack.c.bf16 %v2198_v32, %v2197_v1  ;;  %v2162_v23 = vunpack.c.h.bf16 %v2127_v17  ;;  %v2356_v33 = vpack.c.bf16 %v2335_v44, %v2334_v43  ;;  %6134 = vtanh.f32 %v1973_v19  ;;  %v8258_v1 = vpop.f32.mrf.mxu3  ;;  %v9760_v19 = vld [vmem:[#allocation39_spill] sm:$0xff]  ;;  %v1200_v44 = vpop.f32.mrf.mxu0 }
 0x328   : > { %6136 = vtanh.f32 %v1974_v16  ;;  %v1880_v21 = vunpack.c.l.bf16 %v1556_v29  ;;  %v2260_v25 = vunpack.c.l.bf16 %v8236_v26  ;;  %v2261_v59 = vunpack.c.h.bf16 %v8236_v26  ;;  %v1258_v14 = vpop.f32.mrf.mxu1 }
 0x329   : > { %v8260_v32 = vadd.f32 0.5, %v2161_v53  ;;  %v2391_v12 = vunpack.c.l.bf16 %v2356_v33  ;;  %v1881_v8 = vunpack.c.h.bf16 %v1556_v29  ;;  %v5442_v20 = vor.u32 %v5773_v41, %v5441_v58  ;;  %v9761_v29 = vld [vmem:[#allocation4_spill] sm:$0xff] }
 0x32a   : > { %v2392_v62 = vunpack.c.h.bf16 %v2356_v33  ;;  %v5634_v34 = vor.u32 %v5821_v28, %v5633_v60  ;;  %v1312_v36 = vadd.f32 %v1311_v55, %v9757_v4  ;;  %v1370_v40 = vadd.f32 %v1369_v50, %v9758_v56 }
 0x32b   : > { %v8264_v57 = vpop.eup %6130  ;;  %v8266_v49 = vadd.f32 0.5, %v2162_v23  ;;  %6138 = vtanh.f32 %v1880_v21  ;;  %3414 = vmatpush.bf16.msra.mxu0 %v5442_v20  ;;  %v1199_v17 = vadd.f32 %v1198_v7, %v9759_v6  ;;  %v1257_v16 = vadd.f32 %v1256_v42, %v9760_v19  ;;  %v9762_v42 = vld [vmem:[#allocation5_spill] sm:$0xff] }
 0x32c   : > { %v8270_v37 = vpop.eup %6132  ;;  %6140 = vtanh.f32 %v2391_v12  ;;  %3472 = vmatpush.bf16.msra.mxu1 %v5634_v34  ;;  %v1496_v43 = vadd.f32 %v7549_v22, %v1312_v36  ;;  %v1497_v55 = vadd.f32 %v7553_v10, %v1370_v40  ;;  %v2220_v50 = vpack.c.bf16 %v2196_v38, %v8175_v52 }
 0x32d   : > { %v6135_v27 = vpop.eup %6134  ;;  %6142 = vtanh.f32 %v1881_v8  ;;  %v1500_v53 = vadd.f32 %v7527_v9, %v1199_v17  ;;  %v1501_v7 = vadd.f32 %v7529_v13, %v1257_v16  ;;  %v8279_v58 = vpack.c.bf16 %v9762_v42, %v9761_v29  ;;  %v1316_v20 = vpop.f32.mrf.mxu2 }
 0x32e   : > { %v6137_v41 = vpop.eup %6136  ;;  %6144 = vtanh.f32 %v2392_v62  ;;  %v1557_v23 = vpack.c.bf16 %v1497_v55, %v1496_v43  ;;  %v2447_v33 = vpack.c.bf16 %v8168_v3, %v8160_v2  ;;  %v2448_v52 = vpack.c.bf16 %v8184_v24, %v8173_v31 }
 0x32f   : > { %v2033_v38 = vpack.c.bf16 %v6137_v41, %v6135_v27  ;;  %v1559_v60 = vpack.c.bf16 %v1501_v7, %v1500_v53  ;;  %v2478_v28 = vunpack.c.l.bf16 %v8149_v15  ;;  %v2480_v9 = vunpack.c.l.bf16 %v2220_v50  ;;  %v1374_v34 = vpop.f32.mrf.mxu3  ;;  %v9764_v7 = vld [vmem:[#allocation68_spill] sm:$0xff] }
 0x330   : > { %v1975_v21 = vunpack.c.l.bf16 %v1557_v23  ;;  %v1976_v13 = vunpack.c.h.bf16 %v1557_v23  ;;  %v2516_v12 = vunpack.c.l.bf16 %v2447_v33  ;;  %v2518_v8 = vunpack.c.l.bf16 %v2448_v52 }
 0x331   : > { %v6139_v4 = vpop.eup %6138  ;;  %v2068_v62 = vunpack.c.l.bf16 %v2033_v38  ;;  %v2069_v36 = vunpack.c.h.bf16 %v2033_v38  ;;  %v1882_v56 = vunpack.c.l.bf16 %v1559_v60  ;;  %v1883_v40 = vunpack.c.h.bf16 %v1559_v60  ;;  %v5611_v38 = vld [vmem:[%s9544_s5 + $0x200] sm:$0xf0] }
 0x332   : > { %v8286_v2 = vpop.eup %6140  ;;  %6146 = vtanh.f32 %v1975_v21  ;;  %v2554_v3 = vmul.f32 %v2516_v12, %v2478_v28  ;;  %v2556_v31 = vmul.f32 %v2518_v8, %v2480_v9  ;;  %v2479_v24 = vunpack.c.h.bf16 %v8149_v15  ;;  %v5764_v15 = vld [vmem:[%s9544_s5 + $0x6c] sm:$0xf] }
 0x333   : > { %v6143_v6 = vpop.eup %6142  ;;  %v2106_v17 = vmul.f32 0.5, %v2068_v62  ;;  %v2107_v19 = vmul.f32 0.5, %v2069_v36  ;;  %6148 = vtanh.f32 %v1976_v13  ;;  %v2481_v16 = vunpack.c.h.bf16 %v2220_v50  ;;  %v5419_v50 = vld [vmem:[%s9544_s5 + $0x80] sm:$0xf0]  ;;  %v5417_v13 = vld [vmem:[%s9544_s5 + $0x68] sm:$0xf] }
 0x334   : > { %v8289_v43 = vpop.eup %6144  ;;  %v1939_v55 = vpack.c.bf16 %v6143_v6, %v6139_v4  ;;  %6150 = vtanh.f32 %v1882_v56  ;;  %v8291_v44 = vpack.c.bf16 %v2556_v31, %v2554_v3  ;;  %v2517_v14 = vunpack.c.h.bf16 %v2447_v33  ;;  %v9765_v33 = vld [vmem:[#allocation69_spill] sm:$0xff] }
 0x335   : > { %v8293_v27 = vpack.c.bf16 %v2107_v19, %v2106_v17  ;;  %6152 = vtanh.f32 %v1883_v40  ;;  %v2519_v53 = vunpack.c.h.bf16 %v2448_v52  ;;  %v1315_v29 = vadd.f32 %v8256_v18, %v9764_v7  ;;  %v5812_v18 = vld [vmem:[%s9544_s5 + $0x1ec] sm:$0xf]  ;;  %v5815_v62 = vld [vmem:[%s9544_s5 + $0x1fc] sm:$0xf0] }
 0x336   : > { %9763 = vst [vmem:[#allocation44_spill] sm:$0xff] %v8291_v44  ;;  %v2298_v42 = vunpack.c.l.bf16 %v1939_v55  ;;  %v2299_v41 = vunpack.c.h.bf16 %v1939_v55  ;;  %v2262_v23 = vunpack.c.l.bf16 %v8279_v58  ;;  %3216 = vmatmul.bf16.gmra.mxu0 %v8291_v44  ;;  %3332 = vmatmul.bf16.gmra.mxu2 %v8291_v44  ;;  %v1373_v52 = vadd.f32 %v8258_v1, %v9765_v33  ;;  %v5767_v1 = vld [vmem:[%s9544_s5 + $0x7c] sm:$0xf0] }
 0x337   : > { %v2163_v60 = vunpack.c.l.bf16 %v8293_v27  ;;  %v2555_v28 = vmul.f32 %v2517_v14, %v2479_v24  ;;  %v2557_v9 = vmul.f32 %v2519_v53, %v2481_v16  ;;  %v1502_v21 = vadd.f32 %v7549_v22, %v1315_v29  ;;  %v5609_v22 = vld [vmem:[%s9544_s5 + $0x1e8] sm:$0xf] }
 0x338   : > { %v6147_v12 = vpop.eup %6146  ;;  %v2336_v8 = vmul.f32 %v2298_v42, %v2260_v25  ;;  %v2337_v20 = vmul.f32 %v2299_v41, %v2261_v59  ;;  %v1503_v34 = vadd.f32 %v7553_v10, %v1373_v52  ;;  %v5422_v4 = vor.u32 %v5764_v15, %v5419_v50  ;;  %v8348_v52 = vpop.f32.mrf.mxu1 }
 0x339   : > { %v6149_v36 = vpop.eup %6148  ;;  %v2164_v56 = vunpack.c.h.bf16 %v8293_v27  ;;  %v2263_v40 = vunpack.c.h.bf16 %v8279_v58  ;;  %v8335_v25 = vpack.c.bf16 %v2557_v9, %v2555_v28  ;;  %v5614_v26 = vor.u32 %v5812_v18, %v5611_v38  ;;  %v8350_v28 = vpop.f32.mrf.mxu2  ;;  %v5806_v58 = vld [vmem:[%s9544_s5 + $0x1bc] sm:$0xf] }
 0x33a   : > { %v6151_v59 = vpop.eup %6150  ;;  %v2357_v3 = vpack.c.bf16 %v2337_v20, %v2336_v8  ;;  %v2034_v10 = vpack.c.bf16 %v6149_v36, %v6147_v12  ;;  %v1560_v31 = vpack.c.bf16 %v1503_v34, %v1502_v21  ;;  %3531 = vmatpush.bf16.msra.mxu2 %v5422_v4  ;;  %v5418_v24 = vor.u32 %v5767_v1, %v5417_v13  ;;  %v8352_v9 = vpop.f32.mrf.mxu3  ;;  %v5395_v12 = vld [vmem:[%s9544_s5 + $0x50] sm:$0xf0] }
 0x33b   : > { %9766 = vst [vmem:[#allocation45_spill] sm:$0xff] %v8335_v25  ;;  %v6153_v6 = vpop.eup %6152  ;;  %v8337_v17 = vadd.f32 0.5, %v2163_v60  ;;  %3274 = vmatmul.bf16.gmra.mxu1 %v8335_v25  ;;  %3390 = vmatmul.bf16.gmra.mxu3 %v8335_v25  ;;  %v5610_v19 = vor.u32 %v5815_v62, %v5609_v22  ;;  %v2222_v16 = vpack.c.bf16 %v8266_v49, %v8260_v32  ;;  %v2482_v55 = vunpack.c.l.bf16 %v8246_v61  ;;  %v3187_v49 = vpop.f32.mrf.mxu0 }
 0x33c   : > { %v2393_v14 = vunpack.c.l.bf16 %v2357_v3  ;;  %v2394_v27 = vunpack.c.h.bf16 %v2357_v3  ;;  %v2070_v53 = vunpack.c.l.bf16 %v2034_v10  ;;  %v2071_v7 = vunpack.c.h.bf16 %v2034_v10  ;;  %3589 = vmatpush.bf16.msra.mxu3 %v5614_v26  ;;  %3415 = vmatpush.bf16.msra.mxu0 %v5418_v24  ;;  %v5393_v26 = vld [vmem:[%s9544_s5 + $0x38] sm:$0xf] }
 0x33d   : > { %v1940_v29 = vpack.c.bf16 %v6153_v6, %v6151_v59  ;;  %v1977_v15 = vunpack.c.l.bf16 %v1560_v31  ;;  %v1978_v50 = vunpack.c.h.bf16 %v1560_v31  ;;  %3473 = vmatpush.bf16.msra.mxu1 %v5610_v19  ;;  %v2449_v42 = vpack.c.bf16 %v8229_v46, %v8208_v45  ;;  %v5761_v59 = vld [vmem:[%s9544_s5 + $0x4c] sm:$0xf0] }
 0x33e   : > { %6154 = vtanh.f32 %v2393_v14  ;;  %v2108_v41 = vmul.f32 0.5, %v2070_v53  ;;  %v2109_v33 = vmul.f32 0.5, %v2071_v7  ;;  %v2450_v32 = vpack.c.bf16 %v8270_v37, %v8264_v57  ;;  %v5758_v37 = vld [vmem:[%s9544_s5 + $0x3c] sm:$0xf] }
 0x33f   : > { %6156 = vtanh.f32 %v2394_v27  ;;  %v2300_v18 = vunpack.c.l.bf16 %v1940_v29  ;;  %v2301_v38 = vunpack.c.h.bf16 %v1940_v29  ;;  %v2484_v60 = vunpack.c.l.bf16 %v2222_v16 }
 0x340   : > { %v2129_v21 = vpack.c.bf16 %v2109_v33, %v2108_v41  ;;  %6158 = vtanh.f32 %v1977_v15  ;;  %v2520_v45 = vunpack.c.l.bf16 %v2449_v42  ;;  %v2522_v46 = vunpack.c.l.bf16 %v2450_v32 }
 0x341   : > { %v2338_v13 = vmul.f32 %v2300_v18, %v2262_v23  ;;  %v2339_v1 = vmul.f32 %v2301_v38, %v2263_v40  ;;  %6160 = vtanh.f32 %v1978_v50  ;;  %v2483_v57 = vunpack.c.h.bf16 %v8246_v61  ;;  %v5587_v61 = vld [vmem:[%s9544_s5 + $0x1d0] sm:$0xf0]  ;;  %v8372_v23 = vld [vmem:[%s9545_s6] sm:$0x3f] }
 0x342   : > { %v2165_v8 = vunpack.c.l.bf16 %v2129_v21  ;;  %v2166_v20 = vunpack.c.h.bf16 %v2129_v21  ;;  %v2558_v34 = vmul.f32 %v2520_v45, %v2482_v55  ;;  %v2560_v4 = vmul.f32 %v2522_v46, %v2484_v60  ;;  %v8401_v60 = vpop.f32.mrf.mxu1  ;;  %v5585_v45 = vld [vmem:[%s9544_s5 + $0x1b8] sm:$0xf]  ;;  %v8412_v46 = vpop.f32.mrf.mxu3 }
 0x343   : > { %v2202_v22 = vadd.f32 0.5, %v2164_v56  ;;  %v2485_v62 = vunpack.c.h.bf16 %v2222_v16  ;;  %v2521_v36 = vunpack.c.h.bf16 %v2449_v42  ;;  %v2523_v40 = vunpack.c.h.bf16 %v2450_v32  ;;  %v8399_v38 = vpop.f32.mrf.mxu0 }
 0x344   : > { %v6155_v3 = vpop.eup %6154  ;;  %v2203_v10 = vadd.f32 0.5, %v2165_v8  ;;  %v2204_v31 = vadd.f32 0.5, %v2166_v20  ;;  %v8380_v24 = vpack.c.bf16 %v2560_v4, %v2558_v34  ;;  %v5398_v6 = vor.u32 %v5758_v37, %v5395_v12  ;;  %v5752_v20 = vld [vmem:[%s9544_s5 + $0xc] sm:$0xf]  ;;  %v5371_v34 = vld [vmem:[%s9544_s5 + $0x20] sm:$0xf0] }
 0x345   : > { %v6157_v19 = vpop.eup %6156  ;;  %v2358_v55 = vpack.c.bf16 %v2339_v1, %v2338_v13  ;;  %v2559_v56 = vmul.f32 %v2521_v36, %v2483_v57  ;;  %v2561_v16 = vmul.f32 %v2523_v40, %v2485_v62  ;;  %v5590_v27 = vor.u32 %v5806_v58, %v5587_v61  ;;  %v5563_v62 = vld [vmem:[%s9544_s5 + $0x1a0] sm:$0xf0] }
 0x346   : > { %9767 = vst [vmem:[#allocation12_spill] sm:$0xff] %v8380_v24  ;;  %v6159_v14 = vpop.eup %6158  ;;  %3221 = vmatmul.bf16.gmra.mxu0 %v8380_v24  ;;  %3337 = vmatmul.bf16.gmra.mxu2 %v8380_v24  ;;  %v8385_v53 = vperm.slane %v8372_v23, 0  ;;  %v5394_v7 = vor.u32 %v5761_v59, %v5393_v26  ;;  %v8387_v29 = vpack.c.bf16 %v2204_v31, %v2203_v10  ;;  %v5755_v10 = vld [vmem:[%s9544_s5 + $0x1c] sm:$0xf0] }
 0x347   : > { %v6161_v15 = vpop.eup %6160  ;;  %v8390_v50 = vpack.c.bf16 %v2202_v22, %v8337_v17  ;;  %v8392_v42 = vpack.c.bf16 %v2561_v16, %v2559_v56  ;;  %3532 = vmatpush.bf16.msra.mxu2 %v5398_v6  ;;  %v8396_v41 = vpack.c.bf16 %v8289_v43, %v8286_v2  ;;  %v2452_v33 = vpack.c.bf16 %v6157_v19, %v6155_v3  ;;  %v5809_v2 = vld [vmem:[%s9544_s5 + $0x1cc] sm:$0xf0]  ;;  %v8410_v43 = vpop.f32.mrf.mxu2  ;;  %v5369_v3 = vld [vmem:[%s9544_s5 + $0x8] sm:$0xf] }
 0x348   : > { %v2035_v32 = vpack.c.bf16 %v6161_v15, %v6159_v14  ;;  %3590 = vmatpush.bf16.msra.mxu3 %v5590_v27  ;;  %v3188_v18 = vadd.f32 %v3187_v49, %v8385_v53  ;;  %3416 = vmatpush.bf16.msra.mxu0 %v5394_v7  ;;  %v2395_v21 = vunpack.c.l.bf16 %v2358_v55  ;;  %v2488_v17 = vunpack.c.l.bf16 %v8387_v29  ;;  %v5561_v7 = vld [vmem:[%s9544_s5 + $0x188] sm:$0xf]  ;;  %v5803_v15 = vld [vmem:[%s9544_s5 + $0x19c] sm:$0xf0] }
 0x349   : > { %9768 = vst [vmem:[#allocation13_spill] sm:$0xff] %v8392_v42  ;;  %v2526_v57 = vunpack.c.l.bf16 %v2452_v33  ;;  %v2396_v37 = vunpack.c.h.bf16 %v2358_v55  ;;  %v2486_v12 = vunpack.c.l.bf16 %v8390_v50  ;;  %v2524_v8 = vunpack.c.l.bf16 %v8396_v41 }
 0x34a   : > { %v2072_v49 = vunpack.c.l.bf16 %v2035_v32  ;;  %v2073_v13 = vunpack.c.h.bf16 %v2035_v32  ;;  %v3246_v1 = vadd.f32 %v8348_v52, %v3188_v18  ;;  %v5800_v52 = vld [vmem:[%s9544_s5 + $0x18c] sm:$0xf]  ;;  %v5586_v61 = vor.u32 %v5809_v2, %v5585_v45  ;;  %v3250_v27 = vpop.f32.mrf.mxu1 }
 0x34b   : > { %3279 = vmatmul.bf16.gmra.mxu1 %v8392_v42  ;;  %3395 = vmatmul.bf16.gmra.mxu3 %v8392_v42  ;;  %v8429_v22 = vperm.slane %v8372_v23, 1  ;;  %6162 = vtanh.f32 %v2395_v21  ;;  %v2564_v40 = vmul.f32 %v2526_v57, %v2488_v17  ;;  %v5374_v59 = vor.u32 %v5752_v20, %v5371_v34  ;;  %v3366_v21 = vpop.f32.mrf.mxu3 }
 0x34c   : > { %v2110_v4 = vmul.f32 0.5, %v2072_v49  ;;  %v2111_v58 = vmul.f32 0.5, %v2073_v13  ;;  %3474 = vmatpush.bf16.msra.mxu1 %v5586_v61  ;;  %6164 = vtanh.f32 %v2396_v37  ;;  %v2489_v31 = vunpack.c.h.bf16 %v8387_v29 }
 0x34d   : > { %v3304_v26 = vadd.f32 %v8350_v28, %v8429_v22  ;;  %v2527_v6 = vunpack.c.h.bf16 %v2452_v33  ;;  %v5566_v19 = vor.u32 %v5800_v52, %v5563_v62  ;;  %v2562_v16 = vmul.f32 %v2524_v8, %v2486_v12  ;;  %3533 = vmatpush.bf16.msra.mxu2 %v5374_v59  ;;  %v3192_v28 = vpop.f32.mrf.mxu0  ;;  %v5843_v59 = vld [vmem:[%s9544_s5 + $0x2e4] sm:$0xf] }
 0x34e   : > { %v2130_v36 = vpack.c.bf16 %v2111_v58, %v2110_v4  ;;  %v2487_v29 = vunpack.c.h.bf16 %v8390_v50  ;;  %v2525_v33 = vunpack.c.h.bf16 %v8396_v41  ;;  %v3193_v32 = vadd.f32 %v3192_v28, %v8385_v53  ;;  %v5846_v28 = vld [vmem:[%s9544_s5 + $0x2f4] sm:$0xf0] }
 0x34f   : > { %v3362_v14 = vadd.f32 %v8352_v9, %v3304_v26  ;;  %3591 = vmatpush.bf16.msra.mxu3 %v5566_v19  ;;  %v5370_v18 = vor.u32 %v5755_v10, %v5369_v3  ;;  %v3308_v9 = vpop.f32.mrf.mxu2  ;;  %v8453_v17 = vpack.c.bf16 %v2564_v40, %v2562_v16  ;;  %v2565_v49 = vmul.f32 %v2527_v6, %v2489_v31  ;;  %v5795_v40 = vld [vmem:[%s9544_s5 + $0x164] sm:$0xf]  ;;  %v5547_v26 = vld [vmem:[%s9544_s5 + $0x178] sm:$0xf0]  ;;  %v5737_v16 = vld [vmem:[%s9544_s5 + $0x2e0] sm:$0xf] }
 0x350   : > { %v2167_v55 = vunpack.c.l.bf16 %v2130_v36  ;;  %v2168_v56 = vunpack.c.h.bf16 %v2130_v36  ;;  %v3251_v13 = vadd.f32 %v3250_v27, %v3193_v32  ;;  %v3309_v57 = vadd.f32 %v3308_v9, %v8429_v22  ;;  %v5739_v6 = vld [vmem:[%s9544_s5 + $0x2f8] sm:$0xf0] }
 0x351   : > { %9769 = vst [vmem:[#allocation46_spill] sm:$0xff] %v8453_v17  ;;  %v8455_v45 = vpack.c.bf16 %v3362_v14, %v3246_v1  ;;  %v6163_v2 = vpop.eup %6162  ;;  %3417 = vmatpush.bf16.msra.mxu0 %v5370_v18  ;;  %v5562_v37 = vor.u32 %v5803_v15, %v5561_v7  ;;  %v2563_v8 = vmul.f32 %v2525_v33, %v2487_v29 }
 0x352   : > { %v2205_v50 = vadd.f32 0.5, %v2167_v55  ;;  %v2206_v12 = vadd.f32 0.5, %v2168_v56  ;;  %v6165_v41 = vpop.eup %6164  ;;  %v3367_v20 = vadd.f32 %v3366_v21, %v3309_v57  ;;  %v8466_v61 = vpop.f32.mrf.mxu1  ;;  %v5550_v31 = vor.u32 %v5795_v40, %v5547_v26  ;;  %v5545_v55 = vld [vmem:[%s9544_s5 + $0x160] sm:$0xf]  ;;  %v5798_v56 = vld [vmem:[%s9544_s5 + $0x174] sm:$0xf0] }
 0x353   : > { %3475 = vmatpush.bf16.msra.mxu1 %v5562_v37  ;;  %v8460_v34 = vpack.c.bf16 %v2565_v49, %v2563_v8  ;;  %v2453_v4 = vpack.c.bf16 %v6165_v41, %v6163_v2  ;;  %v8470_v36 = vpop.f32.mrf.mxu3  ;;  %v5742_v19 = vor.u32 %v5843_v59, %v5739_v6  ;;  %v5546_v14 = vor.u32 %v5798_v56, %v5545_v55  ;;  %v5523_v40 = vld [vmem:[%s9544_s5 + $0x148] sm:$0xf0]  ;;  %v5837_v26 = vld [vmem:[%s9544_s5 + $0x2b4] sm:$0xf]  ;;  %v5792_v6 = vld [vmem:[%s9544_s5 + $0x144] sm:$0xf0] }
 0x354   : > { %v8462_v1 = vpack.c.bf16 %v3367_v20, %v3251_v13  ;;  %v2225_v52 = vpack.c.bf16 %v2206_v12, %v2205_v50  ;;  %3758 = vmatpush.bf16.msrb.mxu2 %v5550_v31  ;;  %v5738_v27 = vor.u32 %v5846_v28, %v5737_v16  ;;  %v5715_v59 = vld [vmem:[%s9544_s5 + $0x2c8] sm:$0xf0] }
 0x355   : > { %9770 = vst [vmem:[#allocation47_spill] sm:$0xff] %v8460_v34  ;;  %v8464_v58 = vpop.f32.mrf.mxu0  ;;  %v2528_v10 = vunpack.c.l.bf16 %v2453_v4  ;;  %3816 = vmatpush.bf16.msrb.mxu3 %v5742_v19  ;;  %3642 = vmatpush.bf16.msrb.mxu0 %v5546_v14  ;;  %v2529_v32 = vunpack.c.h.bf16 %v2453_v4  ;;  %v5789_v4 = vld [vmem:[%s9544_s5 + $0x134] sm:$0xf]  ;;  %v5718_v31 = vor.u32 %v5837_v26, %v5715_v59  ;;  %v5499_v26 = vld [vmem:[%s9544_s5 + $0x118] sm:$0xf0] }
 0x356   : > { %3226 = vmatmul.bf16.gmra.mxu0 %v8453_v17  ;;  %3342 = vmatmul.bf16.gmra.mxu2 %v8453_v17  ;;  %v2490_v3 = vunpack.c.l.bf16 %v2225_v52  ;;  %v2491_v33 = vunpack.c.h.bf16 %v2225_v52  ;;  %v5831_v59 = vld [vmem:[%s9544_s5 + $0x284] sm:$0xf] }
 0x357   : > { %v8468_v62 = vpop.f32.mrf.mxu2  ;;  %3700 = vmatpush.bf16.msrb.mxu1 %v5738_v27 }
 0x358   : > { %v2566_v7 = vmul.f32 %v2528_v10, %v2490_v3  ;;  %v2567_v57 = vmul.f32 %v2529_v32, %v2491_v33  ;;  %v5521_v3 = vld [vmem:[%s9544_s5 + $0x130] sm:$0xf]  ;;  %v5526_v10 = vor.u32 %v5789_v4, %v5523_v40  ;;  %v5840_v33 = vld [vmem:[%s9544_s5 + $0x2c4] sm:$0xf0]  ;;  %v5783_v40 = vld [vmem:[%s9544_s5 + $0x104] sm:$0xf] }
 0x359   : > { %v5522_v19 = vor.u32 %v5792_v6, %v5521_v3  ;;  %3817 = vmatpush.bf16.msrb.mxu3 %v5718_v31  ;;  %v9773_v32 = vld [vmem:[#allocation6_spill] sm:$0xff]  ;;  %v5502_v6 = vor.u32 %v5783_v40, %v5499_v26 }
 0x35a   : > { %v3255_v29 = vpop.f32.mrf.mxu1  ;;  %v8500_v13 = vpack.c.bf16 %v2566_v7, %v2566_v7  ;;  %v8510_v8 = vpack.c.bf16 %v2567_v57, %v2567_v57  ;;  %3759 = vmatpush.bf16.msrb.mxu2 %v5526_v10  ;;  %v5691_v10 = vld [vmem:[%s9544_s5 + $0x298] sm:$0xf0] }
 0x35b   : > { %3284 = vmatmul.bf16.gmra.mxu1 %v8460_v34  ;;  %3400 = vmatmul.bf16.gmra.mxu3 %v8460_v34  ;;  %v3371_v21 = vpop.f32.mrf.mxu3 }
 0x35c   : > { %9771 = vst [vmem:[#allocation14_spill] sm:$0xff] %v8500_v13  ;;  %3643 = vmatpush.bf16.msrb.mxu0 %v5522_v19  ;;  %v5694_v19 = vor.u32 %v5831_v59, %v5691_v10 }
 0x35d   : > { %v3197_v15 = vpop.f32.mrf.mxu0  ;;  %9772 = vst [vmem:[#allocation15_spill] sm:$0xff] %v8510_v8 }
 0x35e   : > { %v3198_v18 = vadd.f32 %v3197_v15, %v8385_v53  ;;  %3760 = vmatpush.bf16.msrb.mxu2 %v5502_v6  ;;  %3818 = vmatpush.bf16.msrb.mxu3 %v5694_v19 }
 0x35f   : > { %v3313_v9 = vpop.f32.mrf.mxu2 }
 0x360   : > { %v3256_v2 = vadd.f32 %v3255_v29, %v3198_v18  ;;  %v3314_v49 = vadd.f32 %v3313_v9, %v8429_v22  ;;  %v5713_v29 = vld [vmem:[%s9544_s5 + $0x2b0] sm:$0xf] }
 0x361   : > { %v5714_v9 = vor.u32 %v5840_v33, %v5713_v29  ;;  %v5834_v29 = vld [vmem:[%s9544_s5 + $0x294] sm:$0xf0] }
 0x362   : > { %v3372_v37 = vadd.f32 %v3371_v21, %v3314_v49  ;;  %v8508_v41 = vpop.f32.mrf.mxu1 }
 0x363   : > { %v8514_v52 = vpop.f32.mrf.mxu3  ;;  %3701 = vmatpush.bf16.msrb.mxu1 %v5714_v9 }
 0x364   : > { %v8504_v50 = vpack.c.bf16 %v3372_v37, %v3256_v2 }
 0x365   : > { %v8506_v12 = vpop.f32.mrf.mxu0 }
 0x366   : > { %3231 = vmatmul.bf16.gmra.mxu0 %v8500_v13  ;;  %3347 = vmatmul.bf16.gmra.mxu2 %v8500_v13 }
 0x367   : > { %v8512_v20 = vpop.f32.mrf.mxu2 }
 0x36a   : > { %v3260_v56 = vpop.f32.mrf.mxu1 }
 0x36b   : > { %3289 = vmatmul.bf16.gmra.mxu1 %v8510_v8  ;;  %3405 = vmatmul.bf16.gmra.mxu3 %v8510_v8 }
 0x36d   : > { %v3202_v55 = vpop.f32.mrf.mxu0 }
 0x36e   : > { %v3203_v16 = vadd.f32 %v3202_v55, %v8385_v53 }
 0x36f   : > { %v3318_v14 = vpop.f32.mrf.mxu2 }
 0x370   : > { %v3319_v28 = vadd.f32 %v3318_v14, %v8429_v22  ;;  %v3376_v27 = vpop.f32.mrf.mxu3  ;;  %v3261_v7 = vadd.f32 %v3260_v56, %v3203_v16 }
 0x372   : > { %v3377_v15 = vadd.f32 %v3376_v27, %v3319_v28  ;;  %v8550_v2 = vpop.f32.mrf.mxu1  ;;  %v5497_v28 = vld [vmem:[%s9544_s5 + $0x100] sm:$0xf]  ;;  %v5786_v27 = vld [vmem:[%s9544_s5 + $0x114] sm:$0xf0] }
 0x374   : > { %v8546_v18 = vpack.c.bf16 %v3377_v15, %v3261_v7  ;;  %v5498_v7 = vor.u32 %v5786_v27, %v5497_v28  ;;  %v5689_v15 = vld [vmem:[%s9544_s5 + $0x280] sm:$0xf]  ;;  %v5825_v27 = vld [vmem:[%s9544_s5 + $0x254] sm:$0xf] }
 0x375   : > { %v8548_v21 = vpop.f32.mrf.mxu0  ;;  %v5690_v9 = vor.u32 %v5834_v29, %v5689_v15 }
 0x376   : > { %3418 = vmatmul.bf16.vlgmr.msra.gmra.mxu0 %v9773_v32  ;;  %3534 = vmatmul.bf16.vlgmr.msra.gmra.mxu2 %v9773_v32 }
 0x377   : > { %v8554_v49 = vpop.f32.mrf.mxu2  ;;  %3644 = vmatpush.bf16.msrb.mxu0 %v5498_v7  ;;  %3702 = vmatpush.bf16.msrb.mxu1 %v5690_v9  ;;  %v5667_v7 = vld [vmem:[%s9544_s5 + $0x268] sm:$0xf0]  ;;  %v5473_v9 = vld [vmem:[%s9544_s5 + $0xd0] sm:$0xf] }
 0x378   : > { %v8556_v57 = vpop.f32.mrf.mxu3  ;;  %v5670_v29 = vor.u32 %v5825_v27, %v5667_v7  ;;  %v5828_v27 = vld [vmem:[%s9544_s5 + $0x264] sm:$0xf0] }
 0x37a   : > { %3819 = vmatpush.bf16.msrb.mxu3 %v5670_v29 }
 0x37b   : > { %3476 = vmatmul.bf16.vlgmr.msra.gmra.mxu1 %v7801_v51  ;;  %3592 = vmatmul.bf16.vlgmr.msra.gmra.mxu3 %v7801_v51 }
 0x380   : > { %v3207_v37 = vpop.f32.mrf.mxu0 }
 0x381   : > { %v3208_v4 = vadd.f32 %v3207_v37, %v8385_v53 }
 0x383   : > { %v3265_v3 = vpop.f32.mrf.mxu1 }
 0x384   : > { %v3266_v31 = vadd.f32 %v3265_v3, %v3208_v4 }
 0x386   : > { %3423 = vmatmul.bf16.gmra.mxu0 %v7871_v0  ;;  %3539 = vmatmul.bf16.gmra.mxu2 %v7871_v0  ;;  %v3323_v55 = vpop.f32.mrf.mxu2 }
 0x387   : > { %v3324_v56 = vadd.f32 %v3323_v55, %v8429_v22 }
 0x388   : > { %v8590_v37 = vpop.f32.mrf.mxu0 }
 0x389   : > { %v3381_v16 = vpop.f32.mrf.mxu3 }
 0x38a   : > { %v3382_v14 = vadd.f32 %v3381_v16, %v3324_v56  ;;  %v5777_v16 = vld [vmem:[%s9544_s5 + $0xd4] sm:$0xf] }
 0x38b   : > { %3481 = vmatmul.bf16.gmra.mxu1 %v7874_v35  ;;  %3597 = vmatmul.bf16.gmra.mxu3 %v7874_v35  ;;  %v8592_v4 = vpop.f32.mrf.mxu1 }
 0x38c   : > { %v8588_v33 = vpack.c.bf16 %v3382_v14, %v3266_v31  ;;  %v5475_v14 = vld [vmem:[%s9544_s5 + $0xe8] sm:$0xf0] }
 0x38d   : > { %v5478_v28 = vor.u32 %v5777_v16, %v5475_v14 }
 0x38e   : > { %v8594_v40 = vpop.f32.mrf.mxu2 }
 0x38f   : > { %3761 = vmatpush.bf16.msrb.mxu2 %v5478_v28  ;;  %v5665_v28 = vld [vmem:[%s9544_s5 + $0x250] sm:$0xf] }
 0x390   : > { %v5666_v29 = vor.u32 %v5828_v27, %v5665_v28  ;;  %v5819_v28 = vld [vmem:[%s9544_s5 + $0x224] sm:$0xf] }
 0x391   : > { %v8598_v26 = vpop.f32.mrf.mxu3 }
 0x392   : > { %3703 = vmatpush.bf16.msrb.mxu1 %v5666_v29  ;;  %v5643_v29 = vld [vmem:[%s9544_s5 + $0x238] sm:$0xf0] }
 0x396   : > { %3428 = vmatmul.bf16.gmra.mxu0 %v7953_v47  ;;  %3544 = vmatmul.bf16.gmra.mxu2 %v7953_v47 }
 0x399   : > { %v3212_v59 = vpop.f32.mrf.mxu0 }
 0x39a   : > { %v3213_v3 = vadd.f32 %v3212_v59, %v8385_v53  ;;  %v5780_v59 = vld [vmem:[%s9544_s5 + $0xe4] sm:$0xf0] }
 0x39b   : > { %3486 = vmatmul.bf16.gmra.mxu1 %v7971_v54  ;;  %3602 = vmatmul.bf16.gmra.mxu3 %v7971_v54 }
 0x39c   : > { %v3270_v10 = vpop.f32.mrf.mxu1 }
 0x39d   : > { %v3271_v31 = vadd.f32 %v3270_v10, %v3213_v3  ;;  %v5474_v3 = vor.u32 %v5780_v59, %v5473_v9 }
 0x39f   : > { %v3328_v6 = vpop.f32.mrf.mxu2  ;;  %3645 = vmatpush.bf16.msrb.mxu0 %v5474_v3 }
 0x3a0   : > { %v3329_v19 = vadd.f32 %v3328_v6, %v8429_v22 }
 0x3a1   : > { %v8627_v6 = vpop.f32.mrf.mxu0 }
 0x3a2   : > { %v3386_v55 = vpop.f32.mrf.mxu3 }
 0x3a3   : > { %v3387_v56 = vadd.f32 %v3386_v55, %v3329_v19 }
 0x3a5   : > { %v8616_v15 = vpack.c.bf16 %v3387_v56, %v3271_v31  ;;  %v8633_v56 = vpop.f32.mrf.mxu1 }
 0x3a6   : > { %3433 = vmatmul.bf16.gmra.mxu0 %v8037_v39  ;;  %3549 = vmatmul.bf16.gmra.mxu2 %v8037_v39 }
 0x3a7   : > { %v3330_v10 = vpop.f32.mrf.mxu2 }
 0x3a8   : > { %v3331_v31 = vadd.f32 %v3330_v10, %v8429_v22 }
 0x3aa   : > { %v3388_v19 = vpop.f32.mrf.mxu3 }
 0x3ab   : > { %3491 = vmatmul.bf16.gmra.mxu1 %v8047_v48  ;;  %3607 = vmatmul.bf16.gmra.mxu3 %v8047_v48  ;;  %v8631_v55 = vadd.f32 %v3388_v19, %v3331_v31 }
 0x3b3   : > { %v3217_v16 = vpop.f32.mrf.mxu0 }
 0x3b4   : > { %v3218_v14 = vadd.f32 %v3217_v16, %v8385_v53 }
 0x3b6   : > { %3438 = vmatmul.bf16.gmra.mxu0 %v8119_v11  ;;  %3554 = vmatmul.bf16.gmra.mxu2 %v8119_v11  ;;  %v5771_v11 = vld [vmem:[%s9544_s5 + $0xa4] sm:$0xf] }
 0x3b8   : > { %v3275_v7 = vpop.f32.mrf.mxu1 }
 0x3b9   : > { %v3276_v9 = vadd.f32 %v3275_v7, %v3218_v14  ;;  %v3333_v59 = vpop.f32.mrf.mxu2  ;;  %v5451_v14 = vld [vmem:[%s9544_s5 + $0xb8] sm:$0xf0] }
 0x3ba   : > { %v3334_v3 = vadd.f32 %v3333_v59, %v8429_v22  ;;  %v5454_v7 = vor.u32 %v5771_v11, %v5451_v14 }
 0x3bb   : > { %3496 = vmatmul.bf16.gmra.mxu1 %v8136_v30  ;;  %3612 = vmatmul.bf16.gmra.mxu3 %v8136_v30  ;;  %v3219_v10 = vpop.f32.mrf.mxu0 }
 0x3bc   : > { %v3220_v31 = vadd.f32 %v3219_v10, %v8385_v53  ;;  %3762 = vmatpush.bf16.msrb.mxu2 %v5454_v7 }
 0x3be   : > { %v3391_v19 = vpop.f32.mrf.mxu3 }
 0x3bf   : > { %v3392_v16 = vadd.f32 %v3391_v19, %v3334_v3  ;;  %v5646_v19 = vor.u32 %v5819_v28, %v5643_v29  ;;  %v5822_v28 = vld [vmem:[%s9544_s5 + $0x234] sm:$0xf0] }
 0x3c0   : > { %v3277_v27 = vpop.f32.mrf.mxu1 }
 0x3c1   : > { %v8660_v59 = vpack.c.bf16 %v3392_v16, %v3276_v9  ;;  %v3278_v3 = vadd.f32 %v3277_v27, %v3220_v31  ;;  %v3335_v10 = vpop.f32.mrf.mxu2  ;;  %3820 = vmatpush.bf16.msrb.mxu3 %v5646_v19  ;;  %v5449_v9 = vld [vmem:[%s9544_s5 + $0xa0] sm:$0xf]  ;;  %v5774_v31 = vld [vmem:[%s9544_s5 + $0xb4] sm:$0xf0] }
 0x3c2   : > { %v3336_v30 = vadd.f32 %v3335_v10, %v8429_v22  ;;  %v5641_v16 = vld [vmem:[%s9544_s5 + $0x220] sm:$0xf] }
 0x3c3   : > { %9774 = vst [vmem:[#allocation48_spill] sm:$0xff] %v8660_v59  ;;  %v3222_v48 = vpop.f32.mrf.mxu0  ;;  %v5642_v7 = vor.u32 %v5822_v28, %v5641_v16 }
 0x3c4   : > { %v3223_v39 = vadd.f32 %v3222_v48, %v8385_v53  ;;  %v5450_v48 = vor.u32 %v5774_v31, %v5449_v9 }
 0x3c5   : > { %3704 = vmatpush.bf16.msrb.mxu1 %v5642_v7  ;;  %v5765_v7 = vld [vmem:[%s9544_s5 + $0x74] sm:$0xf] }
 0x3c6   : > { %v3393_v54 = vpop.f32.mrf.mxu3  ;;  %3443 = vmatmul.bf16.gmra.mxu0 %v8210_v5  ;;  %3559 = vmatmul.bf16.gmra.mxu2 %v8210_v5 }
 0x3c7   : > { %v3394_v11 = vadd.f32 %v3393_v54, %v3336_v30  ;;  %3646 = vmatpush.bf16.msrb.mxu0 %v5450_v48 }
 0x3c8   : > { %v3280_v14 = vpop.f32.mrf.mxu1 }
 0x3c9   : > { %v8678_v27 = vpack.c.bf16 %v3394_v11, %v3278_v3  ;;  %v3281_v54 = vadd.f32 %v3280_v14, %v3223_v39  ;;  %v3338_v30 = vpop.f32.mrf.mxu2 }
 0x3ca   : > { %v3339_v29 = vadd.f32 %v3338_v30, %v8429_v22 }
 0x3cb   : > { %3501 = vmatmul.bf16.gmra.mxu1 %v8216_v63  ;;  %3617 = vmatmul.bf16.gmra.mxu3 %v8216_v63  ;;  %v3224_v10 = vpop.f32.mrf.mxu0 }
 0x3cc   : > { %v3225_v19 = vadd.f32 %v3224_v10, %v8385_v53 }
 0x3ce   : > { %v3396_v9 = vpop.f32.mrf.mxu3 }
 0x3cf   : > { %v3397_v31 = vadd.f32 %v3396_v9, %v3339_v29  ;;  %v5619_v9 = vld [vmem:[%s9544_s5 + $0x208] sm:$0xf0] }
 0x3d0   : > { %v3282_v5 = vpop.f32.mrf.mxu1 }
 0x3d1   : > { %v8684_v59 = vpack.c.bf16 %v3397_v31, %v3281_v54  ;;  %v3283_v3 = vadd.f32 %v3282_v5, %v3225_v19  ;;  %v3340_v39 = vpop.f32.mrf.mxu2  ;;  %v5427_v5 = vld [vmem:[%s9544_s5 + $0x88] sm:$0xf0]  ;;  %v5813_v54 = vld [vmem:[%s9544_s5 + $0x1f4] sm:$0xf]  ;;  %v5425_v31 = vld [vmem:[%s9544_s5 + $0x70] sm:$0xf] }
 0x3d2   : > { %v3341_v16 = vadd.f32 %v3340_v39, %v8429_v22  ;;  %v5430_v19 = vor.u32 %v5765_v7, %v5427_v5 }
 0x3d3   : > { %v3227_v11 = vpop.f32.mrf.mxu0 }
 0x3d4   : > { %v3228_v14 = vadd.f32 %v3227_v11, %v8385_v53  ;;  %v5622_v11 = vor.u32 %v5813_v54, %v5619_v9  ;;  %3763 = vmatpush.bf16.msrb.mxu2 %v5430_v19  ;;  %v5617_v54 = vld [vmem:[%s9544_s5 + $0x1f0] sm:$0xf]  ;;  %v5816_v9 = vld [vmem:[%s9544_s5 + $0x204] sm:$0xf0]  ;;  %v3931_v19 = vunpack.c.l.bf16 %v8455_v45 }
 0x3d6   : > { %v3398_v48 = vpop.f32.mrf.mxu3  ;;  %3448 = vmatmul.bf16.gmra.mxu0 %v8291_v44  ;;  %3564 = vmatmul.bf16.gmra.mxu2 %v8291_v44  ;;  %6166 = vtanh.f32 %v3931_v19 }
 0x3d7   : > { %v3399_v28 = vadd.f32 %v3398_v48, %v3341_v16  ;;  %v5768_v16 = vld [vmem:[%s9544_s5 + $0x84] sm:$0xf0]  ;;  %3821 = vmatpush.bf16.msrb.mxu3 %v5622_v11 }
 0x3d8   : > { %v3285_v30 = vpop.f32.mrf.mxu1  ;;  %v5426_v48 = vor.u32 %v5768_v16, %v5425_v31  ;;  %v5618_v16 = vor.u32 %v5816_v9, %v5617_v54  ;;  %v5807_v54 = vld [vmem:[%s9544_s5 + $0x1c4] sm:$0xf]  ;;  %v5595_v9 = vld [vmem:[%s9544_s5 + $0x1d8] sm:$0xf0] }
 0x3d9   : > { %v3286_v29 = vadd.f32 %v3285_v30, %v3228_v14  ;;  %v3343_v10 = vpop.f32.mrf.mxu2  ;;  %v8705_v39 = vpack.c.bf16 %v3399_v28, %v3283_v3  ;;  %v5598_v19 = vor.u32 %v5807_v54, %v5595_v9 }
 0x3da   : > { %v3344_v30 = vadd.f32 %v3343_v10, %v8429_v22  ;;  %3647 = vmatpush.bf16.msrb.mxu0 %v5426_v48  ;;  %3705 = vmatpush.bf16.msrb.mxu1 %v5618_v16 }
 0x3db   : > { %3506 = vmatmul.bf16.gmra.mxu1 %v8335_v25  ;;  %3622 = vmatmul.bf16.gmra.mxu3 %v8335_v25  ;;  %v3229_v14 = vpop.f32.mrf.mxu0 }
 0x3dc   : > { %v3230_v7 = vadd.f32 %v3229_v14, %v8385_v53  ;;  %v3932_v14 = vunpack.c.h.bf16 %v8455_v45  ;;  %3822 = vmatpush.bf16.msrb.mxu3 %v5598_v19  ;;  %v6167_v9 = vpop.eup %6166 }
 0x3de   : > { %v3401_v3 = vpop.f32.mrf.mxu3  ;;  %6168 = vtanh.f32 %v3932_v14  ;;  %v5762_v14 = vld [vmem:[%s9544_s5 + $0x54] sm:$0xf0] }
 0x3df   : > { %v3402_v28 = vadd.f32 %v3401_v3, %v3344_v30 }
 0x3e0   : > { %v3287_v5 = vpop.f32.mrf.mxu1 }
 0x3e1   : > { %v3288_v25 = vadd.f32 %v3287_v5, %v3230_v7  ;;  %v3345_v31 = vpop.f32.mrf.mxu2  ;;  %v8720_v10 = vpack.c.bf16 %v3402_v28, %v3286_v29  ;;  %v5759_v29 = vld [vmem:[%s9544_s5 + $0x44] sm:$0xf]  ;;  %v5403_v7 = vld [vmem:[%s9544_s5 + $0x58] sm:$0xf0] }
 0x3e2   : > { %v3346_v48 = vadd.f32 %v3345_v31, %v8429_v22  ;;  %v5406_v5 = vor.u32 %v5759_v29, %v5403_v7 }
 0x3e3   : > { %v3232_v11 = vpop.f32.mrf.mxu0 }
 0x3e4   : > { %v3233_v30 = vadd.f32 %v3232_v11, %v8385_v53  ;;  %v5401_v11 = vld [vmem:[%s9544_s5 + $0x40] sm:$0xf]  ;;  %3764 = vmatpush.bf16.msrb.mxu2 %v5406_v5  ;;  %v3935_v5 = vunpack.c.l.bf16 %v8462_v1 }
 0x3e5   : > { %v5402_v29 = vor.u32 %v5762_v14, %v5401_v11  ;;  %v3936_v14 = vunpack.c.h.bf16 %v8462_v1 }
 0x3e6   : > { %v3403_v3 = vpop.f32.mrf.mxu3  ;;  %3453 = vmatmul.bf16.gmra.mxu0 %v8380_v24  ;;  %3569 = vmatmul.bf16.gmra.mxu2 %v8380_v24  ;;  %6170 = vtanh.f32 %v3935_v5 }
 0x3e7   : > { %v3404_v45 = vadd.f32 %v3403_v3, %v3346_v48  ;;  %v5593_v48 = vld [vmem:[%s9544_s5 + $0x1c0] sm:$0xf]  ;;  %3648 = vmatpush.bf16.msrb.mxu0 %v5402_v29  ;;  %v8766_v29 = vperm.slane %v8372_v23, 2  ;;  %6172 = vtanh.f32 %v3936_v14 }
 0x3e8   : > { %v3290_v28 = vpop.f32.mrf.mxu1 }
 0x3e9   : > { %v3291_v31 = vadd.f32 %v3290_v28, %v3233_v30  ;;  %v3348_v16 = vpop.f32.mrf.mxu2  ;;  %v8749_v3 = vpack.c.bf16 %v3404_v45, %v3288_v25  ;;  %v5810_v30 = vld [vmem:[%s9544_s5 + $0x1d4] sm:$0xf0]  ;;  %v6169_v25 = vpop.eup %6168  ;;  %v3306_v45 = vadd.f32 %v8410_v43, %v8429_v22 }
 0x3ea   : > { %v3349_v7 = vadd.f32 %v3348_v16, %v8429_v22  ;;  %v5594_v54 = vor.u32 %v5810_v30, %v5593_v48 }
 0x3eb   : > { %3511 = vmatmul.bf16.gmra.mxu1 %v8392_v42  ;;  %3627 = vmatmul.bf16.gmra.mxu3 %v8392_v42  ;;  %v3234_v28 = vpop.f32.mrf.mxu0  ;;  %v3190_v42 = vadd.f32 %v8399_v38, %v8385_v53  ;;  %v3364_v30 = vadd.f32 %v8412_v46, %v3306_v45  ;;  %v3311_v46 = vadd.f32 %v8468_v62, %v8429_v22  ;;  %v5753_v62 = vld [vmem:[%s9544_s5 + $0x14] sm:$0xf] }
 0x3ec   : > { %3706 = vmatpush.bf16.msrb.mxu1 %v5594_v54  ;;  %v4007_v28 = vpack.c.bf16 %v6169_v25, %v6167_v9 }
 0x3ed   : > { %v3248_v54 = vadd.f32 %v8401_v60, %v3190_v42 }
 0x3ee   : > { %v3406_v11 = vpop.f32.mrf.mxu3  ;;  %v4026_v1 = vunpack.c.l.bf16 %v4007_v28 }
 0x3ef   : > { %v3407_v24 = vadd.f32 %v3406_v11, %v3349_v7  ;;  %v4027_v7 = vunpack.c.h.bf16 %v4007_v28  ;;  %v3877_v38 = vpack.c.bf16 %v3364_v30, %v3248_v54  ;;  %v3195_v28 = vadd.f32 %v8464_v58, %v8385_v53  ;;  %v5801_v58 = vld [vmem:[%s9544_s5 + $0x194] sm:$0xf] }
 0x3f0   : > { %v3292_v16 = vpop.f32.mrf.mxu1  ;;  %v4064_v42 = vmul.f32 0.5, %v4026_v1  ;;  %v3369_v1 = vadd.f32 %v8470_v36, %v3311_v46  ;;  %v3939_v46 = vunpack.c.l.bf16 %v8504_v50 }
 0x3f1   : > { %v8763_v48 = vpack.c.bf16 %v3407_v24, %v3291_v31  ;;  %v3350_v19 = vpop.f32.mrf.mxu2  ;;  %v8774_v24 = vperm.slane %v8372_v23, 3  ;;  %v6171_v31 = vpop.eup %6170  ;;  %v4065_v60 = vmul.f32 0.5, %v4027_v7  ;;  %v3933_v14 = vunpack.c.l.bf16 %v3877_v38 }
 0x3f2   : > { %v6173_v25 = vpop.eup %6172  ;;  %v3934_v19 = vunpack.c.h.bf16 %v3877_v38  ;;  %v5377_v38 = vld [vmem:[%s9544_s5 + $0x10] sm:$0xf]  ;;  %v3253_v36 = vadd.f32 %v8466_v61, %v3195_v28 }
 0x3f3   : > { %v3419_v43 = vpop.f32.mrf.mxu0  ;;  %v4009_v54 = vpack.c.bf16 %v6173_v25, %v6171_v31  ;;  %6174 = vtanh.f32 %v3933_v14  ;;  %v3316_v25 = vadd.f32 %v8512_v20, %v8429_v22  ;;  %v3200_v14 = vadd.f32 %v8506_v12, %v8385_v53 }
 0x3f4   : > { %v3420_v11 = vadd.f32 %v3419_v43, %v8766_v29  ;;  %v5379_v43 = vld [vmem:[%s9544_s5 + $0x28] sm:$0xf0]  ;;  %6176 = vtanh.f32 %v3934_v19 }
 0x3f5   : > { %v5382_v7 = vor.u32 %v5753_v62, %v5379_v43  ;;  %v3940_v43 = vunpack.c.h.bf16 %v8504_v50  ;;  %v4031_v28 = vunpack.c.h.bf16 %v4009_v54  ;;  %6178 = vtanh.f32 %v3939_v46 }
 0x3f6   : > { %v3408_v16 = vpop.f32.mrf.mxu3  ;;  %3458 = vmatmul.bf16.gmra.mxu0 %v8453_v17  ;;  %3574 = vmatmul.bf16.gmra.mxu2 %v8453_v17  ;;  %v3374_v19 = vadd.f32 %v8514_v52, %v3316_v25  ;;  %v3258_v12 = vadd.f32 %v8508_v41, %v3200_v14  ;;  %v5569_v52 = vld [vmem:[%s9544_s5 + $0x190] sm:$0xf] }
 0x3f7   : > { %v5756_v16 = vld [vmem:[%s9544_s5 + $0x24] sm:$0xf0]  ;;  %3765 = vmatpush.bf16.msrb.mxu2 %v5382_v7  ;;  %6180 = vtanh.f32 %v3940_v43 }
 0x3f8   : > { %v3477_v9 = vpop.f32.mrf.mxu1  ;;  %v5378_v31 = vor.u32 %v5756_v16, %v5377_v38  ;;  %v3889_v46 = vpack.c.bf16 %v3374_v19, %v3258_v12 }
 0x3f9   : > { %v3478_v45 = vadd.f32 %v3477_v9, %v3420_v11  ;;  %v3535_v5 = vpop.f32.mrf.mxu2  ;;  %v5571_v11 = vld [vmem:[%s9544_s5 + $0x1a8] sm:$0xf0]  ;;  %v4102_v9 = vpack.c.bf16 %v4065_v60, %v4064_v42  ;;  %v4030_v42 = vunpack.c.l.bf16 %v4009_v54  ;;  %v3883_v60 = vpack.c.bf16 %v3369_v1, %v3253_v36  ;;  %v6175_v1 = vpop.eup %6174 }
 0x3fa   : > { %v3536_v23 = vadd.f32 %v3535_v5, %v8774_v24  ;;  %3649 = vmatpush.bf16.msrb.mxu0 %v5378_v31  ;;  %v6177_v36 = vpop.eup %6176  ;;  %v3941_v19 = vunpack.c.l.bf16 %v3889_v46 }
 0x3fb   : > { %3516 = vmatmul.bf16.gmra.mxu1 %v8460_v34  ;;  %3632 = vmatmul.bf16.gmra.mxu3 %v8460_v34  ;;  %v3421_v30 = vpop.f32.mrf.mxu0  ;;  %v5574_v34 = vor.u32 %v5801_v58, %v5571_v11  ;;  %v4121_v61 = vunpack.c.l.bf16 %v4102_v9  ;;  %v4122_v20 = vunpack.c.h.bf16 %v4102_v9  ;;  %v4068_v16 = vmul.f32 0.5, %v4030_v42  ;;  %v5804_v9 = vld [vmem:[%s9544_s5 + $0x1a4] sm:$0xf0]  ;;  %v6179_v42 = vpop.eup %6178 }
 0x3fc   : > { %v3422_v5 = vadd.f32 %v3421_v30, %v8766_v29  ;;  %v3937_v31 = vunpack.c.l.bf16 %v3883_v60  ;;  %v5570_v41 = vor.u32 %v5804_v9, %v5569_v52  ;;  %v8822_v14 = vpack.c.bf16 %v6177_v36, %v6175_v1 }
 0x3fd   : > { %3823 = vmatpush.bf16.msrb.mxu3 %v5574_v34  ;;  %v4159_v54 = vadd.f32 0.5, %v4121_v61  ;;  %v6181_v61 = vpop.eup %6180 }
 0x3fe   : > { %v3593_v62 = vpop.f32.mrf.mxu3  ;;  %3707 = vmatpush.bf16.msrb.mxu1 %v5570_v41  ;;  %v4028_v1 = vunpack.c.l.bf16 %v8822_v14 }
 0x3ff   : > { %v3594_v17 = vadd.f32 %v3593_v62, %v3536_v23  ;;  %v3938_v62 = vunpack.c.h.bf16 %v3883_v60 }
 0x400   : > { %v3479_v30 = vpop.f32.mrf.mxu1 }
 0x401   : > { %v3875_v58 = vpack.c.bf16 %v3594_v17, %v3478_v45  ;;  %v3480_v11 = vadd.f32 %v3479_v30, %v3422_v5  ;;  %v3537_v38 = vpop.f32.mrf.mxu2  ;;  %v4069_v17 = vmul.f32 0.5, %v4031_v28  ;;  %v4160_v5 = vadd.f32 0.5, %v4122_v20 }
 0x402   : > { %v3538_v34 = vadd.f32 %v3537_v38, %v8774_v24 }
 0x403   : > { %v4216_v50 = vunpack.c.l.bf16 %v3875_v58  ;;  %v4217_v23 = vunpack.c.h.bf16 %v3875_v58  ;;  %v3424_v7 = vpop.f32.mrf.mxu0  ;;  %v4104_v28 = vpack.c.bf16 %v4069_v17, %v4068_v16  ;;  %v4011_v16 = vpack.c.bf16 %v6181_v61, %v6179_v42 }
 0x404   : > { %v3425_v45 = vadd.f32 %v3424_v7, %v8766_v29  ;;  %v3321_v17 = vadd.f32 %v8554_v49, %v8429_v22 }
 0x405   : > { %6182 = vtanh.f32 %v4216_v50  ;;  %v4197_v50 = vpack.c.bf16 %v4160_v5, %v4159_v54  ;;  %v4125_v12 = vunpack.c.l.bf16 %v4104_v28  ;;  %v3942_v54 = vunpack.c.h.bf16 %v3889_v46 }
 0x406   : > { %6184 = vtanh.f32 %v4217_v23  ;;  %v3595_v25 = vpop.f32.mrf.mxu3  ;;  %3463 = vmatmul.bf16.gmra.mxu0 %v8500_v13  ;;  %3579 = vmatmul.bf16.gmra.mxu2 %v8500_v13  ;;  %v4035_v42 = vunpack.c.h.bf16 %v4011_v16 }
 0x407   : > { %v3596_v43 = vadd.f32 %v3595_v25, %v3538_v34  ;;  %6186 = vtanh.f32 %v3937_v31  ;;  %v4597_v9 = vunpack.c.h.bf16 %v4197_v50 }
 0x408   : > { %v3482_v30 = vpop.f32.mrf.mxu1  ;;  %6188 = vtanh.f32 %v3938_v62 }
 0x409   : > { %v8824_v58 = vpack.c.bf16 %v3596_v43, %v3480_v11  ;;  %v3483_v38 = vadd.f32 %v3482_v30, %v3425_v45  ;;  %v3540_v20 = vpop.f32.mrf.mxu2  ;;  %v4029_v11 = vunpack.c.h.bf16 %v8822_v14  ;;  %6190 = vtanh.f32 %v3941_v19 }
 0x40a   : > { %v3541_v60 = vadd.f32 %v3540_v20, %v8774_v24  ;;  %v4596_v45 = vunpack.c.l.bf16 %v4197_v50  ;;  %v4034_v43 = vunpack.c.l.bf16 %v4011_v16  ;;  %v3943_v14 = vunpack.c.l.bf16 %v8546_v18 }
 0x40b   : > { %v6183_v23 = vpop.eup %6182  ;;  %3521 = vmatmul.bf16.gmra.mxu1 %v8510_v8  ;;  %3637 = vmatmul.bf16.gmra.mxu3 %v8510_v8  ;;  %v3426_v34 = vpop.f32.mrf.mxu0  ;;  %v3205_v30 = vadd.f32 %v8548_v21, %v8385_v53  ;;  %6192 = vtanh.f32 %v3942_v54  ;;  %v3944_v50 = vunpack.c.h.bf16 %v8546_v18  ;;  %v4163_v18 = vadd.f32 0.5, %v4125_v12 }
 0x40c   : > { %v6185_v7 = vpop.eup %6184  ;;  %v3427_v31 = vadd.f32 %v3426_v34, %v8766_v29  ;;  %6194 = vtanh.f32 %v3943_v14 }
 0x40d   : > { %v4292_v36 = vpack.c.bf16 %v6185_v7, %v6183_v23  ;;  %v6187_v62 = vpop.eup %6186  ;;  %v4126_v7 = vunpack.c.h.bf16 %v4104_v28 }
 0x40e   : > { %v3598_v52 = vpop.f32.mrf.mxu3  ;;  %v6189_v46 = vpop.eup %6188 }
 0x40f   : > { %v4634_v5 = vunpack.c.l.bf16 %v4292_v36  ;;  %v4635_v25 = vunpack.c.h.bf16 %v4292_v36  ;;  %v3599_v41 = vadd.f32 %v3598_v52, %v3541_v60  ;;  %v3379_v60 = vadd.f32 %v8556_v57, %v3321_v17  ;;  %v6191_v13 = vpop.eup %6190 }
 0x410   : > { %v3484_v61 = vpop.f32.mrf.mxu1  ;;  %v4010_v44 = vpack.c.bf16 %v6189_v46, %v6187_v62  ;;  %v4164_v54 = vadd.f32 0.5, %v4126_v7  ;;  %v3210_v7 = vadd.f32 %v8590_v37, %v8385_v53 }
 0x411   : > { %v4672_v20 = vmul.f32 %v4634_v5, %v4596_v45  ;;  %v4673_v19 = vmul.f32 %v4635_v25, %v4597_v9  ;;  %v3881_v23 = vpack.c.bf16 %v3599_v41, %v3483_v38  ;;  %v3485_v49 = vadd.f32 %v3484_v61, %v3427_v31  ;;  %v3542_v34 = vpop.f32.mrf.mxu2 }
 0x412   : > { %v3543_v8 = vadd.f32 %v3542_v34, %v8774_v24  ;;  %v3263_v38 = vadd.f32 %v8550_v2, %v3205_v30  ;;  %v4072_v31 = vmul.f32 0.5, %v4034_v43  ;;  %v4073_v45 = vmul.f32 0.5, %v4035_v42  ;;  %v6193_v2 = vpop.eup %6192 }
 0x413   : > { %v8839_v36 = vpack.c.bf16 %v4673_v19, %v4672_v20  ;;  %v4220_v16 = vunpack.c.l.bf16 %v3881_v23  ;;  %v4221_v52 = vunpack.c.h.bf16 %v3881_v23  ;;  %v3429_v21 = vpop.f32.mrf.mxu0  ;;  %v4066_v9 = vmul.f32 0.5, %v4028_v1  ;;  %v6195_v61 = vpop.eup %6194 }
 0x414   : > { %v3430_v28 = vadd.f32 %v3429_v21, %v8766_v29  ;;  %v8844_v57 = vpack.c.bf16 %v3379_v60, %v3263_v38  ;;  %v4067_v5 = vmul.f32 0.5, %v4029_v11  ;;  %v4032_v41 = vunpack.c.l.bf16 %v4010_v44 }
 0x415   : > { %6196 = vtanh.f32 %v4220_v16  ;;  %v4033_v62 = vunpack.c.h.bf16 %v4010_v44  ;;  %v8848_v42 = vpack.c.bf16 %v4073_v45, %v4072_v31  ;;  %v4199_v1 = vpack.c.bf16 %v4164_v54, %v4163_v18 }
 0x416   : > { %6198 = vtanh.f32 %v4221_v52  ;;  %v3600_v17 = vpop.f32.mrf.mxu3  ;;  %3650 = vmatmul.bf16.vlgmr.msrb.gmra.mxu0 %v9773_v32  ;;  %3766 = vmatmul.bf16.vlgmr.msrb.gmra.mxu2 %v9773_v32  ;;  %v3945_v46 = vunpack.c.l.bf16 %v8844_v57  ;;  %v3326_v32 = vadd.f32 %v8594_v40, %v8429_v22  ;;  %v8855_v20 = vpack.c.bf16 %v4067_v5, %v4066_v9 }
 0x417   : > { %6200 = vtanh.f32 %v3944_v50  ;;  %v3601_v25 = vadd.f32 %v3600_v17, %v3543_v8  ;;  %v4070_v23 = vmul.f32 0.5, %v4032_v41  ;;  %v3947_v34 = vunpack.c.l.bf16 %v8588_v33 }
 0x418   : > { %v3487_v43 = vpop.f32.mrf.mxu1  ;;  %v4129_v40 = vunpack.c.l.bf16 %v8848_v42  ;;  %v4012_v50 = vpack.c.bf16 %v6193_v2, %v6191_v13  ;;  %6202 = vtanh.f32 %v3945_v46  ;;  %v3384_v52 = vadd.f32 %v8598_v26, %v3326_v32 }
 0x419   : > { %v8850_v12 = vpack.c.bf16 %v3601_v25, %v3485_v49  ;;  %v3488_v14 = vadd.f32 %v3487_v43, %v3430_v28  ;;  %v3545_v30 = vpop.f32.mrf.mxu2  ;;  %v4071_v49 = vmul.f32 0.5, %v4033_v62  ;;  %v4600_v21 = vunpack.c.l.bf16 %v4199_v1 }
 0x41a   : > { %v3546_v44 = vadd.f32 %v3545_v30, %v8774_v24  ;;  %v4601_v31 = vunpack.c.h.bf16 %v4199_v1  ;;  %v3946_v37 = vunpack.c.h.bf16 %v8844_v57  ;;  %6204 = vtanh.f32 %v3947_v34 }
 0x41b   : > { %v6197_v11 = vpop.eup %6196  ;;  %3708 = vmatmul.bf16.vlgmr.msrb.gmra.mxu1 %v7801_v51  ;;  %3824 = vmatmul.bf16.vlgmr.msrb.gmra.mxu3 %v7801_v51  ;;  %v3431_v8 = vpop.f32.mrf.mxu0  ;;  %v3948_v51 = vunpack.c.h.bf16 %v8588_v33  ;;  %v3268_v13 = vadd.f32 %v8592_v4, %v3210_v7  ;;  %v4130_v26 = vunpack.c.h.bf16 %v8848_v42  ;;  %v4036_v41 = vunpack.c.l.bf16 %v4012_v50 }
 0x41c   : > { %v6199_v19 = vpop.eup %6198  ;;  %v3432_v16 = vadd.f32 %v3431_v8, %v8766_v29  ;;  %v4037_v42 = vunpack.c.h.bf16 %v4012_v50  ;;  %v4167_v34 = vadd.f32 0.5, %v4129_v40 }
 0x41d   : > { %v6201_v22 = vpop.eup %6200  ;;  %v4294_v60 = vpack.c.bf16 %v6199_v19, %v6197_v11  ;;  %6206 = vtanh.f32 %v3948_v51  ;;  %v3901_v62 = vpack.c.bf16 %v3384_v52, %v3268_v13  ;;  %v4123_v11 = vunpack.c.l.bf16 %v8855_v20 }
 0x41e   : > { %v3603_v38 = vpop.f32.mrf.mxu3  ;;  %v4013_v54 = vpack.c.bf16 %v6201_v22, %v6195_v61  ;;  %v6203_v32 = vpop.eup %6202  ;;  %6208 = vtanh.f32 %v3946_v37  ;;  %v4124_v19 = vunpack.c.h.bf16 %v8855_v20  ;;  %v4168_v7 = vadd.f32 0.5, %v4130_v26 }
 0x41f   : > { %v4638_v45 = vunpack.c.l.bf16 %v4294_v60  ;;  %v4639_v28 = vunpack.c.h.bf16 %v4294_v60  ;;  %v3604_v18 = vadd.f32 %v3603_v38, %v3546_v44  ;;  %v8880_v60 = vpack.c.bf16 %v4071_v49, %v4070_v23 }
 0x420   : > { %v3489_v17 = vpop.f32.mrf.mxu1  ;;  %v4038_v4 = vunpack.c.l.bf16 %v4013_v54  ;;  %v4039_v1 = vunpack.c.h.bf16 %v4013_v54  ;;  %v6205_v8 = vpop.eup %6204  ;;  %v4075_v40 = vmul.f32 0.5, %v4037_v42  ;;  %v8886_v23 = vadd.f32 0.5, %v4123_v11 }
 0x421   : > { %v4676_v9 = vmul.f32 %v4638_v45, %v4600_v21  ;;  %v4677_v5 = vmul.f32 %v4639_v28, %v4601_v31  ;;  %v3887_v25 = vpack.c.bf16 %v3604_v18, %v3488_v14  ;;  %v3490_v2 = vadd.f32 %v3489_v17, %v3432_v16  ;;  %v3547_v33 = vpop.f32.mrf.mxu2 }
 0x422   : > { %v3548_v57 = vadd.f32 %v3547_v33, %v8774_v24  ;;  %v3215_v14 = vadd.f32 %v8627_v6, %v8385_v53  ;;  %v4074_v53 = vmul.f32 0.5, %v4036_v41  ;;  %v3949_v6 = vunpack.c.l.bf16 %v3901_v62 }
 0x423   : > { %v8870_v43 = vpack.c.bf16 %v4677_v5, %v4676_v9  ;;  %v4224_v30 = vunpack.c.l.bf16 %v3887_v25  ;;  %v4225_v61 = vunpack.c.h.bf16 %v3887_v25  ;;  %v3434_v46 = vpop.f32.mrf.mxu0  ;;  %v6207_v50 = vpop.eup %6206  ;;  %v4076_v51 = vmul.f32 0.5, %v4038_v4 }
 0x424   : > { %v3435_v44 = vadd.f32 %v3434_v46, %v8766_v29  ;;  %v4077_v52 = vmul.f32 0.5, %v4039_v1  ;;  %v3950_v21 = vunpack.c.h.bf16 %v3901_v62  ;;  %v3273_v38 = vadd.f32 %v8633_v56, %v3215_v14 }
 0x425   : > { %6210 = vtanh.f32 %v4224_v30  ;;  %v3951_v31 = vunpack.c.l.bf16 %v8616_v15  ;;  %v3952_v49 = vunpack.c.h.bf16 %v8616_v15  ;;  %v4201_v37 = vpack.c.bf16 %v4168_v7, %v4167_v34 }
 0x426   : > { %6212 = vtanh.f32 %v4225_v61  ;;  %v3605_v22 = vpop.f32.mrf.mxu3  ;;  %3655 = vmatmul.bf16.gmra.mxu0 %v7871_v0  ;;  %3771 = vmatmul.bf16.gmra.mxu2 %v7871_v0  ;;  %v6209_v0 = vpop.eup %6208  ;;  %v3907_v54 = vpack.c.bf16 %v8631_v55, %v3273_v38  ;;  %v8890_v17 = vadd.f32 0.5, %v4124_v19  ;;  %v4127_v56 = vunpack.c.l.bf16 %v8880_v60 }
 0x427   : > { %v3606_v16 = vadd.f32 %v3605_v22, %v3548_v57  ;;  %6214 = vtanh.f32 %v3949_v6  ;;  %v4108_v15 = vpack.c.bf16 %v4077_v52, %v4076_v51  ;;  %v4015_v33 = vpack.c.bf16 %v6207_v50, %v6205_v8 }
 0x428   : > { %v3492_v20 = vpop.f32.mrf.mxu1  ;;  %6216 = vtanh.f32 %v3950_v21  ;;  %v8897_v55 = vpack.c.bf16 %v4075_v40, %v4074_v53  ;;  %v4014_v62 = vpack.c.bf16 %v6209_v0, %v6203_v32  ;;  %v3953_v30 = vunpack.c.l.bf16 %v3907_v54 }
 0x429   : > { %v8884_v45 = vpack.c.bf16 %v3606_v16, %v3490_v2  ;;  %v3493_v28 = vadd.f32 %v3492_v20, %v3435_v44  ;;  %v3550_v18 = vpop.f32.mrf.mxu2  ;;  %v4128_v2 = vunpack.c.h.bf16 %v8880_v60  ;;  %6218 = vtanh.f32 %v3951_v31 }
 0x42a   : > { %v3551_v9 = vadd.f32 %v3550_v18, %v8774_v24  ;;  %6220 = vtanh.f32 %v3952_v49  ;;  %v4604_v61 = vunpack.c.l.bf16 %v4201_v37  ;;  %v4605_v57 = vunpack.c.h.bf16 %v4201_v37 }
 0x42b   : > { %v6211_v13 = vpop.eup %6210  ;;  %3713 = vmatmul.bf16.gmra.mxu1 %v7874_v35  ;;  %3829 = vmatmul.bf16.gmra.mxu3 %v7874_v35  ;;  %v3436_v5 = vpop.f32.mrf.mxu0  ;;  %v4133_v14 = vunpack.c.l.bf16 %v4108_v15  ;;  %v4042_v11 = vunpack.c.l.bf16 %v4015_v33  ;;  %v4043_v42 = vunpack.c.h.bf16 %v4015_v33  ;;  %v3954_v44 = vunpack.c.h.bf16 %v3907_v54  ;;  %v9775_v33 = vld [vmem:[#allocation48_spill] sm:$0xff] }
 0x42c   : > { %v6213_v25 = vpop.eup %6212  ;;  %v3437_v41 = vadd.f32 %v3436_v5, %v8766_v29  ;;  %v4134_v6 = vunpack.c.h.bf16 %v4108_v15  ;;  %v4040_v16 = vunpack.c.l.bf16 %v4014_v62  ;;  %v4041_v50 = vunpack.c.h.bf16 %v4014_v62 }
 0x42d   : > { %v4296_v26 = vpack.c.bf16 %v6213_v25, %v6211_v13  ;;  %v6215_v19 = vpop.eup %6214  ;;  %6222 = vtanh.f32 %v3953_v30  ;;  %v8903_v18 = vadd.f32 0.5, %v4127_v56  ;;  %v4080_v0 = vmul.f32 0.5, %v4042_v11 }
 0x42e   : > { %v3608_v35 = vpop.f32.mrf.mxu3  ;;  %v6217_v32 = vpop.eup %6216  ;;  %6224 = vtanh.f32 %v3954_v44  ;;  %v4131_v49 = vunpack.c.l.bf16 %v8897_v55  ;;  %v4132_v13 = vunpack.c.h.bf16 %v8897_v55  ;;  %v4172_v5 = vadd.f32 0.5, %v4134_v6 }
 0x42f   : > { %v4642_v46 = vunpack.c.l.bf16 %v4296_v26  ;;  %v4643_v4 = vunpack.c.h.bf16 %v4296_v26  ;;  %v3609_v1 = vadd.f32 %v3608_v35, %v3551_v9  ;;  %v6219_v51 = vpop.eup %6218  ;;  %v4016_v54 = vpack.c.bf16 %v6217_v32, %v6215_v19 }
 0x430   : > { %v3494_v8 = vpop.f32.mrf.mxu1  ;;  %v6221_v31 = vpop.eup %6220  ;;  %v4171_v9 = vadd.f32 0.5, %v4133_v14  ;;  %v4078_v56 = vmul.f32 0.5, %v4040_v16  ;;  %v4079_v15 = vmul.f32 0.5, %v4041_v50  ;;  %v3955_v26 = vunpack.c.l.bf16 %v9775_v33 }
 0x431   : > { %v4680_v34 = vmul.f32 %v4642_v46, %v4604_v61  ;;  %v4681_v7 = vmul.f32 %v4643_v4, %v4605_v57  ;;  %v3893_v22 = vpack.c.bf16 %v3609_v1, %v3493_v28  ;;  %v3495_v60 = vadd.f32 %v3494_v8, %v3437_v41  ;;  %v3552_v53 = vpop.f32.mrf.mxu2 }
 0x432   : > { %v3553_v20 = vadd.f32 %v3552_v53, %v8774_v24  ;;  %v4081_v28 = vmul.f32 0.5, %v4043_v42  ;;  %v8911_v30 = vadd.f32 0.5, %v4128_v2  ;;  %v4017_v35 = vpack.c.bf16 %v6221_v31, %v6219_v51 }
 0x433   : > { %v8900_v52 = vpack.c.bf16 %v4681_v7, %v4680_v34  ;;  %v4228_v21 = vunpack.c.l.bf16 %v3893_v22  ;;  %v4229_v38 = vunpack.c.h.bf16 %v3893_v22  ;;  %v3439_v40 = vpop.f32.mrf.mxu0  ;;  %v6223_v62 = vpop.eup %6222  ;;  %v3956_v55 = vunpack.c.h.bf16 %v9775_v33  ;;  %v9776_v22 = vld [vmem:[#allocation7_spill] sm:$0xff] }
 0x434   : > { %v3440_v37 = vadd.f32 %v3439_v40, %v8766_v29  ;;  %v8913_v61 = vpack.c.bf16 %v4081_v28, %v4080_v0  ;;  %v4044_v46 = vunpack.c.l.bf16 %v4016_v54  ;;  %v3957_v4 = vunpack.c.l.bf16 %v8678_v27  ;;  %v6225_v11 = vpop.eup %6224 }
 0x435   : > { %6226 = vtanh.f32 %v4228_v21  ;;  %v8919_v42 = vadd.f32 0.5, %v4131_v49  ;;  %v4045_v44 = vunpack.c.h.bf16 %v4016_v54  ;;  %v3958_v2 = vunpack.c.h.bf16 %v8678_v27 }
 0x436   : > { %6228 = vtanh.f32 %v4229_v38  ;;  %v3610_v25 = vpop.f32.mrf.mxu3  ;;  %3660 = vmatmul.bf16.gmra.mxu0 %v7953_v47  ;;  %3776 = vmatmul.bf16.gmra.mxu2 %v7953_v47  ;;  %v4203_v8 = vpack.c.bf16 %v4172_v5, %v4171_v9  ;;  %v8922_v34 = vadd.f32 0.5, %v4132_v13  ;;  %v8924_v7 = vpack.c.bf16 %v4079_v15, %v4078_v56 }
 0x437   : > { %v3611_v41 = vadd.f32 %v3610_v25, %v3553_v20  ;;  %6230 = vtanh.f32 %v3955_v26  ;;  %v4137_v6 = vunpack.c.l.bf16 %v8913_v61  ;;  %v4046_v16 = vunpack.c.l.bf16 %v4017_v35 }
 0x438   : > { %v3497_v57 = vpop.f32.mrf.mxu1  ;;  %v4047_v50 = vunpack.c.h.bf16 %v4017_v35  ;;  %6232 = vtanh.f32 %v3956_v55  ;;  %v4082_v27 = vmul.f32 0.5, %v4044_v46  ;;  %v4083_v38 = vmul.f32 0.5, %v4045_v44 }
 0x439   : > { %v8917_v1 = vpack.c.bf16 %v3611_v41, %v3495_v60  ;;  %v3498_v47 = vadd.f32 %v3497_v57, %v3440_v37  ;;  %v3555_v14 = vpop.f32.mrf.mxu2  ;;  %6234 = vtanh.f32 %v3957_v4  ;;  %v4018_v20 = vpack.c.bf16 %v6225_v11, %v6223_v62 }
 0x43a   : > { %v3556_v60 = vadd.f32 %v3555_v14, %v8774_v24  ;;  %6236 = vtanh.f32 %v3958_v2  ;;  %v4608_v40 = vunpack.c.l.bf16 %v4203_v8  ;;  %v4609_v0 = vunpack.c.h.bf16 %v4203_v8 }
 0x43b   : > { %v6227_v19 = vpop.eup %6226  ;;  %3718 = vmatmul.bf16.gmra.mxu1 %v9776_v22  ;;  %3834 = vmatmul.bf16.gmra.mxu3 %v9776_v22  ;;  %v3441_v53 = vpop.f32.mrf.mxu0  ;;  %v4138_v37 = vunpack.c.h.bf16 %v8913_v61  ;;  %v4084_v13 = vmul.f32 0.5, %v4046_v16  ;;  %v4085_v9 = vmul.f32 0.5, %v4047_v50  ;;  %v3959_v5 = vunpack.c.l.bf16 %v8684_v59 }
 0x43c   : > { %v6229_v32 = vpop.eup %6228  ;;  %v3442_v21 = vadd.f32 %v3441_v53, %v8766_v29  ;;  %v4111_v55 = vpack.c.bf16 %v4083_v38, %v4082_v27  ;;  %v4048_v57 = vunpack.c.l.bf16 %v4018_v20  ;;  %v4049_v46 = vunpack.c.h.bf16 %v4018_v20 }
 0x43d   : > { %v4298_v51 = vpack.c.bf16 %v6229_v32, %v6227_v19  ;;  %v6231_v56 = vpop.eup %6230  ;;  %v3960_v4 = vunpack.c.h.bf16 %v8684_v59  ;;  %v4135_v22 = vunpack.c.l.bf16 %v8924_v7  ;;  %6238 = vtanh.f32 %v3959_v5 }
 0x43e   : > { %v3613_v31 = vpop.f32.mrf.mxu3  ;;  %v6233_v35 = vpop.eup %6232  ;;  %v4176_v53 = vadd.f32 0.5, %v4138_v37  ;;  %v4112_v32 = vpack.c.bf16 %v4085_v9, %v4084_v13  ;;  %v4086_v16 = vmul.f32 0.5, %v4048_v57  ;;  %v4087_v50 = vmul.f32 0.5, %v4049_v46 }
 0x43f   : > { %v4646_v28 = vunpack.c.l.bf16 %v4298_v51  ;;  %v4647_v49 = vunpack.c.h.bf16 %v4298_v51  ;;  %v3614_v54 = vadd.f32 %v3613_v31, %v3556_v60  ;;  %v6235_v14 = vpop.eup %6234  ;;  %v4175_v60 = vadd.f32 0.5, %v4137_v6 }
 0x440   : > { %v3499_v25 = vpop.f32.mrf.mxu1  ;;  %v6237_v19 = vpop.eup %6236  ;;  %v4019_v27 = vpack.c.bf16 %v6233_v35, %v6231_v56  ;;  %v4139_v38 = vunpack.c.l.bf16 %v4111_v55  ;;  %v8943_v20 = vadd.f32 0.5, %v4135_v22 }
 0x441   : > { %v4684_v15 = vmul.f32 %v4646_v28, %v4608_v40  ;;  %v4685_v33 = vmul.f32 %v4647_v49, %v4609_v0  ;;  %v3899_v26 = vpack.c.bf16 %v3614_v54, %v3498_v47  ;;  %v3500_v41 = vadd.f32 %v3499_v25, %v3442_v21  ;;  %v3557_v62 = vpop.f32.mrf.mxu2  ;;  %v9777_v21 = vld [vmem:[#allocation43_spill] sm:$0xff] }
 0x442   : > { %v3558_v2 = vadd.f32 %v3557_v62, %v8774_v24  ;;  %v4136_v47 = vunpack.c.h.bf16 %v8924_v7  ;;  %v3961_v7 = vunpack.c.l.bf16 %v8705_v39  ;;  %v4140_v40 = vunpack.c.h.bf16 %v4111_v55  ;;  %v9778_v55 = vld [vmem:[#allocation8_spill] sm:$0xff] }
 0x443   : > { %v8934_v11 = vpack.c.bf16 %v4685_v33, %v4684_v15  ;;  %v4232_v61 = vunpack.c.l.bf16 %v3899_v26  ;;  %v4233_v44 = vunpack.c.h.bf16 %v3899_v26  ;;  %v3444_v8 = vpop.f32.mrf.mxu0  ;;  %v4020_v31 = vpack.c.bf16 %v6237_v19, %v6235_v14  ;;  %v6239_v5 = vpop.eup %6238 }
 0x444   : > { %v3445_v59 = vadd.f32 %v3444_v8, %v8766_v29  ;;  %v3962_v0 = vunpack.c.h.bf16 %v8705_v39  ;;  %v4141_v49 = vunpack.c.l.bf16 %v4112_v32  ;;  %v4142_v54 = vunpack.c.h.bf16 %v4112_v32 }
 0x445   : > { %6240 = vtanh.f32 %v4232_v61  ;;  %v4113_v25 = vpack.c.bf16 %v4087_v50, %v4086_v16  ;;  %v4050_v56 = vunpack.c.l.bf16 %v4019_v27  ;;  %v4051_v15 = vunpack.c.h.bf16 %v4019_v27 }
 0x446   : > { %6242 = vtanh.f32 %v4233_v44  ;;  %v3615_v51 = vpop.f32.mrf.mxu3  ;;  %3665 = vmatmul.bf16.gmra.mxu0 %v9777_v21  ;;  %3781 = vmatmul.bf16.gmra.mxu2 %v9777_v21  ;;  %v4205_v33 = vpack.c.bf16 %v4176_v53, %v4175_v60  ;;  %v8948_v62 = vadd.f32 0.5, %v4136_v47  ;;  %v8950_v35 = vadd.f32 0.5, %v4139_v38 }
 0x447   : > { %6244 = vtanh.f32 %v3960_v4  ;;  %v3616_v6 = vadd.f32 %v3615_v51, %v3558_v2  ;;  %v8955_v46 = vadd.f32 0.5, %v4140_v40  ;;  %v4052_v4 = vunpack.c.l.bf16 %v4020_v31 }
 0x448   : > { %v3502_v28 = vpop.f32.mrf.mxu1  ;;  %6246 = vtanh.f32 %v3961_v7  ;;  %v4053_v14 = vunpack.c.h.bf16 %v4020_v31  ;;  %v8957_v44 = vadd.f32 0.5, %v4141_v49  ;;  %v8959_v2 = vadd.f32 0.5, %v4142_v54 }
 0x449   : > { %v8946_v37 = vpack.c.bf16 %v3616_v6, %v3500_v41  ;;  %v3503_v13 = vadd.f32 %v3502_v28, %v3445_v59  ;;  %v3560_v9 = vpop.f32.mrf.mxu2  ;;  %6248 = vtanh.f32 %v3962_v0  ;;  %v4143_v22 = vunpack.c.l.bf16 %v4113_v25 }
 0x44a   : > { %v3561_v39 = vadd.f32 %v3560_v9, %v8774_v24  ;;  %v4088_v47 = vmul.f32 0.5, %v4050_v56  ;;  %v4089_v60 = vmul.f32 0.5, %v4051_v15  ;;  %v4612_v53 = vunpack.c.l.bf16 %v4205_v33 }
 0x44b   : > { %v6241_v26 = vpop.eup %6240  ;;  %3723 = vmatmul.bf16.gmra.mxu1 %v9778_v55  ;;  %3839 = vmatmul.bf16.gmra.mxu3 %v9778_v55  ;;  %v3446_v41 = vpop.f32.mrf.mxu0  ;;  %v4613_v59 = vunpack.c.h.bf16 %v4205_v33  ;;  %v4090_v51 = vmul.f32 0.5, %v4052_v4  ;;  %v4091_v21 = vmul.f32 0.5, %v4053_v14  ;;  %v3963_v7 = vunpack.c.l.bf16 %v8720_v10 }
 0x44c   : > { %v6243_v57 = vpop.eup %6242  ;;  %v3447_v19 = vadd.f32 %v3446_v41, %v8766_v29  ;;  %v4144_v56 = vunpack.c.h.bf16 %v4113_v25  ;;  %v4114_v15 = vpack.c.bf16 %v4089_v60, %v4088_v47  ;;  %v3964_v33 = vunpack.c.h.bf16 %v8720_v10  ;;  %v9779_v47 = vld [vmem:[#allocation9_spill] sm:$0xff] }
 0x44d   : > { %v6245_v61 = vpop.eup %6244  ;;  %v4300_v8 = vpack.c.bf16 %v6243_v57, %v6241_v26  ;;  %v8966_v26 = vpack.c.bf16 %v8890_v17, %v8886_v23  ;;  %v4115_v4 = vpack.c.bf16 %v4091_v21, %v4090_v51  ;;  %6250 = vtanh.f32 %v3963_v7 }
 0x44e   : > { %v3618_v32 = vpop.f32.mrf.mxu3  ;;  %v4021_v38 = vpack.c.bf16 %v6245_v61, %v6239_v5  ;;  %v6247_v40 = vpop.eup %6246  ;;  %v8971_v61 = vadd.f32 0.5, %v4143_v22  ;;  %v4145_v23 = vunpack.c.l.bf16 %v4114_v15  ;;  %v3965_v17 = vunpack.c.l.bf16 %v8749_v3 }
 0x44f   : > { %v4650_v16 = vunpack.c.l.bf16 %v4300_v8  ;;  %v4651_v50 = vunpack.c.h.bf16 %v4300_v8  ;;  %v3619_v27 = vadd.f32 %v3618_v32, %v3561_v39  ;;  %v6249_v9 = vpop.eup %6248  ;;  %v8974_v8 = vadd.f32 0.5, %v4144_v56  ;;  %v9780_v56 = vld [vmem:[#allocation10_spill] sm:$0xff] }
 0x450   : > { %v3504_v6 = vpop.f32.mrf.mxu1  ;;  %v4055_v14 = vunpack.c.h.bf16 %v4021_v38  ;;  %v4022_v25 = vpack.c.bf16 %v6249_v9, %v6247_v40  ;;  %v4146_v60 = vunpack.c.h.bf16 %v4114_v15  ;;  %v3966_v22 = vunpack.c.h.bf16 %v8749_v3 }
 0x451   : > { %v4688_v31 = vmul.f32 %v4650_v16, %v4612_v53  ;;  %v4689_v0 = vmul.f32 %v4651_v50, %v4613_v59  ;;  %v3905_v28 = vpack.c.bf16 %v3619_v27, %v3503_v13  ;;  %v3505_v49 = vadd.f32 %v3504_v6, %v3447_v19  ;;  %v3562_v54 = vpop.f32.mrf.mxu2 }
 0x452   : > { %v3563_v41 = vadd.f32 %v3562_v54, %v8774_v24  ;;  %v4054_v13 = vunpack.c.l.bf16 %v4021_v38  ;;  %v4147_v32 = vunpack.c.l.bf16 %v4115_v4  ;;  %v4093_v16 = vmul.f32 0.5, %v4055_v14 }
 0x453   : > { %v8968_v55 = vpack.c.bf16 %v4689_v0, %v4688_v31  ;;  %v4236_v5 = vunpack.c.l.bf16 %v3905_v28  ;;  %v4237_v39 = vunpack.c.h.bf16 %v3905_v28  ;;  %v3449_v57 = vpop.f32.mrf.mxu0  ;;  %v4598_v50 = vunpack.c.l.bf16 %v8966_v26  ;;  %v6251_v40 = vpop.eup %6250 }
 0x454   : > { %v3450_v10 = vadd.f32 %v3449_v57, %v8766_v29  ;;  %v4092_v59 = vmul.f32 0.5, %v4054_v13  ;;  %v4056_v51 = vunpack.c.l.bf16 %v4022_v25  ;;  %v4599_v21 = vunpack.c.h.bf16 %v8966_v26 }
 0x455   : > { %6252 = vtanh.f32 %v4236_v5  ;;  %v8982_v31 = vadd.f32 0.5, %v4145_v23  ;;  %v4057_v0 = vunpack.c.h.bf16 %v4022_v25  ;;  %v4207_v3 = vpack.c.bf16 %v8959_v2, %v8957_v44 }
 0x456   : > { %6254 = vtanh.f32 %v4237_v39  ;;  %v3620_v19 = vpop.f32.mrf.mxu3  ;;  %3670 = vmatmul.bf16.gmra.mxu0 %v9779_v47  ;;  %3786 = vmatmul.bf16.gmra.mxu2 %v9779_v47  ;;  %v8989_v5 = vadd.f32 0.5, %v4146_v60  ;;  %v4148_v39 = vunpack.c.h.bf16 %v4115_v4  ;;  %v8993_v57 = vpack.c.bf16 %v4093_v16, %v4092_v59 }
 0x457   : > { %6256 = vtanh.f32 %v3964_v33  ;;  %v3621_v53 = vadd.f32 %v3620_v19, %v3563_v41  ;;  %v8991_v41 = vadd.f32 0.5, %v4147_v32  ;;  %v4094_v2 = vmul.f32 0.5, %v4056_v51 }
 0x458   : > { %v3507_v27 = vpop.f32.mrf.mxu1  ;;  %6258 = vtanh.f32 %v3965_v17  ;;  %v4095_v25 = vmul.f32 0.5, %v4057_v0  ;;  %v4616_v23 = vunpack.c.l.bf16 %v4207_v3  ;;  %v4617_v19 = vunpack.c.h.bf16 %v4207_v3 }
 0x459   : > { %v3908_v38 = vpack.c.bf16 %v3621_v53, %v3505_v49  ;;  %v3508_v7 = vadd.f32 %v3507_v27, %v3450_v10  ;;  %v3565_v6 = vpop.f32.mrf.mxu2  ;;  %6260 = vtanh.f32 %v3966_v22  ;;  %v3967_v10 = vunpack.c.l.bf16 %v8763_v48 }
 0x45a   : > { %v3566_v49 = vadd.f32 %v3565_v6, %v8774_v24  ;;  %v8997_v53 = vadd.f32 0.5, %v4148_v39  ;;  %v3968_v59 = vunpack.c.h.bf16 %v8763_v48  ;;  %v9002_v16 = vpack.c.bf16 %v8911_v30, %v8903_v18 }
 0x45b   : > { %v6253_v28 = vpop.eup %6252  ;;  %v4238_v54 = vunpack.c.l.bf16 %v3908_v38  ;;  %v4239_v9 = vunpack.c.h.bf16 %v3908_v38  ;;  %3728 = vmatmul.bf16.gmra.mxu1 %v9780_v56  ;;  %3844 = vmatmul.bf16.gmra.mxu3 %v9780_v56  ;;  %v3451_v15 = vpop.f32.mrf.mxu0 }
 0x45c   : > { %v6255_v33 = vpop.eup %6254  ;;  %v3452_v14 = vadd.f32 %v3451_v15, %v8766_v29 }
 0x45d   : > { %v6257_v44 = vpop.eup %6256  ;;  %v4302_v13 = vpack.c.bf16 %v6255_v33, %v6253_v28  ;;  %6262 = vtanh.f32 %v4238_v54  ;;  %v4149_v54 = vunpack.c.l.bf16 %v8993_v57 }
 0x45e   : > { %6264 = vtanh.f32 %v4239_v9  ;;  %v3623_v17 = vpop.f32.mrf.mxu3  ;;  %v6259_v22 = vpop.eup %6258  ;;  %v4023_v32 = vpack.c.bf16 %v6257_v44, %v6251_v40  ;;  %v4117_v9 = vpack.c.bf16 %v4095_v25, %v4094_v2  ;;  %v4208_v40 = vpack.c.bf16 %v8974_v8, %v8971_v61 }
 0x45f   : > { %v4654_v47 = vunpack.c.l.bf16 %v4302_v13  ;;  %v4655_v60 = vunpack.c.h.bf16 %v4302_v13  ;;  %v3624_v4 = vadd.f32 %v3623_v17, %v3566_v49  ;;  %v6261_v51 = vpop.eup %6260  ;;  %6266 = vtanh.f32 %v3967_v10 }
 0x460   : > { %v3509_v27 = vpop.f32.mrf.mxu1  ;;  %v4058_v39 = vunpack.c.l.bf16 %v4023_v32  ;;  %v4024_v44 = vpack.c.bf16 %v6261_v51, %v6259_v22  ;;  %6268 = vtanh.f32 %v3968_v59  ;;  %v4150_v13 = vunpack.c.h.bf16 %v8993_v57 }
 0x461   : > { %v4692_v38 = vmul.f32 %v4654_v47, %v4616_v23  ;;  %v4693_v6 = vmul.f32 %v4655_v60, %v4617_v19  ;;  %v3911_v0 = vpack.c.bf16 %v3624_v4, %v3508_v7  ;;  %v3510_v28 = vadd.f32 %v3509_v27, %v3452_v14  ;;  %v3567_v3 = vpop.f32.mrf.mxu2  ;;  %v9781_v23 = vld [vmem:[#allocation11_spill] sm:$0xff] }
 0x462   : > { %v3568_v30 = vadd.f32 %v3567_v3, %v8774_v24  ;;  %v4059_v7 = vunpack.c.h.bf16 %v4023_v32  ;;  %v4151_v61 = vunpack.c.l.bf16 %v4117_v9  ;;  %v4602_v8 = vunpack.c.l.bf16 %v9002_v16 }
 0x463   : > { %v6263_v56 = vpop.eup %6262  ;;  %v9007_v48 = vpack.c.bf16 %v4693_v6, %v4692_v38  ;;  %v4240_v49 = vunpack.c.l.bf16 %v3911_v0  ;;  %v4241_v18 = vunpack.c.h.bf16 %v3911_v0  ;;  %v3454_v15 = vpop.f32.mrf.mxu0  ;;  %v4618_v25 = vunpack.c.l.bf16 %v4208_v40 }
 0x464   : > { %v6265_v33 = vpop.eup %6264  ;;  %v3455_v14 = vadd.f32 %v3454_v15, %v8766_v29  ;;  %v4619_v17 = vunpack.c.h.bf16 %v4208_v40  ;;  %v4096_v57 = vmul.f32 0.5, %v4058_v39  ;;  %v4097_v22 = vmul.f32 0.5, %v4059_v7 }
 0x465   : > { %v4303_v2 = vpack.c.bf16 %v6265_v33, %v6263_v56  ;;  %6270 = vtanh.f32 %v4240_v49  ;;  %v6267_v4 = vpop.eup %6266  ;;  %v4060_v32 = vunpack.c.l.bf16 %v4024_v44  ;;  %v4061_v59 = vunpack.c.h.bf16 %v4024_v44 }
 0x466   : > { %6272 = vtanh.f32 %v4241_v18  ;;  %v3625_v10 = vpop.f32.mrf.mxu3  ;;  %3675 = vmatmul.bf16.gmra.mxu0 %v9781_v23  ;;  %3791 = vmatmul.bf16.gmra.mxu2 %v9781_v23  ;;  %v6269_v56 = vpop.eup %6268  ;;  %v9015_v49 = vadd.f32 0.5, %v4149_v54  ;;  %v4152_v18 = vunpack.c.h.bf16 %v4117_v9  ;;  %v4603_v40 = vunpack.c.h.bf16 %v9002_v16 }
 0x467   : > { %v4656_v19 = vunpack.c.l.bf16 %v4303_v2  ;;  %v4657_v47 = vunpack.c.h.bf16 %v4303_v2  ;;  %v3626_v60 = vadd.f32 %v3625_v10, %v3568_v30  ;;  %v4209_v30 = vpack.c.bf16 %v8989_v5, %v8982_v31 }
 0x468   : > { %v3512_v27 = vpop.f32.mrf.mxu1  ;;  %v9025_v2 = vadd.f32 0.5, %v4150_v13  ;;  %v9027_v9 = vpack.c.bf16 %v4097_v22, %v4096_v57  ;;  %v9029_v31 = vadd.f32 0.5, %v4151_v61  ;;  %v9032_v23 = vadd.f32 0.5, %v4152_v18 }
 0x469   : > { %v4694_v51 = vmul.f32 %v4656_v19, %v4618_v25  ;;  %v4695_v38 = vmul.f32 %v4657_v47, %v4619_v17  ;;  %v3914_v6 = vpack.c.bf16 %v3626_v60, %v3510_v28  ;;  %v3513_v0 = vadd.f32 %v3512_v27, %v3455_v14  ;;  %v3570_v3 = vpop.f32.mrf.mxu2 }
 0x46a   : > { %v3571_v28 = vadd.f32 %v3570_v3, %v8774_v24  ;;  %v4098_v14 = vmul.f32 0.5, %v4060_v32  ;;  %v4099_v25 = vmul.f32 0.5, %v4061_v59  ;;  %v4620_v17 = vunpack.c.l.bf16 %v4209_v30 }
 0x46b   : > { %v6271_v15 = vpop.eup %6270  ;;  %v9020_v33 = vpack.c.bf16 %v4695_v38, %v4694_v51  ;;  %v4242_v39 = vunpack.c.l.bf16 %v3914_v6  ;;  %v4243_v7 = vunpack.c.h.bf16 %v3914_v6  ;;  %3733 = vmatmul.bf16.gmra.mxu1 %v8216_v63  ;;  %3849 = vmatmul.bf16.gmra.mxu3 %v8216_v63  ;;  %v3456_v44 = vpop.f32.mrf.mxu0  ;;  %v9036_v63 = vpack.c.bf16 %v8922_v34, %v8919_v42 }
 0x46c   : > { %v6273_v54 = vpop.eup %6272  ;;  %v3457_v10 = vadd.f32 %v3456_v44, %v8766_v29  ;;  %v4621_v19 = vunpack.c.h.bf16 %v4209_v30  ;;  %v4153_v61 = vunpack.c.l.bf16 %v9027_v9  ;;  %v9039_v22 = vpack.c.bf16 %v4099_v25, %v4098_v14 }
 0x46d   : > { %v4304_v5 = vpack.c.bf16 %v6273_v54, %v6271_v15  ;;  %6274 = vtanh.f32 %v4242_v39  ;;  %v4025_v32 = vpack.c.bf16 %v6269_v56, %v6267_v4  ;;  %v4218_v59 = vunpack.c.l.bf16 %v8824_v58 }
 0x46e   : > { %6276 = vtanh.f32 %v4243_v7  ;;  %v3628_v13 = vpop.f32.mrf.mxu3  ;;  %v4154_v3 = vunpack.c.h.bf16 %v9027_v9  ;;  %v4606_v18 = vunpack.c.l.bf16 %v9036_v63  ;;  %v4607_v30 = vunpack.c.h.bf16 %v9036_v63 }
 0x46f   : > { %v4658_v47 = vunpack.c.l.bf16 %v4304_v5  ;;  %v4659_v60 = vunpack.c.h.bf16 %v4304_v5  ;;  %v3629_v57 = vadd.f32 %v3628_v13, %v3571_v28  ;;  %v4210_v15 = vpack.c.bf16 %v8997_v53, %v8991_v41 }
 0x470   : > { %v3514_v27 = vpop.f32.mrf.mxu1  ;;  %v4062_v54 = vunpack.c.l.bf16 %v4025_v32  ;;  %v4063_v14 = vunpack.c.h.bf16 %v4025_v32  ;;  %v4219_v9 = vunpack.c.h.bf16 %v8824_v58  ;;  %6278 = vtanh.f32 %v4218_v59 }
 0x471   : > { %v4696_v51 = vmul.f32 %v4658_v47, %v4620_v17  ;;  %v4697_v38 = vmul.f32 %v4659_v60, %v4621_v19  ;;  %v3917_v6 = vpack.c.bf16 %v3629_v57, %v3513_v0  ;;  %v3515_v42 = vadd.f32 %v3514_v27, %v3457_v10  ;;  %v3572_v34 = vpop.f32.mrf.mxu2  ;;  %v9782_v19 = vld [vmem:[#allocation44_spill] sm:$0xff] }
 0x472   : > { %v3573_v28 = vadd.f32 %v3572_v34, %v8774_v24  ;;  %v4155_v25 = vunpack.c.l.bf16 %v9039_v22  ;;  %v4156_v53 = vunpack.c.h.bf16 %v9039_v22  ;;  %v4222_v10 = vunpack.c.l.bf16 %v8850_v12 }
 0x473   : > { %v6275_v39 = vpop.eup %6274  ;;  %v9047_v7 = vpack.c.bf16 %v4697_v38, %v4696_v51  ;;  %v4244_v4 = vunpack.c.l.bf16 %v3917_v6  ;;  %v4245_v56 = vunpack.c.h.bf16 %v3917_v6  ;;  %v3459_v44 = vpop.f32.mrf.mxu0  ;;  %v4622_v17 = vunpack.c.l.bf16 %v4210_v15 }
 0x474   : > { %v6277_v0 = vpop.eup %6276  ;;  %v3460_v41 = vadd.f32 %v3459_v44, %v8766_v29  ;;  %v4623_v47 = vunpack.c.h.bf16 %v4210_v15  ;;  %v4100_v32 = vmul.f32 0.5, %v4062_v54  ;;  %v4101_v59 = vmul.f32 0.5, %v4063_v14  ;;  %v9783_v14 = vld [vmem:[#allocation45_spill] sm:$0xff] }
 0x475   : > { %v4305_v5 = vpack.c.bf16 %v6277_v0, %v6275_v39  ;;  %6280 = vtanh.f32 %v4244_v4  ;;  %v4223_v27 = vunpack.c.h.bf16 %v8850_v12  ;;  %v9060_v44 = vadd.f32 0.5, %v4154_v3 }
 0x476   : > { %6282 = vtanh.f32 %v4245_v56  ;;  %v3630_v13 = vpop.f32.mrf.mxu3  ;;  %3680 = vmatmul.bf16.gmra.mxu0 %v9782_v19  ;;  %3796 = vmatmul.bf16.gmra.mxu2 %v9782_v19  ;;  %v6279_v4 = vpop.eup %6278  ;;  %v9058_v56 = vadd.f32 0.5, %v4153_v61  ;;  %v4211_v15 = vpack.c.bf16 %v9025_v2, %v9015_v49  ;;  %v9071_v3 = vpack.c.bf16 %v4101_v59, %v4100_v32 }
 0x477   : > { %v4660_v58 = vunpack.c.l.bf16 %v4305_v5  ;;  %v4661_v60 = vunpack.c.h.bf16 %v4305_v5  ;;  %v3631_v57 = vadd.f32 %v3630_v13, %v3573_v28  ;;  %6284 = vtanh.f32 %v4219_v9 }
 0x478   : > { %v3517_v51 = vpop.f32.mrf.mxu1  ;;  %6286 = vtanh.f32 %v4222_v10  ;;  %v9069_v5 = vadd.f32 0.5, %v4155_v25  ;;  %v4226_v49 = vunpack.c.l.bf16 %v8884_v45  ;;  %v9074_v2 = vadd.f32 0.5, %v4156_v53 }
 0x479   : > { %v4698_v22 = vmul.f32 %v4660_v58, %v4622_v17  ;;  %v4699_v38 = vmul.f32 %v4661_v60, %v4623_v47  ;;  %v3920_v6 = vpack.c.bf16 %v3631_v57, %v3515_v42  ;;  %v3518_v34 = vadd.f32 %v3517_v51, %v3460_v41  ;;  %v3575_v39 = vpop.f32.mrf.mxu2 }
 0x47a   : > { %v3576_v42 = vadd.f32 %v3575_v39, %v8774_v24  ;;  %6288 = vtanh.f32 %v4223_v27  ;;  %v4227_v13 = vunpack.c.h.bf16 %v8884_v45  ;;  %v9080_v19 = vpack.c.bf16 %v8948_v62, %v8943_v20 }
 0x47b   : > { %v6281_v28 = vpop.eup %6280  ;;  %v9064_v0 = vpack.c.bf16 %v4699_v38, %v4698_v22  ;;  %v4246_v54 = vunpack.c.l.bf16 %v3920_v6  ;;  %v4247_v12 = vunpack.c.h.bf16 %v3920_v6  ;;  %3738 = vmatmul.bf16.gmra.mxu1 %v9783_v14  ;;  %3854 = vmatmul.bf16.gmra.mxu3 %v9783_v14  ;;  %v3461_v9 = vpop.f32.mrf.mxu0  ;;  %v4624_v25 = vunpack.c.l.bf16 %v4211_v15 }
 0x47c   : > { %v6283_v61 = vpop.eup %6282  ;;  %v3462_v10 = vadd.f32 %v3461_v9, %v8766_v29  ;;  %v4625_v58 = vunpack.c.h.bf16 %v4211_v15  ;;  %v4157_v59 = vunpack.c.l.bf16 %v9071_v3  ;;  %v4158_v27 = vunpack.c.h.bf16 %v9071_v3 }
 0x47d   : > { %v4306_v41 = vpack.c.bf16 %v6283_v61, %v6281_v28  ;;  %6290 = vtanh.f32 %v4246_v54  ;;  %v6285_v17 = vpop.eup %6284  ;;  %v4230_v51 = vunpack.c.l.bf16 %v8917_v1  ;;  %v4610_v15 = vunpack.c.l.bf16 %v9080_v19 }
 0x47e   : > { %6292 = vtanh.f32 %v4247_v12  ;;  %v3633_v47 = vpop.f32.mrf.mxu3  ;;  %v6287_v53 = vpop.eup %6286  ;;  %v4611_v28 = vunpack.c.h.bf16 %v9080_v19  ;;  %v4212_v54 = vpack.c.bf16 %v9032_v23, %v9029_v31  ;;  %v4741_v19 = vunpack.c.l.bf16 %v8934_v11 }
 0x47f   : > { %v4662_v60 = vunpack.c.l.bf16 %v4306_v41  ;;  %v4663_v57 = vunpack.c.h.bf16 %v4306_v41  ;;  %v3634_v32 = vadd.f32 %v3633_v47, %v3576_v42  ;;  %6294 = vtanh.f32 %v4226_v49 }
 0x480   : > { %v3519_v45 = vpop.f32.mrf.mxu1  ;;  %v6289_v39 = vpop.eup %6288  ;;  %6296 = vtanh.f32 %v4227_v13  ;;  %v9092_v41 = vadd.f32 0.5, %v4157_v59  ;;  %v4231_v13 = vunpack.c.h.bf16 %v8917_v1  ;;  %v9784_v59 = vld [vmem:[#allocation12_spill] sm:$0xff]  ;;  %v4627_v1 = vunpack.c.h.bf16 %v4212_v54 }
 0x481   : > { %v4700_v22 = vmul.f32 %v4662_v60, %v4624_v25  ;;  %v4701_v38 = vmul.f32 %v4663_v57, %v4625_v58  ;;  %v3923_v20 = vpack.c.bf16 %v3634_v32, %v3518_v34  ;;  %v3520_v62 = vadd.f32 %v3519_v45, %v3462_v10  ;;  %v3577_v6 = vpop.f32.mrf.mxu2 }
 0x482   : > { %v3578_v61 = vadd.f32 %v3577_v6, %v8774_v24  ;;  %v4293_v10 = vpack.c.bf16 %v6285_v17, %v6279_v4  ;;  %6298 = vtanh.f32 %v4230_v51  ;;  %v9097_v25 = vpack.c.bf16 %v8955_v46, %v8950_v35 }
 0x483   : > { %v6291_v12 = vpop.eup %6290  ;;  %v9089_v14 = vpack.c.bf16 %v4701_v38, %v4700_v22  ;;  %v4248_v42 = vunpack.c.l.bf16 %v3923_v20  ;;  %v4249_v9 = vunpack.c.h.bf16 %v3923_v20  ;;  %v3464_v49 = vpop.f32.mrf.mxu0  ;;  %v4295_v58 = vpack.c.bf16 %v6289_v39, %v6287_v53 }
 0x484   : > { %v6293_v34 = vpop.eup %6292  ;;  %v3465_v23 = vadd.f32 %v3464_v49, %v8766_v29  ;;  %v4234_v60 = vunpack.c.l.bf16 %v8946_v37  ;;  %v4626_v57 = vunpack.c.l.bf16 %v4212_v54  ;;  %v4636_v51 = vunpack.c.l.bf16 %v4293_v10 }
 0x485   : > { %v4307_v31 = vpack.c.bf16 %v6293_v34, %v6291_v12  ;;  %6300 = vtanh.f32 %v4248_v42  ;;  %v6295_v47 = vpop.eup %6294  ;;  %v4637_v45 = vunpack.c.h.bf16 %v4293_v10  ;;  %v4235_v29 = vunpack.c.h.bf16 %v8946_v37 }
 0x486   : > { %6302 = vtanh.f32 %v4249_v9  ;;  %v3635_v32 = vpop.f32.mrf.mxu3  ;;  %3685 = vmatmul.bf16.gmra.mxu0 %v9784_v59  ;;  %3801 = vmatmul.bf16.gmra.mxu2 %v9784_v59  ;;  %v6297_v46 = vpop.eup %6296  ;;  %v4640_v42 = vunpack.c.l.bf16 %v4295_v58  ;;  %v4641_v9 = vunpack.c.h.bf16 %v4295_v58  ;;  %v4213_v54 = vpack.c.bf16 %v9060_v44, %v9058_v56 }
 0x487   : > { %v4664_v4 = vunpack.c.l.bf16 %v4307_v31  ;;  %v4665_v17 = vunpack.c.h.bf16 %v4307_v31  ;;  %v3636_v35 = vadd.f32 %v3635_v32, %v3578_v61  ;;  %6304 = vtanh.f32 %v4231_v13  ;;  %v9785_v13 = vld [vmem:[#allocation13_spill] sm:$0xff] }
 0x488   : > { %v3522_v53 = vpop.f32.mrf.mxu1  ;;  %v6299_v12 = vpop.eup %6298  ;;  %6306 = vtanh.f32 %v4234_v60  ;;  %v4675_v58 = vmul.f32 %v4637_v45, %v4599_v21  ;;  %v4297_v56 = vpack.c.bf16 %v6297_v46, %v6295_v47  ;;  %v9117_v44 = vadd.f32 0.5, %v4158_v27 }
 0x489   : > { %v4702_v22 = vmul.f32 %v4664_v4, %v4626_v57  ;;  %v4703_v38 = vmul.f32 %v4665_v17, %v4627_v1  ;;  %v3926_v20 = vpack.c.bf16 %v3636_v35, %v3520_v62  ;;  %v3523_v6 = vadd.f32 %v3522_v53, %v3465_v23  ;;  %v3580_v39 = vpop.f32.mrf.mxu2 }
 0x48a   : > { %v3581_v37 = vadd.f32 %v3580_v39, %v8774_v24  ;;  %v4674_v23 = vmul.f32 %v4636_v51, %v4598_v50  ;;  %6308 = vtanh.f32 %v4235_v29  ;;  %v4729_v60 = vunpack.c.l.bf16 %v8839_v36 }
 0x48b   : > { %v6301_v61 = vpop.eup %6300  ;;  %v9106_v49 = vpack.c.bf16 %v4703_v38, %v4702_v22  ;;  %v4250_v34 = vunpack.c.l.bf16 %v3926_v20  ;;  %v4251_v10 = vunpack.c.h.bf16 %v3926_v20  ;;  %3743 = vmatmul.bf16.gmra.mxu1 %v9785_v13  ;;  %3859 = vmatmul.bf16.gmra.mxu3 %v9785_v13  ;;  %v3466_v62 = vpop.f32.mrf.mxu0  ;;  %v4678_v24 = vmul.f32 %v4640_v42, %v4602_v8 }
 0x48c   : > { %v6303_v31 = vpop.eup %6302  ;;  %v4679_v50 = vmul.f32 %v4641_v9, %v4603_v40  ;;  %v4628_v59 = vunpack.c.l.bf16 %v4213_v54  ;;  %v4629_v21 = vunpack.c.h.bf16 %v4213_v54  ;;  %v4730_v4 = vunpack.c.h.bf16 %v8839_v36 }
 0x48d   : > { %v4308_v57 = vpack.c.bf16 %v6303_v31, %v6301_v61  ;;  %6310 = vtanh.f32 %v4250_v34  ;;  %v6305_v32 = vpop.eup %6304  ;;  %v4711_v17 = vpack.c.bf16 %v4675_v58, %v4674_v23  ;;  %v4644_v35 = vunpack.c.l.bf16 %v4297_v56  ;;  %v9786_v58 = vld [vmem:[#allocation46_spill] sm:$0xff] }
 0x48e   : > { %6312 = vtanh.f32 %v4251_v10  ;;  %v3638_v26 = vpop.f32.mrf.mxu3  ;;  %v6307_v27 = vpop.eup %6306  ;;  %v4614_v46 = vunpack.c.l.bf16 %v9097_v25  ;;  %v4645_v45 = vunpack.c.h.bf16 %v4297_v56  ;;  %v4733_v22 = vunpack.c.l.bf16 %v8870_v43 }
 0x48f   : > { %v4666_v47 = vunpack.c.l.bf16 %v4308_v57  ;;  %v4667_v1 = vunpack.c.h.bf16 %v4308_v57  ;;  %v3639_v3 = vadd.f32 %v3638_v26, %v3581_v37  ;;  %v4734_v38 = vunpack.c.h.bf16 %v8870_v43 }
 0x490   : > { %v3524_v51 = vpop.f32.mrf.mxu1  ;;  %v6309_v53 = vpop.eup %6308  ;;  %v4615_v20 = vunpack.c.h.bf16 %v9097_v25  ;;  %v4214_v36 = vpack.c.bf16 %v9074_v2, %v9069_v5  ;;  %v4713_v42 = vpack.c.bf16 %v4679_v50, %v4678_v24  ;;  %v4682_v13 = vmul.f32 %v4644_v35, %v4606_v18  ;;  %v6471_v18 = vld [vmem:[%s9545_s6] sm:$0x3f] }
 0x491   : > { %v4704_v8 = vmul.f32 %v4666_v47, %v4628_v59  ;;  %v4705_v29 = vmul.f32 %v4667_v1, %v4629_v21  ;;  %v3929_v16 = vpack.c.bf16 %v3639_v3, %v3523_v6  ;;  %v3582_v40 = vpop.f32.mrf.mxu2  ;;  %v4737_v6 = vunpack.c.l.bf16 %v8900_v52 }
 0x492   : > { %v4299_v37 = vpack.c.bf16 %v6305_v32, %v6299_v12  ;;  %6314 = vtanh.f32 %v4729_v60  ;;  %v4683_v43 = vmul.f32 %v4645_v45, %v4607_v30  ;;  %v4731_v5 = vunpack.c.l.bf16 %v4711_v17 }
 0x493   : > { %v6311_v39 = vpop.eup %6310  ;;  %v9131_v9 = vpack.c.bf16 %v4705_v29, %v4704_v8  ;;  %v4252_v54 = vunpack.c.l.bf16 %v3929_v16  ;;  %v4253_v61 = vunpack.c.h.bf16 %v3929_v16  ;;  %v3651_v34 = vpop.f32.mrf.mxu0  ;;  %v4630_v2 = vunpack.c.l.bf16 %v4214_v36 }
 0x494   : > { %v6313_v10 = vpop.eup %6312  ;;  %v4631_v31 = vunpack.c.h.bf16 %v4214_v36  ;;  %v4732_v56 = vunpack.c.h.bf16 %v4711_v17  ;;  %v9143_v63 = vperm.slane %v6471_v18, 4  ;;  %v9145_v30 = vperm.slane %v6471_v18, 5 }
 0x495   : > { %v4309_v62 = vpack.c.bf16 %v6313_v10, %v6311_v39  ;;  %6316 = vtanh.f32 %v4252_v54  ;;  %v4648_v12 = vunpack.c.l.bf16 %v4299_v37  ;;  %v4649_v60 = vunpack.c.h.bf16 %v4299_v37 }
 0x496   : > { %6318 = vtanh.f32 %v4253_v61  ;;  %v3640_v23 = vpop.f32.mrf.mxu3  ;;  %3690 = vmatmul.bf16.gmra.mxu0 %v9786_v58  ;;  %3806 = vmatmul.bf16.gmra.mxu2 %v9786_v58  ;;  %v4301_v32 = vpack.c.bf16 %v6309_v53, %v6307_v27  ;;  %v4735_v47 = vunpack.c.l.bf16 %v4713_v42  ;;  %v4715_v3 = vpack.c.bf16 %v4683_v43, %v4682_v13  ;;  %v9787_v27 = vld [vmem:[#allocation47_spill] sm:$0xff] }
 0x497   : > { %v4668_v57 = vunpack.c.l.bf16 %v4309_v62  ;;  %v4669_v24 = vunpack.c.h.bf16 %v4309_v62  ;;  %6320 = vtanh.f32 %v4730_v4  ;;  %v4215_v17 = vpack.c.bf16 %v9117_v44, %v9092_v41 }
 0x498   : > { %v3709_v50 = vpop.f32.mrf.mxu1  ;;  %6322 = vtanh.f32 %v4731_v5  ;;  %v6315_v1 = vpop.eup %6314  ;;  %v4736_v35 = vunpack.c.h.bf16 %v4713_v42  ;;  %v3652_v8 = vadd.f32 %v3651_v34, %v9143_v63  ;;  %v4738_v40 = vunpack.c.h.bf16 %v8900_v52 }
 0x499   : > { %v4706_v59 = vmul.f32 %v4668_v57, %v4630_v2  ;;  %v4707_v26 = vmul.f32 %v4669_v24, %v4631_v31  ;;  %v3767_v21 = vpop.f32.mrf.mxu2  ;;  %6324 = vtanh.f32 %v4732_v56  ;;  %v4686_v41 = vmul.f32 %v4648_v12, %v4610_v15 }
 0x49a   : > { %v3768_v4 = vadd.f32 %v3767_v21, %v9145_v30  ;;  %6326 = vtanh.f32 %v4733_v22  ;;  %v4687_v44 = vmul.f32 %v4649_v60, %v4611_v28  ;;  %v4652_v53 = vunpack.c.l.bf16 %v4301_v32 }
 0x49b   : > { %v6317_v51 = vpop.eup %6316  ;;  %v9149_v45 = vpack.c.bf16 %v4707_v26, %v4706_v59  ;;  %3748 = vmatmul.bf16.gmra.mxu1 %v9787_v27  ;;  %3864 = vmatmul.bf16.gmra.mxu3 %v9787_v27  ;;  %v3653_v29 = vpop.f32.mrf.mxu0  ;;  %6328 = vtanh.f32 %v4734_v38  ;;  %v4653_v36 = vunpack.c.h.bf16 %v4301_v32  ;;  %v4632_v54 = vunpack.c.l.bf16 %v4215_v17 }
 0x49c   : > { %v6319_v16 = vpop.eup %6318  ;;  %6330 = vtanh.f32 %v4735_v47  ;;  %v4633_v61 = vunpack.c.h.bf16 %v4215_v17  ;;  %v4739_v22 = vunpack.c.l.bf16 %v4715_v3  ;;  %v3710_v43 = vadd.f32 %v3709_v50, %v3652_v8 }
 0x49d   : > { %v4310_v39 = vpack.c.bf16 %v6319_v16, %v6317_v51  ;;  %v6321_v42 = vpop.eup %6320  ;;  %6332 = vtanh.f32 %v4736_v35  ;;  %v4717_v28 = vpack.c.bf16 %v4687_v44, %v4686_v41  ;;  %v4740_v5 = vunpack.c.h.bf16 %v4715_v3  ;;  %v9788_v51 = vld [vmem:[#allocation14_spill] sm:$0xff] }
 0x49e   : > { %v3825_v34 = vpop.f32.mrf.mxu3  ;;  %v6323_v10 = vpop.eup %6322  ;;  %6334 = vtanh.f32 %v4737_v6  ;;  %v4690_v24 = vmul.f32 %v4652_v53, %v4614_v46  ;;  %v4691_v18 = vmul.f32 %v4653_v36, %v4615_v20  ;;  %v3654_v12 = vadd.f32 %v3653_v29, %v9143_v63 }
 0x49f   : > { %v4670_v13 = vunpack.c.l.bf16 %v4310_v39  ;;  %v4671_v37 = vunpack.c.h.bf16 %v4310_v39  ;;  %v3826_v62 = vadd.f32 %v3825_v34, %v3768_v4  ;;  %v6325_v15 = vpop.eup %6324  ;;  %6336 = vtanh.f32 %v4738_v40 }
 0x4a0   : > { %v3711_v38 = vpop.f32.mrf.mxu1  ;;  %v6327_v2 = vpop.eup %6326  ;;  %6338 = vtanh.f32 %v4739_v22  ;;  %v4742_v21 = vunpack.c.h.bf16 %v8934_v11  ;;  %v9172_v47 = vpack.c.bf16 %v6321_v42, %v6315_v1  ;;  %v4745_v25 = vunpack.c.l.bf16 %v8968_v55 }
 0x4a1   : > { %v4708_v31 = vmul.f32 %v4670_v13, %v4632_v54  ;;  %v4709_v23 = vmul.f32 %v4671_v37, %v4633_v61  ;;  %v3876_v58 = vpack.c.bf16 %v3826_v62, %v3710_v43  ;;  %v3769_v56 = vpop.f32.mrf.mxu2  ;;  %v6329_v57 = vpop.eup %6328  ;;  %6340 = vtanh.f32 %v4740_v5  ;;  %v9789_v37 = vld [vmem:[#allocation15_spill] sm:$0xff] }
 0x4a2   : > { %v6331_v60 = vpop.eup %6330  ;;  %v3770_v50 = vadd.f32 %v3769_v56, %v9145_v30  ;;  %v4743_v46 = vunpack.c.l.bf16 %v4717_v28  ;;  %v4746_v3 = vunpack.c.h.bf16 %v8968_v55  ;;  %v9176_v17 = vpack.c.bf16 %v4691_v18, %v4690_v24 }
 0x4a3   : > { %v9168_v52 = vpack.c.bf16 %v4709_v23, %v4708_v31  ;;  %v4311_v6 = vunpack.c.l.bf16 %v3876_v58  ;;  %v4312_v32 = vunpack.c.h.bf16 %v3876_v58  ;;  %v3656_v59 = vpop.f32.mrf.mxu0  ;;  %v6333_v26 = vpop.eup %6332  ;;  %v4744_v8 = vunpack.c.h.bf16 %v4717_v28 }
 0x4a4   : > { %v6335_v20 = vpop.eup %6334  ;;  %v4749_v1 = vunpack.c.l.bf16 %v9007_v48  ;;  %v3712_v27 = vadd.f32 %v3711_v38, %v3654_v12  ;;  %v4750_v16 = vunpack.c.h.bf16 %v9007_v48  ;;  %v4862_v55 = vunpack.c.l.bf16 %v9172_v47 }
 0x4a5   : > { %6342 = vtanh.f32 %v4311_v6  ;;  %v6337_v11 = vpop.eup %6336  ;;  %v9183_v41 = vpack.c.bf16 %v6325_v15, %v6323_v10  ;;  %v4863_v36 = vunpack.c.h.bf16 %v9172_v47  ;;  %v9186_v39 = vpack.c.bf16 %v6329_v57, %v6327_v2 }
 0x4a6   : > { %6344 = vtanh.f32 %v4312_v32  ;;  %v3827_v35 = vpop.f32.mrf.mxu3  ;;  %3695 = vmatmul.bf16.gmra.mxu0 %v9788_v51  ;;  %3811 = vmatmul.bf16.gmra.mxu2 %v9788_v51  ;;  %v6339_v29 = vpop.eup %6338  ;;  %v4753_v54 = vunpack.c.l.bf16 %v9047_v7  ;;  %v4754_v61 = vunpack.c.h.bf16 %v9047_v7  ;;  %v3657_v34 = vadd.f32 %v3656_v59, %v9143_v63 }
 0x4a7   : > { %v3828_v4 = vadd.f32 %v3827_v35, %v3770_v50  ;;  %6346 = vtanh.f32 %v4741_v19  ;;  %v6341_v42 = vpop.eup %6340  ;;  %v4864_v19 = vunpack.c.l.bf16 %v9183_v41  ;;  %v4865_v28 = vunpack.c.h.bf16 %v9183_v41 }
 0x4a8   : > { %v3714_v40 = vpop.f32.mrf.mxu1  ;;  %6348 = vtanh.f32 %v4742_v21  ;;  %v9196_v38 = vpack.c.bf16 %v6333_v26, %v6331_v60  ;;  %v4866_v31 = vunpack.c.l.bf16 %v9186_v39  ;;  %v9199_v23 = vpack.c.bf16 %v6337_v11, %v6335_v20 }
 0x4a9   : > { %v3879_v44 = vpack.c.bf16 %v3828_v4, %v3712_v27  ;;  %v3772_v53 = vpop.f32.mrf.mxu2  ;;  %6350 = vtanh.f32 %v4743_v46  ;;  %v4867_v18 = vunpack.c.h.bf16 %v9186_v39  ;;  %v3715_v32 = vadd.f32 %v3714_v40, %v3657_v34 }
 0x4aa   : > { %6352 = vtanh.f32 %v4744_v8  ;;  %v3773_v43 = vadd.f32 %v3772_v53, %v9145_v30  ;;  %v4868_v21 = vunpack.c.l.bf16 %v9196_v38  ;;  %v4747_v46 = vunpack.c.l.bf16 %v9176_v17 }
 0x4ab   : > { %v6343_v22 = vpop.eup %6342  ;;  %v4313_v13 = vunpack.c.l.bf16 %v3879_v44  ;;  %v4314_v10 = vunpack.c.h.bf16 %v3879_v44  ;;  %3753 = vmatmul.bf16.gmra.mxu1 %v9789_v37  ;;  %3869 = vmatmul.bf16.gmra.mxu3 %v9789_v37  ;;  %v3658_v62 = vpop.f32.mrf.mxu0  ;;  %6354 = vtanh.f32 %v4745_v25  ;;  %v9205_v25 = vpack.c.bf16 %v6341_v42, %v6339_v29 }
 0x4ac   : > { %v6345_v15 = vpop.eup %6344  ;;  %6356 = vtanh.f32 %v4746_v3  ;;  %v4748_v20 = vunpack.c.h.bf16 %v9176_v17  ;;  %v4869_v8 = vunpack.c.h.bf16 %v9196_v38  ;;  %v4870_v11 = vunpack.c.l.bf16 %v9199_v23 }
 0x4ad   : > { %v6347_v5 = vpop.eup %6346  ;;  %v4387_v2 = vpack.c.bf16 %v6345_v15, %v6343_v22  ;;  %6358 = vtanh.f32 %v4313_v13  ;;  %v4871_v27 = vunpack.c.h.bf16 %v9199_v23  ;;  %v3659_v53 = vadd.f32 %v3658_v62, %v9143_v63 }
 0x4ae   : > { %v6349_v58 = vpop.eup %6348  ;;  %6360 = vtanh.f32 %v4314_v10  ;;  %v3830_v24 = vpop.f32.mrf.mxu3 }
 0x4af   : > { %v6351_v12 = vpop.eup %6350  ;;  %v4406_v60 = vunpack.c.l.bf16 %v4387_v2  ;;  %v4407_v6 = vunpack.c.h.bf16 %v4387_v2  ;;  %v3831_v50 = vadd.f32 %v3830_v24, %v3773_v43  ;;  %6362 = vtanh.f32 %v4747_v46 }
 0x4b0   : > { %v6353_v59 = vpop.eup %6352  ;;  %v3716_v26 = vpop.f32.mrf.mxu1  ;;  %6364 = vtanh.f32 %v4748_v20  ;;  %v4872_v43 = vunpack.c.l.bf16 %v9205_v25  ;;  %v9217_v15 = vpack.c.bf16 %v6349_v58, %v6347_v5  ;;  %v4873_v24 = vunpack.c.h.bf16 %v9205_v25 }
 0x4b1   : > { %v6355_v3 = vpop.eup %6354  ;;  %v3882_v35 = vpack.c.bf16 %v3831_v50, %v3715_v32  ;;  %v3774_v51 = vpop.f32.mrf.mxu2  ;;  %v4444_v40 = vmul.f32 0.5, %v4406_v60  ;;  %v4445_v44 = vmul.f32 0.5, %v4407_v6  ;;  %v3717_v60 = vadd.f32 %v3716_v26, %v3659_v53 }
 0x4b2   : > { %v6357_v4 = vpop.eup %6356  ;;  %v3775_v17 = vadd.f32 %v3774_v51, %v9145_v30  ;;  %v9221_v32 = vpack.c.bf16 %v6353_v59, %v6351_v12 }
 0x4b3   : > { %v6359_v29 = vpop.eup %6358  ;;  %v4315_v42 = vunpack.c.l.bf16 %v3882_v35  ;;  %v4316_v34 = vunpack.c.h.bf16 %v3882_v35  ;;  %v3661_v22 = vpop.f32.mrf.mxu0  ;;  %v9223_v50 = vpack.c.bf16 %v6357_v4, %v6355_v3  ;;  %v4482_v46 = vpack.c.bf16 %v4445_v44, %v4444_v40 }
 0x4b4   : > { %v6361_v13 = vpop.eup %6360  ;;  %v3662_v58 = vadd.f32 %v3661_v22, %v9143_v63 }
 0x4b5   : > { %v4388_v62 = vpack.c.bf16 %v6361_v13, %v6359_v29  ;;  %6366 = vtanh.f32 %v4315_v42  ;;  %v6363_v37 = vpop.eup %6362  ;;  %v4501_v10 = vunpack.c.l.bf16 %v4482_v46 }
 0x4b6   : > { %6368 = vtanh.f32 %v4316_v34  ;;  %v3832_v6 = vpop.f32.mrf.mxu3  ;;  %v6365_v26 = vpop.eup %6364 }
 0x4b7   : > { %v4408_v20 = vunpack.c.l.bf16 %v4388_v62  ;;  %v4409_v35 = vunpack.c.h.bf16 %v4388_v62  ;;  %v3833_v51 = vadd.f32 %v3832_v6, %v3775_v17  ;;  %v9238_v12 = vpack.c.bf16 %v6365_v26, %v6363_v37 }
 0x4b8   : > { %v3719_v29 = vpop.f32.mrf.mxu1  ;;  %6370 = vtanh.f32 %v4749_v1 }
 0x4b9   : > { %v4446_v59 = vmul.f32 0.5, %v4408_v20  ;;  %v4447_v3 = vmul.f32 0.5, %v4409_v35  ;;  %v3885_v4 = vpack.c.bf16 %v3833_v51, %v3717_v60  ;;  %v3777_v40 = vpop.f32.mrf.mxu2  ;;  %v4995_v60 = vld [vmem:[%s9546_s7] sm:$0x3]  ;;  %v3720_v35 = vadd.f32 %v3719_v29, %v3662_v58 }
 0x4ba   : > { %v3778_v5 = vadd.f32 %v3777_v40, %v9145_v30  ;;  %v4502_v51 = vunpack.c.h.bf16 %v4482_v46  ;;  %v9243_v44 = vperm.slane %v4995_v60, 0  ;;  %v9247_v1 = vperm.slane %v4995_v60, 1 }
 0x4bb   : > { %v6367_v13 = vpop.eup %6366  ;;  %v4317_v62 = vunpack.c.l.bf16 %v3885_v4  ;;  %v4318_v6 = vunpack.c.h.bf16 %v3885_v4  ;;  %v3663_v2 = vpop.f32.mrf.mxu0  ;;  %v4483_v22 = vpack.c.bf16 %v4447_v3, %v4446_v59  ;;  %v4539_v4 = vadd.f32 0.5, %v4501_v10 }
 0x4bc   : > { %v6369_v20 = vpop.eup %6368  ;;  %v3664_v57 = vadd.f32 %v3663_v2, %v9143_v63  ;;  %v4540_v53 = vadd.f32 0.5, %v4502_v51  ;;  %v4751_v10 = vunpack.c.l.bf16 %v9020_v33 }
 0x4bd   : > { %v4389_v17 = vpack.c.bf16 %v6369_v20, %v6367_v13  ;;  %6372 = vtanh.f32 %v4317_v62  ;;  %v4752_v13 = vunpack.c.h.bf16 %v9020_v33  ;;  %v4504_v33 = vunpack.c.h.bf16 %v4483_v22 }
 0x4be   : > { %6374 = vtanh.f32 %v4318_v6  ;;  %v3835_v40 = vpop.f32.mrf.mxu3  ;;  %v4577_v46 = vpack.c.bf16 %v4540_v53, %v4539_v4  ;;  %v4503_v4 = vunpack.c.l.bf16 %v4483_v22 }
 0x4bf   : > { %v4410_v56 = vunpack.c.l.bf16 %v4389_v17  ;;  %v4411_v34 = vunpack.c.h.bf16 %v4389_v17  ;;  %v3836_v58 = vadd.f32 %v3835_v40, %v3778_v5  ;;  %6376 = vtanh.f32 %v4750_v16  ;;  %v6371_v17 = vpop.eup %6370 }
 0x4c0   : > { %v3721_v37 = vpop.f32.mrf.mxu1  ;;  %v4824_v48 = vunpack.c.l.bf16 %v4577_v46  ;;  %v4825_v16 = vunpack.c.h.bf16 %v4577_v46  ;;  %6378 = vtanh.f32 %v4751_v10 }
 0x4c1   : > { %v4448_v26 = vmul.f32 0.5, %v4410_v56  ;;  %v3888_v59 = vpack.c.bf16 %v3836_v58, %v3720_v35  ;;  %v3779_v2 = vpop.f32.mrf.mxu2  ;;  %v4449_v5 = vmul.f32 0.5, %v4411_v34  ;;  %v3722_v62 = vadd.f32 %v3721_v37, %v3664_v57 }
 0x4c2   : > { %v3780_v20 = vadd.f32 %v3779_v2, %v9145_v30  ;;  %v4900_v56 = vmul.f32 %v4862_v55, %v4824_v48  ;;  %v4901_v35 = vmul.f32 %v4863_v36, %v4825_v16  ;;  %v4541_v37 = vadd.f32 0.5, %v4503_v4 }
 0x4c3   : > { %v6373_v6 = vpop.eup %6372  ;;  %v4319_v53 = vunpack.c.l.bf16 %v3888_v59  ;;  %v4320_v60 = vunpack.c.h.bf16 %v3888_v59  ;;  %v3666_v51 = vpop.f32.mrf.mxu0  ;;  %v4542_v2 = vadd.f32 0.5, %v4504_v33  ;;  %v4484_v47 = vpack.c.bf16 %v4449_v5, %v4448_v26 }
 0x4c4   : > { %v6375_v40 = vpop.eup %6374  ;;  %v3667_v58 = vadd.f32 %v3666_v51, %v9143_v63  ;;  %v4938_v59 = vpack.c.bf16 %v4901_v35, %v4900_v56 }
 0x4c5   : > { %v6377_v34 = vpop.eup %6376  ;;  %v4390_v57 = vpack.c.bf16 %v6375_v40, %v6373_v6  ;;  %6380 = vtanh.f32 %v4319_v53  ;;  %v4578_v48 = vpack.c.bf16 %v4542_v2, %v4541_v37  ;;  %v4506_v2 = vunpack.c.h.bf16 %v4484_v47 }
 0x4c6   : > { %6382 = vtanh.f32 %v4320_v60  ;;  %v3837_v46 = vpop.f32.mrf.mxu3  ;;  %v9259_v3 = vpack.c.bf16 %v6377_v34, %v6371_v17  ;;  %v4957_v22 = vunpack.c.l.bf16 %v4938_v59  ;;  %v4958_v10 = vunpack.c.h.bf16 %v4938_v59  ;;  %v6379_v4 = vpop.eup %6378 }
 0x4c7   : > { %v4412_v29 = vunpack.c.l.bf16 %v4390_v57  ;;  %v4413_v42 = vunpack.c.h.bf16 %v4390_v57  ;;  %v3838_v55 = vadd.f32 %v3837_v46, %v3780_v20  ;;  %6384 = vtanh.f32 %v4752_v13 }
 0x4c8   : > { %v3724_v36 = vpop.f32.mrf.mxu1  ;;  %v4882_v60 = vunpack.c.l.bf16 %v9259_v3  ;;  %v5001_v17 = vmul.f32 %v9243_v44, %v4957_v22  ;;  %v5002_v56 = vmul.f32 %v9247_v1, %v4958_v10  ;;  %v4826_v35 = vunpack.c.l.bf16 %v4578_v48 }
 0x4c9   : > { %v4450_v16 = vmul.f32 0.5, %v4412_v29  ;;  %v4451_v6 = vmul.f32 0.5, %v4413_v42  ;;  %v3891_v53 = vpack.c.bf16 %v3838_v55, %v3722_v62  ;;  %v3782_v51 = vpop.f32.mrf.mxu2  ;;  %v3725_v40 = vadd.f32 %v3724_v36, %v3667_v58 }
 0x4ca   : > { %v3783_v5 = vadd.f32 %v3782_v51, %v9145_v30  ;;  %v4827_v34 = vunpack.c.h.bf16 %v4578_v48  ;;  %v5039_v42 = vadd.f32 %v5002_v56, %v5001_v17  ;;  %v4902_v57 = vmul.f32 %v4864_v19, %v4826_v35 }
 0x4cb   : > { %v6381_v20 = vpop.eup %6380  ;;  %v4321_v13 = vunpack.c.l.bf16 %v3891_v53  ;;  %v4322_v26 = vunpack.c.h.bf16 %v3891_v53  ;;  %v3668_v33 = vpop.f32.mrf.mxu0  ;;  %v4505_v58 = vunpack.c.l.bf16 %v4484_v47  ;;  %v4485_v55 = vpack.c.bf16 %v4451_v6, %v4450_v16 }
 0x4cc   : > { %v6383_v29 = vpop.eup %6382  ;;  %v3669_v62 = vadd.f32 %v3668_v33, %v9143_v63  ;;  %v4903_v59 = vmul.f32 %v4865_v28, %v4827_v34  ;;  %5040 = vadd.xlane.f32.xlu1 %v5039_v42  ;;  %v4544_v56 = vadd.f32 0.5, %v4506_v2  ;;  %v4883_v35 = vunpack.c.h.bf16 %v9259_v3 }
 0x4cd   : > { %v6385_v37 = vpop.eup %6384  ;;  %v4391_v46 = vpack.c.bf16 %v6383_v29, %v6381_v20  ;;  %6386 = vtanh.f32 %v4321_v13  ;;  %v4543_v22 = vadd.f32 0.5, %v4505_v58  ;;  %v4507_v58 = vunpack.c.l.bf16 %v4485_v55 }
 0x4ce   : > { %6388 = vtanh.f32 %v4322_v26  ;;  %v3840_v36 = vpop.f32.mrf.mxu3  ;;  %v9270_v10 = vpack.c.bf16 %v6385_v37, %v6379_v4  ;;  %v4939_v17 = vpack.c.bf16 %v4903_v59, %v4902_v57 }
 0x4cf   : > { %v4414_v48 = vunpack.c.l.bf16 %v4391_v46  ;;  %v4415_v53 = vunpack.c.h.bf16 %v4391_v46  ;;  %v3841_v51 = vadd.f32 %v3840_v36, %v3783_v5  ;;  %6390 = vtanh.f32 %v4753_v54 }
 0x4d0   : > { %v3726_v19 = vpop.f32.mrf.mxu1  ;;  %v4884_v20 = vunpack.c.l.bf16 %v9270_v10  ;;  %v4959_v4 = vunpack.c.l.bf16 %v4939_v17  ;;  %v4960_v13 = vunpack.c.h.bf16 %v4939_v17  ;;  %v4579_v5 = vpack.c.bf16 %v4544_v56, %v4543_v22 }
 0x4d1   : > { %v4452_v41 = vmul.f32 0.5, %v4414_v48  ;;  %v4453_v28 = vmul.f32 0.5, %v4415_v53  ;;  %v3894_v47 = vpack.c.bf16 %v3841_v51, %v3725_v40  ;;  %v3727_v16 = vadd.f32 %v3726_v19, %v3669_v62  ;;  %v3784_v6 = vpop.f32.mrf.mxu2 }
 0x4d2   : > { %v3785_v26 = vadd.f32 %v3784_v6, %v9145_v30  ;;  %v5003_v54 = vmul.f32 %v9243_v44, %v4959_v4  ;;  %v5004_v46 = vmul.f32 %v9247_v1, %v4960_v13  ;;  %v4828_v62 = vunpack.c.l.bf16 %v4579_v5 }
 0x4d3   : > { %v6387_v33 = vpop.eup %6386  ;;  %v9277_v34 = vpack.c.bf16 %v4453_v28, %v4452_v41  ;;  %v4323_v29 = vunpack.c.l.bf16 %v3894_v47  ;;  %v4324_v42 = vunpack.c.h.bf16 %v3894_v47  ;;  %v3671_v57 = vpop.f32.mrf.mxu0  ;;  %v4829_v2 = vunpack.c.h.bf16 %v4579_v5 }
 0x4d4   : > { %v6389_v37 = vpop.eup %6388  ;;  %v3672_v40 = vadd.f32 %v3671_v57, %v9143_v63  ;;  %v4508_v36 = vunpack.c.h.bf16 %v4485_v55  ;;  %v5042_v48 = vadd.f32 %v5004_v46, %v5003_v54  ;;  %v4904_v51 = vmul.f32 %v4866_v31, %v4828_v62 }
 0x4d5   : > { %v4392_v59 = vpack.c.bf16 %v6389_v37, %v6387_v33  ;;  %6392 = vtanh.f32 %v4323_v29  ;;  %v6391_v22 = vpop.eup %6390  ;;  %v4545_v17 = vadd.f32 0.5, %v4507_v58  ;;  %v4905_v28 = vmul.f32 %v4867_v18, %v4829_v2 }
 0x4d6   : > { %6394 = vtanh.f32 %v4324_v42  ;;  %v3842_v53 = vpop.f32.mrf.mxu3  ;;  %5043 = vadd.xlane.f32.xlu2 %v5042_v48  ;;  %v4546_v6 = vadd.f32 0.5, %v4508_v36  ;;  %v4885_v4 = vunpack.c.h.bf16 %v9270_v10  ;;  %v4755_v55 = vunpack.c.l.bf16 %v9064_v0 }
 0x4d7   : > { %v4416_v19 = vunpack.c.l.bf16 %v4392_v59  ;;  %v4417_v56 = vunpack.c.h.bf16 %v4392_v59  ;;  %v3843_v41 = vadd.f32 %v3842_v53, %v3785_v26  ;;  %6396 = vtanh.f32 %v4754_v61 }
 0x4d8   : > { %v3729_v47 = vpop.f32.mrf.mxu1  ;;  %v4756_v29 = vunpack.c.h.bf16 %v9064_v0  ;;  %v4940_v42 = vpack.c.bf16 %v4905_v28, %v4904_v51  ;;  %v4580_v18 = vpack.c.bf16 %v4546_v6, %v4545_v17  ;;  %v4509_v61 = vunpack.c.l.bf16 %v9277_v34 }
 0x4d9   : > { %v4454_v13 = vmul.f32 0.5, %v4416_v19  ;;  %v4455_v5 = vmul.f32 0.5, %v4417_v56  ;;  %v3897_v31 = vpack.c.bf16 %v3843_v41, %v3727_v16  ;;  %v3787_v33 = vpop.f32.mrf.mxu2  ;;  %v3730_v26 = vadd.f32 %v3729_v47, %v3672_v40 }
 0x4da   : > { %v3788_v39 = vadd.f32 %v3787_v33, %v9145_v30  ;;  %v4961_v62 = vunpack.c.l.bf16 %v4940_v42  ;;  %v4962_v59 = vunpack.c.h.bf16 %v4940_v42  ;;  %v4830_v2 = vunpack.c.l.bf16 %v4580_v18 }
 0x4db   : > { %v6393_v57 = vpop.eup %6392  ;;  %v9292_v58 = vpack.c.bf16 %v4455_v5, %v4454_v13  ;;  %v4325_v37 = vunpack.c.l.bf16 %v3897_v31  ;;  %v4326_v54 = vunpack.c.h.bf16 %v3897_v31  ;;  %v3673_v7 = vpop.f32.mrf.mxu0  ;;  %v4831_v40 = vunpack.c.h.bf16 %v4580_v18 }
 0x4dc   : > { %v6395_v46 = vpop.eup %6394  ;;  %v3674_v16 = vadd.f32 %v3673_v7, %v9143_v63  ;;  %v4510_v48 = vunpack.c.h.bf16 %v9277_v34  ;;  %v5005_v51 = vmul.f32 %v9243_v44, %v4961_v62  ;;  %v5006_v17 = vmul.f32 %v9247_v1, %v4962_v59 }
 0x4dd   : > { %v4393_v36 = vpack.c.bf16 %v6395_v46, %v6393_v57  ;;  %6398 = vtanh.f32 %v4325_v37  ;;  %v6397_v53 = vpop.eup %6396  ;;  %v4906_v56 = vmul.f32 %v4868_v21, %v4830_v2  ;;  %v4907_v6 = vmul.f32 %v4869_v8, %v4831_v40 }
 0x4de   : > { %6400 = vtanh.f32 %v4326_v54  ;;  %v3845_v19 = vpop.f32.mrf.mxu3  ;;  %v5045_v13 = vadd.f32 %v5006_v17, %v5005_v51  ;;  %v4547_v31 = vadd.f32 0.5, %v4509_v61  ;;  %v4548_v34 = vadd.f32 0.5, %v4510_v48 }
 0x4df   : > { %v4418_v41 = vunpack.c.l.bf16 %v4393_v36  ;;  %v4419_v28 = vunpack.c.h.bf16 %v4393_v36  ;;  %v3846_v47 = vadd.f32 %v3845_v19, %v3788_v39  ;;  %6402 = vtanh.f32 %v4755_v55 }
 0x4e0   : > { %v3731_v5 = vpop.f32.mrf.mxu1  ;;  %v9303_v37 = vpack.c.bf16 %v6397_v53, %v6391_v22  ;;  %5046 = vadd.xlane.f32.xlu0 %v5045_v13  ;;  %v4941_v21 = vpack.c.bf16 %v4907_v6, %v4906_v56  ;;  %v4581_v39 = vpack.c.bf16 %v4548_v34, %v4547_v31  ;;  %v4511_v55 = vunpack.c.l.bf16 %v9292_v58 }
 0x4e1   : > { %v4456_v33 = vmul.f32 0.5, %v4418_v41  ;;  %v4457_v42 = vmul.f32 0.5, %v4419_v28  ;;  %v3900_v18 = vpack.c.bf16 %v3846_v47, %v3730_v26  ;;  %v3789_v57 = vpop.f32.mrf.mxu2  ;;  %v3732_v54 = vadd.f32 %v3731_v5, %v3674_v16 }
 0x4e2   : > { %v3790_v7 = vadd.f32 %v3789_v57, %v9145_v30  ;;  %v4963_v2 = vunpack.c.l.bf16 %v4941_v21  ;;  %v4964_v26 = vunpack.c.h.bf16 %v4941_v21  ;;  %v4832_v36 = vunpack.c.l.bf16 %v4581_v39 }
 0x4e3   : > { %v6399_v46 = vpop.eup %6398  ;;  %v9306_v38 = vpack.c.bf16 %v4457_v42, %v4456_v33  ;;  %v4327_v8 = vunpack.c.l.bf16 %v3900_v18  ;;  %v4328_v62 = vunpack.c.h.bf16 %v3900_v18  ;;  %v3676_v61 = vpop.f32.mrf.mxu0  ;;  %v4833_v16 = vunpack.c.h.bf16 %v4581_v39 }
 0x4e4   : > { %v6401_v59 = vpop.eup %6400  ;;  %v3677_v22 = vadd.f32 %v3676_v61, %v9143_v63  ;;  %v4512_v48 = vunpack.c.h.bf16 %v9292_v58  ;;  %v5007_v51 = vmul.f32 %v9243_v44, %v4963_v2  ;;  %v5008_v17 = vmul.f32 %v9247_v1, %v4964_v26 }
 0x4e5   : > { %v4394_v40 = vpack.c.bf16 %v6401_v59, %v6399_v46  ;;  %6404 = vtanh.f32 %v4327_v8  ;;  %v9311_v53 = vpop.eup %6402  ;;  %v4908_v56 = vmul.f32 %v4870_v11, %v4832_v36  ;;  %v4909_v6 = vmul.f32 %v4871_v27, %v4833_v16 }
 0x4e6   : > { %6406 = vtanh.f32 %v4328_v62  ;;  %v3847_v19 = vpop.f32.mrf.mxu3  ;;  %v5048_v13 = vadd.f32 %v5008_v17, %v5007_v51  ;;  %v4549_v58 = vadd.f32 0.5, %v4511_v55  ;;  %v4550_v31 = vadd.f32 0.5, %v4512_v48 }
 0x4e7   : > { %v4420_v41 = vunpack.c.l.bf16 %v4394_v40  ;;  %v4421_v28 = vunpack.c.h.bf16 %v4394_v40  ;;  %v3848_v47 = vadd.f32 %v3847_v19, %v3790_v7  ;;  %v4886_v34 = vunpack.c.l.bf16 %v9303_v37 }
 0x4e8   : > { %v3734_v5 = vpop.f32.mrf.mxu1  ;;  %5049 = vadd.xlane.f32.xlu2 %v5048_v13  ;;  %v4942_v39 = vpack.c.bf16 %v4909_v6, %v4908_v56  ;;  %v4582_v46 = vpack.c.bf16 %v4550_v31, %v4549_v58  ;;  %6408 = vtanh.f32 %v4756_v29  ;;  %v4513_v61 = vunpack.c.l.bf16 %v9306_v38 }
 0x4e9   : > { %v4458_v33 = vmul.f32 0.5, %v4420_v41  ;;  %v4459_v42 = vmul.f32 0.5, %v4421_v28  ;;  %v3903_v18 = vpack.c.bf16 %v3848_v47, %v3732_v54  ;;  %v3735_v57 = vadd.f32 %v3734_v5, %v3677_v22  ;;  %v3792_v21 = vpop.f32.mrf.mxu2 }
 0x4ea   : > { %v3793_v11 = vadd.f32 %v3792_v21, %v9145_v30  ;;  %v4965_v54 = vunpack.c.l.bf16 %v4942_v39  ;;  %v4966_v59 = vunpack.c.h.bf16 %v4942_v39  ;;  %v4834_v26 = vunpack.c.l.bf16 %v4582_v46 }
 0x4eb   : > { %v6405_v23 = vpop.eup %6404  ;;  %v9323_v27 = vpack.c.bf16 %v4459_v42, %v4458_v33  ;;  %v4329_v7 = vunpack.c.l.bf16 %v3903_v18  ;;  %v4330_v8 = vunpack.c.h.bf16 %v3903_v18  ;;  %v3678_v62 = vpop.f32.mrf.mxu0  ;;  %v4835_v36 = vunpack.c.h.bf16 %v4582_v46 }
 0x4ec   : > { %v6407_v55 = vpop.eup %6406  ;;  %v3679_v2 = vadd.f32 %v3678_v62, %v9143_v63  ;;  %v4514_v0 = vunpack.c.h.bf16 %v9306_v38  ;;  %v5009_v29 = vmul.f32 %v9243_v44, %v4965_v54  ;;  %v5010_v40 = vmul.f32 %v9247_v1, %v4966_v59 }
 0x4ed   : > { %v4395_v22 = vpack.c.bf16 %v6407_v55, %v6405_v23  ;;  %6410 = vtanh.f32 %v4329_v7  ;;  %v4910_v48 = vmul.f32 %v4872_v43, %v4834_v26  ;;  %v4911_v56 = vmul.f32 %v4873_v24, %v4835_v36 }
 0x4ee   : > { %6412 = vtanh.f32 %v4330_v8  ;;  %v3850_v16 = vpop.f32.mrf.mxu3  ;;  %v6409_v41 = vpop.eup %6408  ;;  %v5051_v28 = vadd.f32 %v5010_v40, %v5009_v29  ;;  %v4551_v6 = vadd.f32 0.5, %v4513_v61  ;;  %v4552_v38 = vadd.f32 0.5, %v4514_v0 }
 0x4ef   : > { %v4422_v51 = vunpack.c.l.bf16 %v4395_v22  ;;  %v4423_v17 = vunpack.c.h.bf16 %v4395_v22  ;;  %v3851_v19 = vadd.f32 %v3850_v16, %v3793_v11  ;;  %v4887_v13 = vunpack.c.h.bf16 %v9303_v37 }
 0x4f0   : > { %v3736_v47 = vpop.f32.mrf.mxu1  ;;  %5052 = vadd.xlane.f32.xlu1 %v5051_v28  ;;  %v4943_v43 = vpack.c.bf16 %v4911_v56, %v4910_v48  ;;  %v4583_v21 = vpack.c.bf16 %v4552_v38, %v4551_v6  ;;  %v9337_v25 = vpack.c.bf16 %v6409_v41, %v9311_v53  ;;  %v4515_v7 = vunpack.c.l.bf16 %v9323_v27 }
 0x4f1   : > { %v4460_v5 = vmul.f32 0.5, %v4422_v51  ;;  %v4461_v58 = vmul.f32 0.5, %v4423_v17  ;;  %v3906_v31 = vpack.c.bf16 %v3851_v19, %v3735_v57  ;;  %v3737_v33 = vadd.f32 %v3736_v47, %v3679_v2  ;;  %v3794_v42 = vpop.f32.mrf.mxu2 }
 0x4f2   : > { %v3795_v18 = vadd.f32 %v3794_v42, %v9145_v30  ;;  %v4967_v57 = vunpack.c.l.bf16 %v4943_v43  ;;  %v4968_v62 = vunpack.c.h.bf16 %v4943_v43  ;;  %v4836_v55 = vunpack.c.l.bf16 %v4583_v21 }
 0x4f3   : > { %v6411_v24 = vpop.eup %6410  ;;  %v9339_v39 = vpack.c.bf16 %v4461_v58, %v4460_v5  ;;  %v4331_v11 = vunpack.c.l.bf16 %v3906_v31  ;;  %v4332_v46 = vunpack.c.h.bf16 %v3906_v31  ;;  %v3681_v23 = vpop.f32.mrf.mxu0  ;;  %v4837_v59 = vunpack.c.h.bf16 %v4583_v21 }
 0x4f4   : > { %v6413_v8 = vpop.eup %6412  ;;  %v3682_v61 = vadd.f32 %v3681_v23, %v9143_v63  ;;  %v4516_v53 = vunpack.c.h.bf16 %v9323_v27  ;;  %v5011_v2 = vmul.f32 %v9243_v44, %v4967_v57  ;;  %v5012_v26 = vmul.f32 %v9247_v1, %v4968_v62 }
 0x4f5   : > { %v4396_v54 = vpack.c.bf16 %v6413_v8, %v6411_v24  ;;  %6414 = vtanh.f32 %v4331_v11  ;;  %v9790_v36 = vunpack.c.l.bf16 %v9217_v15  ;;  %v9791_v48 = vunpack.c.h.bf16 %v9217_v15 }
 0x4f6   : > { %6416 = vtanh.f32 %v4332_v46  ;;  %v3852_v22 = vpop.f32.mrf.mxu3  ;;  %v5054_v17 = vadd.f32 %v5012_v26, %v5011_v2  ;;  %v4553_v56 = vadd.f32 0.5, %v4515_v7  ;;  %v4554_v41 = vadd.f32 0.5, %v4516_v53 }
 0x4f7   : > { %v4912_v0 = vmul.f32 %v9790_v36, %v4836_v55  ;;  %v4424_v29 = vunpack.c.l.bf16 %v4396_v54  ;;  %v4425_v40 = vunpack.c.h.bf16 %v4396_v54  ;;  %v3853_v16 = vadd.f32 %v3852_v22, %v3795_v18 }
 0x4f8   : > { %v4913_v51 = vmul.f32 %v9791_v48, %v4837_v59  ;;  %v3739_v19 = vpop.f32.mrf.mxu1  ;;  %v9792_v27 = vunpack.c.l.bf16 %v9089_v14  ;;  %v4888_v5 = vunpack.c.l.bf16 %v9337_v25  ;;  %5055 = vadd.xlane.f32.xlu2 %v5054_v17  ;;  %v4584_v15 = vpack.c.bf16 %v4554_v41, %v4553_v56 }
 0x4f9   : > { %v4462_v28 = vmul.f32 0.5, %v4424_v29  ;;  %v4463_v47 = vmul.f32 0.5, %v4425_v40  ;;  %v3909_v6 = vpack.c.bf16 %v3853_v16, %v3737_v33  ;;  %v3797_v38 = vpop.f32.mrf.mxu2  ;;  %v3740_v58 = vadd.f32 %v3739_v19, %v3682_v61 }
 0x4fa   : > { %6418 = vtanh.f32 %v9792_v27  ;;  %v4944_v31 = vpack.c.bf16 %v4913_v51, %v4912_v0  ;;  %v3798_v42 = vadd.f32 %v3797_v38, %v9145_v30  ;;  %v4517_v46 = vunpack.c.l.bf16 %v9339_v39 }
 0x4fb   : > { %v6415_v43 = vpop.eup %6414  ;;  %v9354_v18 = vpack.c.bf16 %v4463_v47, %v4462_v28  ;;  %v4333_v21 = vunpack.c.l.bf16 %v3909_v6  ;;  %v4334_v24 = vunpack.c.h.bf16 %v3909_v6  ;;  %v3683_v11 = vpop.f32.mrf.mxu0  ;;  %v4838_v57 = vunpack.c.l.bf16 %v4584_v15 }
 0x4fc   : > { %v6417_v23 = vpop.eup %6416  ;;  %v4969_v7 = vunpack.c.l.bf16 %v4944_v31  ;;  %v4970_v33 = vunpack.c.h.bf16 %v4944_v31  ;;  %v3684_v8 = vadd.f32 %v3683_v11, %v9143_v63  ;;  %v4839_v61 = vunpack.c.h.bf16 %v4584_v15 }
 0x4fd   : > { %v4397_v62 = vpack.c.bf16 %v6417_v23, %v6415_v43  ;;  %6420 = vtanh.f32 %v4333_v21  ;;  %v4518_v55 = vunpack.c.h.bf16 %v9339_v39  ;;  %v9793_v26 = vunpack.c.l.bf16 %v9221_v32 }
 0x4fe   : > { %6422 = vtanh.f32 %v4334_v24  ;;  %v5013_v59 = vmul.f32 %v9243_v44, %v4969_v7  ;;  %v5014_v53 = vmul.f32 %v9247_v1, %v4970_v33  ;;  %v3855_v2 = vpop.f32.mrf.mxu3  ;;  %v9794_v40 = vunpack.c.h.bf16 %v9221_v32 }
 0x4ff   : > { %v4914_v22 = vmul.f32 %v9793_v26, %v4838_v57  ;;  %v4426_v36 = vunpack.c.l.bf16 %v4397_v62  ;;  %v4427_v0 = vunpack.c.h.bf16 %v4397_v62  ;;  %v3856_v29 = vadd.f32 %v3855_v2, %v3798_v42 }
 0x500   : > { %v6419_v54 = vpop.eup %6418  ;;  %v4915_v16 = vmul.f32 %v9794_v40, %v4839_v61  ;;  %v5057_v48 = vadd.f32 %v5014_v53, %v5013_v59  ;;  %v3741_v51 = vpop.f32.mrf.mxu1  ;;  %v4555_v17 = vadd.f32 0.5, %v4517_v46  ;;  %v4556_v39 = vadd.f32 0.5, %v4518_v55 }
 0x501   : > { %v9795_v19 = vunpack.c.h.bf16 %v9089_v14  ;;  %v4464_v56 = vmul.f32 0.5, %v4426_v36  ;;  %v4465_v41 = vmul.f32 0.5, %v4427_v0  ;;  %v3912_v27 = vpack.c.bf16 %v3856_v29, %v3740_v58  ;;  %v3799_v28 = vpop.f32.mrf.mxu2 }
 0x502   : > { %v4889_v47 = vunpack.c.h.bf16 %v9337_v25  ;;  %5058 = vadd.xlane.f32.xlu0 %v5057_v48  ;;  %v3742_v6 = vadd.f32 %v3741_v51, %v3684_v8  ;;  %v4945_v38 = vpack.c.bf16 %v4915_v16, %v4914_v22  ;;  %v3800_v31 = vadd.f32 %v3799_v28, %v9145_v30 }
 0x503   : > { %6424 = vtanh.f32 %v9795_v19  ;;  %v4585_v32 = vpack.c.bf16 %v4556_v39, %v4555_v17  ;;  %v6421_v42 = vpop.eup %6420  ;;  %v9369_v15 = vpack.c.bf16 %v4465_v41, %v4464_v56  ;;  %v4335_v43 = vunpack.c.l.bf16 %v3912_v27  ;;  %v3686_v24 = vpop.f32.mrf.mxu0 }
 0x504   : > { %v4336_v21 = vunpack.c.h.bf16 %v3912_v27  ;;  %v4519_v14 = vunpack.c.l.bf16 %v9354_v18  ;;  %v6423_v11 = vpop.eup %6422  ;;  %v4971_v46 = vunpack.c.l.bf16 %v4945_v38  ;;  %v4972_v58 = vunpack.c.h.bf16 %v4945_v38 }
 0x505   : > { %v3687_v23 = vadd.f32 %v3686_v24, %v9143_v63  ;;  %v4840_v7 = vunpack.c.l.bf16 %v4585_v32  ;;  %v4398_v33 = vpack.c.bf16 %v6423_v11, %v6421_v42  ;;  %6426 = vtanh.f32 %v4335_v43 }
 0x506   : > { %v4841_v8 = vunpack.c.h.bf16 %v4585_v32  ;;  %v4520_v57 = vunpack.c.h.bf16 %v9354_v18  ;;  %6428 = vtanh.f32 %v4336_v21  ;;  %v5015_v61 = vmul.f32 %v9243_v44, %v4971_v46  ;;  %v3857_v59 = vpop.f32.mrf.mxu3 }
 0x507   : > { %v5016_v55 = vmul.f32 %v9247_v1, %v4972_v58  ;;  %v9796_v53 = vunpack.c.l.bf16 %v9223_v50  ;;  %v4428_v26 = vunpack.c.l.bf16 %v4398_v33  ;;  %v4429_v22 = vunpack.c.h.bf16 %v4398_v33 }
 0x508   : > { %v3858_v36 = vadd.f32 %v3857_v59, %v3800_v31  ;;  %v9797_v0 = vunpack.c.h.bf16 %v9223_v50  ;;  %v3744_v16 = vpop.f32.mrf.mxu1  ;;  %v4557_v48 = vadd.f32 0.5, %v4519_v14  ;;  %v4558_v18 = vadd.f32 0.5, %v4520_v57 }
 0x509   : > { %v6425_v62 = vpop.eup %6424  ;;  %v4916_v2 = vmul.f32 %v9796_v53, %v4840_v7  ;;  %v5060_v40 = vadd.f32 %v5016_v55, %v5015_v61  ;;  %v4759_v51 = vunpack.c.l.bf16 %v9106_v49  ;;  %v4466_v17 = vmul.f32 0.5, %v4428_v26  ;;  %v3802_v56 = vpop.f32.mrf.mxu2 }
 0x50a   : > { %v4917_v29 = vmul.f32 %v9797_v0, %v4841_v8  ;;  %v4467_v39 = vmul.f32 0.5, %v4429_v22  ;;  %v3915_v19 = vpack.c.bf16 %v3858_v36, %v3742_v6  ;;  %v9381_v41 = vpack.c.bf16 %v6425_v62, %v6419_v54 }
 0x50b   : > { %5061 = vadd.xlane.f32.xlu1 %v5060_v40  ;;  %v3745_v27 = vadd.f32 %v3744_v16, %v3687_v23  ;;  %v3803_v38 = vadd.f32 %v3802_v56, %v9145_v30  ;;  %v4586_v31 = vpack.c.bf16 %v4558_v18, %v4557_v48  ;;  %v6427_v50 = vpop.eup %6426  ;;  %v3688_v21 = vpop.f32.mrf.mxu0  ;;  %v4521_v24 = vunpack.c.l.bf16 %v9369_v15 }
 0x50c   : > { %v4946_v28 = vpack.c.bf16 %v4917_v29, %v4916_v2  ;;  %v9384_v32 = vpack.c.bf16 %v4467_v39, %v4466_v17  ;;  %v4337_v42 = vunpack.c.l.bf16 %v3915_v19  ;;  %v4338_v43 = vunpack.c.h.bf16 %v3915_v19  ;;  %v6429_v14 = vpop.eup %6428 }
 0x50d   : > { %v3689_v54 = vadd.f32 %v3688_v21, %v9143_v63  ;;  %v4842_v46 = vunpack.c.l.bf16 %v4586_v31  ;;  %v4399_v58 = vpack.c.bf16 %v6429_v14, %v6427_v50  ;;  %v4843_v23 = vunpack.c.h.bf16 %v4586_v31 }
 0x50e   : > { %v4973_v11 = vunpack.c.l.bf16 %v4946_v28  ;;  %v4974_v6 = vunpack.c.h.bf16 %v4946_v28  ;;  %6430 = vtanh.f32 %v4337_v42  ;;  %v4522_v7 = vunpack.c.h.bf16 %v9369_v15  ;;  %v3860_v57 = vpop.f32.mrf.mxu3 }
 0x50f   : > { %6432 = vtanh.f32 %v4338_v43  ;;  %v9798_v62 = vunpack.c.l.bf16 %v9238_v12  ;;  %v4430_v55 = vunpack.c.l.bf16 %v4399_v58  ;;  %v4431_v59 = vunpack.c.h.bf16 %v4399_v58 }
 0x510   : > { %v5017_v33 = vmul.f32 %v9243_v44, %v4973_v11  ;;  %v5018_v8 = vmul.f32 %v9247_v1, %v4974_v6  ;;  %v3861_v53 = vadd.f32 %v3860_v57, %v3803_v38  ;;  %v9799_v2 = vunpack.c.h.bf16 %v9238_v12  ;;  %v3746_v36 = vpop.f32.mrf.mxu1 }
 0x511   : > { %v4918_v61 = vmul.f32 %v9798_v62, %v4842_v46  ;;  %v4559_v0 = vadd.f32 0.5, %v4521_v24  ;;  %v4560_v29 = vadd.f32 0.5, %v4522_v7  ;;  %v4890_v15 = vunpack.c.l.bf16 %v9381_v41  ;;  %v3804_v17 = vpop.f32.mrf.mxu2 }
 0x512   : > { %v4919_v26 = vmul.f32 %v9799_v2, %v4843_v23  ;;  %v5063_v22 = vadd.f32 %v5018_v8, %v5017_v33  ;;  %v4468_v40 = vmul.f32 0.5, %v4430_v55  ;;  %v4469_v16 = vmul.f32 0.5, %v4431_v59 }
 0x513   : > { %v3918_v48 = vpack.c.bf16 %v3861_v53, %v3745_v27  ;;  %v3747_v18 = vadd.f32 %v3746_v36, %v3689_v54  ;;  %v3805_v19 = vadd.f32 %v3804_v17, %v9145_v30  ;;  %v4587_v56 = vpack.c.bf16 %v4560_v29, %v4559_v0  ;;  %v3691_v42 = vpop.f32.mrf.mxu0 }
 0x514   : > { %5064 = vadd.xlane.f32.xlu2 %v5063_v22  ;;  %v4947_v39 = vpack.c.bf16 %v4919_v26, %v4918_v61  ;;  %v4760_v28 = vunpack.c.h.bf16 %v9106_v49  ;;  %v6431_v12 = vpop.eup %6430  ;;  %v9398_v38 = vpack.c.bf16 %v4469_v16, %v4468_v40  ;;  %v4523_v43 = vunpack.c.l.bf16 %v9384_v32 }
 0x515   : > { %v4339_v31 = vunpack.c.l.bf16 %v3918_v48  ;;  %v4340_v50 = vunpack.c.h.bf16 %v3918_v48  ;;  %v6433_v21 = vpop.eup %6432  ;;  %v3692_v14 = vadd.f32 %v3691_v42, %v9143_v63  ;;  %v4844_v11 = vunpack.c.l.bf16 %v4587_v56 }
 0x516   : > { %v4975_v24 = vunpack.c.l.bf16 %v4947_v39  ;;  %v4976_v27 = vunpack.c.h.bf16 %v4947_v39  ;;  %v4400_v6 = vpack.c.bf16 %v6433_v21, %v6431_v12  ;;  %v4845_v54 = vunpack.c.h.bf16 %v4587_v56  ;;  %v3862_v7 = vpop.f32.mrf.mxu3 }
 0x517   : > { %6434 = vtanh.f32 %v4339_v31  ;;  %v4524_v46 = vunpack.c.h.bf16 %v9384_v32  ;;  %v4920_v33 = vmul.f32 %v4882_v60, %v4844_v11  ;;  %v3863_v62 = vadd.f32 %v3862_v7, %v3805_v19 }
 0x518   : > { %6436 = vtanh.f32 %v4340_v50  ;;  %v5019_v58 = vmul.f32 %v9243_v44, %v4975_v24  ;;  %v5020_v23 = vmul.f32 %v9247_v1, %v4976_v27  ;;  %v4432_v8 = vunpack.c.l.bf16 %v4400_v6  ;;  %v3749_v59 = vpop.f32.mrf.mxu1 }
 0x519   : > { %v4433_v57 = vunpack.c.h.bf16 %v4400_v6  ;;  %v4921_v61 = vmul.f32 %v4883_v35, %v4845_v54  ;;  %v4561_v53 = vadd.f32 0.5, %v4523_v43  ;;  %v4562_v2 = vadd.f32 0.5, %v4524_v46  ;;  %v3807_v0 = vpop.f32.mrf.mxu2 }
 0x51a   : > { %v5066_v55 = vadd.f32 %v5020_v23, %v5019_v58  ;;  %v4891_v32 = vunpack.c.h.bf16 %v9381_v41  ;;  %v4470_v26 = vmul.f32 0.5, %v4432_v8  ;;  %v3921_v36 = vpack.c.bf16 %v3863_v62, %v3747_v18 }
 0x51b   : > { %v4471_v22 = vmul.f32 0.5, %v4433_v57  ;;  %6438 = vtanh.f32 %v4759_v51  ;;  %v3750_v60 = vadd.f32 %v3749_v59, %v3692_v14  ;;  %v4948_v29 = vpack.c.bf16 %v4921_v61, %v4920_v33  ;;  %v3693_v17 = vpop.f32.mrf.mxu0 }
 0x51c   : > { %5067 = vadd.xlane.f32.xlu0 %v5066_v55  ;;  %v4588_v40 = vpack.c.bf16 %v4562_v2, %v4561_v53  ;;  %6440 = vtanh.f32 %v4760_v28  ;;  %v4341_v35 = vunpack.c.l.bf16 %v3921_v36  ;;  %v4342_v16 = vunpack.c.h.bf16 %v3921_v36 }
 0x51d   : > { %v6435_v3 = vpop.eup %6434  ;;  %v3808_v48 = vadd.f32 %v3807_v0, %v9145_v30  ;;  %v4525_v39 = vunpack.c.l.bf16 %v9398_v38  ;;  %v4977_v56 = vunpack.c.l.bf16 %v4948_v29  ;;  %v4978_v18 = vunpack.c.h.bf16 %v4948_v29 }
 0x51e   : > { %v6437_v19 = vpop.eup %6436  ;;  %v3694_v12 = vadd.f32 %v3693_v17, %v9143_v63  ;;  %v4846_v49 = vunpack.c.l.bf16 %v4588_v40  ;;  %6442 = vtanh.f32 %v4341_v35  ;;  %v4847_v31 = vunpack.c.h.bf16 %v4588_v40  ;;  %v3865_v43 = vpop.f32.mrf.mxu3 }
 0x51f   : > { %v4401_v51 = vpack.c.bf16 %v6437_v19, %v6435_v3  ;;  %v4526_v50 = vunpack.c.h.bf16 %v9398_v38  ;;  %6444 = vtanh.f32 %v4342_v16  ;;  %v5021_v28 = vmul.f32 %v9243_v44, %v4977_v56 }
 0x520   : > { %v5022_v42 = vmul.f32 %v9247_v1, %v4978_v18  ;;  %v4922_v21 = vmul.f32 %v4884_v20, %v4846_v49  ;;  %v3866_v11 = vadd.f32 %v3865_v43, %v3808_v48  ;;  %v4923_v6 = vmul.f32 %v4885_v4, %v4847_v31  ;;  %v3751_v38 = vpop.f32.mrf.mxu1 }
 0x521   : > { %v6439_v24 = vpop.eup %6438  ;;  %v4434_v27 = vunpack.c.l.bf16 %v4401_v51  ;;  %v4435_v14 = vunpack.c.h.bf16 %v4401_v51  ;;  %v4495_v46 = vpack.c.bf16 %v4471_v22, %v4470_v26  ;;  %v4563_v23 = vadd.f32 0.5, %v4525_v39  ;;  %v3809_v62 = vpop.f32.mrf.mxu2 }
 0x522   : > { %v6441_v54 = vpop.eup %6440  ;;  %v5069_v58 = vadd.f32 %v5022_v42, %v5021_v28  ;;  %v4564_v7 = vadd.f32 0.5, %v4526_v50  ;;  %v3924_v57 = vpack.c.bf16 %v3866_v11, %v3750_v60  ;;  %v9800_v61 = vunpack.c.l.bf16 %v9131_v9 }
 0x523   : > { %v4472_v33 = vmul.f32 0.5, %v4434_v27  ;;  %v4473_v8 = vmul.f32 0.5, %v4435_v14  ;;  %v3752_v20 = vadd.f32 %v3751_v38, %v3694_v12  ;;  %v4949_v55 = vpack.c.bf16 %v4923_v6, %v4922_v21  ;;  %v3696_v22 = vpop.f32.mrf.mxu0 }
 0x524   : > { %6446 = vtanh.f32 %v9800_v61  ;;  %5070 = vadd.xlane.f32.xlu1 %v5069_v58  ;;  %v3810_v59 = vadd.f32 %v3809_v62, %v9145_v30  ;;  %v4589_v10 = vpack.c.bf16 %v4564_v7, %v4563_v23  ;;  %v6443_v4 = vpop.eup %6442  ;;  %v4343_v2 = vunpack.c.l.bf16 %v3924_v57 }
 0x525   : > { %v4496_v53 = vpack.c.bf16 %v4473_v8, %v4472_v33  ;;  %v4344_v26 = vunpack.c.h.bf16 %v3924_v57  ;;  %v9425_v36 = vpack.c.bf16 %v6441_v54, %v6439_v24  ;;  %v6445_v0 = vpop.eup %6444  ;;  %v4979_v29 = vunpack.c.l.bf16 %v4949_v55 }
 0x526   : > { %v4980_v60 = vunpack.c.h.bf16 %v4949_v55  ;;  %v4848_v40 = vunpack.c.l.bf16 %v4589_v10  ;;  %v4527_v3 = vunpack.c.l.bf16 %v4495_v46  ;;  %v4402_v35 = vpack.c.bf16 %v6445_v0, %v6443_v4  ;;  %v3867_v19 = vpop.f32.mrf.mxu3 }
 0x527   : > { %6448 = vtanh.f32 %v4343_v2  ;;  %v4849_v16 = vunpack.c.h.bf16 %v4589_v10  ;;  %v4528_v48 = vunpack.c.h.bf16 %v4495_v46  ;;  %v5023_v17 = vmul.f32 %v9243_v44, %v4979_v29 }
 0x528   : > { %6450 = vtanh.f32 %v4344_v26  ;;  %v5024_v39 = vmul.f32 %v9247_v1, %v4980_v60  ;;  %v4924_v56 = vmul.f32 %v4886_v34, %v4848_v40  ;;  %v4436_v12 = vunpack.c.l.bf16 %v4402_v35  ;;  %v3754_v28 = vpop.f32.mrf.mxu1 }
 0x529   : > { %v4437_v49 = vunpack.c.h.bf16 %v4402_v35  ;;  %v3868_v51 = vadd.f32 %v3867_v19, %v3810_v59  ;;  %v4925_v31 = vmul.f32 %v4887_v13, %v4849_v16  ;;  %v4565_v42 = vadd.f32 0.5, %v4527_v3  ;;  %v3812_v6 = vpop.f32.mrf.mxu2 }
 0x52a   : > { %v9431_v18 = vpop.eup %6446  ;;  %v5072_v50 = vadd.f32 %v5024_v39, %v5023_v17  ;;  %v4566_v43 = vadd.f32 0.5, %v4528_v48  ;;  %v4529_v21 = vunpack.c.l.bf16 %v4496_v53  ;;  %v4474_v24 = vmul.f32 0.5, %v4436_v12 }
 0x52b   : > { %v4475_v27 = vmul.f32 0.5, %v4437_v49  ;;  %v3927_v14 = vpack.c.bf16 %v3868_v51, %v3752_v20  ;;  %v3697_v11 = vadd.f32 %v3696_v22, %v9143_v63  ;;  %v4950_v34 = vpack.c.bf16 %v4925_v31, %v4924_v56  ;;  %v3698_v7 = vpop.f32.mrf.mxu0 }
 0x52c   : > { %5073 = vadd.xlane.f32.xlu2 %v5072_v50  ;;  %v3813_v54 = vadd.f32 %v3812_v6, %v9145_v30  ;;  %v4590_v46 = vpack.c.bf16 %v4566_v43, %v4565_v42  ;;  %v4530_v58 = vunpack.c.h.bf16 %v4496_v53  ;;  %v4567_v33 = vadd.f32 0.5, %v4529_v21 }
 0x52d   : > { %v6449_v38 = vpop.eup %6448  ;;  %v4497_v37 = vpack.c.bf16 %v4475_v27, %v4474_v24  ;;  %v4345_v13 = vunpack.c.l.bf16 %v3927_v14  ;;  %v4346_v23 = vunpack.c.h.bf16 %v3927_v14  ;;  %v4981_v57 = vunpack.c.l.bf16 %v4950_v34 }
 0x52e   : > { %v6451_v8 = vpop.eup %6450  ;;  %v4982_v62 = vunpack.c.h.bf16 %v4950_v34  ;;  %v4850_v61 = vunpack.c.l.bf16 %v4590_v46  ;;  %v4851_v20 = vunpack.c.h.bf16 %v4590_v46  ;;  %v3755_v63 = vadd.f32 %v3754_v28, %v3697_v11  ;;  %v3870_v4 = vpop.f32.mrf.mxu3 }
 0x52f   : > { %v4403_v55 = vpack.c.bf16 %v6451_v8, %v6449_v38  ;;  %6452 = vtanh.f32 %v4345_v13  ;;  %v4568_v59 = vadd.f32 0.5, %v4530_v58  ;;  %v5025_v30 = vmul.f32 %v9243_v44, %v4981_v57 }
 0x530   : > { %6454 = vtanh.f32 %v4346_v23  ;;  %v5026_v10 = vmul.f32 %v9247_v1, %v4982_v62  ;;  %v4926_v53 = vmul.f32 %v4888_v5, %v4850_v61  ;;  %v3871_v22 = vadd.f32 %v3870_v4, %v3813_v54  ;;  %v3756_v60 = vpop.f32.mrf.mxu1 }
 0x531   : > { %v4438_v2 = vunpack.c.l.bf16 %v4403_v55  ;;  %v4439_v26 = vunpack.c.h.bf16 %v4403_v55  ;;  %v4927_v0 = vmul.f32 %v4889_v47, %v4851_v20  ;;  %v4591_v40 = vpack.c.bf16 %v4568_v59, %v4567_v33  ;;  %v3814_v19 = vpop.f32.mrf.mxu2 }
 0x532   : > { %v5075_v29 = vadd.f32 %v5026_v10, %v5025_v30  ;;  %v4531_v3 = vunpack.c.l.bf16 %v4497_v37  ;;  %v4532_v35 = vunpack.c.h.bf16 %v4497_v37  ;;  %v3930_v17 = vpack.c.bf16 %v3871_v22, %v3755_v63 }
 0x533   : > { %v4476_v16 = vmul.f32 0.5, %v4438_v2  ;;  %v4477_v48 = vmul.f32 0.5, %v4439_v26  ;;  %v4951_v39 = vpack.c.bf16 %v4927_v0, %v4926_v53  ;;  %v4852_v56 = vunpack.c.l.bf16 %v4591_v40 }
 0x534   : > { %5076 = vadd.xlane.f32.xlu0 %v5075_v29  ;;  %v4853_v12 = vunpack.c.h.bf16 %v4591_v40  ;;  %v4569_v5 = vadd.f32 0.5, %v4531_v3  ;;  %v4570_v49 = vadd.f32 0.5, %v4532_v35  ;;  %v4347_v50 = vunpack.c.l.bf16 %v3930_v17  ;;  %v9460_v40 = vld [vmem:[#allocation2] ss:$0 sm:$0xff] }
 0x535   : > { %v6453_v51 = vpop.eup %6452  ;;  %v4498_v31 = vpack.c.bf16 %v4477_v48, %v4476_v16  ;;  %v4348_v25 = vunpack.c.h.bf16 %v3930_v17  ;;  %v4983_v47 = vunpack.c.l.bf16 %v4951_v39  ;;  %v4984_v42 = vunpack.c.h.bf16 %v4951_v39 }
 0x536   : > { %v6455_v28 = vpop.eup %6454  ;;  %v4928_v43 = vmul.f32 %v4890_v15, %v4852_v56  ;;  %v4929_v21 = vmul.f32 %v4891_v32, %v4853_v12  ;;  %v4592_v24 = vpack.c.bf16 %v4570_v49, %v4569_v5  ;;  %6456 = vtanh.f32 %v4347_v50  ;;  %v3872_v34 = vpop.f32.mrf.mxu3 }
 0x537   : > { %v4404_v27 = vpack.c.bf16 %v6455_v28, %v6453_v51  ;;  %v5027_v14 = vmul.f32 %v9243_v44, %v4983_v47  ;;  %v4892_v11 = vunpack.c.l.bf16 %v9425_v36  ;;  %6458 = vtanh.f32 %v4348_v25 }
 0x538   : > { %v5028_v6 = vmul.f32 %v9247_v1, %v4984_v42  ;;  %v4952_v54 = vpack.c.bf16 %v4929_v21, %v4928_v43  ;;  %v4854_v46 = vunpack.c.l.bf16 %v4592_v24  ;;  %v4855_v37 = vunpack.c.h.bf16 %v4592_v24 }
 0x539   : > { %v4440_v58 = vunpack.c.l.bf16 %v4404_v27  ;;  %v4441_v38 = vunpack.c.h.bf16 %v4404_v27  ;;  %v4893_v15 = vunpack.c.h.bf16 %v9425_v36  ;;  %v4533_v57 = vunpack.c.l.bf16 %v4498_v31 }
 0x53a   : > { %v5078_v41 = vadd.f32 %v5028_v6, %v5027_v14  ;;  %v4985_v32 = vunpack.c.l.bf16 %v4952_v54  ;;  %v4986_v13 = vunpack.c.h.bf16 %v4952_v54  ;;  %v4930_v23 = vmul.f32 %v4892_v11, %v4854_v46 }
 0x53b   : > { %v4478_v7 = vmul.f32 0.5, %v4440_v58  ;;  %v4479_v33 = vmul.f32 0.5, %v4441_v38  ;;  %v4931_v8 = vmul.f32 %v4893_v15, %v4855_v37  ;;  %v4534_v20 = vunpack.c.h.bf16 %v4498_v31 }
 0x53c   : > { %5079 = vadd.xlane.f32.xlu1 %v5078_v41  ;;  %v5029_v62 = vmul.f32 %v9243_v44, %v4985_v32  ;;  %v5030_v61 = vmul.f32 %v9247_v1, %v4986_v13  ;;  %v9801_v55 = vunpack.c.h.bf16 %v9131_v9  ;;  %v6457_v63 = vpop.eup %6456  ;;  %v4571_v30 = vadd.f32 0.5, %v4533_v57 }
 0x53d   : > { %v4499_v59 = vpack.c.bf16 %v4479_v33, %v4478_v7  ;;  %v4953_v36 = vpack.c.bf16 %v4931_v8, %v4930_v23  ;;  %v9802_v10 = vunpack.c.l.bf16 %v9149_v45  ;;  %v6459_v4 = vpop.eup %6458  ;;  %v4766_v53 = vunpack.c.h.bf16 %v9168_v52 }
 0x53e   : > { %6460 = vtanh.f32 %v9801_v55  ;;  %v5081_v2 = vadd.f32 %v5030_v61, %v5029_v62  ;;  %v4572_v26 = vadd.f32 0.5, %v4534_v20  ;;  %v9803_v22 = vunpack.c.h.bf16 %v9149_v45 }
 0x53f   : > { %6462 = vtanh.f32 %v9802_v10  ;;  %v4405_v0 = vpack.c.bf16 %v6459_v4, %v6457_v63  ;;  %v4987_v29 = vunpack.c.l.bf16 %v4953_v36  ;;  %v4988_v60 = vunpack.c.h.bf16 %v4953_v36 }
 0x540   : > { %6464 = vtanh.f32 %v9803_v22  ;;  %v4535_v9 = vunpack.c.l.bf16 %v4499_v59  ;;  %5082 = vadd.xlane.f32.xlu2 %v5081_v2  ;;  %v4593_v3 = vpack.c.bf16 %v4572_v26, %v4571_v30  ;;  %v4536_v35 = vunpack.c.h.bf16 %v4499_v59 }
 0x541   : > { %v9804_v16 = vunpack.c.l.bf16 %v9168_v52  ;;  %v4442_v48 = vunpack.c.l.bf16 %v4405_v0  ;;  %v4443_v17 = vunpack.c.h.bf16 %v4405_v0  ;;  %v5031_v39 = vmul.f32 %v9243_v44, %v4987_v29  ;;  %v5041_v52 = vpop.xlane.xlu1 %5040 }
 0x542   : > { %v5032_v45 = vmul.f32 %v9247_v1, %v4988_v60  ;;  %v4856_v56 = vunpack.c.l.bf16 %v4593_v3  ;;  %v4857_v12 = vunpack.c.h.bf16 %v4593_v3  ;;  %v4573_v5 = vadd.f32 0.5, %v4535_v9 }
 0x543   : > { %6466 = vtanh.f32 %v9804_v16  ;;  %v4574_v49 = vadd.f32 0.5, %v4536_v35  ;;  %v4480_v31 = vmul.f32 0.5, %v4442_v48  ;;  %v4481_v50 = vmul.f32 0.5, %v4443_v17 }
 0x544   : > { %v6461_v19 = vpop.eup %6460  ;;  %v5084_v25 = vadd.f32 %v5032_v45, %v5031_v39  ;;  %v5100_v42 = vadd.f32 %v9460_v40, %v5041_v52  ;;  %6468 = vtanh.f32 %v4766_v53 }
 0x545   : > { %v6463_v51 = vpop.eup %6462  ;;  %v4821_v47 = vpack.c.bf16 %v6461_v19, %v9431_v18  ;;  %v4594_v43 = vpack.c.bf16 %v4574_v49, %v4573_v5  ;;  %v4500_v21 = vpack.c.bf16 %v4481_v50, %v4480_v31 }
 0x546   : > { %v6465_v28 = vpop.eup %6464  ;;  %5085 = vadd.xlane.f32.xlu0 %v5084_v25  ;;  %5120 = vst.msk [vmem:[%s9470_s30] sm:$0xff] %vm5119_vm5, %v5100_v42 }
 0x547   : > { %v4894_v24 = vunpack.c.l.bf16 %v4821_v47  ;;  %v4895_v27 = vunpack.c.h.bf16 %v4821_v47  ;;  %v4822_v14 = vpack.c.bf16 %v6465_v28, %v6463_v51  ;;  %v4858_v6 = vunpack.c.l.bf16 %v4594_v43 }
 0x548   : > { %v4859_v34 = vunpack.c.h.bf16 %v4594_v43  ;;  %v4537_v18 = vunpack.c.l.bf16 %v4500_v21  ;;  %v4538_v37 = vunpack.c.h.bf16 %v4500_v21 }
 0x549   : > { %v6467_v11 = vpop.eup %6466  ;;  %v4932_v54 = vmul.f32 %v4894_v24, %v4856_v56  ;;  %v4933_v46 = vmul.f32 %v4895_v27, %v4857_v12  ;;  %v4896_v58 = vunpack.c.l.bf16 %v4822_v14  ;;  %v4897_v38 = vunpack.c.h.bf16 %v4822_v14  ;;  %v5044_v20 = vpop.xlane.xlu2 %5043 }
 0x54a   : > { %v6469_v13 = vpop.eup %6468  ;;  %v4575_v23 = vadd.f32 0.5, %v4537_v18  ;;  %v4576_v7 = vadd.f32 0.5, %v4538_v37  ;;  %v5101_v30 = vadd.f32 %v9460_v40, %v5044_v20 }
 0x54b   : > { %v4954_v15 = vpack.c.bf16 %v4933_v46, %v4932_v54  ;;  %v4934_v41 = vmul.f32 %v4896_v58, %v4858_v6  ;;  %v4935_v32 = vmul.f32 %v4897_v38, %v4859_v34  ;;  %v4823_v62 = vpack.c.bf16 %v6469_v13, %v6467_v11 }
 0x54c   : > { %v4595_v61 = vpack.c.bf16 %v4576_v7, %v4575_v23  ;;  %5121 = vst.msk [vmem:[%s9470_s30 + $0x8] sm:$0xff] %vm5119_vm5, %v5101_v30 }
 0x54d   : > { %v4989_v33 = vunpack.c.l.bf16 %v4954_v15  ;;  %v4990_v8 = vunpack.c.h.bf16 %v4954_v15  ;;  %v4955_v57 = vpack.c.bf16 %v4935_v32, %v4934_v41  ;;  %v4898_v53 = vunpack.c.l.bf16 %v4823_v62 }
 0x54e   : > { %v4860_v10 = vunpack.c.l.bf16 %v4595_v61  ;;  %v4861_v4 = vunpack.c.h.bf16 %v4595_v61  ;;  %v4899_v0 = vunpack.c.h.bf16 %v4823_v62 }
 0x54f   : > { %v5033_v55 = vmul.f32 %v9243_v44, %v4989_v33  ;;  %v5034_v63 = vmul.f32 %v9247_v1, %v4990_v8  ;;  %v4991_v59 = vunpack.c.l.bf16 %v4955_v57  ;;  %v4992_v36 = vunpack.c.h.bf16 %v4955_v57 }
 0x550   : > { %v4936_v29 = vmul.f32 %v4898_v53, %v4860_v10  ;;  %v4937_v9 = vmul.f32 %v4899_v0, %v4861_v4 }
 0x551   : > { %v5087_v2 = vadd.f32 %v5034_v63, %v5033_v55  ;;  %v5035_v26 = vmul.f32 %v9243_v44, %v4991_v59  ;;  %v5036_v22 = vmul.f32 %v9247_v1, %v4992_v36 }
 0x552   : > { %v4956_v3 = vpack.c.bf16 %v4937_v9, %v4936_v29 }
 0x553   : > { %5088 = vadd.xlane.f32.xlu1 %v5087_v2  ;;  %v5090_v60 = vadd.f32 %v5036_v22, %v5035_v26  ;;  %v5047_v48 = vpop.xlane.xlu0 %5046 }
 0x554   : > { %v4993_v35 = vunpack.c.l.bf16 %v4956_v3  ;;  %v4994_v16 = vunpack.c.h.bf16 %v4956_v3  ;;  %v5102_v45 = vadd.f32 %v9460_v40, %v5047_v48 }
 0x555   : > { %5091 = vadd.xlane.f32.xlu2 %v5090_v60 }
 0x556   : > { %v5037_v17 = vmul.f32 %v9243_v44, %v4993_v35  ;;  %v5038_v39 = vmul.f32 %v9247_v1, %v4994_v16  ;;  %5122 = vst.msk [vmem:[%s9470_s30 + $0x10] sm:$0xff] %vm5119_vm5, %v5102_v45 }
 0x558   : > { %v5093_v19 = vadd.f32 %v5038_v39, %v5037_v17 }
 0x55a   : > { %5094 = vadd.xlane.f32.xlu0 %v5093_v19 }
 0x55b   : > { %v5050_v56 = vpop.xlane.xlu2 %5049 }
 0x55c   : > { %v5103_v12 = vadd.f32 %v9460_v40, %v5050_v56 }
 0x55e   : > { %5123 = vst.msk [vmem:[%s9470_s30 + $0x18] sm:$0xff] %vm5119_vm5, %v5103_v12 }
 0x563   : > { %v5053_v5 = vpop.xlane.xlu1 %5052 }
 0x564   : > { %v5104_v49 = vadd.f32 %v9460_v40, %v5053_v5 }
 0x566   : > { %5124 = vst.msk [vmem:[%s9470_s30 + $0x20] sm:$0xff] %vm5119_vm5, %v5104_v49 }
 0x56b   : > { %v5056_v44 = vpop.xlane.xlu2 %5055 }
 0x56c   : > { %v5105_v1 = vadd.f32 %v9460_v40, %v5056_v44 }
 0x56e   : > { %5125 = vst.msk [vmem:[%s9470_s30 + $0x28] sm:$0xff] %vm5119_vm5, %v5105_v1 }
 0x575   : > { %v5059_v51 = vpop.xlane.xlu0 %5058 }
 0x576   : > { %v5106_v31 = vadd.f32 %v9460_v40, %v5059_v51 }
 0x578   : > { %5126 = vst.msk [vmem:[%s9470_s30 + $0x30] sm:$0xff] %vm5119_vm5, %v5106_v31 }
 0x57e   : > { %v5062_v50 = vpop.xlane.xlu1 %5061 }
 0x57f   : > { %v5107_v52 = vadd.f32 %v9460_v40, %v5062_v50 }
 0x581   : > { %5127 = vst.msk [vmem:[%s9470_s30 + $0x38] sm:$0xff] %vm5119_vm5, %v5107_v52 }
 0x587   : > { %v5065_v25 = vpop.xlane.xlu2 %5064 }
 0x588   : > { %v5108_v47 = vadd.f32 %v9460_v40, %v5065_v25 }
 0x58a   : > { %5128 = vst.msk [vmem:[%s9470_s30 + $0x40] sm:$0xff] %vm5119_vm5, %v5108_v47 }
 0x58f   : > { %v5068_v28 = vpop.xlane.xlu0 %5067 }
 0x590   : > { %v5109_v42 = vadd.f32 %v9460_v40, %v5068_v28 }
 0x592   : > { %5129 = vst.msk [vmem:[%s9470_s30 + $0x48] sm:$0xff] %vm5119_vm5, %v5109_v42 }
 0x597   : > { %v5071_v43 = vpop.xlane.xlu1 %5070 }
 0x598   : > { %v5110_v21 = vadd.f32 %v9460_v40, %v5071_v43 }
 0x59a   : > { %5130 = vst.msk [vmem:[%s9470_s30 + $0x50] sm:$0xff] %vm5119_vm5, %v5110_v21 }
 0x59f   : > { %v5074_v24 = vpop.xlane.xlu2 %5073 }
 0x5a0   : > { %v5111_v27 = vadd.f32 %v9460_v40, %v5074_v24 }
 0x5a2   : > { %5131 = vst.msk [vmem:[%s9470_s30 + $0x58] sm:$0xff] %vm5119_vm5, %v5111_v27 }
 0x5a7   : > { %v5077_v14 = vpop.xlane.xlu0 %5076 }
 0x5a8   : > { %v5112_v11 = vadd.f32 %v9460_v40, %v5077_v14 }
 0x5aa   : > { %5132 = vst.msk [vmem:[%s9470_s30 + $0x60] sm:$0xff] %vm5119_vm5, %v5112_v11 }
 0x5af   : > { %v5080_v6 = vpop.xlane.xlu1 %5079 }
 0x5b0   : > { %v5113_v34 = vadd.f32 %v9460_v40, %v5080_v6 }
 0x5b2   : > { %5133 = vst.msk [vmem:[%s9470_s30 + $0x68] sm:$0xff] %vm5119_vm5, %v5113_v34 }
 0x5b3   : > { %v5083_v54 = vpop.xlane.xlu2 %5082 }
 0x5b4   : > { %v5114_v46 = vadd.f32 %v9460_v40, %v5083_v54 }
 0x5b6   : > { %5134 = vst.msk [vmem:[%s9470_s30 + $0x70] sm:$0xff] %vm5119_vm5, %v5114_v46 }
 0x5b9   : > { %v5086_v58 = vpop.xlane.xlu0 %5085 }
 0x5ba   : > { %v5115_v38 = vadd.f32 %v9460_v40, %v5086_v58 }
 0x5bc   : > { %5135 = vst.msk [vmem:[%s9470_s30 + $0x78] sm:$0xff] %vm5119_vm5, %v5115_v38 }
 0x5c6   : > { %v5089_v18 = vpop.xlane.xlu1 %5088 }
 0x5c7   : > { %v5116_v37 = vadd.f32 %v9460_v40, %v5089_v18 }
 0x5c8   : > { %v5092_v15 = vpop.xlane.xlu2 %5091 }
 0x5c9   : > { %5136 = vst.msk [vmem:[%s9470_s30 + $0x80] sm:$0xff] %vm5119_vm5, %v5116_v37  ;;  %v5117_v41 = vadd.f32 %v9460_v40, %v5092_v15 }
 0x5cb   : > { %5137 = vst.msk [vmem:[%s9470_s30 + $0x88] sm:$0xff] %vm5119_vm5, %v5117_v41 }
 0x5cd   : > { %v5095_v32 = vpop.xlane.xlu0 %5094 }
 0x5ce   : > { %v5118_v13 = vadd.f32 %v9460_v40, %v5095_v32 }
 0x5d0   : > { %5138 = vst.msk [vmem:[%s9470_s30 + $0x90] sm:$0xff] %vm5119_vm5, %v5118_v13 }
 0x5d1 PF: > { %s21_s11 = sadd.s32 1, %s6478_s11  }
 0x5d2   : > { %p18_p4 = scmp.ge.s32.totalorder %s21_s11, 4  }
 0x5d4   :  { %20 = sbr.rel (!%p18_p4) target bundleno = 3 (0x3), region = 90 }

</bundles_post_ra>
